<compile_context>
chip_gen: v5e
topology: v5e:2x2
jax: 0.10.0
libtpu: 0.0.40
codegen_flags: <defaults>
</compile_context>

<pallas_src>
import numpy as np

import jax
import jax.numpy as jnp
from jax.experimental import pallas as pl
from jax.experimental.pallas import tpu as pltpu


CIN = 4            # input channels padded 3 -> 4 so conv1 K = 32*4 = 128
C1P = 8            # channel slots for conv1/pool1 activations (6 real + 2 pad)
C2P = 16           # channel slots for conv2/pool2 activations (16 real)
NP = 128           # fc lane padding
N1P = 16 * C1P     # 128 : conv1 matmul N (14 real pooled-width slots + 2 pad)
N2P = 8 * C2P      # 128 : conv2 matmul N (5 real pooled-width slots + 3 pad)
BT = 16            # images per grid step (conv1 M = 7*BT = 112)


# ---------------- the fused Pallas kernel (BT images per grid step) ----------

def _net_kernel(x_ref, a1_ref, b1_ref, a2_ref, b2_ref,
                w1_ref, c1_ref, w2_ref, c2_ref, w3_ref, c3_ref,
                out_ref, p1e_ref, p1o_ref, p2_ref):
    f32 = jnp.float32
    bf16 = jnp.bfloat16
    bt = x_ref.shape[1] // 8           # images in this block

    def lhs1(u):
        # Contiguous [7*bt, 128] bf16 slice; row (m*bt + b) holds image-b input
        # row 4*m + u (see wrapper layout).  Sublane-aligned, no reshape needed.
        return x_ref[u % 4, (u // 4) * bt:(u // 4 + 7) * bt, :]

    # ---- conv1 + ReLU + maxpool 2x2 (running max; <= 2 f32 accs live) -------
    for q in range(2):                     # parity of the pooled output row
        m_run = None
        for s in range(2):                 # pre-pool row parity (pooled away)
            g = 2 * q + s
            for r in range(2):             # pre-pool col parity (pooled away)
                acc = None
                for i in range(5):         # conv kernel row
                    d = jnp.dot(lhs1(g + i), a1_ref[i, r],
                                preferred_element_type=f32)
                    acc = d if acc is None else acc + d
                m_run = acc if m_run is None else jnp.maximum(m_run, acc)
        pooled = jnp.maximum(m_run + b1_ref[...], 0.0)     # [7*bt, 128] f32
        dst = p1e_ref if q == 0 else p1o_ref
        dst[...] = pooled.astype(bf16)     # pool1 rows 2m+q, image-minor order

    # ---- conv2 + ReLU + maxpool 2x2 (running max) ----------------------------
    m2_run = None
    for s in range(2):
        for r in range(2):
            acc = None
            for i in range(5):
                t = s + i
                src = p1e_ref if t % 2 == 0 else p1o_ref
                chunk = src[(t // 2) * bt:(t // 2 + 5) * bt, :]   # [5*bt, 128]
                d = jnp.dot(chunk, a2_ref[i, r], preferred_element_type=f32)
                acc = d if acc is None else acc + d
            m2_run = acc if m2_run is None else jnp.maximum(m2_run, acc)
    p2_ref[...] = jnp.maximum(m2_run + b2_ref[...], 0.0).astype(bf16)

    # ---- fc1 -> fc2 -> fc3 (all widths padded to 128 lanes) ------------------
    h = c1_ref[...]                                        # [1, 128] f32
    for hh in range(5):                                    # pooled row of pool2
        h = h + jnp.dot(p2_ref[hh * bt:(hh + 1) * bt, :], w1_ref[hh],
                        preferred_element_type=f32)
    h = jnp.maximum(h, 0.0)
    h = jnp.maximum(jnp.dot(h.astype(bf16), w2_ref[...],
                            preferred_element_type=f32) + c2_ref[...], 0.0)
    out_ref[...] = (jnp.dot(h.astype(bf16), w3_ref[...],
                            preferred_element_type=f32) + c3_ref[...])
    # TODO(synk): DeepSpeed MoE branch (args.moe=True) not implemented; this is
    # the default (non-MoE) forward ending in fc3.


# ---------------- forward wrapper --------------------------------------------

def net_forward(packed, x):
    # x: [B, 3, 32, 32] NCHW (PyTorch convention), float32.
    B, C, H, W = x.shape
    assert (C, H, W) == (3, 32, 32), x.shape
    Bp = ((B + BT - 1) // BT) * BT
    G = Bp // BT

    # Tiny layout prep in XLA: NCHW -> NHWC, pad C to 4, flatten (W, C) onto
    # 128 lanes, pad the batch to a BT multiple, split rows by residue mod 4
    # and interleave images (k-major, image-minor) so every conv1 tap is a
    # contiguous sublane-aligned slice inside the kernel.
    xh = jnp.transpose(x, (0, 2, 3, 1))
    xh = jnp.pad(xh, ((0, 0), (0, 0), (0, 0), (0, CIN - 3)))
    xh = xh.reshape(B, 32, 32 * CIN)                              # [B, 32, 128]
    if Bp != B:
        xh = jnp.pad(xh, ((0, Bp - B), (0, 0), (0, 0)))
    x_res = jnp.stack([xh[:, r::4, :] for r in range(4)], axis=1)  # [Bp,4,8,128]
    x_res = x_res.reshape(G, BT, 4, 8, 32 * CIN)
    x_res = jnp.transpose(x_res, (0, 2, 3, 1, 4))                  # [G,4,8,BT,128]
    x_res = x_res.reshape(G, 4, 8 * BT, 32 * CIN).astype(jnp.bfloat16)

    def wspec(shape):
        n = len(shape)
        return pl.BlockSpec(shape, lambda g, _n=n: (0,) * _n)

    out = pl.pallas_call(
        _net_kernel,
        grid=(G,),
        in_specs=[
            pl.BlockSpec((None, 4, 8 * BT, 32 * CIN), lambda g: (g, 0, 0, 0)),
            wspec((5, 2, 32 * CIN, N1P)),   # A1  (conv1 block-Toeplitz, bf16)
            wspec((1, N1P)),                # conv1 bias tiled over pooled width
            wspec((5, 2, N1P, N2P)),        # A2  (conv2 block-Toeplitz, bf16)
            wspec((1, N2P)),                # conv2 bias tiled over pooled width
            wspec((5, N2P, NP)),            # fc1 weight split per pooled row
            wspec((1, NP)),                 # fc1 bias
            wspec((NP, NP)),                # fc2 weight
            wspec((1, NP)),                 # fc2 bias
            wspec((NP, NP)),                # fc3 weight
            wspec((1, NP)),                 # fc3 bias
        ],
        out_specs=pl.BlockSpec((BT, NP), lambda g: (g, 0)),
        out_shape=jax.ShapeDtypeStruct((Bp, NP), jnp.float32),
        scratch_shapes=[pltpu.VMEM((7 * BT, N1P), jnp.bfloat16),  # pool1 even
                        pltpu.VMEM((7 * BT, N1P), jnp.bfloat16),  # pool1 odd
                        pltpu.VMEM((5 * BT, N2P), jnp.bfloat16)], # pool2
        compiler_params=pltpu.CompilerParams(
            dimension_semantics=("parallel",)),
    )(x_res, packed["A1"], packed["b1"], packed["A2"], packed["b2"],
      packed["W1"], packed["c1"], packed["W2"], packed["c2"],
      packed["W3"], packed["c3"])
    return out[:B, :10]


# ---------------- parameter init & one-time packing ---------------------------

def init_params(key):
    # PyTorch-layout parameters, U(-1/sqrt(fan_in), 1/sqrt(fan_in)) init.
    def uniform(k, shape, fan_in):
        bound = 1.0 / float(fan_in) ** 0.5
        return jax.random.uniform(k, shape, jnp.float32, -bound, bound)

    ks = jax.random.split(key, 10)
    return {
        "conv1_w": uniform(ks[0], (6, 3, 5, 5), 3 * 5 * 5),
        "conv1_b": uniform(ks[1], (6,), 3 * 5 * 5),
        "conv2_w": uniform(ks[2], (16, 6, 5, 5), 6 * 5 * 5),
        "conv2_b": uniform(ks[3], (16,), 6 * 5 * 5),
        "fc1_w": uniform(ks[4], (120, 400), 400),
        "fc1_b": uniform(ks[5], (120,), 400),
        "fc2_w": uniform(ks[6], (84, 120), 120),
        "fc2_b": uniform(ks[7], (84,), 120),
        "fc3_w": uniform(ks[8], (10, 84), 84),
        "fc3_b": uniform(ks[9], (10,), 84),
    }


def pack_params(params):
    # One-time re-layout of the PyTorch weights into the kernel's formats.
    # Matmul weights go to bf16 (MXU feed); biases stay f32 (epilogue math).
    w1 = np.asarray(params["conv1_w"], np.float32)
    b1 = np.asarray(params["conv1_b"], np.float32)
    w2 = np.asarray(params["conv2_w"], np.float32)
    b2 = np.asarray(params["conv2_b"], np.float32)
    f1w = np.asarray(params["fc1_w"], np.float32)
    f1b = np.asarray(params["fc1_b"], np.float32)
    f2w = np.asarray(params["fc2_w"], np.float32)
    f2b = np.asarray(params["fc2_b"], np.float32)
    f3w = np.asarray(params["fc3_w"], np.float32)
    f3b = np.asarray(params["fc3_b"], np.float32)

    # conv1 block-Toeplitz: A1[i, r, w*CIN + ci, pw*C1P + co] = w1[co, ci, i, j]
    # with j = w - (2*pw + r); columns are (pooled-width pw, channel co) with
    # the width-pool parity r handled by separate matrices.  pw 14..15 padded.
    A1 = np.zeros((5, 2, 32 * CIN, N1P), np.float32)
    for i in range(5):
        for r in range(2):
            for pw in range(14):
                for j in range(5):
                    w = 2 * pw + r + j
                    A1[i, r, w * CIN:w * CIN + 3,
                       pw * C1P:pw * C1P + 6] = w1[:, :, i, j].T
    b1c = np.zeros((1, N1P), np.float32)
    for pw in range(14):
        b1c[0, pw * C1P:pw * C1P + 6] = b1

    # conv2 block-Toeplitz over the pool1 activation layout (w*C1P + c).
    A2 = np.zeros((5, 2, N1P, N2P), np.float32)
    for i in range(5):
        for r in range(2):
            for pw in range(5):
                for j in range(5):
                    w = 2 * pw + r + j
                    A2[i, r, w * C1P:w * C1P + 6,
                       pw * C2P:pw * C2P + 16] = w2[:, :, i, j].T
    b2c = np.zeros((1, N2P), np.float32)
    for pw in range(5):
        b2c[0, pw * C2P:pw * C2P + 16] = b2

    # fc1: bake PyTorch's (C, H, W) flatten order into the weight, split per
    # pooled row h (kernel sums 5 dots), pad K (80) and N (120) to 128.
    f1wr = f1w.reshape(120, 16, 5, 5)                  # [n, c, h, w]
    W1 = np.zeros((5, N2P, NP), np.float32)
    for h in range(5):
        for w in range(5):
            W1[h, w * C2P:w * C2P + 16, :120] = f1wr[:, :, h, w].T
    c1 = np.zeros((1, NP), np.float32); c1[0, :120] = f1b
    W2 = np.zeros((NP, NP), np.float32); W2[:120, :84] = f2w.T
    c2 = np.zeros((1, NP), np.float32); c2[0, :84] = f2b
    W3 = np.zeros((NP, NP), np.float32); W3[:84, :10] = f3w.T
    c3 = np.zeros((1, NP), np.float32); c3[0, :10] = f3b

    return {
        "A1": jnp.asarray(A1, jnp.bfloat16), "b1": jnp.asarray(b1c),
        "A2": jnp.asarray(A2, jnp.bfloat16), "b2": jnp.asarray(b2c),
        "W1": jnp.asarray(W1, jnp.bfloat16), "c1": jnp.asarray(c1),
        "W2": jnp.asarray(W2, jnp.bfloat16), "c2": jnp.asarray(c2),
        "W3": jnp.asarray(W3, jnp.bfloat16), "c3": jnp.asarray(c3),
    }


# ---------------- pure-JAX reference (for validation) -------------------------

def net_reference(params, x):
    dn = ("NCHW", "OIHW", "NCHW")
    y = jax.lax.conv_general_dilated(x, params["conv1_w"], (1, 1), "VALID",
                                     dimension_numbers=dn)
    y = jax.nn.relu(y + params["conv1_b"][None, :, None, None])
    y = jax.lax.reduce_window(y, -jnp.inf, jax.lax.max,
                              (1, 1, 2, 2), (1, 1, 2, 2), "VALID")
    y = jax.lax.conv_general_dilated(y, params["conv2_w"], (1, 1), "VALID",
                                     dimension_numbers=dn)
    y = jax.nn.relu(y + params["conv2_b"][None, :, None, None])
    y = jax.lax.reduce_window(y, -jnp.inf, jax.lax.max,
                              (1, 1, 2, 2), (1, 1, 2, 2), "VALID")
    y = y.reshape(y.shape[0], -1)
    y = jax.nn.relu(y @ params["fc1_w"].T + params["fc1_b"])
    y = jax.nn.relu(y @ params["fc2_w"].T + params["fc2_b"])
    return y @ params["fc3_w"].T + params["fc3_b"]


if __name__ == "__main__":
    key = jax.random.PRNGKey(0)
    pkey, xkey = jax.random.split(key)
    params = init_params(pkey)
    packed = pack_params(params)
    # Input must be 3x32x32 so the flatten hits 16*5*5 = 400 features.
    # B = 32 -> two grid steps of BT=16 images (keeps both v7x TCs busy).
    x = jax.random.normal(xkey, (32, 3, 32, 32), dtype=jnp.float32)

    fwd = jax.jit(net_forward)
    out = jax.block_until_ready(fwd(packed, x))
    assert out.shape == (32, 10), out.shape
    assert bool(jnp.all(jnp.isfinite(out)))

    ref = jax.block_until_ready(net_reference(params, x))
    # bf16 MXU feeds bound the agreement with the f32 reference to ~1e-2.
    err = float(jnp.max(jnp.abs(out - ref)))
    assert jnp.allclose(out, ref, atol=5e-2, rtol=5e-2), f"max abs diff {err}"

    print("KERNEL_OK")
</pallas_src>

<mosaic_0001>
module attributes {stable_mosaic.version = 11 : i64} {
  func.func @_net_kernel(%arg0: i32, %arg1: memref<1x4x128x128xbf16, #tpu.memory_space<vmem>>, %arg2: memref<5x2x128x128xbf16, #tpu.memory_space<vmem>>, %arg3: memref<1x128xf32, #tpu.memory_space<vmem>>, %arg4: memref<5x2x128x128xbf16, #tpu.memory_space<vmem>>, %arg5: memref<1x128xf32, #tpu.memory_space<vmem>>, %arg6: memref<5x128x128xbf16, #tpu.memory_space<vmem>>, %arg7: memref<1x128xf32, #tpu.memory_space<vmem>>, %arg8: memref<128x128xbf16, #tpu.memory_space<vmem>>, %arg9: memref<1x128xf32, #tpu.memory_space<vmem>>, %arg10: memref<128x128xbf16, #tpu.memory_space<vmem>>, %arg11: memref<1x128xf32, #tpu.memory_space<vmem>>, %arg12: memref<16x128xf32, #tpu.memory_space<vmem>>, %arg13: memref<112x128xbf16, #tpu.memory_space<vmem>>, %arg14: memref<112x128xbf16, #tpu.memory_space<vmem>>, %arg15: memref<80x128xbf16, #tpu.memory_space<vmem>>) attributes {dimension_semantics = [#tpu.dimension_semantics<parallel>], iteration_bounds = array<i64: 2>, scalar_prefetch = 0 : i64, scratch_operands = 3 : i64, tpu.core_type = #tpu.core_type<tc>, window_params = [{transform_indices = @transform_0, window_bounds = array<i64: 1, 4, 128, 128>}, {pipeline_mode = #tpu.pipeline_mode<synchronous>, transform_indices = @transform_1, window_bounds = array<i64: 5, 2, 128, 128>}, {pipeline_mode = #tpu.pipeline_mode<synchronous>, transform_indices = @transform_2, window_bounds = array<i64: 1, 128>}, {pipeline_mode = #tpu.pipeline_mode<synchronous>, transform_indices = @transform_3, window_bounds = array<i64: 5, 2, 128, 128>}, {pipeline_mode = #tpu.pipeline_mode<synchronous>, transform_indices = @transform_4, window_bounds = array<i64: 1, 128>}, {pipeline_mode = #tpu.pipeline_mode<synchronous>, transform_indices = @transform_5, window_bounds = array<i64: 5, 128, 128>}, {pipeline_mode = #tpu.pipeline_mode<synchronous>, transform_indices = @transform_6, window_bounds = array<i64: 1, 128>}, {pipeline_mode = #tpu.pipeline_mode<synchronous>, transform_indices = @transform_7, window_bounds = array<i64: 128, 128>}, {pipeline_mode = #tpu.pipeline_mode<synchronous>, transform_indices = @transform_8, window_bounds = array<i64: 1, 128>}, {pipeline_mode = #tpu.pipeline_mode<synchronous>, transform_indices = @transform_9, window_bounds = array<i64: 128, 128>}, {pipeline_mode = #tpu.pipeline_mode<synchronous>, transform_indices = @transform_10, window_bounds = array<i64: 1, 128>}, {transform_indices = @transform_11, window_bounds = array<i64: 16, 128>}]} {
    %c0 = arith.constant 0 : index
    %c0_0 = arith.constant 0 : index
    %c0_1 = arith.constant 0 : index
    %c0_2 = arith.constant 0 : index
    %0 = vector.load %arg1[%c0, %c0_0, %c0_1, %c0_2] : memref<1x4x128x128xbf16, #tpu.memory_space<vmem>>, vector<1x1x112x128xbf16>
    %1 = vector.shape_cast %0 : vector<1x1x112x128xbf16> to vector<112x128xbf16>
    %c0_3 = arith.constant 0 : index
    %c0_4 = arith.constant 0 : index
    %c0_5 = arith.constant 0 : index
    %c0_6 = arith.constant 0 : index
    %2 = vector.load %arg2[%c0_3, %c0_4, %c0_5, %c0_6] : memref<5x2x128x128xbf16, #tpu.memory_space<vmem>>, vector<1x1x128x128xbf16>
    %3 = vector.shape_cast %2 : vector<1x1x128x128xbf16> to vector<128x128xbf16>
    %cst = arith.constant dense<0.000000e+00> : vector<112x128xf32>
    %4 = tpu.matmul %1, %3, %cst {dimension_numbers = #tpu.dot_dimension_numbers<[1], [0], [0], [1], [0, 0, 1, 1], [], []>} : vector<112x128xbf16>, vector<128x128xbf16>, vector<112x128xf32> -> vector<112x128xf32>
    %c0_7 = arith.constant 0 : index
    %c1 = arith.constant 1 : index
    %c0_8 = arith.constant 0 : index
    %c0_9 = arith.constant 0 : index
    %5 = vector.load %arg1[%c0_7, %c1, %c0_8, %c0_9] : memref<1x4x128x128xbf16, #tpu.memory_space<vmem>>, vector<1x1x112x128xbf16>
    %6 = vector.shape_cast %5 : vector<1x1x112x128xbf16> to vector<112x128xbf16>
    %c1_10 = arith.constant 1 : index
    %c0_11 = arith.constant 0 : index
    %c0_12 = arith.constant 0 : index
    %c0_13 = arith.constant 0 : index
    %7 = vector.load %arg2[%c1_10, %c0_11, %c0_12, %c0_13] : memref<5x2x128x128xbf16, #tpu.memory_space<vmem>>, vector<1x1x128x128xbf16>
    %8 = vector.shape_cast %7 : vector<1x1x128x128xbf16> to vector<128x128xbf16>
    %cst_14 = arith.constant dense<0.000000e+00> : vector<112x128xf32>
    %9 = tpu.matmul %6, %8, %cst_14 {dimension_numbers = #tpu.dot_dimension_numbers<[1], [0], [0], [1], [0, 0, 1, 1], [], []>} : vector<112x128xbf16>, vector<128x128xbf16>, vector<112x128xf32> -> vector<112x128xf32>
    %10 = arith.addf %4, %9 : vector<112x128xf32>
    %c0_15 = arith.constant 0 : index
    %c2 = arith.constant 2 : index
    %c0_16 = arith.constant 0 : index
    %c0_17 = arith.constant 0 : index
    %11 = vector.load %arg1[%c0_15, %c2, %c0_16, %c0_17] : memref<1x4x128x128xbf16, #tpu.memory_space<vmem>>, vector<1x1x112x128xbf16>
    %12 = vector.shape_cast %11 : vector<1x1x112x128xbf16> to vector<112x128xbf16>
    %c2_18 = arith.constant 2 : index
    %c0_19 = arith.constant 0 : index
    %c0_20 = arith.constant 0 : index
    %c0_21 = arith.constant 0 : index
    %13 = vector.load %arg2[%c2_18, %c0_19, %c0_20, %c0_21] : memref<5x2x128x128xbf16, #tpu.memory_space<vmem>>, vector<1x1x128x128xbf16>
    %14 = vector.shape_cast %13 : vector<1x1x128x128xbf16> to vector<128x128xbf16>
    %cst_22 = arith.constant dense<0.000000e+00> : vector<112x128xf32>
    %15 = tpu.matmul %12, %14, %cst_22 {dimension_numbers = #tpu.dot_dimension_numbers<[1], [0], [0], [1], [0, 0, 1, 1], [], []>} : vector<112x128xbf16>, vector<128x128xbf16>, vector<112x128xf32> -> vector<112x128xf32>
    %16 = arith.addf %10, %15 : vector<112x128xf32>
    %c0_23 = arith.constant 0 : index
    %c3 = arith.constant 3 : index
    %c0_24 = arith.constant 0 : index
    %c0_25 = arith.constant 0 : index
    %17 = vector.load %arg1[%c0_23, %c3, %c0_24, %c0_25] : memref<1x4x128x128xbf16, #tpu.memory_space<vmem>>, vector<1x1x112x128xbf16>
    %18 = vector.shape_cast %17 : vector<1x1x112x128xbf16> to vector<112x128xbf16>
    %c3_26 = arith.constant 3 : index
    %c0_27 = arith.constant 0 : index
    %c0_28 = arith.constant 0 : index
    %c0_29 = arith.constant 0 : index
    %19 = vector.load %arg2[%c3_26, %c0_27, %c0_28, %c0_29] : memref<5x2x128x128xbf16, #tpu.memory_space<vmem>>, vector<1x1x128x128xbf16>
    %20 = vector.shape_cast %19 : vector<1x1x128x128xbf16> to vector<128x128xbf16>
    %cst_30 = arith.constant dense<0.000000e+00> : vector<112x128xf32>
    %21 = tpu.matmul %18, %20, %cst_30 {dimension_numbers = #tpu.dot_dimension_numbers<[1], [0], [0], [1], [0, 0, 1, 1], [], []>} : vector<112x128xbf16>, vector<128x128xbf16>, vector<112x128xf32> -> vector<112x128xf32>
    %22 = arith.addf %16, %21 : vector<112x128xf32>
    %c0_31 = arith.constant 0 : index
    %c0_32 = arith.constant 0 : index
    %c16 = arith.constant 16 : index
    %c0_33 = arith.constant 0 : index
    %23 = vector.load %arg1[%c0_31, %c0_32, %c16, %c0_33] : memref<1x4x128x128xbf16, #tpu.memory_space<vmem>>, vector<1x1x112x128xbf16>
    %24 = vector.shape_cast %23 : vector<1x1x112x128xbf16> to vector<112x128xbf16>
    %c4 = arith.constant 4 : index
    %c0_34 = arith.constant 0 : index
    %c0_35 = arith.constant 0 : index
    %c0_36 = arith.constant 0 : index
    %25 = vector.load %arg2[%c4, %c0_34, %c0_35, %c0_36] : memref<5x2x128x128xbf16, #tpu.memory_space<vmem>>, vector<1x1x128x128xbf16>
    %26 = vector.shape_cast %25 : vector<1x1x128x128xbf16> to vector<128x128xbf16>
    %cst_37 = arith.constant dense<0.000000e+00> : vector<112x128xf32>
    %27 = tpu.matmul %24, %26, %cst_37 {dimension_numbers = #tpu.dot_dimension_numbers<[1], [0], [0], [1], [0, 0, 1, 1], [], []>} : vector<112x128xbf16>, vector<128x128xbf16>, vector<112x128xf32> -> vector<112x128xf32>
    %28 = arith.addf %22, %27 : vector<112x128xf32>
    %c0_38 = arith.constant 0 : index
    %c0_39 = arith.constant 0 : index
    %c0_40 = arith.constant 0 : index
    %c0_41 = arith.constant 0 : index
    %29 = vector.load %arg1[%c0_38, %c0_39, %c0_40, %c0_41] : memref<1x4x128x128xbf16, #tpu.memory_space<vmem>>, vector<1x1x112x128xbf16>
    %30 = vector.shape_cast %29 : vector<1x1x112x128xbf16> to vector<112x128xbf16>
    %c0_42 = arith.constant 0 : index
    %c1_43 = arith.constant 1 : index
    %c0_44 = arith.constant 0 : index
    %c0_45 = arith.constant 0 : index
    %31 = vector.load %arg2[%c0_42, %c1_43, %c0_44, %c0_45] : memref<5x2x128x128xbf16, #tpu.memory_space<vmem>>, vector<1x1x128x128xbf16>
    %32 = vector.shape_cast %31 : vector<1x1x128x128xbf16> to vector<128x128xbf16>
    %cst_46 = arith.constant dense<0.000000e+00> : vector<112x128xf32>
    %33 = tpu.matmul %30, %32, %cst_46 {dimension_numbers = #tpu.dot_dimension_numbers<[1], [0], [0], [1], [0, 0, 1, 1], [], []>} : vector<112x128xbf16>, vector<128x128xbf16>, vector<112x128xf32> -> vector<112x128xf32>
    %c0_47 = arith.constant 0 : index
    %c1_48 = arith.constant 1 : index
    %c0_49 = arith.constant 0 : index
    %c0_50 = arith.constant 0 : index
    %34 = vector.load %arg1[%c0_47, %c1_48, %c0_49, %c0_50] : memref<1x4x128x128xbf16, #tpu.memory_space<vmem>>, vector<1x1x112x128xbf16>
    %35 = vector.shape_cast %34 : vector<1x1x112x128xbf16> to vector<112x128xbf16>
    %c1_51 = arith.constant 1 : index
    %c1_52 = arith.constant 1 : index
    %c0_53 = arith.constant 0 : index
    %c0_54 = arith.constant 0 : index
    %36 = vector.load %arg2[%c1_51, %c1_52, %c0_53, %c0_54] : memref<5x2x128x128xbf16, #tpu.memory_space<vmem>>, vector<1x1x128x128xbf16>
    %37 = vector.shape_cast %36 : vector<1x1x128x128xbf16> to vector<128x128xbf16>
    %cst_55 = arith.constant dense<0.000000e+00> : vector<112x128xf32>
    %38 = tpu.matmul %35, %37, %cst_55 {dimension_numbers = #tpu.dot_dimension_numbers<[1], [0], [0], [1], [0, 0, 1, 1], [], []>} : vector<112x128xbf16>, vector<128x128xbf16>, vector<112x128xf32> -> vector<112x128xf32>
    %39 = arith.addf %33, %38 : vector<112x128xf32>
    %c0_56 = arith.constant 0 : index
    %c2_57 = arith.constant 2 : index
    %c0_58 = arith.constant 0 : index
    %c0_59 = arith.constant 0 : index
    %40 = vector.load %arg1[%c0_56, %c2_57, %c0_58, %c0_59] : memref<1x4x128x128xbf16, #tpu.memory_space<vmem>>, vector<1x1x112x128xbf16>
    %41 = vector.shape_cast %40 : vector<1x1x112x128xbf16> to vector<112x128xbf16>
    %c2_60 = arith.constant 2 : index
    %c1_61 = arith.constant 1 : index
    %c0_62 = arith.constant 0 : index
    %c0_63 = arith.constant 0 : index
    %42 = vector.load %arg2[%c2_60, %c1_61, %c0_62, %c0_63] : memref<5x2x128x128xbf16, #tpu.memory_space<vmem>>, vector<1x1x128x128xbf16>
    %43 = vector.shape_cast %42 : vector<1x1x128x128xbf16> to vector<128x128xbf16>
    %cst_64 = arith.constant dense<0.000000e+00> : vector<112x128xf32>
    %44 = tpu.matmul %41, %43, %cst_64 {dimension_numbers = #tpu.dot_dimension_numbers<[1], [0], [0], [1], [0, 0, 1, 1], [], []>} : vector<112x128xbf16>, vector<128x128xbf16>, vector<112x128xf32> -> vector<112x128xf32>
    %45 = arith.addf %39, %44 : vector<112x128xf32>
    %c0_65 = arith.constant 0 : index
    %c3_66 = arith.constant 3 : index
    %c0_67 = arith.constant 0 : index
    %c0_68 = arith.constant 0 : index
    %46 = vector.load %arg1[%c0_65, %c3_66, %c0_67, %c0_68] : memref<1x4x128x128xbf16, #tpu.memory_space<vmem>>, vector<1x1x112x128xbf16>
    %47 = vector.shape_cast %46 : vector<1x1x112x128xbf16> to vector<112x128xbf16>
    %c3_69 = arith.constant 3 : index
    %c1_70 = arith.constant 1 : index
    %c0_71 = arith.constant 0 : index
    %c0_72 = arith.constant 0 : index
    %48 = vector.load %arg2[%c3_69, %c1_70, %c0_71, %c0_72] : memref<5x2x128x128xbf16, #tpu.memory_space<vmem>>, vector<1x1x128x128xbf16>
    %49 = vector.shape_cast %48 : vector<1x1x128x128xbf16> to vector<128x128xbf16>
    %cst_73 = arith.constant dense<0.000000e+00> : vector<112x128xf32>
    %50 = tpu.matmul %47, %49, %cst_73 {dimension_numbers = #tpu.dot_dimension_numbers<[1], [0], [0], [1], [0, 0, 1, 1], [], []>} : vector<112x128xbf16>, vector<128x128xbf16>, vector<112x128xf32> -> vector<112x128xf32>
    %51 = arith.addf %45, %50 : vector<112x128xf32>
    %c0_74 = arith.constant 0 : index
    %c0_75 = arith.constant 0 : index
    %c16_76 = arith.constant 16 : index
    %c0_77 = arith.constant 0 : index
    %52 = vector.load %arg1[%c0_74, %c0_75, %c16_76, %c0_77] : memref<1x4x128x128xbf16, #tpu.memory_space<vmem>>, vector<1x1x112x128xbf16>
    %53 = vector.shape_cast %52 : vector<1x1x112x128xbf16> to vector<112x128xbf16>
    %c4_78 = arith.constant 4 : index
    %c1_79 = arith.constant 1 : index
    %c0_80 = arith.constant 0 : index
    %c0_81 = arith.constant 0 : index
    %54 = vector.load %arg2[%c4_78, %c1_79, %c0_80, %c0_81] : memref<5x2x128x128xbf16, #tpu.memory_space<vmem>>, vector<1x1x128x128xbf16>
    %55 = vector.shape_cast %54 : vector<1x1x128x128xbf16> to vector<128x128xbf16>
    %cst_82 = arith.constant dense<0.000000e+00> : vector<112x128xf32>
    %56 = tpu.matmul %53, %55, %cst_82 {dimension_numbers = #tpu.dot_dimension_numbers<[1], [0], [0], [1], [0, 0, 1, 1], [], []>} : vector<112x128xbf16>, vector<128x128xbf16>, vector<112x128xf32> -> vector<112x128xf32>
    %57 = arith.addf %51, %56 : vector<112x128xf32>
    %58 = arith.maximumf %28, %57 : vector<112x128xf32>
    %c0_83 = arith.constant 0 : index
    %c1_84 = arith.constant 1 : index
    %c0_85 = arith.constant 0 : index
    %c0_86 = arith.constant 0 : index
    %59 = vector.load %arg1[%c0_83, %c1_84, %c0_85, %c0_86] : memref<1x4x128x128xbf16, #tpu.memory_space<vmem>>, vector<1x1x112x128xbf16>
    %60 = vector.shape_cast %59 : vector<1x1x112x128xbf16> to vector<112x128xbf16>
    %c0_87 = arith.constant 0 : index
    %c0_88 = arith.constant 0 : index
    %c0_89 = arith.constant 0 : index
    %c0_90 = arith.constant 0 : index
    %61 = vector.load %arg2[%c0_87, %c0_88, %c0_89, %c0_90] : memref<5x2x128x128xbf16, #tpu.memory_space<vmem>>, vector<1x1x128x128xbf16>
    %62 = vector.shape_cast %61 : vector<1x1x128x128xbf16> to vector<128x128xbf16>
    %cst_91 = arith.constant dense<0.000000e+00> : vector<112x128xf32>
    %63 = tpu.matmul %60, %62, %cst_91 {dimension_numbers = #tpu.dot_dimension_numbers<[1], [0], [0], [1], [0, 0, 1, 1], [], []>} : vector<112x128xbf16>, vector<128x128xbf16>, vector<112x128xf32> -> vector<112x128xf32>
    %c0_92 = arith.constant 0 : index
    %c2_93 = arith.constant 2 : index
    %c0_94 = arith.constant 0 : index
    %c0_95 = arith.constant 0 : index
    %64 = vector.load %arg1[%c0_92, %c2_93, %c0_94, %c0_95] : memref<1x4x128x128xbf16, #tpu.memory_space<vmem>>, vector<1x1x112x128xbf16>
    %65 = vector.shape_cast %64 : vector<1x1x112x128xbf16> to vector<112x128xbf16>
    %c1_96 = arith.constant 1 : index
    %c0_97 = arith.constant 0 : index
    %c0_98 = arith.constant 0 : index
    %c0_99 = arith.constant 0 : index
    %66 = vector.load %arg2[%c1_96, %c0_97, %c0_98, %c0_99] : memref<5x2x128x128xbf16, #tpu.memory_space<vmem>>, vector<1x1x128x128xbf16>
    %67 = vector.shape_cast %66 : vector<1x1x128x128xbf16> to vector<128x128xbf16>
    %cst_100 = arith.constant dense<0.000000e+00> : vector<112x128xf32>
    %68 = tpu.matmul %65, %67, %cst_100 {dimension_numbers = #tpu.dot_dimension_numbers<[1], [0], [0], [1], [0, 0, 1, 1], [], []>} : vector<112x128xbf16>, vector<128x128xbf16>, vector<112x128xf32> -> vector<112x128xf32>
    %69 = arith.addf %63, %68 : vector<112x128xf32>
    %c0_101 = arith.constant 0 : index
    %c3_102 = arith.constant 3 : index
    %c0_103 = arith.constant 0 : index
    %c0_104 = arith.constant 0 : index
    %70 = vector.load %arg1[%c0_101, %c3_102, %c0_103, %c0_104] : memref<1x4x128x128xbf16, #tpu.memory_space<vmem>>, vector<1x1x112x128xbf16>
    %71 = vector.shape_cast %70 : vector<1x1x112x128xbf16> to vector<112x128xbf16>
    %c2_105 = arith.constant 2 : index
    %c0_106 = arith.constant 0 : index
    %c0_107 = arith.constant 0 : index
    %c0_108 = arith.constant 0 : index
    %72 = vector.load %arg2[%c2_105, %c0_106, %c0_107, %c0_108] : memref<5x2x128x128xbf16, #tpu.memory_space<vmem>>, vector<1x1x128x128xbf16>
    %73 = vector.shape_cast %72 : vector<1x1x128x128xbf16> to vector<128x128xbf16>
    %cst_109 = arith.constant dense<0.000000e+00> : vector<112x128xf32>
    %74 = tpu.matmul %71, %73, %cst_109 {dimension_numbers = #tpu.dot_dimension_numbers<[1], [0], [0], [1], [0, 0, 1, 1], [], []>} : vector<112x128xbf16>, vector<128x128xbf16>, vector<112x128xf32> -> vector<112x128xf32>
    %75 = arith.addf %69, %74 : vector<112x128xf32>
    %c0_110 = arith.constant 0 : index
    %c0_111 = arith.constant 0 : index
    %c16_112 = arith.constant 16 : index
    %c0_113 = arith.constant 0 : index
    %76 = vector.load %arg1[%c0_110, %c0_111, %c16_112, %c0_113] : memref<1x4x128x128xbf16, #tpu.memory_space<vmem>>, vector<1x1x112x128xbf16>
    %77 = vector.shape_cast %76 : vector<1x1x112x128xbf16> to vector<112x128xbf16>
    %c3_114 = arith.constant 3 : index
    %c0_115 = arith.constant 0 : index
    %c0_116 = arith.constant 0 : index
    %c0_117 = arith.constant 0 : index
    %78 = vector.load %arg2[%c3_114, %c0_115, %c0_116, %c0_117] : memref<5x2x128x128xbf16, #tpu.memory_space<vmem>>, vector<1x1x128x128xbf16>
    %79 = vector.shape_cast %78 : vector<1x1x128x128xbf16> to vector<128x128xbf16>
    %cst_118 = arith.constant dense<0.000000e+00> : vector<112x128xf32>
    %80 = tpu.matmul %77, %79, %cst_118 {dimension_numbers = #tpu.dot_dimension_numbers<[1], [0], [0], [1], [0, 0, 1, 1], [], []>} : vector<112x128xbf16>, vector<128x128xbf16>, vector<112x128xf32> -> vector<112x128xf32>
    %81 = arith.addf %75, %80 : vector<112x128xf32>
    %c0_119 = arith.constant 0 : index
    %c1_120 = arith.constant 1 : index
    %c16_121 = arith.constant 16 : index
    %c0_122 = arith.constant 0 : index
    %82 = vector.load %arg1[%c0_119, %c1_120, %c16_121, %c0_122] : memref<1x4x128x128xbf16, #tpu.memory_space<vmem>>, vector<1x1x112x128xbf16>
    %83 = vector.shape_cast %82 : vector<1x1x112x128xbf16> to vector<112x128xbf16>
    %c4_123 = arith.constant 4 : index
    %c0_124 = arith.constant 0 : index
    %c0_125 = arith.constant 0 : index
    %c0_126 = arith.constant 0 : index
    %84 = vector.load %arg2[%c4_123, %c0_124, %c0_125, %c0_126] : memref<5x2x128x128xbf16, #tpu.memory_space<vmem>>, vector<1x1x128x128xbf16>
    %85 = vector.shape_cast %84 : vector<1x1x128x128xbf16> to vector<128x128xbf16>
    %cst_127 = arith.constant dense<0.000000e+00> : vector<112x128xf32>
    %86 = tpu.matmul %83, %85, %cst_127 {dimension_numbers = #tpu.dot_dimension_numbers<[1], [0], [0], [1], [0, 0, 1, 1], [], []>} : vector<112x128xbf16>, vector<128x128xbf16>, vector<112x128xf32> -> vector<112x128xf32>
    %87 = arith.addf %81, %86 : vector<112x128xf32>
    %88 = arith.maximumf %58, %87 : vector<112x128xf32>
    %c0_128 = arith.constant 0 : index
    %c1_129 = arith.constant 1 : index
    %c0_130 = arith.constant 0 : index
    %c0_131 = arith.constant 0 : index
    %89 = vector.load %arg1[%c0_128, %c1_129, %c0_130, %c0_131] : memref<1x4x128x128xbf16, #tpu.memory_space<vmem>>, vector<1x1x112x128xbf16>
    %90 = vector.shape_cast %89 : vector<1x1x112x128xbf16> to vector<112x128xbf16>
    %c0_132 = arith.constant 0 : index
    %c1_133 = arith.constant 1 : index
    %c0_134 = arith.constant 0 : index
    %c0_135 = arith.constant 0 : index
    %91 = vector.load %arg2[%c0_132, %c1_133, %c0_134, %c0_135] : memref<5x2x128x128xbf16, #tpu.memory_space<vmem>>, vector<1x1x128x128xbf16>
    %92 = vector.shape_cast %91 : vector<1x1x128x128xbf16> to vector<128x128xbf16>
    %cst_136 = arith.constant dense<0.000000e+00> : vector<112x128xf32>
    %93 = tpu.matmul %90, %92, %cst_136 {dimension_numbers = #tpu.dot_dimension_numbers<[1], [0], [0], [1], [0, 0, 1, 1], [], []>} : vector<112x128xbf16>, vector<128x128xbf16>, vector<112x128xf32> -> vector<112x128xf32>
    %c0_137 = arith.constant 0 : index
    %c2_138 = arith.constant 2 : index
    %c0_139 = arith.constant 0 : index
    %c0_140 = arith.constant 0 : index
    %94 = vector.load %arg1[%c0_137, %c2_138, %c0_139, %c0_140] : memref<1x4x128x128xbf16, #tpu.memory_space<vmem>>, vector<1x1x112x128xbf16>
    %95 = vector.shape_cast %94 : vector<1x1x112x128xbf16> to vector<112x128xbf16>
    %c1_141 = arith.constant 1 : index
    %c1_142 = arith.constant 1 : index
    %c0_143 = arith.constant 0 : index
    %c0_144 = arith.constant 0 : index
    %96 = vector.load %arg2[%c1_141, %c1_142, %c0_143, %c0_144] : memref<5x2x128x128xbf16, #tpu.memory_space<vmem>>, vector<1x1x128x128xbf16>
    %97 = vector.shape_cast %96 : vector<1x1x128x128xbf16> to vector<128x128xbf16>
    %cst_145 = arith.constant dense<0.000000e+00> : vector<112x128xf32>
    %98 = tpu.matmul %95, %97, %cst_145 {dimension_numbers = #tpu.dot_dimension_numbers<[1], [0], [0], [1], [0, 0, 1, 1], [], []>} : vector<112x128xbf16>, vector<128x128xbf16>, vector<112x128xf32> -> vector<112x128xf32>
    %99 = arith.addf %93, %98 : vector<112x128xf32>
    %c0_146 = arith.constant 0 : index
    %c3_147 = arith.constant 3 : index
    %c0_148 = arith.constant 0 : index
    %c0_149 = arith.constant 0 : index
    %100 = vector.load %arg1[%c0_146, %c3_147, %c0_148, %c0_149] : memref<1x4x128x128xbf16, #tpu.memory_space<vmem>>, vector<1x1x112x128xbf16>
    %101 = vector.shape_cast %100 : vector<1x1x112x128xbf16> to vector<112x128xbf16>
    %c2_150 = arith.constant 2 : index
    %c1_151 = arith.constant 1 : index
    %c0_152 = arith.constant 0 : index
    %c0_153 = arith.constant 0 : index
    %102 = vector.load %arg2[%c2_150, %c1_151, %c0_152, %c0_153] : memref<5x2x128x128xbf16, #tpu.memory_space<vmem>>, vector<1x1x128x128xbf16>
    %103 = vector.shape_cast %102 : vector<1x1x128x128xbf16> to vector<128x128xbf16>
    %cst_154 = arith.constant dense<0.000000e+00> : vector<112x128xf32>
    %104 = tpu.matmul %101, %103, %cst_154 {dimension_numbers = #tpu.dot_dimension_numbers<[1], [0], [0], [1], [0, 0, 1, 1], [], []>} : vector<112x128xbf16>, vector<128x128xbf16>, vector<112x128xf32> -> vector<112x128xf32>
    %105 = arith.addf %99, %104 : vector<112x128xf32>
    %c0_155 = arith.constant 0 : index
    %c0_156 = arith.constant 0 : index
    %c16_157 = arith.constant 16 : index
    %c0_158 = arith.constant 0 : index
    %106 = vector.load %arg1[%c0_155, %c0_156, %c16_157, %c0_158] : memref<1x4x128x128xbf16, #tpu.memory_space<vmem>>, vector<1x1x112x128xbf16>
    %107 = vector.shape_cast %106 : vector<1x1x112x128xbf16> to vector<112x128xbf16>
    %c3_159 = arith.constant 3 : index
    %c1_160 = arith.constant 1 : index
    %c0_161 = arith.constant 0 : index
    %c0_162 = arith.constant 0 : index
    %108 = vector.load %arg2[%c3_159, %c1_160, %c0_161, %c0_162] : memref<5x2x128x128xbf16, #tpu.memory_space<vmem>>, vector<1x1x128x128xbf16>
    %109 = vector.shape_cast %108 : vector<1x1x128x128xbf16> to vector<128x128xbf16>
    %cst_163 = arith.constant dense<0.000000e+00> : vector<112x128xf32>
    %110 = tpu.matmul %107, %109, %cst_163 {dimension_numbers = #tpu.dot_dimension_numbers<[1], [0], [0], [1], [0, 0, 1, 1], [], []>} : vector<112x128xbf16>, vector<128x128xbf16>, vector<112x128xf32> -> vector<112x128xf32>
    %111 = arith.addf %105, %110 : vector<112x128xf32>
    %c0_164 = arith.constant 0 : index
    %c1_165 = arith.constant 1 : index
    %c16_166 = arith.constant 16 : index
    %c0_167 = arith.constant 0 : index
    %112 = vector.load %arg1[%c0_164, %c1_165, %c16_166, %c0_167] : memref<1x4x128x128xbf16, #tpu.memory_space<vmem>>, vector<1x1x112x128xbf16>
    %113 = vector.shape_cast %112 : vector<1x1x112x128xbf16> to vector<112x128xbf16>
    %c4_168 = arith.constant 4 : index
    %c1_169 = arith.constant 1 : index
    %c0_170 = arith.constant 0 : index
    %c0_171 = arith.constant 0 : index
    %114 = vector.load %arg2[%c4_168, %c1_169, %c0_170, %c0_171] : memref<5x2x128x128xbf16, #tpu.memory_space<vmem>>, vector<1x1x128x128xbf16>
    %115 = vector.shape_cast %114 : vector<1x1x128x128xbf16> to vector<128x128xbf16>
    %cst_172 = arith.constant dense<0.000000e+00> : vector<112x128xf32>
    %116 = tpu.matmul %113, %115, %cst_172 {dimension_numbers = #tpu.dot_dimension_numbers<[1], [0], [0], [1], [0, 0, 1, 1], [], []>} : vector<112x128xbf16>, vector<128x128xbf16>, vector<112x128xf32> -> vector<112x128xf32>
    %117 = arith.addf %111, %116 : vector<112x128xf32>
    %118 = arith.maximumf %88, %117 : vector<112x128xf32>
    %c0_173 = arith.constant 0 : index
    %c0_174 = arith.constant 0 : index
    %119 = vector.load %arg3[%c0_173, %c0_174] : memref<1x128xf32, #tpu.memory_space<vmem>>, vector<1x128xf32>
    %120 = vector.broadcast %119 : vector<1x128xf32> to vector<112x128xf32>
    %121 = arith.addf %118, %120 : vector<112x128xf32>
    %cst_175 = arith.constant 0.000000e+00 : f32
    %122 = vector.broadcast %cst_175 : f32 to vector<112x128xf32>
    %123 = arith.maximumf %121, %122 : vector<112x128xf32>
    %124 = arith.truncf %123 : vector<112x128xf32> to vector<112x128xbf16>
    %c0_176 = arith.constant 0 : index
    %c0_177 = arith.constant 0 : index
    %125 = vector.load %arg13[%c0_176, %c0_177] : memref<112x128xbf16, #tpu.memory_space<vmem>>, vector<112x128xbf16>
    tpu.vector_store %arg13[%c0_176, %c0_177], %124 {strides = array<i32>} : memref<112x128xbf16, #tpu.memory_space<vmem>>, vector<112x128xbf16>,
    %c0_178 = arith.constant 0 : index
    %c2_179 = arith.constant 2 : index
    %c0_180 = arith.constant 0 : index
    %c0_181 = arith.constant 0 : index
    %126 = vector.load %arg1[%c0_178, %c2_179, %c0_180, %c0_181] : memref<1x4x128x128xbf16, #tpu.memory_space<vmem>>, vector<1x1x112x128xbf16>
    %127 = vector.shape_cast %126 : vector<1x1x112x128xbf16> to vector<112x128xbf16>
    %c0_182 = arith.constant 0 : index
    %c0_183 = arith.constant 0 : index
    %c0_184 = arith.constant 0 : index
    %c0_185 = arith.constant 0 : index
    %128 = vector.load %arg2[%c0_182, %c0_183, %c0_184, %c0_185] : memref<5x2x128x128xbf16, #tpu.memory_space<vmem>>, vector<1x1x128x128xbf16>
    %129 = vector.shape_cast %128 : vector<1x1x128x128xbf16> to vector<128x128xbf16>
    %cst_186 = arith.constant dense<0.000000e+00> : vector<112x128xf32>
    %130 = tpu.matmul %127, %129, %cst_186 {dimension_numbers = #tpu.dot_dimension_numbers<[1], [0], [0], [1], [0, 0, 1, 1], [], []>} : vector<112x128xbf16>, vector<128x128xbf16>, vector<112x128xf32> -> vector<112x128xf32>
    %c0_187 = arith.constant 0 : index
    %c3_188 = arith.constant 3 : index
    %c0_189 = arith.constant 0 : index
    %c0_190 = arith.constant 0 : index
    %131 = vector.load %arg1[%c0_187, %c3_188, %c0_189, %c0_190] : memref<1x4x128x128xbf16, #tpu.memory_space<vmem>>, vector<1x1x112x128xbf16>
    %132 = vector.shape_cast %131 : vector<1x1x112x128xbf16> to vector<112x128xbf16>
    %c1_191 = arith.constant 1 : index
    %c0_192 = arith.constant 0 : index
    %c0_193 = arith.constant 0 : index
    %c0_194 = arith.constant 0 : index
    %133 = vector.load %arg2[%c1_191, %c0_192, %c0_193, %c0_194] : memref<5x2x128x128xbf16, #tpu.memory_space<vmem>>, vector<1x1x128x128xbf16>
    %134 = vector.shape_cast %133 : vector<1x1x128x128xbf16> to vector<128x128xbf16>
    %cst_195 = arith.constant dense<0.000000e+00> : vector<112x128xf32>
    %135 = tpu.matmul %132, %134, %cst_195 {dimension_numbers = #tpu.dot_dimension_numbers<[1], [0], [0], [1], [0, 0, 1, 1], [], []>} : vector<112x128xbf16>, vector<128x128xbf16>, vector<112x128xf32> -> vector<112x128xf32>
    %136 = arith.addf %130, %135 : vector<112x128xf32>
    %c0_196 = arith.constant 0 : index
    %c0_197 = arith.constant 0 : index
    %c16_198 = arith.constant 16 : index
    %c0_199 = arith.constant 0 : index
    %137 = vector.load %arg1[%c0_196, %c0_197, %c16_198, %c0_199] : memref<1x4x128x128xbf16, #tpu.memory_space<vmem>>, vector<1x1x112x128xbf16>
    %138 = vector.shape_cast %137 : vector<1x1x112x128xbf16> to vector<112x128xbf16>
    %c2_200 = arith.constant 2 : index
    %c0_201 = arith.constant 0 : index
    %c0_202 = arith.constant 0 : index
    %c0_203 = arith.constant 0 : index
    %139 = vector.load %arg2[%c2_200, %c0_201, %c0_202, %c0_203] : memref<5x2x128x128xbf16, #tpu.memory_space<vmem>>, vector<1x1x128x128xbf16>
    %140 = vector.shape_cast %139 : vector<1x1x128x128xbf16> to vector<128x128xbf16>
    %cst_204 = arith.constant dense<0.000000e+00> : vector<112x128xf32>
    %141 = tpu.matmul %138, %140, %cst_204 {dimension_numbers = #tpu.dot_dimension_numbers<[1], [0], [0], [1], [0, 0, 1, 1], [], []>} : vector<112x128xbf16>, vector<128x128xbf16>, vector<112x128xf32> -> vector<112x128xf32>
    %142 = arith.addf %136, %141 : vector<112x128xf32>
    %c0_205 = arith.constant 0 : index
    %c1_206 = arith.constant 1 : index
    %c16_207 = arith.constant 16 : index
    %c0_208 = arith.constant 0 : index
    %143 = vector.load %arg1[%c0_205, %c1_206, %c16_207, %c0_208] : memref<1x4x128x128xbf16, #tpu.memory_space<vmem>>, vector<1x1x112x128xbf16>
    %144 = vector.shape_cast %143 : vector<1x1x112x128xbf16> to vector<112x128xbf16>
    %c3_209 = arith.constant 3 : index
    %c0_210 = arith.constant 0 : index
    %c0_211 = arith.constant 0 : index
    %c0_212 = arith.constant 0 : index
    %145 = vector.load %arg2[%c3_209, %c0_210, %c0_211, %c0_212] : memref<5x2x128x128xbf16, #tpu.memory_space<vmem>>, vector<1x1x128x128xbf16>
    %146 = vector.shape_cast %145 : vector<1x1x128x128xbf16> to vector<128x128xbf16>
    %cst_213 = arith.constant dense<0.000000e+00> : vector<112x128xf32>
    %147 = tpu.matmul %144, %146, %cst_213 {dimension_numbers = #tpu.dot_dimension_numbers<[1], [0], [0], [1], [0, 0, 1, 1], [], []>} : vector<112x128xbf16>, vector<128x128xbf16>, vector<112x128xf32> -> vector<112x128xf32>
    %148 = arith.addf %142, %147 : vector<112x128xf32>
    %c0_214 = arith.constant 0 : index
    %c2_215 = arith.constant 2 : index
    %c16_216 = arith.constant 16 : index
    %c0_217 = arith.constant 0 : index
    %149 = vector.load %arg1[%c0_214, %c2_215, %c16_216, %c0_217] : memref<1x4x128x128xbf16, #tpu.memory_space<vmem>>, vector<1x1x112x128xbf16>
    %150 = vector.shape_cast %149 : vector<1x1x112x128xbf16> to vector<112x128xbf16>
    %c4_218 = arith.constant 4 : index
    %c0_219 = arith.constant 0 : index
    %c0_220 = arith.constant 0 : index
    %c0_221 = arith.constant 0 : index
    %151 = vector.load %arg2[%c4_218, %c0_219, %c0_220, %c0_221] : memref<5x2x128x128xbf16, #tpu.memory_space<vmem>>, vector<1x1x128x128xbf16>
    %152 = vector.shape_cast %151 : vector<1x1x128x128xbf16> to vector<128x128xbf16>
    %cst_222 = arith.constant dense<0.000000e+00> : vector<112x128xf32>
    %153 = tpu.matmul %150, %152, %cst_222 {dimension_numbers = #tpu.dot_dimension_numbers<[1], [0], [0], [1], [0, 0, 1, 1], [], []>} : vector<112x128xbf16>, vector<128x128xbf16>, vector<112x128xf32> -> vector<112x128xf32>
    %154 = arith.addf %148, %153 : vector<112x128xf32>
    %c0_223 = arith.constant 0 : index
    %c2_224 = arith.constant 2 : index
    %c0_225 = arith.constant 0 : index
    %c0_226 = arith.constant 0 : index
    %155 = vector.load %arg1[%c0_223, %c2_224, %c0_225, %c0_226] : memref<1x4x128x128xbf16, #tpu.memory_space<vmem>>, vector<1x1x112x128xbf16>
    %156 = vector.shape_cast %155 : vector<1x1x112x128xbf16> to vector<112x128xbf16>
    %c0_227 = arith.constant 0 : index
    %c1_228 = arith.constant 1 : index
    %c0_229 = arith.constant 0 : index
    %c0_230 = arith.constant 0 : index
    %157 = vector.load %arg2[%c0_227, %c1_228, %c0_229, %c0_230] : memref<5x2x128x128xbf16, #tpu.memory_space<vmem>>, vector<1x1x128x128xbf16>
    %158 = vector.shape_cast %157 : vector<1x1x128x128xbf16> to vector<128x128xbf16>
    %cst_231 = arith.constant dense<0.000000e+00> : vector<112x128xf32>
    %159 = tpu.matmul %156, %158, %cst_231 {dimension_numbers = #tpu.dot_dimension_numbers<[1], [0], [0], [1], [0, 0, 1, 1], [], []>} : vector<112x128xbf16>, vector<128x128xbf16>, vector<112x128xf32> -> vector<112x128xf32>
    %c0_232 = arith.constant 0 : index
    %c3_233 = arith.constant 3 : index
    %c0_234 = arith.constant 0 : index
    %c0_235 = arith.constant 0 : index
    %160 = vector.load %arg1[%c0_232, %c3_233, %c0_234, %c0_235] : memref<1x4x128x128xbf16, #tpu.memory_space<vmem>>, vector<1x1x112x128xbf16>
    %161 = vector.shape_cast %160 : vector<1x1x112x128xbf16> to vector<112x128xbf16>
    %c1_236 = arith.constant 1 : index
    %c1_237 = arith.constant 1 : index
    %c0_238 = arith.constant 0 : index
    %c0_239 = arith.constant 0 : index
    %162 = vector.load %arg2[%c1_236, %c1_237, %c0_238, %c0_239] : memref<5x2x128x128xbf16, #tpu.memory_space<vmem>>, vector<1x1x128x128xbf16>
    %163 = vector.shape_cast %162 : vector<1x1x128x128xbf16> to vector<128x128xbf16>
    %cst_240 = arith.constant dense<0.000000e+00> : vector<112x128xf32>
    %164 = tpu.matmul %161, %163, %cst_240 {dimension_numbers = #tpu.dot_dimension_numbers<[1], [0], [0], [1], [0, 0, 1, 1], [], []>} : vector<112x128xbf16>, vector<128x128xbf16>, vector<112x128xf32> -> vector<112x128xf32>
    %165 = arith.addf %159, %164 : vector<112x128xf32>
    %c0_241 = arith.constant 0 : index
    %c0_242 = arith.constant 0 : index
    %c16_243 = arith.constant 16 : index
    %c0_244 = arith.constant 0 : index
    %166 = vector.load %arg1[%c0_241, %c0_242, %c16_243, %c0_244] : memref<1x4x128x128xbf16, #tpu.memory_space<vmem>>, vector<1x1x112x128xbf16>
    %167 = vector.shape_cast %166 : vector<1x1x112x128xbf16> to vector<112x128xbf16>
    %c2_245 = arith.constant 2 : index
    %c1_246 = arith.constant 1 : index
    %c0_247 = arith.constant 0 : index
    %c0_248 = arith.constant 0 : index
    %168 = vector.load %arg2[%c2_245, %c1_246, %c0_247, %c0_248] : memref<5x2x128x128xbf16, #tpu.memory_space<vmem>>, vector<1x1x128x128xbf16>
    %169 = vector.shape_cast %168 : vector<1x1x128x128xbf16> to vector<128x128xbf16>
    %cst_249 = arith.constant dense<0.000000e+00> : vector<112x128xf32>
    %170 = tpu.matmul %167, %169, %cst_249 {dimension_numbers = #tpu.dot_dimension_numbers<[1], [0], [0], [1], [0, 0, 1, 1], [], []>} : vector<112x128xbf16>, vector<128x128xbf16>, vector<112x128xf32> -> vector<112x128xf32>
    %171 = arith.addf %165, %170 : vector<112x128xf32>
    %c0_250 = arith.constant 0 : index
    %c1_251 = arith.constant 1 : index
    %c16_252 = arith.constant 16 : index
    %c0_253 = arith.constant 0 : index
    %172 = vector.load %arg1[%c0_250, %c1_251, %c16_252, %c0_253] : memref<1x4x128x128xbf16, #tpu.memory_space<vmem>>, vector<1x1x112x128xbf16>
    %173 = vector.shape_cast %172 : vector<1x1x112x128xbf16> to vector<112x128xbf16>
    %c3_254 = arith.constant 3 : index
    %c1_255 = arith.constant 1 : index
    %c0_256 = arith.constant 0 : index
    %c0_257 = arith.constant 0 : index
    %174 = vector.load %arg2[%c3_254, %c1_255, %c0_256, %c0_257] : memref<5x2x128x128xbf16, #tpu.memory_space<vmem>>, vector<1x1x128x128xbf16>
    %175 = vector.shape_cast %174 : vector<1x1x128x128xbf16> to vector<128x128xbf16>
    %cst_258 = arith.constant dense<0.000000e+00> : vector<112x128xf32>
    %176 = tpu.matmul %173, %175, %cst_258 {dimension_numbers = #tpu.dot_dimension_numbers<[1], [0], [0], [1], [0, 0, 1, 1], [], []>} : vector<112x128xbf16>, vector<128x128xbf16>, vector<112x128xf32> -> vector<112x128xf32>
    %177 = arith.addf %171, %176 : vector<112x128xf32>
    %c0_259 = arith.constant 0 : index
    %c2_260 = arith.constant 2 : index
    %c16_261 = arith.constant 16 : index
    %c0_262 = arith.constant 0 : index
    %178 = vector.load %arg1[%c0_259, %c2_260, %c16_261, %c0_262] : memref<1x4x128x128xbf16, #tpu.memory_space<vmem>>, vector<1x1x112x128xbf16>
    %179 = vector.shape_cast %178 : vector<1x1x112x128xbf16> to vector<112x128xbf16>
    %c4_263 = arith.constant 4 : index
    %c1_264 = arith.constant 1 : index
    %c0_265 = arith.constant 0 : index
    %c0_266 = arith.constant 0 : index
    %180 = vector.load %arg2[%c4_263, %c1_264, %c0_265, %c0_266] : memref<5x2x128x128xbf16, #tpu.memory_space<vmem>>, vector<1x1x128x128xbf16>
    %181 = vector.shape_cast %180 : vector<1x1x128x128xbf16> to vector<128x128xbf16>
    %cst_267 = arith.constant dense<0.000000e+00> : vector<112x128xf32>
    %182 = tpu.matmul %179, %181, %cst_267 {dimension_numbers = #tpu.dot_dimension_numbers<[1], [0], [0], [1], [0, 0, 1, 1], [], []>} : vector<112x128xbf16>, vector<128x128xbf16>, vector<112x128xf32> -> vector<112x128xf32>
    %183 = arith.addf %177, %182 : vector<112x128xf32>
    %184 = arith.maximumf %154, %183 : vector<112x128xf32>
    %c0_268 = arith.constant 0 : index
    %c3_269 = arith.constant 3 : index
    %c0_270 = arith.constant 0 : index
    %c0_271 = arith.constant 0 : index
    %185 = vector.load %arg1[%c0_268, %c3_269, %c0_270, %c0_271] : memref<1x4x128x128xbf16, #tpu.memory_space<vmem>>, vector<1x1x112x128xbf16>
    %186 = vector.shape_cast %185 : vector<1x1x112x128xbf16> to vector<112x128xbf16>
    %c0_272 = arith.constant 0 : index
    %c0_273 = arith.constant 0 : index
    %c0_274 = arith.constant 0 : index
    %c0_275 = arith.constant 0 : index
    %187 = vector.load %arg2[%c0_272, %c0_273, %c0_274, %c0_275] : memref<5x2x128x128xbf16, #tpu.memory_space<vmem>>, vector<1x1x128x128xbf16>
    %188 = vector.shape_cast %187 : vector<1x1x128x128xbf16> to vector<128x128xbf16>
    %cst_276 = arith.constant dense<0.000000e+00> : vector<112x128xf32>
    %189 = tpu.matmul %186, %188, %cst_276 {dimension_numbers = #tpu.dot_dimension_numbers<[1], [0], [0], [1], [0, 0, 1, 1], [], []>} : vector<112x128xbf16>, vector<128x128xbf16>, vector<112x128xf32> -> vector<112x128xf32>
    %c0_277 = arith.constant 0 : index
    %c0_278 = arith.constant 0 : index
    %c16_279 = arith.constant 16 : index
    %c0_280 = arith.constant 0 : index
    %190 = vector.load %arg1[%c0_277, %c0_278, %c16_279, %c0_280] : memref<1x4x128x128xbf16, #tpu.memory_space<vmem>>, vector<1x1x112x128xbf16>
    %191 = vector.shape_cast %190 : vector<1x1x112x128xbf16> to vector<112x128xbf16>
    %c1_281 = arith.constant 1 : index
    %c0_282 = arith.constant 0 : index
    %c0_283 = arith.constant 0 : index
    %c0_284 = arith.constant 0 : index
    %192 = vector.load %arg2[%c1_281, %c0_282, %c0_283, %c0_284] : memref<5x2x128x128xbf16, #tpu.memory_space<vmem>>, vector<1x1x128x128xbf16>
    %193 = vector.shape_cast %192 : vector<1x1x128x128xbf16> to vector<128x128xbf16>
    %cst_285 = arith.constant dense<0.000000e+00> : vector<112x128xf32>
    %194 = tpu.matmul %191, %193, %cst_285 {dimension_numbers = #tpu.dot_dimension_numbers<[1], [0], [0], [1], [0, 0, 1, 1], [], []>} : vector<112x128xbf16>, vector<128x128xbf16>, vector<112x128xf32> -> vector<112x128xf32>
    %195 = arith.addf %189, %194 : vector<112x128xf32>
    %c0_286 = arith.constant 0 : index
    %c1_287 = arith.constant 1 : index
    %c16_288 = arith.constant 16 : index
    %c0_289 = arith.constant 0 : index
    %196 = vector.load %arg1[%c0_286, %c1_287, %c16_288, %c0_289] : memref<1x4x128x128xbf16, #tpu.memory_space<vmem>>, vector<1x1x112x128xbf16>
    %197 = vector.shape_cast %196 : vector<1x1x112x128xbf16> to vector<112x128xbf16>
    %c2_290 = arith.constant 2 : index
    %c0_291 = arith.constant 0 : index
    %c0_292 = arith.constant 0 : index
    %c0_293 = arith.constant 0 : index
    %198 = vector.load %arg2[%c2_290, %c0_291, %c0_292, %c0_293] : memref<5x2x128x128xbf16, #tpu.memory_space<vmem>>, vector<1x1x128x128xbf16>
    %199 = vector.shape_cast %198 : vector<1x1x128x128xbf16> to vector<128x128xbf16>
    %cst_294 = arith.constant dense<0.000000e+00> : vector<112x128xf32>
    %200 = tpu.matmul %197, %199, %cst_294 {dimension_numbers = #tpu.dot_dimension_numbers<[1], [0], [0], [1], [0, 0, 1, 1], [], []>} : vector<112x128xbf16>, vector<128x128xbf16>, vector<112x128xf32> -> vector<112x128xf32>
    %201 = arith.addf %195, %200 : vector<112x128xf32>
    %c0_295 = arith.constant 0 : index
    %c2_296 = arith.constant 2 : index
    %c16_297 = arith.constant 16 : index
    %c0_298 = arith.constant 0 : index
    %202 = vector.load %arg1[%c0_295, %c2_296, %c16_297, %c0_298] : memref<1x4x128x128xbf16, #tpu.memory_space<vmem>>, vector<1x1x112x128xbf16>
    %203 = vector.shape_cast %202 : vector<1x1x112x128xbf16> to vector<112x128xbf16>
    %c3_299 = arith.constant 3 : index
    %c0_300 = arith.constant 0 : index
    %c0_301 = arith.constant 0 : index
    %c0_302 = arith.constant 0 : index
    %204 = vector.load %arg2[%c3_299, %c0_300, %c0_301, %c0_302] : memref<5x2x128x128xbf16, #tpu.memory_space<vmem>>, vector<1x1x128x128xbf16>
    %205 = vector.shape_cast %204 : vector<1x1x128x128xbf16> to vector<128x128xbf16>
    %cst_303 = arith.constant dense<0.000000e+00> : vector<112x128xf32>
    %206 = tpu.matmul %203, %205, %cst_303 {dimension_numbers = #tpu.dot_dimension_numbers<[1], [0], [0], [1], [0, 0, 1, 1], [], []>} : vector<112x128xbf16>, vector<128x128xbf16>, vector<112x128xf32> -> vector<112x128xf32>
    %207 = arith.addf %201, %206 : vector<112x128xf32>
    %c0_304 = arith.constant 0 : index
    %c3_305 = arith.constant 3 : index
    %c16_306 = arith.constant 16 : index
    %c0_307 = arith.constant 0 : index
    %208 = vector.load %arg1[%c0_304, %c3_305, %c16_306, %c0_307] : memref<1x4x128x128xbf16, #tpu.memory_space<vmem>>, vector<1x1x112x128xbf16>
    %209 = vector.shape_cast %208 : vector<1x1x112x128xbf16> to vector<112x128xbf16>
    %c4_308 = arith.constant 4 : index
    %c0_309 = arith.constant 0 : index
    %c0_310 = arith.constant 0 : index
    %c0_311 = arith.constant 0 : index
    %210 = vector.load %arg2[%c4_308, %c0_309, %c0_310, %c0_311] : memref<5x2x128x128xbf16, #tpu.memory_space<vmem>>, vector<1x1x128x128xbf16>
    %211 = vector.shape_cast %210 : vector<1x1x128x128xbf16> to vector<128x128xbf16>
    %cst_312 = arith.constant dense<0.000000e+00> : vector<112x128xf32>
    %212 = tpu.matmul %209, %211, %cst_312 {dimension_numbers = #tpu.dot_dimension_numbers<[1], [0], [0], [1], [0, 0, 1, 1], [], []>} : vector<112x128xbf16>, vector<128x128xbf16>, vector<112x128xf32> -> vector<112x128xf32>
    %213 = arith.addf %207, %212 : vector<112x128xf32>
    %214 = arith.maximumf %184, %213 : vector<112x128xf32>
    %c0_313 = arith.constant 0 : index
    %c3_314 = arith.constant 3 : index
    %c0_315 = arith.constant 0 : index
    %c0_316 = arith.constant 0 : index
    %215 = vector.load %arg1[%c0_313, %c3_314, %c0_315, %c0_316] : memref<1x4x128x128xbf16, #tpu.memory_space<vmem>>, vector<1x1x112x128xbf16>
    %216 = vector.shape_cast %215 : vector<1x1x112x128xbf16> to vector<112x128xbf16>
    %c0_317 = arith.constant 0 : index
    %c1_318 = arith.constant 1 : index
    %c0_319 = arith.constant 0 : index
    %c0_320 = arith.constant 0 : index
    %217 = vector.load %arg2[%c0_317, %c1_318, %c0_319, %c0_320] : memref<5x2x128x128xbf16, #tpu.memory_space<vmem>>, vector<1x1x128x128xbf16>
    %218 = vector.shape_cast %217 : vector<1x1x128x128xbf16> to vector<128x128xbf16>
    %cst_321 = arith.constant dense<0.000000e+00> : vector<112x128xf32>
    %219 = tpu.matmul %216, %218, %cst_321 {dimension_numbers = #tpu.dot_dimension_numbers<[1], [0], [0], [1], [0, 0, 1, 1], [], []>} : vector<112x128xbf16>, vector<128x128xbf16>, vector<112x128xf32> -> vector<112x128xf32>
    %c0_322 = arith.constant 0 : index
    %c0_323 = arith.constant 0 : index
    %c16_324 = arith.constant 16 : index
    %c0_325 = arith.constant 0 : index
    %220 = vector.load %arg1[%c0_322, %c0_323, %c16_324, %c0_325] : memref<1x4x128x128xbf16, #tpu.memory_space<vmem>>, vector<1x1x112x128xbf16>
    %221 = vector.shape_cast %220 : vector<1x1x112x128xbf16> to vector<112x128xbf16>
    %c1_326 = arith.constant 1 : index
    %c1_327 = arith.constant 1 : index
    %c0_328 = arith.constant 0 : index
    %c0_329 = arith.constant 0 : index
    %222 = vector.load %arg2[%c1_326, %c1_327, %c0_328, %c0_329] : memref<5x2x128x128xbf16, #tpu.memory_space<vmem>>, vector<1x1x128x128xbf16>
    %223 = vector.shape_cast %222 : vector<1x1x128x128xbf16> to vector<128x128xbf16>
    %cst_330 = arith.constant dense<0.000000e+00> : vector<112x128xf32>
    %224 = tpu.matmul %221, %223, %cst_330 {dimension_numbers = #tpu.dot_dimension_numbers<[1], [0], [0], [1], [0, 0, 1, 1], [], []>} : vector<112x128xbf16>, vector<128x128xbf16>, vector<112x128xf32> -> vector<112x128xf32>
    %225 = arith.addf %219, %224 : vector<112x128xf32>
    %c0_331 = arith.constant 0 : index
    %c1_332 = arith.constant 1 : index
    %c16_333 = arith.constant 16 : index
    %c0_334 = arith.constant 0 : index
    %226 = vector.load %arg1[%c0_331, %c1_332, %c16_333, %c0_334] : memref<1x4x128x128xbf16, #tpu.memory_space<vmem>>, vector<1x1x112x128xbf16>
    %227 = vector.shape_cast %226 : vector<1x1x112x128xbf16> to vector<112x128xbf16>
    %c2_335 = arith.constant 2 : index
    %c1_336 = arith.constant 1 : index
    %c0_337 = arith.constant 0 : index
    %c0_338 = arith.constant 0 : index
    %228 = vector.load %arg2[%c2_335, %c1_336, %c0_337, %c0_338] : memref<5x2x128x128xbf16, #tpu.memory_space<vmem>>, vector<1x1x128x128xbf16>
    %229 = vector.shape_cast %228 : vector<1x1x128x128xbf16> to vector<128x128xbf16>
    %cst_339 = arith.constant dense<0.000000e+00> : vector<112x128xf32>
    %230 = tpu.matmul %227, %229, %cst_339 {dimension_numbers = #tpu.dot_dimension_numbers<[1], [0], [0], [1], [0, 0, 1, 1], [], []>} : vector<112x128xbf16>, vector<128x128xbf16>, vector<112x128xf32> -> vector<112x128xf32>
    %231 = arith.addf %225, %230 : vector<112x128xf32>
    %c0_340 = arith.constant 0 : index
    %c2_341 = arith.constant 2 : index
    %c16_342 = arith.constant 16 : index
    %c0_343 = arith.constant 0 : index
    %232 = vector.load %arg1[%c0_340, %c2_341, %c16_342, %c0_343] : memref<1x4x128x128xbf16, #tpu.memory_space<vmem>>, vector<1x1x112x128xbf16>
    %233 = vector.shape_cast %232 : vector<1x1x112x128xbf16> to vector<112x128xbf16>
    %c3_344 = arith.constant 3 : index
    %c1_345 = arith.constant 1 : index
    %c0_346 = arith.constant 0 : index
    %c0_347 = arith.constant 0 : index
    %234 = vector.load %arg2[%c3_344, %c1_345, %c0_346, %c0_347] : memref<5x2x128x128xbf16, #tpu.memory_space<vmem>>, vector<1x1x128x128xbf16>
    %235 = vector.shape_cast %234 : vector<1x1x128x128xbf16> to vector<128x128xbf16>
    %cst_348 = arith.constant dense<0.000000e+00> : vector<112x128xf32>
    %236 = tpu.matmul %233, %235, %cst_348 {dimension_numbers = #tpu.dot_dimension_numbers<[1], [0], [0], [1], [0, 0, 1, 1], [], []>} : vector<112x128xbf16>, vector<128x128xbf16>, vector<112x128xf32> -> vector<112x128xf32>
    %237 = arith.addf %231, %236 : vector<112x128xf32>
    %c0_349 = arith.constant 0 : index
    %c3_350 = arith.constant 3 : index
    %c16_351 = arith.constant 16 : index
    %c0_352 = arith.constant 0 : index
    %238 = vector.load %arg1[%c0_349, %c3_350, %c16_351, %c0_352] : memref<1x4x128x128xbf16, #tpu.memory_space<vmem>>, vector<1x1x112x128xbf16>
    %239 = vector.shape_cast %238 : vector<1x1x112x128xbf16> to vector<112x128xbf16>
    %c4_353 = arith.constant 4 : index
    %c1_354 = arith.constant 1 : index
    %c0_355 = arith.constant 0 : index
    %c0_356 = arith.constant 0 : index
    %240 = vector.load %arg2[%c4_353, %c1_354, %c0_355, %c0_356] : memref<5x2x128x128xbf16, #tpu.memory_space<vmem>>, vector<1x1x128x128xbf16>
    %241 = vector.shape_cast %240 : vector<1x1x128x128xbf16> to vector<128x128xbf16>
    %cst_357 = arith.constant dense<0.000000e+00> : vector<112x128xf32>
    %242 = tpu.matmul %239, %241, %cst_357 {dimension_numbers = #tpu.dot_dimension_numbers<[1], [0], [0], [1], [0, 0, 1, 1], [], []>} : vector<112x128xbf16>, vector<128x128xbf16>, vector<112x128xf32> -> vector<112x128xf32>
    %243 = arith.addf %237, %242 : vector<112x128xf32>
    %244 = arith.maximumf %214, %243 : vector<112x128xf32>
    %c0_358 = arith.constant 0 : index
    %c0_359 = arith.constant 0 : index
    %245 = vector.load %arg3[%c0_358, %c0_359] : memref<1x128xf32, #tpu.memory_space<vmem>>, vector<1x128xf32>
    %246 = vector.broadcast %245 : vector<1x128xf32> to vector<112x128xf32>
    %247 = arith.addf %244, %246 : vector<112x128xf32>
    %cst_360 = arith.constant 0.000000e+00 : f32
    %248 = vector.broadcast %cst_360 : f32 to vector<112x128xf32>
    %249 = arith.maximumf %247, %248 : vector<112x128xf32>
    %250 = arith.truncf %249 : vector<112x128xf32> to vector<112x128xbf16>
    %c0_361 = arith.constant 0 : index
    %c0_362 = arith.constant 0 : index
    %251 = vector.load %arg14[%c0_361, %c0_362] : memref<112x128xbf16, #tpu.memory_space<vmem>>, vector<112x128xbf16>
    tpu.vector_store %arg14[%c0_361, %c0_362], %250 {strides = array<i32>} : memref<112x128xbf16, #tpu.memory_space<vmem>>, vector<112x128xbf16>,
    %c0_363 = arith.constant 0 : index
    %c0_364 = arith.constant 0 : index
    %252 = vector.load %arg13[%c0_363, %c0_364] : memref<112x128xbf16, #tpu.memory_space<vmem>>, vector<80x128xbf16>
    %c0_365 = arith.constant 0 : index
    %c0_366 = arith.constant 0 : index
    %c0_367 = arith.constant 0 : index
    %c0_368 = arith.constant 0 : index
    %253 = vector.load %arg4[%c0_365, %c0_366, %c0_367, %c0_368] : memref<5x2x128x128xbf16, #tpu.memory_space<vmem>>, vector<1x1x128x128xbf16>
    %254 = vector.shape_cast %253 : vector<1x1x128x128xbf16> to vector<128x128xbf16>
    %cst_369 = arith.constant dense<0.000000e+00> : vector<80x128xf32>
    %255 = tpu.matmul %252, %254, %cst_369 {dimension_numbers = #tpu.dot_dimension_numbers<[1], [0], [0], [1], [0, 0, 1, 1], [], []>} : vector<80x128xbf16>, vector<128x128xbf16>, vector<80x128xf32> -> vector<80x128xf32>
    %c0_370 = arith.constant 0 : index
    %c0_371 = arith.constant 0 : index
    %256 = vector.load %arg14[%c0_370, %c0_371] : memref<112x128xbf16, #tpu.memory_space<vmem>>, vector<80x128xbf16>
    %c1_372 = arith.constant 1 : index
    %c0_373 = arith.constant 0 : index
    %c0_374 = arith.constant 0 : index
    %c0_375 = arith.constant 0 : index
    %257 = vector.load %arg4[%c1_372, %c0_373, %c0_374, %c0_375] : memref<5x2x128x128xbf16, #tpu.memory_space<vmem>>, vector<1x1x128x128xbf16>
    %258 = vector.shape_cast %257 : vector<1x1x128x128xbf16> to vector<128x128xbf16>
    %cst_376 = arith.constant dense<0.000000e+00> : vector<80x128xf32>
    %259 = tpu.matmul %256, %258, %cst_376 {dimension_numbers = #tpu.dot_dimension_numbers<[1], [0], [0], [1], [0, 0, 1, 1], [], []>} : vector<80x128xbf16>, vector<128x128xbf16>, vector<80x128xf32> -> vector<80x128xf32>
    %260 = arith.addf %255, %259 : vector<80x128xf32>
    %c16_377 = arith.constant 16 : index
    %c0_378 = arith.constant 0 : index
    %261 = vector.load %arg13[%c16_377, %c0_378] : memref<112x128xbf16, #tpu.memory_space<vmem>>, vector<80x128xbf16>
    %c2_379 = arith.constant 2 : index
    %c0_380 = arith.constant 0 : index
    %c0_381 = arith.constant 0 : index
    %c0_382 = arith.constant 0 : index
    %262 = vector.load %arg4[%c2_379, %c0_380, %c0_381, %c0_382] : memref<5x2x128x128xbf16, #tpu.memory_space<vmem>>, vector<1x1x128x128xbf16>
    %263 = vector.shape_cast %262 : vector<1x1x128x128xbf16> to vector<128x128xbf16>
    %cst_383 = arith.constant dense<0.000000e+00> : vector<80x128xf32>
    %264 = tpu.matmul %261, %263, %cst_383 {dimension_numbers = #tpu.dot_dimension_numbers<[1], [0], [0], [1], [0, 0, 1, 1], [], []>} : vector<80x128xbf16>, vector<128x128xbf16>, vector<80x128xf32> -> vector<80x128xf32>
    %265 = arith.addf %260, %264 : vector<80x128xf32>
    %c16_384 = arith.constant 16 : index
    %c0_385 = arith.constant 0 : index
    %266 = vector.load %arg14[%c16_384, %c0_385] : memref<112x128xbf16, #tpu.memory_space<vmem>>, vector<80x128xbf16>
    %c3_386 = arith.constant 3 : index
    %c0_387 = arith.constant 0 : index
    %c0_388 = arith.constant 0 : index
    %c0_389 = arith.constant 0 : index
    %267 = vector.load %arg4[%c3_386, %c0_387, %c0_388, %c0_389] : memref<5x2x128x128xbf16, #tpu.memory_space<vmem>>, vector<1x1x128x128xbf16>
    %268 = vector.shape_cast %267 : vector<1x1x128x128xbf16> to vector<128x128xbf16>
    %cst_390 = arith.constant dense<0.000000e+00> : vector<80x128xf32>
    %269 = tpu.matmul %266, %268, %cst_390 {dimension_numbers = #tpu.dot_dimension_numbers<[1], [0], [0], [1], [0, 0, 1, 1], [], []>} : vector<80x128xbf16>, vector<128x128xbf16>, vector<80x128xf32> -> vector<80x128xf32>
    %270 = arith.addf %265, %269 : vector<80x128xf32>
    %c32 = arith.constant 32 : index
    %c0_391 = arith.constant 0 : index
    %271 = vector.load %arg13[%c32, %c0_391] : memref<112x128xbf16, #tpu.memory_space<vmem>>, vector<80x128xbf16>
    %c4_392 = arith.constant 4 : index
    %c0_393 = arith.constant 0 : index
    %c0_394 = arith.constant 0 : index
    %c0_395 = arith.constant 0 : index
    %272 = vector.load %arg4[%c4_392, %c0_393, %c0_394, %c0_395] : memref<5x2x128x128xbf16, #tpu.memory_space<vmem>>, vector<1x1x128x128xbf16>
    %273 = vector.shape_cast %272 : vector<1x1x128x128xbf16> to vector<128x128xbf16>
    %cst_396 = arith.constant dense<0.000000e+00> : vector<80x128xf32>
    %274 = tpu.matmul %271, %273, %cst_396 {dimension_numbers = #tpu.dot_dimension_numbers<[1], [0], [0], [1], [0, 0, 1, 1], [], []>} : vector<80x128xbf16>, vector<128x128xbf16>, vector<80x128xf32> -> vector<80x128xf32>
    %275 = arith.addf %270, %274 : vector<80x128xf32>
    %c0_397 = arith.constant 0 : index
    %c0_398 = arith.constant 0 : index
    %276 = vector.load %arg13[%c0_397, %c0_398] : memref<112x128xbf16, #tpu.memory_space<vmem>>, vector<80x128xbf16>
    %c0_399 = arith.constant 0 : index
    %c1_400 = arith.constant 1 : index
    %c0_401 = arith.constant 0 : index
    %c0_402 = arith.constant 0 : index
    %277 = vector.load %arg4[%c0_399, %c1_400, %c0_401, %c0_402] : memref<5x2x128x128xbf16, #tpu.memory_space<vmem>>, vector<1x1x128x128xbf16>
    %278 = vector.shape_cast %277 : vector<1x1x128x128xbf16> to vector<128x128xbf16>
    %cst_403 = arith.constant dense<0.000000e+00> : vector<80x128xf32>
    %279 = tpu.matmul %276, %278, %cst_403 {dimension_numbers = #tpu.dot_dimension_numbers<[1], [0], [0], [1], [0, 0, 1, 1], [], []>} : vector<80x128xbf16>, vector<128x128xbf16>, vector<80x128xf32> -> vector<80x128xf32>
    %c0_404 = arith.constant 0 : index
    %c0_405 = arith.constant 0 : index
    %280 = vector.load %arg14[%c0_404, %c0_405] : memref<112x128xbf16, #tpu.memory_space<vmem>>, vector<80x128xbf16>
    %c1_406 = arith.constant 1 : index
    %c1_407 = arith.constant 1 : index
    %c0_408 = arith.constant 0 : index
    %c0_409 = arith.constant 0 : index
    %281 = vector.load %arg4[%c1_406, %c1_407, %c0_408, %c0_409] : memref<5x2x128x128xbf16, #tpu.memory_space<vmem>>, vector<1x1x128x128xbf16>
    %282 = vector.shape_cast %281 : vector<1x1x128x128xbf16> to vector<128x128xbf16>
    %cst_410 = arith.constant dense<0.000000e+00> : vector<80x128xf32>
    %283 = tpu.matmul %280, %282, %cst_410 {dimension_numbers = #tpu.dot_dimension_numbers<[1], [0], [0], [1], [0, 0, 1, 1], [], []>} : vector<80x128xbf16>, vector<128x128xbf16>, vector<80x128xf32> -> vector<80x128xf32>
    %284 = arith.addf %279, %283 : vector<80x128xf32>
    %c16_411 = arith.constant 16 : index
    %c0_412 = arith.constant 0 : index
    %285 = vector.load %arg13[%c16_411, %c0_412] : memref<112x128xbf16, #tpu.memory_space<vmem>>, vector<80x128xbf16>
    %c2_413 = arith.constant 2 : index
    %c1_414 = arith.constant 1 : index
    %c0_415 = arith.constant 0 : index
    %c0_416 = arith.constant 0 : index
    %286 = vector.load %arg4[%c2_413, %c1_414, %c0_415, %c0_416] : memref<5x2x128x128xbf16, #tpu.memory_space<vmem>>, vector<1x1x128x128xbf16>
    %287 = vector.shape_cast %286 : vector<1x1x128x128xbf16> to vector<128x128xbf16>
    %cst_417 = arith.constant dense<0.000000e+00> : vector<80x128xf32>
    %288 = tpu.matmul %285, %287, %cst_417 {dimension_numbers = #tpu.dot_dimension_numbers<[1], [0], [0], [1], [0, 0, 1, 1], [], []>} : vector<80x128xbf16>, vector<128x128xbf16>, vector<80x128xf32> -> vector<80x128xf32>
    %289 = arith.addf %284, %288 : vector<80x128xf32>
    %c16_418 = arith.constant 16 : index
    %c0_419 = arith.constant 0 : index
    %290 = vector.load %arg14[%c16_418, %c0_419] : memref<112x128xbf16, #tpu.memory_space<vmem>>, vector<80x128xbf16>
    %c3_420 = arith.constant 3 : index
    %c1_421 = arith.constant 1 : index
    %c0_422 = arith.constant 0 : index
    %c0_423 = arith.constant 0 : index
    %291 = vector.load %arg4[%c3_420, %c1_421, %c0_422, %c0_423] : memref<5x2x128x128xbf16, #tpu.memory_space<vmem>>, vector<1x1x128x128xbf16>
    %292 = vector.shape_cast %291 : vector<1x1x128x128xbf16> to vector<128x128xbf16>
    %cst_424 = arith.constant dense<0.000000e+00> : vector<80x128xf32>
    %293 = tpu.matmul %290, %292, %cst_424 {dimension_numbers = #tpu.dot_dimension_numbers<[1], [0], [0], [1], [0, 0, 1, 1], [], []>} : vector<80x128xbf16>, vector<128x128xbf16>, vector<80x128xf32> -> vector<80x128xf32>
    %294 = arith.addf %289, %293 : vector<80x128xf32>
    %c32_425 = arith.constant 32 : index
    %c0_426 = arith.constant 0 : index
    %295 = vector.load %arg13[%c32_425, %c0_426] : memref<112x128xbf16, #tpu.memory_space<vmem>>, vector<80x128xbf16>
    %c4_427 = arith.constant 4 : index
    %c1_428 = arith.constant 1 : index
    %c0_429 = arith.constant 0 : index
    %c0_430 = arith.constant 0 : index
    %296 = vector.load %arg4[%c4_427, %c1_428, %c0_429, %c0_430] : memref<5x2x128x128xbf16, #tpu.memory_space<vmem>>, vector<1x1x128x128xbf16>
    %297 = vector.shape_cast %296 : vector<1x1x128x128xbf16> to vector<128x128xbf16>
    %cst_431 = arith.constant dense<0.000000e+00> : vector<80x128xf32>
    %298 = tpu.matmul %295, %297, %cst_431 {dimension_numbers = #tpu.dot_dimension_numbers<[1], [0], [0], [1], [0, 0, 1, 1], [], []>} : vector<80x128xbf16>, vector<128x128xbf16>, vector<80x128xf32> -> vector<80x128xf32>
    %299 = arith.addf %294, %298 : vector<80x128xf32>
    %300 = arith.maximumf %275, %299 : vector<80x128xf32>
    %c0_432 = arith.constant 0 : index
    %c0_433 = arith.constant 0 : index
    %301 = vector.load %arg14[%c0_432, %c0_433] : memref<112x128xbf16, #tpu.memory_space<vmem>>, vector<80x128xbf16>
    %c0_434 = arith.constant 0 : index
    %c0_435 = arith.constant 0 : index
    %c0_436 = arith.constant 0 : index
    %c0_437 = arith.constant 0 : index
    %302 = vector.load %arg4[%c0_434, %c0_435, %c0_436, %c0_437] : memref<5x2x128x128xbf16, #tpu.memory_space<vmem>>, vector<1x1x128x128xbf16>
    %303 = vector.shape_cast %302 : vector<1x1x128x128xbf16> to vector<128x128xbf16>
    %cst_438 = arith.constant dense<0.000000e+00> : vector<80x128xf32>
    %304 = tpu.matmul %301, %303, %cst_438 {dimension_numbers = #tpu.dot_dimension_numbers<[1], [0], [0], [1], [0, 0, 1, 1], [], []>} : vector<80x128xbf16>, vector<128x128xbf16>, vector<80x128xf32> -> vector<80x128xf32>
    %c16_439 = arith.constant 16 : index
    %c0_440 = arith.constant 0 : index
    %305 = vector.load %arg13[%c16_439, %c0_440] : memref<112x128xbf16, #tpu.memory_space<vmem>>, vector<80x128xbf16>
    %c1_441 = arith.constant 1 : index
    %c0_442 = arith.constant 0 : index
    %c0_443 = arith.constant 0 : index
    %c0_444 = arith.constant 0 : index
    %306 = vector.load %arg4[%c1_441, %c0_442, %c0_443, %c0_444] : memref<5x2x128x128xbf16, #tpu.memory_space<vmem>>, vector<1x1x128x128xbf16>
    %307 = vector.shape_cast %306 : vector<1x1x128x128xbf16> to vector<128x128xbf16>
    %cst_445 = arith.constant dense<0.000000e+00> : vector<80x128xf32>
    %308 = tpu.matmul %305, %307, %cst_445 {dimension_numbers = #tpu.dot_dimension_numbers<[1], [0], [0], [1], [0, 0, 1, 1], [], []>} : vector<80x128xbf16>, vector<128x128xbf16>, vector<80x128xf32> -> vector<80x128xf32>
    %309 = arith.addf %304, %308 : vector<80x128xf32>
    %c16_446 = arith.constant 16 : index
    %c0_447 = arith.constant 0 : index
    %310 = vector.load %arg14[%c16_446, %c0_447] : memref<112x128xbf16, #tpu.memory_space<vmem>>, vector<80x128xbf16>
    %c2_448 = arith.constant 2 : index
    %c0_449 = arith.constant 0 : index
    %c0_450 = arith.constant 0 : index
    %c0_451 = arith.constant 0 : index
    %311 = vector.load %arg4[%c2_448, %c0_449, %c0_450, %c0_451] : memref<5x2x128x128xbf16, #tpu.memory_space<vmem>>, vector<1x1x128x128xbf16>
    %312 = vector.shape_cast %311 : vector<1x1x128x128xbf16> to vector<128x128xbf16>
    %cst_452 = arith.constant dense<0.000000e+00> : vector<80x128xf32>
    %313 = tpu.matmul %310, %312, %cst_452 {dimension_numbers = #tpu.dot_dimension_numbers<[1], [0], [0], [1], [0, 0, 1, 1], [], []>} : vector<80x128xbf16>, vector<128x128xbf16>, vector<80x128xf32> -> vector<80x128xf32>
    %314 = arith.addf %309, %313 : vector<80x128xf32>
    %c32_453 = arith.constant 32 : index
    %c0_454 = arith.constant 0 : index
    %315 = vector.load %arg13[%c32_453, %c0_454] : memref<112x128xbf16, #tpu.memory_space<vmem>>, vector<80x128xbf16>
    %c3_455 = arith.constant 3 : index
    %c0_456 = arith.constant 0 : index
    %c0_457 = arith.constant 0 : index
    %c0_458 = arith.constant 0 : index
    %316 = vector.load %arg4[%c3_455, %c0_456, %c0_457, %c0_458] : memref<5x2x128x128xbf16, #tpu.memory_space<vmem>>, vector<1x1x128x128xbf16>
    %317 = vector.shape_cast %316 : vector<1x1x128x128xbf16> to vector<128x128xbf16>
    %cst_459 = arith.constant dense<0.000000e+00> : vector<80x128xf32>
    %318 = tpu.matmul %315, %317, %cst_459 {dimension_numbers = #tpu.dot_dimension_numbers<[1], [0], [0], [1], [0, 0, 1, 1], [], []>} : vector<80x128xbf16>, vector<128x128xbf16>, vector<80x128xf32> -> vector<80x128xf32>
    %319 = arith.addf %314, %318 : vector<80x128xf32>
    %c32_460 = arith.constant 32 : index
    %c0_461 = arith.constant 0 : index
    %320 = vector.load %arg14[%c32_460, %c0_461] : memref<112x128xbf16, #tpu.memory_space<vmem>>, vector<80x128xbf16>
    %c4_462 = arith.constant 4 : index
    %c0_463 = arith.constant 0 : index
    %c0_464 = arith.constant 0 : index
    %c0_465 = arith.constant 0 : index
    %321 = vector.load %arg4[%c4_462, %c0_463, %c0_464, %c0_465] : memref<5x2x128x128xbf16, #tpu.memory_space<vmem>>, vector<1x1x128x128xbf16>
    %322 = vector.shape_cast %321 : vector<1x1x128x128xbf16> to vector<128x128xbf16>
    %cst_466 = arith.constant dense<0.000000e+00> : vector<80x128xf32>
    %323 = tpu.matmul %320, %322, %cst_466 {dimension_numbers = #tpu.dot_dimension_numbers<[1], [0], [0], [1], [0, 0, 1, 1], [], []>} : vector<80x128xbf16>, vector<128x128xbf16>, vector<80x128xf32> -> vector<80x128xf32>
    %324 = arith.addf %319, %323 : vector<80x128xf32>
    %325 = arith.maximumf %300, %324 : vector<80x128xf32>
    %c0_467 = arith.constant 0 : index
    %c0_468 = arith.constant 0 : index
    %326 = vector.load %arg14[%c0_467, %c0_468] : memref<112x128xbf16, #tpu.memory_space<vmem>>, vector<80x128xbf16>
    %c0_469 = arith.constant 0 : index
    %c1_470 = arith.constant 1 : index
    %c0_471 = arith.constant 0 : index
    %c0_472 = arith.constant 0 : index
    %327 = vector.load %arg4[%c0_469, %c1_470, %c0_471, %c0_472] : memref<5x2x128x128xbf16, #tpu.memory_space<vmem>>, vector<1x1x128x128xbf16>
    %328 = vector.shape_cast %327 : vector<1x1x128x128xbf16> to vector<128x128xbf16>
    %cst_473 = arith.constant dense<0.000000e+00> : vector<80x128xf32>
    %329 = tpu.matmul %326, %328, %cst_473 {dimension_numbers = #tpu.dot_dimension_numbers<[1], [0], [0], [1], [0, 0, 1, 1], [], []>} : vector<80x128xbf16>, vector<128x128xbf16>, vector<80x128xf32> -> vector<80x128xf32>
    %c16_474 = arith.constant 16 : index
    %c0_475 = arith.constant 0 : index
    %330 = vector.load %arg13[%c16_474, %c0_475] : memref<112x128xbf16, #tpu.memory_space<vmem>>, vector<80x128xbf16>
    %c1_476 = arith.constant 1 : index
    %c1_477 = arith.constant 1 : index
    %c0_478 = arith.constant 0 : index
    %c0_479 = arith.constant 0 : index
    %331 = vector.load %arg4[%c1_476, %c1_477, %c0_478, %c0_479] : memref<5x2x128x128xbf16, #tpu.memory_space<vmem>>, vector<1x1x128x128xbf16>
    %332 = vector.shape_cast %331 : vector<1x1x128x128xbf16> to vector<128x128xbf16>
    %cst_480 = arith.constant dense<0.000000e+00> : vector<80x128xf32>
    %333 = tpu.matmul %330, %332, %cst_480 {dimension_numbers = #tpu.dot_dimension_numbers<[1], [0], [0], [1], [0, 0, 1, 1], [], []>} : vector<80x128xbf16>, vector<128x128xbf16>, vector<80x128xf32> -> vector<80x128xf32>
    %334 = arith.addf %329, %333 : vector<80x128xf32>
    %c16_481 = arith.constant 16 : index
    %c0_482 = arith.constant 0 : index
    %335 = vector.load %arg14[%c16_481, %c0_482] : memref<112x128xbf16, #tpu.memory_space<vmem>>, vector<80x128xbf16>
    %c2_483 = arith.constant 2 : index
    %c1_484 = arith.constant 1 : index
    %c0_485 = arith.constant 0 : index
    %c0_486 = arith.constant 0 : index
    %336 = vector.load %arg4[%c2_483, %c1_484, %c0_485, %c0_486] : memref<5x2x128x128xbf16, #tpu.memory_space<vmem>>, vector<1x1x128x128xbf16>
    %337 = vector.shape_cast %336 : vector<1x1x128x128xbf16> to vector<128x128xbf16>
    %cst_487 = arith.constant dense<0.000000e+00> : vector<80x128xf32>
    %338 = tpu.matmul %335, %337, %cst_487 {dimension_numbers = #tpu.dot_dimension_numbers<[1], [0], [0], [1], [0, 0, 1, 1], [], []>} : vector<80x128xbf16>, vector<128x128xbf16>, vector<80x128xf32> -> vector<80x128xf32>
    %339 = arith.addf %334, %338 : vector<80x128xf32>
    %c32_488 = arith.constant 32 : index
    %c0_489 = arith.constant 0 : index
    %340 = vector.load %arg13[%c32_488, %c0_489] : memref<112x128xbf16, #tpu.memory_space<vmem>>, vector<80x128xbf16>
    %c3_490 = arith.constant 3 : index
    %c1_491 = arith.constant 1 : index
    %c0_492 = arith.constant 0 : index
    %c0_493 = arith.constant 0 : index
    %341 = vector.load %arg4[%c3_490, %c1_491, %c0_492, %c0_493] : memref<5x2x128x128xbf16, #tpu.memory_space<vmem>>, vector<1x1x128x128xbf16>
    %342 = vector.shape_cast %341 : vector<1x1x128x128xbf16> to vector<128x128xbf16>
    %cst_494 = arith.constant dense<0.000000e+00> : vector<80x128xf32>
    %343 = tpu.matmul %340, %342, %cst_494 {dimension_numbers = #tpu.dot_dimension_numbers<[1], [0], [0], [1], [0, 0, 1, 1], [], []>} : vector<80x128xbf16>, vector<128x128xbf16>, vector<80x128xf32> -> vector<80x128xf32>
    %344 = arith.addf %339, %343 : vector<80x128xf32>
    %c32_495 = arith.constant 32 : index
    %c0_496 = arith.constant 0 : index
    %345 = vector.load %arg14[%c32_495, %c0_496] : memref<112x128xbf16, #tpu.memory_space<vmem>>, vector<80x128xbf16>
    %c4_497 = arith.constant 4 : index
    %c1_498 = arith.constant 1 : index
    %c0_499 = arith.constant 0 : index
    %c0_500 = arith.constant 0 : index
    %346 = vector.load %arg4[%c4_497, %c1_498, %c0_499, %c0_500] : memref<5x2x128x128xbf16, #tpu.memory_space<vmem>>, vector<1x1x128x128xbf16>
    %347 = vector.shape_cast %346 : vector<1x1x128x128xbf16> to vector<128x128xbf16>
    %cst_501 = arith.constant dense<0.000000e+00> : vector<80x128xf32>
    %348 = tpu.matmul %345, %347, %cst_501 {dimension_numbers = #tpu.dot_dimension_numbers<[1], [0], [0], [1], [0, 0, 1, 1], [], []>} : vector<80x128xbf16>, vector<128x128xbf16>, vector<80x128xf32> -> vector<80x128xf32>
    %349 = arith.addf %344, %348 : vector<80x128xf32>
    %350 = arith.maximumf %325, %349 : vector<80x128xf32>
    %c0_502 = arith.constant 0 : index
    %c0_503 = arith.constant 0 : index
    %351 = vector.load %arg5[%c0_502, %c0_503] : memref<1x128xf32, #tpu.memory_space<vmem>>, vector<1x128xf32>
    %352 = vector.broadcast %351 : vector<1x128xf32> to vector<80x128xf32>
    %353 = arith.addf %350, %352 : vector<80x128xf32>
    %cst_504 = arith.constant 0.000000e+00 : f32
    %354 = vector.broadcast %cst_504 : f32 to vector<80x128xf32>
    %355 = arith.maximumf %353, %354 : vector<80x128xf32>
    %356 = arith.truncf %355 : vector<80x128xf32> to vector<80x128xbf16>
    %c0_505 = arith.constant 0 : index
    %c0_506 = arith.constant 0 : index
    %357 = vector.load %arg15[%c0_505, %c0_506] : memref<80x128xbf16, #tpu.memory_space<vmem>>, vector<80x128xbf16>
    tpu.vector_store %arg15[%c0_505, %c0_506], %356 {strides = array<i32>} : memref<80x128xbf16, #tpu.memory_space<vmem>>, vector<80x128xbf16>,
    %c0_507 = arith.constant 0 : index
    %c0_508 = arith.constant 0 : index
    %358 = vector.load %arg7[%c0_507, %c0_508] : memref<1x128xf32, #tpu.memory_space<vmem>>, vector<1x128xf32>
    %c0_509 = arith.constant 0 : index
    %c0_510 = arith.constant 0 : index
    %359 = vector.load %arg15[%c0_509, %c0_510] : memref<80x128xbf16, #tpu.memory_space<vmem>>, vector<16x128xbf16>
    %c0_511 = arith.constant 0 : index
    %c0_512 = arith.constant 0 : index
    %c0_513 = arith.constant 0 : index
    %360 = vector.load %arg6[%c0_511, %c0_512, %c0_513] : memref<5x128x128xbf16, #tpu.memory_space<vmem>>, vector<1x128x128xbf16>
    %361 = vector.shape_cast %360 : vector<1x128x128xbf16> to vector<128x128xbf16>
    %cst_514 = arith.constant dense<0.000000e+00> : vector<16x128xf32>
    %362 = tpu.matmul %359, %361, %cst_514 {dimension_numbers = #tpu.dot_dimension_numbers<[1], [0], [0], [1], [0, 0, 1, 1], [], []>} : vector<16x128xbf16>, vector<128x128xbf16>, vector<16x128xf32> -> vector<16x128xf32>
    %363 = vector.broadcast %358 : vector<1x128xf32> to vector<16x128xf32>
    %364 = arith.addf %363, %362 : vector<16x128xf32>
    %c16_515 = arith.constant 16 : index
    %c0_516 = arith.constant 0 : index
    %365 = vector.load %arg15[%c16_515, %c0_516] : memref<80x128xbf16, #tpu.memory_space<vmem>>, vector<16x128xbf16>
    %c1_517 = arith.constant 1 : index
    %c0_518 = arith.constant 0 : index
    %c0_519 = arith.constant 0 : index
    %366 = vector.load %arg6[%c1_517, %c0_518, %c0_519] : memref<5x128x128xbf16, #tpu.memory_space<vmem>>, vector<1x128x128xbf16>
    %367 = vector.shape_cast %366 : vector<1x128x128xbf16> to vector<128x128xbf16>
    %cst_520 = arith.constant dense<0.000000e+00> : vector<16x128xf32>
    %368 = tpu.matmul %365, %367, %cst_520 {dimension_numbers = #tpu.dot_dimension_numbers<[1], [0], [0], [1], [0, 0, 1, 1], [], []>} : vector<16x128xbf16>, vector<128x128xbf16>, vector<16x128xf32> -> vector<16x128xf32>
    %369 = arith.addf %364, %368 : vector<16x128xf32>
    %c32_521 = arith.constant 32 : index
    %c0_522 = arith.constant 0 : index
    %370 = vector.load %arg15[%c32_521, %c0_522] : memref<80x128xbf16, #tpu.memory_space<vmem>>, vector<16x128xbf16>
    %c2_523 = arith.constant 2 : index
    %c0_524 = arith.constant 0 : index
    %c0_525 = arith.constant 0 : index
    %371 = vector.load %arg6[%c2_523, %c0_524, %c0_525] : memref<5x128x128xbf16, #tpu.memory_space<vmem>>, vector<1x128x128xbf16>
    %372 = vector.shape_cast %371 : vector<1x128x128xbf16> to vector<128x128xbf16>
    %cst_526 = arith.constant dense<0.000000e+00> : vector<16x128xf32>
    %373 = tpu.matmul %370, %372, %cst_526 {dimension_numbers = #tpu.dot_dimension_numbers<[1], [0], [0], [1], [0, 0, 1, 1], [], []>} : vector<16x128xbf16>, vector<128x128xbf16>, vector<16x128xf32> -> vector<16x128xf32>
    %374 = arith.addf %369, %373 : vector<16x128xf32>
    %c48 = arith.constant 48 : index
    %c0_527 = arith.constant 0 : index
    %375 = vector.load %arg15[%c48, %c0_527] : memref<80x128xbf16, #tpu.memory_space<vmem>>, vector<16x128xbf16>
    %c3_528 = arith.constant 3 : index
    %c0_529 = arith.constant 0 : index
    %c0_530 = arith.constant 0 : index
    %376 = vector.load %arg6[%c3_528, %c0_529, %c0_530] : memref<5x128x128xbf16, #tpu.memory_space<vmem>>, vector<1x128x128xbf16>
    %377 = vector.shape_cast %376 : vector<1x128x128xbf16> to vector<128x128xbf16>
    %cst_531 = arith.constant dense<0.000000e+00> : vector<16x128xf32>
    %378 = tpu.matmul %375, %377, %cst_531 {dimension_numbers = #tpu.dot_dimension_numbers<[1], [0], [0], [1], [0, 0, 1, 1], [], []>} : vector<16x128xbf16>, vector<128x128xbf16>, vector<16x128xf32> -> vector<16x128xf32>
    %379 = arith.addf %374, %378 : vector<16x128xf32>
    %c64 = arith.constant 64 : index
    %c0_532 = arith.constant 0 : index
    %380 = vector.load %arg15[%c64, %c0_532] : memref<80x128xbf16, #tpu.memory_space<vmem>>, vector<16x128xbf16>
    %c4_533 = arith.constant 4 : index
    %c0_534 = arith.constant 0 : index
    %c0_535 = arith.constant 0 : index
    %381 = vector.load %arg6[%c4_533, %c0_534, %c0_535] : memref<5x128x128xbf16, #tpu.memory_space<vmem>>, vector<1x128x128xbf16>
    %382 = vector.shape_cast %381 : vector<1x128x128xbf16> to vector<128x128xbf16>
    %cst_536 = arith.constant dense<0.000000e+00> : vector<16x128xf32>
    %383 = tpu.matmul %380, %382, %cst_536 {dimension_numbers = #tpu.dot_dimension_numbers<[1], [0], [0], [1], [0, 0, 1, 1], [], []>} : vector<16x128xbf16>, vector<128x128xbf16>, vector<16x128xf32> -> vector<16x128xf32>
    %384 = arith.addf %379, %383 : vector<16x128xf32>
    %cst_537 = arith.constant 0.000000e+00 : f32
    %385 = vector.broadcast %cst_537 : f32 to vector<16x128xf32>
    %386 = arith.maximumf %384, %385 : vector<16x128xf32>
    %387 = arith.truncf %386 : vector<16x128xf32> to vector<16x128xbf16>
    %c0_538 = arith.constant 0 : index
    %c0_539 = arith.constant 0 : index
    %388 = vector.load %arg8[%c0_538, %c0_539] : memref<128x128xbf16, #tpu.memory_space<vmem>>, vector<128x128xbf16>
    %cst_540 = arith.constant dense<0.000000e+00> : vector<16x128xf32>
    %389 = tpu.matmul %387, %388, %cst_540 {dimension_numbers = #tpu.dot_dimension_numbers<[1], [0], [0], [1], [0, 0, 1, 1], [], []>} : vector<16x128xbf16>, vector<128x128xbf16>, vector<16x128xf32> -> vector<16x128xf32>
    %c0_541 = arith.constant 0 : index
    %c0_542 = arith.constant 0 : index
    %390 = vector.load %arg9[%c0_541, %c0_542] : memref<1x128xf32, #tpu.memory_space<vmem>>, vector<1x128xf32>
    %391 = vector.broadcast %390 : vector<1x128xf32> to vector<16x128xf32>
    %392 = arith.addf %389, %391 : vector<16x128xf32>
    %cst_543 = arith.constant 0.000000e+00 : f32
    %393 = vector.broadcast %cst_543 : f32 to vector<16x128xf32>
    %394 = arith.maximumf %392, %393 : vector<16x128xf32>
    %395 = arith.truncf %394 : vector<16x128xf32> to vector<16x128xbf16>
    %c0_544 = arith.constant 0 : index
    %c0_545 = arith.constant 0 : index
    %396 = vector.load %arg10[%c0_544, %c0_545] : memref<128x128xbf16, #tpu.memory_space<vmem>>, vector<128x128xbf16>
    %cst_546 = arith.constant dense<0.000000e+00> : vector<16x128xf32>
    %397 = tpu.matmul %395, %396, %cst_546 {dimension_numbers = #tpu.dot_dimension_numbers<[1], [0], [0], [1], [0, 0, 1, 1], [], []>} : vector<16x128xbf16>, vector<128x128xbf16>, vector<16x128xf32> -> vector<16x128xf32>
    %c0_547 = arith.constant 0 : index
    %c0_548 = arith.constant 0 : index
    %398 = vector.load %arg11[%c0_547, %c0_548] : memref<1x128xf32, #tpu.memory_space<vmem>>, vector<1x128xf32>
    %399 = vector.broadcast %398 : vector<1x128xf32> to vector<16x128xf32>
    %400 = arith.addf %397, %399 : vector<16x128xf32>
    %c0_549 = arith.constant 0 : index
    %c0_550 = arith.constant 0 : index
    %401 = vector.load %arg12[%c0_549, %c0_550] : memref<16x128xf32, #tpu.memory_space<vmem>>, vector<16x128xf32>
    tpu.vector_store %arg12[%c0_549, %c0_550], %400 {strides = array<i32>} : memref<16x128xf32, #tpu.memory_space<vmem>>, vector<16x128xf32>,
    return
  }
  func.func @transform_0(%arg0: i32) -> (i32, i32, i32, i32) {
    %c0_i32 = arith.constant 0 : i32
    %c0_i32_0 = arith.constant 0 : i32
    %c0_i32_1 = arith.constant 0 : i32
    %c0_i32_2 = arith.constant 0 : i32
    return %arg0, %c0_i32, %c0_i32_0, %c0_i32_1 : i32, i32, i32, i32
  }
  func.func @transform_1(%arg0: i32) -> (i32, i32, i32, i32) {
    %c0_i32 = arith.constant 0 : i32
    %c0_i32_0 = arith.constant 0 : i32
    %c0_i32_1 = arith.constant 0 : i32
    %c0_i32_2 = arith.constant 0 : i32
    %c0_i32_3 = arith.constant 0 : i32
    return %c0_i32, %c0_i32_0, %c0_i32_1, %c0_i32_2 : i32, i32, i32, i32
  }
  func.func @transform_2(%arg0: i32) -> (i32, i32) {
    %c0_i32 = arith.constant 0 : i32
    %c0_i32_0 = arith.constant 0 : i32
    %c0_i32_1 = arith.constant 0 : i32
    return %c0_i32, %c0_i32_0 : i32, i32
  }
  func.func @transform_3(%arg0: i32) -> (i32, i32, i32, i32) {
    %c0_i32 = arith.constant 0 : i32
    %c0_i32_0 = arith.constant 0 : i32
    %c0_i32_1 = arith.constant 0 : i32
    %c0_i32_2 = arith.constant 0 : i32
    %c0_i32_3 = arith.constant 0 : i32
    return %c0_i32, %c0_i32_0, %c0_i32_1, %c0_i32_2 : i32, i32, i32, i32
  }
  func.func @transform_4(%arg0: i32) -> (i32, i32) {
    %c0_i32 = arith.constant 0 : i32
    %c0_i32_0 = arith.constant 0 : i32
    %c0_i32_1 = arith.constant 0 : i32
    return %c0_i32, %c0_i32_0 : i32, i32
  }
  func.func @transform_5(%arg0: i32) -> (i32, i32, i32) {
    %c0_i32 = arith.constant 0 : i32
    %c0_i32_0 = arith.constant 0 : i32
    %c0_i32_1 = arith.constant 0 : i32
    %c0_i32_2 = arith.constant 0 : i32
    return %c0_i32, %c0_i32_0, %c0_i32_1 : i32, i32, i32
  }
  func.func @transform_6(%arg0: i32) -> (i32, i32) {
    %c0_i32 = arith.constant 0 : i32
    %c0_i32_0 = arith.constant 0 : i32
    %c0_i32_1 = arith.constant 0 : i32
    return %c0_i32, %c0_i32_0 : i32, i32
  }
  func.func @transform_7(%arg0: i32) -> (i32, i32) {
    %c0_i32 = arith.constant 0 : i32
    %c0_i32_0 = arith.constant 0 : i32
    %c0_i32_1 = arith.constant 0 : i32
    return %c0_i32, %c0_i32_0 : i32, i32
  }
  func.func @transform_8(%arg0: i32) -> (i32, i32) {
    %c0_i32 = arith.constant 0 : i32
    %c0_i32_0 = arith.constant 0 : i32
    %c0_i32_1 = arith.constant 0 : i32
    return %c0_i32, %c0_i32_0 : i32, i32
  }
  func.func @transform_9(%arg0: i32) -> (i32, i32) {
    %c0_i32 = arith.constant 0 : i32
    %c0_i32_0 = arith.constant 0 : i32
    %c0_i32_1 = arith.constant 0 : i32
    return %c0_i32, %c0_i32_0 : i32, i32
  }
  func.func @transform_10(%arg0: i32) -> (i32, i32) {
    %c0_i32 = arith.constant 0 : i32
    %c0_i32_0 = arith.constant 0 : i32
    %c0_i32_1 = arith.constant 0 : i32
    return %c0_i32, %c0_i32_0 : i32, i32
  }
  func.func @transform_11(%arg0: i32) -> (i32, i32) {
    %c0_i32 = arith.constant 0 : i32
    %c0_i32_0 = arith.constant 0 : i32
    return %arg0, %c0_i32 : i32, i32
  }
}

</mosaic_0001>

<bundles_post_ra>
// kernel: net_forward.1
= control target key start
LH: loop header
LB: loop body
LE: loop exit
PB: predicated region body
PF: predicated region fallthrough
CT: control target
= control target key end

     0   :  { %s10069_s17 = smov 0   ;;  %s13644_s0 = inlined_call_operand.vmem [shape: bf16[2,4,128,128], index: 0, kind: input, shape index: {}]   ;;  %s13645_s1 = inlined_call_operand.vmem [shape: bf16[5,2,128,128], index: 1, kind: input, shape index: {}]   ;;  %s13646_s2 = inlined_call_operand.vmem [shape: f32[1,128], index: 2, kind: input, shape index: {}]   ;;  %s13647_s3 = inlined_call_operand.vmem [shape: bf16[5,2,128,128], index: 3, kind: input, shape index: {}]   ;;  %s13648_s4 = inlined_call_operand.vmem [shape: f32[1,128], index: 4, kind: input, shape index: {}]   ;;  %s13649_s5 = inlined_call_operand.vmem [shape: bf16[5,128,128], index: 5, kind: input, shape index: {}]   ;;  %s13650_s6 = inlined_call_operand.vmem [shape: f32[1,128], index: 6, kind: input, shape index: {}]   ;;  %s13651_s7 = inlined_call_operand.vmem [shape: bf16[128,128], index: 7, kind: input, shape index: {}]   ;;  %s13652_s8 = inlined_call_operand.vmem [shape: f32[1,128], index: 8, kind: input, shape index: {}]   ;;  %s13653_s9 = inlined_call_operand.vmem [shape: bf16[128,128], index: 9, kind: input, shape index: {}]   ;;  %s13654_s10 = inlined_call_operand.vmem [shape: f32[1,128], index: 10, kind: input, shape index: {}]   ;;  %s13655_s11 = inlined_call_operand.vmem [shape: f32[32,128], index: 11, kind: output, shape index: {}]  }
   0x1 LB: > { %s10075_s18 = sadd.s32 4294967295, %s10007_s17   ;;  %p7095_p0 = scmp.ge.s32.totalorder %s10007_s17, 1  ;;  %s10007_s17 = sphi %s10069_s17, %s21_s17  }
   0x2   : > { %p337_p1 = scmp.lt.s32.totalorder %s10007_s17, 3 }
   0x4   : > { %p338_p2 = pnand %p7095_p0, %p337_p1 }
   0x6   : > { %341 = sbr.rel (%p338_p2) target bundleno = 2195 (0x893), region = 64 }
   0xb   : > { %v10082_v0 = vld [vmem:[%s13645_s1 + $0xb8] sm:$0xff]  ;;  %v10104_v4 = vld [vmem:[%s13645_s1 + $0xb0] sm:$0xff]  ;;  %v10128_v8 = vld [vmem:[%s13645_s1 + $0xa8] sm:$0xff]  ;;  %p377_p3 = scmp.lt.s32.totalorder %s10075_s18, 1  ;;  %s7098_s23 = sshll.u32 %s10075_s18, 1 }
   0xc   : > { %v10087_v1 = vld [vmem:[%s13645_s1 + $0x38] sm:$0xff]  ;;  %540 = vmatpush.bf16.msra.mxu0 %v10082_v0  ;;  %v10109_v5 = vld [vmem:[%s13645_s1 + $0x30] sm:$0xff]  ;;  %v10133_v9 = vld [vmem:[%s13645_s1 + $0x28] sm:$0xff]  ;;  %p383_p4 = scmp.lt.s32.totalorder %s7098_s23, 3 }
   0xd   : > { %v10092_v2 = vld [vmem:[%s13645_s1 + $0x138] sm:$0xff]  ;;  %674 = vmatpush.bf16.msra.mxu1 %v10087_v1  ;;  %v10116_v6 = vld [vmem:[%s13645_s1 + $0x130] sm:$0xff]  ;;  %v10140_v10 = vld [vmem:[%s13645_s1 + $0x128] sm:$0xff]  ;;  %s378_s14 = scalar_select %p377_p3, %s10075_s18, 1 }
   0xe   : > { %v10097_v3 = vld [vmem:[%s13645_s1 + $0x1b8] sm:$0xff]  ;;  %840 = vmatpush.bf16.msra.mxu2 %v10092_v2  ;;  %v10121_v7 = vld [vmem:[%s13645_s1 + $0x1b0] sm:$0xff]  ;;  %v10145_v11 = vld [vmem:[%s13645_s1 + $0x1a8] sm:$0xff]  ;;  %s13984_s23 = smov (!%p383_p4, %s7098_s23), 3 }
   0xf   : > { %1020 = vmatpush.bf16.msra.mxu3 %v10097_v3  ;;  %v10152_v12 = vld [vmem:[%s13645_s1 + $0xa0] sm:$0xff]  ;;  %v10174_v16 = vld [vmem:[%s13645_s1 + $0x98] sm:$0xff]  ;;  %v10201_v20 = vld [vmem:[%s13645_s1 + $0x90] sm:$0xff]  ;;  %s9384_s25 = sshll.u32 %s378_s14, 8  ;;  %s7099_s24 = sshll.u32 %s13984_s23, 3 }
  0x10   : > { %541 = vmatpush.bf16.msra.mxu0 %v10104_v4  ;;  %v10157_v13 = vld [vmem:[%s13645_s1 + $0x20] sm:$0xff]  ;;  %v10179_v17 = vld [vmem:[%s13645_s1 + $0x18] sm:$0xff]  ;;  %v10206_v21 = vld [vmem:[%s13645_s1 + $0x10] sm:$0xff]  ;;  %s10260_s13 = scalar_lea.vmem %s13644_s0, %s9384_s25  ;;  %s386_s29 = scalar_lea.vmem %s13655_s11, %s7099_s24 }
  0x11   : > { %675 = vmatpush.bf16.msra.mxu1 %v10109_v5  ;;  %v10164_v14 = vld [vmem:[%s13645_s1 + $0x120] sm:$0xff]  ;;  %v10184_v18 = vld [vmem:[%s13645_s1 + $0x118] sm:$0xff]  ;;  %v10213_v22 = vld [vmem:[%s13645_s1 + $0x110] sm:$0xff] }
  0x12   : > { %841 = vmatpush.bf16.msra.mxu2 %v10116_v6  ;;  %v10169_v15 = vld [vmem:[%s13645_s1 + $0x1a0] sm:$0xff]  ;;  %v10189_v19 = vld [vmem:[%s13645_s1 + $0x198] sm:$0xff]  ;;  %v10218_v23 = vld [vmem:[%s13645_s1 + $0x190] sm:$0xff] }
  0x13   : > { %1021 = vmatpush.bf16.msra.mxu3 %v10121_v7  ;;  %v10226_v24 = vld [vmem:[%s13645_s1 + $0x88] sm:$0xff]  ;;  %v10250_v28 = vld [vmem:[%s13645_s1 + $0x80] sm:$0xff]  ;;  %v10277_v32 = vld [vmem:[%s13645_s1 + $0x78] sm:$0xff] }
  0x14   : > { %542 = vmatpush.bf16.msra.mxu0 %v10128_v8  ;;  %v10231_v25 = vld [vmem:[%s13645_s1 + $0x8] sm:$0xff]  ;;  %v10255_v29 = vld [vmem:[%s13645_s1] sm:$0xff]  ;;  %13771 = vst [vmem:[#allocation9_spill] sm:$0xff] %v10277_v32  ;;  %v10282_v33 = vld [vmem:[%s13645_s1 + $0x238] sm:$0xff] }
  0x15   : > { %676 = vmatpush.bf16.msra.mxu1 %v10133_v9  ;;  %v10238_v26 = vld [vmem:[%s13645_s1 + $0x108] sm:$0xff]  ;;  %v10267_v30 = vld [vmem:[%s13645_s1 + $0x100] sm:$0xff]  ;;  %v10303_v38 = vld [vmem:[%s13645_s1 + $0x178] sm:$0xff] }
  0x16   : > { %842 = vmatpush.bf16.msra.mxu2 %v10140_v10  ;;  %13767 = vst [vmem:[#allocation5_spill] sm:$0xff] %v10238_v26  ;;  %v10243_v27 = vld [vmem:[%s13645_s1 + $0x188] sm:$0xff]  ;;  %v10272_v31 = vld [vmem:[%s13645_s1 + $0x180] sm:$0xff]  ;;  %v10308_v39 = vld [vmem:[%s13645_s1 + $0xf8] sm:$0xff] }
  0x17   : > { %1022 = vmatpush.bf16.msra.mxu3 %v10145_v11  ;;  %13768 = vst [vmem:[#allocation6_spill] sm:$0xff] %v10243_v27  ;;  %v10285_v34 = vld [vmem:[%s10260_s13 + $0x40] sm:$0xff]  ;;  %v10315_v40 = vld [vmem:[%s13645_s1 + $0x70] sm:$0xff]  ;;  %v10343_v44 = vld [vmem:[%s13645_s1 + $0x68] sm:$0xff] }
  0x18   : > { %543 = vmatpush.bf16.msra.mxu0 %v10152_v12  ;;  %13769 = vst [vmem:[#allocation7_spill] sm:$0xff] %v10267_v30  ;;  %v10288_v35 = vld [vmem:[%s10260_s13] sm:$0xff]  ;;  %v10320_v41 = vld [vmem:[%s13645_s1 + $0x230] sm:$0xff]  ;;  %v10348_v45 = vld [vmem:[%s13645_s1 + $0x228] sm:$0xff] }
  0x19   : > { %677 = vmatpush.bf16.msra.mxu1 %v10157_v13  ;;  %13770 = vst [vmem:[#allocation8_spill] sm:$0xff] %v10272_v31  ;;  %v10293_v36 = vld [vmem:[%s10260_s13 + $0x80] sm:$0xff]  ;;  %v10331_v42 = vld [vmem:[%s13645_s1 + $0x170] sm:$0xff]  ;;  %v10355_v46 = vld [vmem:[%s13645_s1 + $0x168] sm:$0xff] }
  0x1a   : > { %843 = vmatpush.bf16.msra.mxu2 %v10164_v14  ;;  %v10296_v37 = vld [vmem:[%s10260_s13 + $0xc0] sm:$0xff]  ;;  %13773 = vst [vmem:[#allocation11_spill] sm:$0xff] %v10303_v38  ;;  %v10336_v43 = vld [vmem:[%s13645_s1 + $0xf0] sm:$0xff]  ;;  %v10360_v47 = vld [vmem:[%s13645_s1 + $0xe8] sm:$0xff] }
  0x1b   : > { %1023 = vmatpush.bf16.msra.mxu3 %v10169_v15  ;;  %13772 = vst [vmem:[#allocation10_spill] sm:$0xff] %v10296_v37  ;;  %v10367_v48 = vld [vmem:[%s13645_s1 + $0x60] sm:$0xff]  ;;  %v10389_v52 = vld [vmem:[%s10260_s13 + $0x48] sm:$0xff]  ;;  %v10409_v56 = vld [vmem:[%s13645_s1 + $0x58] sm:$0xff] }
  0x1c   : > { %544 = vmatpush.bf16.msra.mxu0 %v10174_v16  ;;  %13774 = vst [vmem:[#allocation12_spill] sm:$0xff] %v10315_v40  ;;  %v10372_v49 = vld [vmem:[%s13645_s1 + $0x220] sm:$0xff]  ;;  %v10392_v53 = vld [vmem:[%s10260_s13 + $0x8] sm:$0xff]  ;;  %v10414_v57 = vld [vmem:[%s13645_s1 + $0x218] sm:$0xff] }
  0x1d   : > { %678 = vmatpush.bf16.msra.mxu1 %v10179_v17  ;;  %13775 = vst [vmem:[#allocation13_spill] sm:$0xff] %v10331_v42  ;;  %v10379_v50 = vld [vmem:[%s13645_s1 + $0x160] sm:$0xff]  ;;  %v10395_v54 = vld [vmem:[%s10260_s13 + $0x88] sm:$0xff]  ;;  %v10419_v58 = vld [vmem:[%s13645_s1 + $0x158] sm:$0xff] }
  0x1e   : > { %844 = vmatpush.bf16.msra.mxu2 %v10184_v18  ;;  %13776 = vst [vmem:[#allocation14_spill] sm:$0xff] %v10343_v44  ;;  %v10384_v51 = vld [vmem:[%s13645_s1 + $0xe0] sm:$0xff]  ;;  %v10398_v55 = vld [vmem:[%s10260_s13 + $0xc8] sm:$0xff]  ;;  %v10424_v59 = vld [vmem:[%s13645_s1 + $0xd8] sm:$0xff] }
  0x1f   : > { %1024 = vmatpush.bf16.msra.mxu3 %v10189_v19  ;;  %13777 = vst [vmem:[#allocation15_spill] sm:$0xff] %v10355_v46  ;;  %v10431_v60 = vld [vmem:[%s10260_s13 + $0x50] sm:$0xff] }
  0x20   : > { %545 = vmatpush.bf16.msra.mxu0 %v10201_v20  ;;  %13778 = vst [vmem:[#allocation16_spill] sm:$0xff] %v10367_v48  ;;  %v10434_v61 = vld [vmem:[%s10260_s13 + $0x10] sm:$0xff] }
  0x21   : > { %679 = vmatpush.bf16.msra.mxu1 %v10206_v21  ;;  %13779 = vst [vmem:[#allocation17_spill] sm:$0xff] %v10379_v50  ;;  %v10437_v62 = vld [vmem:[%s10260_s13 + $0x90] sm:$0xff] }
  0x22   : > { %845 = vmatpush.bf16.msra.mxu2 %v10213_v22  ;;  %13780 = vst [vmem:[#allocation18_spill] sm:$0xff] %v10398_v55  ;;  %v10440_v63 = vld [vmem:[%s10260_s13 + $0xd0] sm:$0xff] }
  0x23   : > { %1025 = vmatpush.bf16.msra.mxu3 %v10218_v23  ;;  %13781 = vst [vmem:[#allocation19_spill] sm:$0xff] %v10409_v56 }
  0x24   : > { %546 = vmatpush.bf16.msra.mxu0 %v10226_v24  ;;  %13782 = vst [vmem:[#allocation20_spill] sm:$0xff] %v10419_v58 }
  0x25   : > { %680 = vmatpush.bf16.msra.mxu1 %v10231_v25  ;;  %13783 = vst [vmem:[#allocation21_spill] sm:$0xff] %v10440_v63 }
  0x26   : > { %846 = vmatpush.bf16.msra.mxu2 %v10238_v26  ;;  %v10561_v26 = vld [vmem:[%s10260_s13 + $0xa8] sm:$0xff] }
  0x27   : > { %1026 = vmatpush.bf16.msra.mxu3 %v10243_v27  ;;  %v10558_v27 = vld [vmem:[%s10260_s13 + $0x28] sm:$0xff] }
  0x28   : > { %547 = vmatpush.bf16.msra.mxu0 %v10250_v28 }
  0x29   : > { %681 = vmatpush.bf16.msra.mxu1 %v10255_v29 }
  0x2a   : > { %847 = vmatpush.bf16.msra.mxu2 %v10267_v30  ;;  %v10555_v30 = vld [vmem:[%s10260_s13 + $0x68] sm:$0xff] }
  0x2b   : > { %1027 = vmatpush.bf16.msra.mxu3 %v10272_v31  ;;  %548 = vmatmul.bf16.vlgmr.msra.gmra.mxu0 %v10285_v34  ;;  %v10539_v31 = vld [vmem:[%s13645_s1 + $0x140] sm:$0xff] }
  0x2c   : > { %1199 = vmatpush.bf16.msrb.mxu0 %v10282_v33  ;;  %682 = vmatmul.bf16.vlgmr.msra.gmra.mxu1 %v10288_v35 }
  0x2d   : > { %848 = vmatmul.bf16.vlgmr.msra.gmra.mxu2 %v10293_v36  ;;  %1339 = vmatpush.bf16.msrb.mxu1 %v10308_v39 }
  0x2e   : > { %1431 = vmatpush.bf16.msrb.mxu2 %v10277_v32  ;;  %1028 = vmatmul.bf16.vlgmr.msra.gmra.mxu3 %v10296_v37  ;;  %v10517_v32 = vld [vmem:[%s10260_s13 + $0xa0] sm:$0xff] }
  0x2f   : > { %1540 = vmatpush.bf16.msrb.mxu3 %v10303_v38  ;;  %v10514_v38 = vld [vmem:[%s10260_s13 + $0x20] sm:$0xff] }
  0x30   : > { %1200 = vmatpush.bf16.msrb.mxu0 %v10320_v41  ;;  %v10520_v37 = vld [vmem:[%s10260_s13 + $0xe0] sm:$0xff] }
  0x31   : > { %1340 = vmatpush.bf16.msrb.mxu1 %v10336_v43  ;;  %13791 = vst [vmem:[#allocation29_spill] sm:$0xff] %v10520_v37 }
  0x32   : > { %1432 = vmatpush.bf16.msrb.mxu2 %v10315_v40  ;;  %v10504_v40 = vld [vmem:[%s13645_s1 + $0xc8] sm:$0xff] }
  0x33   : > { %1541 = vmatpush.bf16.msrb.mxu3 %v10331_v42  ;;  %v10499_v42 = vld [vmem:[%s13645_s1 + $0x148] sm:$0xff] }
  0x34   : > { %1201 = vmatpush.bf16.msrb.mxu0 %v10348_v45  ;;  %13790 = vst [vmem:[#allocation28_spill] sm:$0xff] %v10499_v42 }
  0x35   : > { %1341 = vmatpush.bf16.msrb.mxu1 %v10360_v47 }
  0x36   : > { %1433 = vmatpush.bf16.msrb.mxu2 %v10343_v44  ;;  %v10480_v44 = vld [vmem:[%s10260_s13 + $0xd8] sm:$0xff] }
  0x37   : > { %1542 = vmatpush.bf16.msrb.mxu3 %v10355_v46  ;;  %v10477_v46 = vld [vmem:[%s10260_s13 + $0x98] sm:$0xff]  ;;  %13788 = vst [vmem:[#allocation26_spill] sm:$0xff] %v10480_v44 }
  0x38   : > { %1202 = vmatpush.bf16.msrb.mxu0 %v10372_v49  ;;  %13787 = vst [vmem:[#allocation25_spill] sm:$0xff] %v10477_v46 }
  0x39   : > { %1342 = vmatpush.bf16.msrb.mxu1 %v10384_v51 }
  0x3a   : > { %1434 = vmatpush.bf16.msrb.mxu2 %v10367_v48  ;;  %v10474_v48 = vld [vmem:[%s10260_s13 + $0x18] sm:$0xff] }
  0x3b   : > { %1543 = vmatpush.bf16.msrb.mxu3 %v10379_v50  ;;  %553 = vmatmul.bf16.gmra.mxu0 %v10389_v52  ;;  %v10464_v50 = vld [vmem:[%s13645_s1 + $0xd0] sm:$0xff] }
  0x3c   : > { %687 = vmatmul.bf16.gmra.mxu1 %v10392_v53  ;;  %1203 = vmatpush.bf16.msrb.mxu0 %v10414_v57 }
  0x3d   : > { %853 = vmatmul.bf16.gmra.mxu2 %v10395_v54  ;;  %1343 = vmatpush.bf16.msrb.mxu1 %v10424_v59 }
  0x3e   : > { %1033 = vmatmul.bf16.gmra.mxu3 %v10398_v55  ;;  %1435 = vmatpush.bf16.msrb.mxu2 %v10409_v56  ;;  %v10454_v56 = vld [vmem:[%s13645_s1 + $0x210] sm:$0xff] }
  0x3f   : > { %1544 = vmatpush.bf16.msrb.mxu3 %v10419_v58  ;;  %v10449_v58 = vld [vmem:[%s13645_s1 + $0x50] sm:$0xff] }
  0x40   : > { %13784 = vst [vmem:[#allocation22_spill] sm:$0xff] %v10449_v58  ;;  %v10459_v55 = vld [vmem:[%s13645_s1 + $0x150] sm:$0xff]  ;;  %1204 = vmatpush.bf16.msrb.mxu0 %v10454_v56 }
  0x41   : > { %13785 = vst [vmem:[#allocation23_spill] sm:$0xff] %v10459_v55  ;;  %1344 = vmatpush.bf16.msrb.mxu1 %v10464_v50 }
  0x42   : > { %1436 = vmatpush.bf16.msrb.mxu2 %v10449_v58  ;;  %v10494_v58 = vld [vmem:[%s13645_s1 + $0x208] sm:$0xff] }
  0x43   : > { %1545 = vmatpush.bf16.msrb.mxu3 %v10459_v55  ;;  %v10489_v55 = vld [vmem:[%s13645_s1 + $0x48] sm:$0xff] }
  0x44   : > { %13789 = vst [vmem:[#allocation27_spill] sm:$0xff] %v10489_v55  ;;  %1205 = vmatpush.bf16.msrb.mxu0 %v10494_v58 }
  0x45   : > { %1345 = vmatpush.bf16.msrb.mxu1 %v10504_v40 }
  0x46   : > { %1437 = vmatpush.bf16.msrb.mxu2 %v10489_v55  ;;  %v10534_v55 = vld [vmem:[%s13645_s1 + $0x200] sm:$0xff] }
  0x47   : > { %1546 = vmatpush.bf16.msrb.mxu3 %v10499_v42  ;;  %v10529_v42 = vld [vmem:[%s13645_s1 + $0x40] sm:$0xff] }
  0x48   : > { %13792 = vst [vmem:[#allocation30_spill] sm:$0xff] %v10529_v42  ;;  %1206 = vmatpush.bf16.msrb.mxu0 %v10534_v55 }
  0x4a   : > { %1438 = vmatpush.bf16.msrb.mxu2 %v10529_v42  ;;  %v10564_v42 = vld [vmem:[%s10260_s13 + $0xe8] sm:$0xff] }
  0x4b   : > { %558 = vmatmul.bf16.gmra.mxu0 %v10431_v60  ;;  %1547 = vmatpush.bf16.msrb.mxu3 %v10539_v31  ;;  %13793 = vst [vmem:[#allocation31_spill] sm:$0xff] %v10564_v42 }
  0x4c   : > { %692 = vmatmul.bf16.gmra.mxu1 %v10434_v61 }
  0x4d   : > { %858 = vmatmul.bf16.gmra.mxu2 %v10437_v62 }
  0x4e   : > { %1038 = vmatmul.bf16.gmra.mxu3 %v10440_v63  ;;  %v10471_v63 = vld [vmem:[%s10260_s13 + $0x58] sm:$0xff]  ;;  %1858 = vmatpush.bf16.msra.mxu2 %v10082_v0 }
  0x4f   : > { %13786 = vst [vmem:[#allocation24_spill] sm:$0xff] %v10471_v63  ;;  %1902 = vmatpush.bf16.msra.mxu3 %v10087_v1  ;;  %v10575_v0 = vld [vmem:[%s13645_s1 + $0x1f8] sm:$0xff] }
  0x50   : > { %v10580_v1 = vld [vmem:[%s13645_s1 + $0x278] sm:$0xff]  ;;  %1663 = vmatpush.bf16.msra.mxu0 %v10575_v0 }
  0x52   : > { %1859 = vmatpush.bf16.msra.mxu2 %v10104_v4  ;;  %v10591_v4 = vld [vmem:[%s10260_s13 + $0x70] sm:$0xff] }
  0x53   : > { %1903 = vmatpush.bf16.msra.mxu3 %v10109_v5  ;;  %v10594_v5 = vld [vmem:[%s10260_s13 + $0x30] sm:$0xff] }
  0x56   : > { %1860 = vmatpush.bf16.msra.mxu2 %v10128_v8  ;;  %v10597_v8 = vld [vmem:[%s10260_s13 + $0xb0] sm:$0xff] }
  0x57   : > { %1904 = vmatpush.bf16.msra.mxu3 %v10133_v9  ;;  %v10600_v9 = vld [vmem:[%s10260_s13 + $0xf0] sm:$0xff] }
  0x58   : > { %13794 = vst [vmem:[#allocation32_spill] sm:$0xff] %v10600_v9 }
  0x5a   : > { %1861 = vmatpush.bf16.msra.mxu2 %v10152_v12  ;;  %v10611_v12 = vld [vmem:[%s13645_s1 + $0x1f0] sm:$0xff] }
  0x5b   : > { %563 = vmatmul.bf16.gmra.mxu0 %v10471_v63  ;;  %1905 = vmatpush.bf16.msra.mxu3 %v10157_v13  ;;  %v10616_v13 = vld [vmem:[%s13645_s1 + $0x270] sm:$0xff] }
  0x5c   : > { %697 = vmatmul.bf16.gmra.mxu1 %v10474_v48  ;;  %1664 = vmatpush.bf16.msra.mxu0 %v10611_v12 }
  0x5d   : > { %863 = vmatmul.bf16.gmra.mxu2 %v10477_v46 }
  0x5e   : > { %1043 = vmatmul.bf16.gmra.mxu3 %v10480_v44  ;;  %v10511_v44 = vld [vmem:[%s10260_s13 + $0x60] sm:$0xff]  ;;  %1862 = vmatpush.bf16.msra.mxu2 %v10174_v16  ;;  %v10623_v16 = vld [vmem:[%s10260_s13 + $0x8] sm:$0xff] }
  0x5f   : > { %1906 = vmatpush.bf16.msra.mxu3 %v10179_v17  ;;  %v10628_v17 = vld [vmem:[%s13645_s1 + $0x1e8] sm:$0xff] }
  0x60   : > { %1665 = vmatpush.bf16.msra.mxu0 %v10628_v17 }
  0x62   : > { %1863 = vmatpush.bf16.msra.mxu2 %v10201_v20  ;;  %v10637_v20 = vld [vmem:[%s13645_s1 + $0x268] sm:$0xff] }
  0x63   : > { %1907 = vmatpush.bf16.msra.mxu3 %v10206_v21  ;;  %v10648_v21 = vld [vmem:[%s10260_s13 + $0x10] sm:$0xff] }
  0x66   : > { %1864 = vmatpush.bf16.msra.mxu2 %v10226_v24 }
  0x67   : > { %1908 = vmatpush.bf16.msra.mxu3 %v10231_v25 }
  0x6a   : > { %1865 = vmatpush.bf16.msra.mxu2 %v10250_v28 }
  0x6b   : > { %568 = vmatmul.bf16.gmra.mxu0 %v10511_v44  ;;  %1909 = vmatpush.bf16.msra.mxu3 %v10255_v29  ;;  %v10654_v29 = vld [vmem:[%s13645_s1 + $0x1e0] sm:$0xff] }
  0x6c   : > { %702 = vmatmul.bf16.gmra.mxu1 %v10514_v38  ;;  %1666 = vmatpush.bf16.msra.mxu0 %v10654_v29 }
  0x6d   : > { %868 = vmatmul.bf16.gmra.mxu2 %v10517_v32 }
  0x6e   : > { %1048 = vmatmul.bf16.gmra.mxu3 %v10520_v37  ;;  %v10544_v37 = vld [vmem:[%s13645_s1 + $0xc0] sm:$0xff] }
  0x6f   : > { %1346 = vmatpush.bf16.msrb.mxu1 %v10544_v37 }
  0x73   : > { %1786 = vmatpush.bf16.msra.mxu1 %v10580_v1 }
  0x77   : > { %1787 = vmatpush.bf16.msra.mxu1 %v10616_v13 }
  0x7b   : > { %573 = vmatmul.bf16.gmra.mxu0 %v10555_v30  ;;  %1788 = vmatpush.bf16.msra.mxu1 %v10637_v20 }
  0x7c   : > { %707 = vmatmul.bf16.gmra.mxu1 %v10558_v27 }
  0x7d   : > { %873 = vmatmul.bf16.gmra.mxu2 %v10561_v26 }
  0x7e   : > { %1053 = vmatmul.bf16.gmra.mxu3 %v10564_v42 }
  0x8b   : > { %578 = vmatmul.bf16.gmra.mxu0 %v10591_v4 }
  0x8c   : > { %712 = vmatmul.bf16.gmra.mxu1 %v10594_v5 }
  0x8d   : > { %878 = vmatmul.bf16.gmra.mxu2 %v10597_v8 }
  0x8e   : > { %1058 = vmatmul.bf16.gmra.mxu3 %v10600_v9 }
  0x9b   : > { %1207 = vmatmul.bf16.vlgmr.msrb.gmra.mxu0 %v10623_v16 }
  0x9c   : > { %1347 = vmatmul.bf16.vlgmr.msrb.gmra.mxu1 %v10285_v34 }
  0x9d   : > { %1439 = vmatmul.bf16.vlgmr.msrb.gmra.mxu2 %v10288_v35 }
  0x9e   : > { %1548 = vmatmul.bf16.vlgmr.msrb.gmra.mxu3 %v10293_v36  ;;  %2118 = vmatpush.bf16.msrb.mxu2 %v10282_v33  ;;  %v10659_v33 = vld [vmem:[%s13645_s1 + $0x260] sm:$0xff] }
  0x9f   : > { %2190 = vmatpush.bf16.msrb.mxu3 %v10308_v39  ;;  %1789 = vmatpush.bf16.msra.mxu1 %v10659_v33 }
  0xa2   : > { %2119 = vmatpush.bf16.msrb.mxu2 %v10320_v41 }
  0xa3   : > { %2191 = vmatpush.bf16.msrb.mxu3 %v10336_v43 }
  0xa6   : > { %2120 = vmatpush.bf16.msrb.mxu2 %v10348_v45 }
  0xa7   : > { %2192 = vmatpush.bf16.msrb.mxu3 %v10360_v47 }
  0xa8   : > { %v549_v24 = vpop.f32.mrf.mxu0 }
  0xa9   : > { %v683_v25 = vpop.f32.mrf.mxu1 }
  0xaa   : > { %v684_v28 = vadd.f32 %v683_v25, %v549_v24  ;;  %2121 = vmatpush.bf16.msrb.mxu2 %v10372_v49 }
  0xab   : > { %2193 = vmatpush.bf16.msrb.mxu3 %v10384_v51  ;;  %1212 = vmatmul.bf16.gmra.mxu0 %v10648_v21  ;;  %v10675_v51 = vld [vmem:[%s13645_s1 + $0x1d8] sm:$0xff] }
  0xac   : > { %1352 = vmatmul.bf16.gmra.mxu1 %v10389_v52  ;;  %1667 = vmatpush.bf16.msra.mxu0 %v10675_v51 }
  0xad   : > { %1444 = vmatmul.bf16.gmra.mxu2 %v10392_v53 }
  0xae   : > { %1553 = vmatmul.bf16.gmra.mxu3 %v10395_v54  ;;  %2122 = vmatpush.bf16.msrb.mxu2 %v10414_v57 }
  0xaf   : > { %2194 = vmatpush.bf16.msrb.mxu3 %v10424_v59  ;;  %v10683_v59 = vld [vmem:[%s10260_s13 + $0x18] sm:$0xff] }
  0xb0   : > { %v849_v35 = vpop.f32.mrf.mxu2  ;;  %v551_v43 = vpop.f32.mrf.mxu0 }
  0xb1   : > { %v1029_v39 = vpop.f32.mrf.mxu3  ;;  %v884_v41 = vadd.f32 %v849_v35, %v684_v28  ;;  %v685_v45 = vpop.f32.mrf.mxu1 }
  0xb2   : > { %v686_v47 = vadd.f32 %v685_v45, %v551_v43  ;;  %2123 = vmatpush.bf16.msrb.mxu2 %v10454_v56 }
  0xb3   : > { %v10670_v49 = vadd.f32 %v1029_v39, %v884_v41  ;;  %2195 = vmatpush.bf16.msrb.mxu3 %v10464_v50  ;;  %v10690_v50 = vld [vmem:[%s13645_s1 + $0x258] sm:$0xff] }
  0xb4   : > { %1790 = vmatpush.bf16.msra.mxu1 %v10690_v50 }
  0xb6   : > { %2124 = vmatpush.bf16.msrb.mxu2 %v10494_v58 }
  0xb7   : > { %2196 = vmatpush.bf16.msrb.mxu3 %v10504_v40 }
  0xb8   : > { %v851_v53 = vpop.f32.mrf.mxu2  ;;  %v554_v25 = vpop.f32.mrf.mxu0 }
  0xb9   : > { %v1031_v57 = vpop.f32.mrf.mxu3  ;;  %v885_v24 = vadd.f32 %v851_v53, %v686_v47  ;;  %v688_v28 = vpop.f32.mrf.mxu1 }
  0xba   : > { %v689_v35 = vadd.f32 %v688_v28, %v554_v25  ;;  %2125 = vmatpush.bf16.msrb.mxu2 %v10534_v55 }
  0xbb   : > { %v10685_v39 = vadd.f32 %v1031_v57, %v885_v24  ;;  %2197 = vmatpush.bf16.msrb.mxu3 %v10544_v37  ;;  %1217 = vmatmul.bf16.gmra.mxu0 %v10683_v59  ;;  %v10704_v37 = vld [vmem:[%s13645_s1 + $0x1d0] sm:$0xff]  ;;  %v10714_v57 = vld [vmem:[%s10260_s13 + $0x20] sm:$0xff] }
  0xbc   : > { %1357 = vmatmul.bf16.gmra.mxu1 %v10431_v60  ;;  %1668 = vmatpush.bf16.msra.mxu0 %v10704_v37  ;;  %13795 = vst [vmem:[#allocation33_spill] sm:$0xff] %v10714_v57 }
  0xbd   : > { %1449 = vmatmul.bf16.gmra.mxu2 %v10434_v61  ;;  %v10709_v61 = vld [vmem:[%s13645_s1 + $0x250] sm:$0xff] }
  0xbe   : > { %1558 = vmatmul.bf16.gmra.mxu3 %v10437_v62  ;;  %1791 = vmatpush.bf16.msra.mxu1 %v10709_v61 }
  0xc0   : > { %v854_v40 = vpop.f32.mrf.mxu2  ;;  %v556_v41 = vpop.f32.mrf.mxu0 }
  0xc1   : > { %v1034_v56 = vpop.f32.mrf.mxu3  ;;  %v886_v58 = vadd.f32 %v854_v40, %v689_v35  ;;  %v690_v43 = vpop.f32.mrf.mxu1 }
  0xc2   : > { %v691_v45 = vadd.f32 %v690_v43, %v556_v41 }
  0xc3   : > { %v10699_v55 = vadd.f32 %v1034_v56, %v886_v58 }
  0xc8   : > { %v856_v47 = vpop.f32.mrf.mxu2  ;;  %v559_v25 = vpop.f32.mrf.mxu0 }
  0xc9   : > { %v1036_v53 = vpop.f32.mrf.mxu3  ;;  %v887_v24 = vadd.f32 %v856_v47, %v691_v45  ;;  %v693_v28 = vpop.f32.mrf.mxu1 }
  0xca   : > { %v694_v35 = vadd.f32 %v693_v28, %v559_v25  ;;  %v10737_v28 = vld [vmem:[%s10260_s13 + $0x28] sm:$0xff] }
  0xcb   : > { %v10716_v40 = vadd.f32 %v1036_v53, %v887_v24  ;;  %1222 = vmatmul.bf16.gmra.mxu0 %v10714_v57  ;;  %v10727_v53 = vld [vmem:[%s13645_s1 + $0x1c8] sm:$0xff] }
  0xcc   : > { %1362 = vmatmul.bf16.gmra.mxu1 %v10471_v63  ;;  %v10732_v24 = vld [vmem:[%s13645_s1 + $0x248] sm:$0xff]  ;;  %1669 = vmatpush.bf16.msra.mxu0 %v10727_v53 }
  0xcd   : > { %1454 = vmatmul.bf16.gmra.mxu2 %v10474_v48  ;;  %1792 = vmatpush.bf16.msra.mxu1 %v10732_v24 }
  0xce   : > { %1563 = vmatmul.bf16.gmra.mxu3 %v10477_v46 }
  0xd0   : > { %v859_v56 = vpop.f32.mrf.mxu2  ;;  %v561_v43 = vpop.f32.mrf.mxu0 }
  0xd1   : > { %v1039_v58 = vpop.f32.mrf.mxu3  ;;  %v888_v41 = vadd.f32 %v859_v56, %v694_v35  ;;  %v695_v9 = vpop.f32.mrf.mxu1 }
  0xd2   : > { %v696_v45 = vadd.f32 %v695_v9, %v561_v43 }
  0xd3   : > { %v10722_v47 = vadd.f32 %v1039_v58, %v888_v41 }
  0xd8   : > { %v861_v48 = vpop.f32.mrf.mxu2  ;;  %v564_v35 = vpop.f32.mrf.mxu0 }
  0xd9   : > { %v1041_v25 = vpop.f32.mrf.mxu3  ;;  %v889_v9 = vadd.f32 %v861_v48, %v696_v45  ;;  %v698_v56 = vpop.f32.mrf.mxu1 }
  0xda   : > { %v699_v58 = vadd.f32 %v698_v56, %v564_v35 }
  0xdb   : > { %v10739_v41 = vadd.f32 %v1041_v25, %v889_v9  ;;  %1227 = vmatmul.bf16.gmra.mxu0 %v10737_v28  ;;  %v10750_v25 = vld [vmem:[%s13645_s1 + $0x1c0] sm:$0xff] }
  0xdc   : > { %1367 = vmatmul.bf16.gmra.mxu1 %v10511_v44  ;;  %1670 = vmatpush.bf16.msra.mxu0 %v10750_v25 }
  0xdd   : > { %1459 = vmatmul.bf16.gmra.mxu2 %v10514_v38  ;;  %v10755_v38 = vld [vmem:[%s13645_s1 + $0x240] sm:$0xff] }
  0xde   : > { %1568 = vmatmul.bf16.gmra.mxu3 %v10517_v32  ;;  %1793 = vmatpush.bf16.msra.mxu1 %v10755_v38 }
  0xe0   : > { %v864_v43 = vpop.f32.mrf.mxu2  ;;  %v566_v46 = vpop.f32.mrf.mxu0  ;;  %1946 = vmatpush.bf16.msrb.mxu0 %v10092_v2 }
  0xe1   : > { %v1044_v42 = vpop.f32.mrf.mxu3  ;;  %v890_v63 = vadd.f32 %v864_v43, %v699_v58  ;;  %v700_v57 = vpop.f32.mrf.mxu1 }
  0xe2   : > { %v701_v45 = vadd.f32 %v700_v57, %v566_v46  ;;  %2004 = vmatpush.bf16.msrb.mxu1 %v10097_v3 }
  0xe3   : > { %v10745_v48 = vadd.f32 %v1044_v42, %v890_v63  ;;  %v10762_v63 = vld [vmem:[%s10260_s13 + $0x30] sm:$0xff] }
  0xe4   : > { %1947 = vmatpush.bf16.msrb.mxu0 %v10116_v6 }
  0xe6   : > { %2005 = vmatpush.bf16.msrb.mxu1 %v10121_v7 }
  0xe8   : > { %v866_v42 = vpop.f32.mrf.mxu2  ;;  %v569_v9 = vpop.f32.mrf.mxu0  ;;  %1948 = vmatpush.bf16.msrb.mxu0 %v10140_v10 }
  0xe9   : > { %v1046_v46 = vpop.f32.mrf.mxu3  ;;  %v891_v57 = vadd.f32 %v866_v42, %v701_v45  ;;  %v703_v35 = vpop.f32.mrf.mxu1 }
  0xea   : > { %v704_v56 = vadd.f32 %v703_v35, %v569_v9  ;;  %2006 = vmatpush.bf16.msrb.mxu1 %v10145_v11 }
  0xeb   : > { %v10766_v58 = vadd.f32 %v1046_v46, %v891_v57  ;;  %1232 = vmatmul.bf16.gmra.mxu0 %v10762_v63  ;;  %v10781_v46 = vld [vmem:[%s10260_s13 + $0x38] sm:$0xff] }
  0xec   : > { %1372 = vmatmul.bf16.gmra.mxu1 %v10555_v30  ;;  %1949 = vmatpush.bf16.msrb.mxu0 %v10164_v14 }
  0xed   : > { %1464 = vmatmul.bf16.gmra.mxu2 %v10558_v27 }
  0xee   : > { %1573 = vmatmul.bf16.gmra.mxu3 %v10561_v26  ;;  %2007 = vmatpush.bf16.msrb.mxu1 %v10169_v15  ;;  %v13796_v15 = vld [vmem:[#allocation5_spill] sm:$0xff] }
  0xf0   : > { %v869_v2 = vpop.f32.mrf.mxu2  ;;  %v571_v43 = vpop.f32.mrf.mxu0  ;;  %1950 = vmatpush.bf16.msrb.mxu0 %v10184_v18  ;;  %v13797_v18 = vld [vmem:[#allocation6_spill] sm:$0xff] }
  0xf1   : > { %v1049_v3 = vpop.f32.mrf.mxu3  ;;  %v892_v6 = vadd.f32 %v869_v2, %v704_v56  ;;  %v705_v7 = vpop.f32.mrf.mxu1 }
  0xf2   : > { %v706_v45 = vadd.f32 %v705_v7, %v571_v43  ;;  %2008 = vmatpush.bf16.msrb.mxu1 %v10189_v19  ;;  %v13799_v43 = vld [vmem:[#allocation8_spill] sm:$0xff] }
  0xf3   : > { %v10776_v42 = vadd.f32 %v1049_v3, %v892_v6  ;;  %v13798_v6 = vld [vmem:[#allocation7_spill] sm:$0xff] }
  0xf4   : > { %1951 = vmatpush.bf16.msrb.mxu0 %v10213_v22 }
  0xf6   : > { %2009 = vmatpush.bf16.msrb.mxu1 %v10218_v23 }
  0xf8   : > { %v871_v27 = vpop.f32.mrf.mxu2  ;;  %v574_v57 = vpop.f32.mrf.mxu0  ;;  %1952 = vmatpush.bf16.msrb.mxu0 %v13796_v15  ;;  %v13800_v15 = vld [vmem:[#allocation10_spill] sm:$0xff] }
  0xf9   : > { %v1051_v10 = vpop.f32.mrf.mxu3  ;;  %v893_v11 = vadd.f32 %v871_v27, %v706_v45  ;;  %v708_v9 = vpop.f32.mrf.mxu1 }
  0xfa   : > { %v709_v35 = vadd.f32 %v708_v9, %v574_v57  ;;  %2010 = vmatpush.bf16.msrb.mxu1 %v13797_v18  ;;  %v13802_v18 = vld [vmem:[#allocation11_spill] sm:$0xff] }
  0xfb   : > { %v10785_v14 = vadd.f32 %v1051_v10, %v893_v11  ;;  %1237 = vmatmul.bf16.gmra.mxu0 %v10781_v46 }
  0xfc   : > { %1377 = vmatmul.bf16.gmra.mxu1 %v10591_v4  ;;  %1953 = vmatpush.bf16.msrb.mxu0 %v13798_v6  ;;  %v13803_v6 = vld [vmem:[#allocation12_spill] sm:$0xff] }
  0xfd   : > { %1469 = vmatmul.bf16.gmra.mxu2 %v10594_v5 }
  0xfe   : > { %1578 = vmatmul.bf16.gmra.mxu3 %v10597_v8  ;;  %2011 = vmatpush.bf16.msrb.mxu1 %v13799_v43 }
 0x100   : > { %v874_v19 = vpop.f32.mrf.mxu2  ;;  %v576_v22 = vpop.f32.mrf.mxu0 }
 0x101   : > { %v1054_v56 = vpop.f32.mrf.mxu3  ;;  %v894_v2 = vadd.f32 %v874_v19, %v709_v35  ;;  %v710_v3 = vpop.f32.mrf.mxu1  ;;  %v13801_v35 = vld [vmem:[#allocation9_spill] sm:$0xff] }
 0x102   : > { %v711_v23 = vadd.f32 %v710_v3, %v576_v22 }
 0x103   : > { %v10795_v7 = vadd.f32 %v1054_v56, %v894_v2 }
 0x108   : > { %v876_v45 = vpop.f32.mrf.mxu2  ;;  %v579_v10 = vpop.f32.mrf.mxu0 }
 0x109   : > { %v1056_v5 = vpop.f32.mrf.mxu3  ;;  %v895_v27 = vadd.f32 %v876_v45, %v711_v23  ;;  %v713_v11 = vpop.f32.mrf.mxu1 }
 0x10a   : > { %v714_v57 = vadd.f32 %v713_v11, %v579_v10 }
 0x10b   : > { %v10797_v9 = vadd.f32 %v1056_v5, %v895_v27  ;;  %1671 = vmatmul.bf16.vlgmr.msra.gmra.mxu0 %v13800_v15 }
 0x10c   : > { %1794 = vmatmul.bf16.vlgmr.msra.gmra.mxu1 %v10623_v16  ;;  %2234 = vmatpush.bf16.msra.mxu0 %v13801_v35 }
 0x10d   : > { %1866 = vmatmul.bf16.vlgmr.msra.gmra.mxu2 %v10293_v36  ;;  %2278 = vmatpush.bf16.msra.mxu1 %v13802_v18 }
 0x10e   : > { %1910 = vmatmul.bf16.vlgmr.msra.gmra.mxu3 %v10285_v34  ;;  %2336 = vmatpush.bf16.msra.mxu2 %v10575_v0  ;;  %v13804_v34 = vld [vmem:[#allocation13_spill] sm:$0xff]  ;;  %v13805_v0 = vld [vmem:[#allocation14_spill] sm:$0xff] }
 0x10f   : > { %2394 = vmatpush.bf16.msra.mxu3 %v10580_v1  ;;  %v13806_v1 = vld [vmem:[#allocation15_spill] sm:$0xff] }
 0x110   : > { %v879_v19 = vpop.f32.mrf.mxu2  ;;  %v581_v22 = vpop.f32.mrf.mxu0  ;;  %2235 = vmatpush.bf16.msra.mxu0 %v13803_v6 }
 0x111   : > { %v1059_v56 = vpop.f32.mrf.mxu3  ;;  %v896_v2 = vadd.f32 %v879_v19, %v714_v57  ;;  %v715_v3 = vpop.f32.mrf.mxu1  ;;  %2279 = vmatpush.bf16.msra.mxu1 %v13804_v34 }
 0x112   : > { %v716_v23 = vadd.f32 %v715_v3, %v581_v22  ;;  %2337 = vmatpush.bf16.msra.mxu2 %v10611_v12  ;;  %v13812_v22 = vld [vmem:[#allocation22_spill] sm:$0xff]  ;;  %v13815_v3 = vld [vmem:[#allocation28_spill] sm:$0xff] }
 0x113   : > { %v10809_v43 = vadd.f32 %v1059_v56, %v896_v2  ;;  %2395 = vmatpush.bf16.msra.mxu3 %v10616_v13  ;;  %v13807_v13 = vld [vmem:[#allocation16_spill] sm:$0xff] }
 0x114   : > { %2236 = vmatpush.bf16.msra.mxu0 %v13805_v0 }
 0x115   : > { %2280 = vmatpush.bf16.msra.mxu1 %v13806_v1 }
 0x116   : > { %2338 = vmatpush.bf16.msra.mxu2 %v10628_v17  ;;  %v13808_v17 = vld [vmem:[#allocation17_spill] sm:$0xff] }
 0x117   : > { %2396 = vmatpush.bf16.msra.mxu3 %v10637_v20  ;;  %v13809_v20 = vld [vmem:[#allocation18_spill] sm:$0xff] }
 0x118   : > { %v881_v45 = vpop.f32.mrf.mxu2  ;;  %v1208_v12 = vpop.f32.mrf.mxu0  ;;  %2237 = vmatpush.bf16.msra.mxu0 %v13807_v13 }
 0x119   : > { %v1061_v5 = vpop.f32.mrf.mxu3  ;;  %v897_v27 = vadd.f32 %v881_v45, %v716_v23  ;;  %v1348_v10 = vpop.f32.mrf.mxu1  ;;  %v10818_v11 = vadd.f32 %v1208_v12, %v10670_v49  ;;  %2281 = vmatpush.bf16.msra.mxu1 %v13808_v17  ;;  %v13810_v49 = vld [vmem:[#allocation19_spill] sm:$0xff] }
 0x11a   : > { %2339 = vmatpush.bf16.msra.mxu2 %v10654_v29  ;;  %v13811_v29 = vld [vmem:[#allocation20_spill] sm:$0xff] }
 0x11b   : > { %v10822_v57 = vadd.f32 %v1061_v5, %v897_v27  ;;  %2397 = vmatpush.bf16.msra.mxu3 %v10659_v33  ;;  %1676 = vmatmul.bf16.gmra.mxu0 %v13809_v20 }
 0x11c   : > { %1799 = vmatmul.bf16.gmra.mxu1 %v10648_v21  ;;  %2238 = vmatpush.bf16.msra.mxu0 %v13810_v49 }
 0x11d   : > { %1871 = vmatmul.bf16.gmra.mxu2 %v10395_v54  ;;  %2282 = vmatpush.bf16.msra.mxu1 %v13811_v29 }
 0x11e   : > { %1915 = vmatmul.bf16.gmra.mxu3 %v10389_v52  ;;  %2340 = vmatpush.bf16.msra.mxu2 %v10675_v51  ;;  %v13813_v51 = vld [vmem:[#allocation23_spill] sm:$0xff] }
 0x11f   : > { %2398 = vmatpush.bf16.msra.mxu3 %v10690_v50  ;;  %v13814_v50 = vld [vmem:[#allocation27_spill] sm:$0xff] }
 0x120   : > { %v1440_v35 = vpop.f32.mrf.mxu2  ;;  %v1210_v19 = vpop.f32.mrf.mxu0  ;;  %2239 = vmatpush.bf16.msra.mxu0 %v13812_v22 }
 0x121   : > { %v1549_v33 = vpop.f32.mrf.mxu3  ;;  %v1441_v18 = vadd.f32 %v1440_v35, %v1348_v10  ;;  %v1350_v56 = vpop.f32.mrf.mxu1  ;;  %v10835_v2 = vadd.f32 %v1210_v19, %v10685_v39  ;;  %2283 = vmatpush.bf16.msra.mxu1 %v13813_v51  ;;  %v13819_v35 = vld [vmem:[#allocation33_spill] sm:$0xff] }
 0x122   : > { %2341 = vmatpush.bf16.msra.mxu2 %v10704_v37 }
 0x123   : > { %v10839_v52 = vadd.f32 %v1549_v33, %v1441_v18  ;;  %2399 = vmatpush.bf16.msra.mxu3 %v10709_v61  ;;  %v13816_v61 = vld [vmem:[#allocation30_spill] sm:$0xff]  ;;  %v13820_v33 = vld [vmem:[#allocation25_spill] sm:$0xff] }
 0x124   : > { %2240 = vmatpush.bf16.msra.mxu0 %v13814_v50 }
 0x125   : > { %2284 = vmatpush.bf16.msra.mxu1 %v13815_v3 }
 0x126   : > { %2342 = vmatpush.bf16.msra.mxu2 %v10727_v53  ;;  %v13817_v53 = vld [vmem:[#allocation21_spill] sm:$0xff] }
 0x127   : > { %2400 = vmatpush.bf16.msra.mxu3 %v10732_v24 }
 0x128   : > { %v1442_v39 = vpop.f32.mrf.mxu2  ;;  %v1213_v37 = vpop.f32.mrf.mxu0  ;;  %2241 = vmatpush.bf16.msra.mxu0 %v13816_v61 }
 0x129   : > { %v1551_v23 = vpop.f32.mrf.mxu3  ;;  %v1443_v6 = vadd.f32 %v1442_v39, %v1350_v56  ;;  %v1353_v34 = vpop.f32.mrf.mxu1  ;;  %v10848_v0 = vadd.f32 %v1213_v37, %v10699_v55  ;;  %2285 = vmatpush.bf16.msra.mxu1 %v10539_v31 }
 0x12a   : > { %2343 = vmatpush.bf16.msra.mxu2 %v10750_v25 }
 0x12b   : > { %v10852_v1 = vadd.f32 %v1551_v23, %v1443_v6  ;;  %2401 = vmatpush.bf16.msra.mxu3 %v10755_v38  ;;  %1681 = vmatmul.bf16.gmra.mxu0 %v13817_v53 }
 0x12c   : > { %1804 = vmatmul.bf16.gmra.mxu1 %v10683_v59 }
 0x12d   : > { %1876 = vmatmul.bf16.gmra.mxu2 %v10437_v62 }
 0x12e   : > { %1920 = vmatmul.bf16.gmra.mxu3 %v10431_v60  ;;  %v13818_v60 = vld [vmem:[#allocation26_spill] sm:$0xff] }
 0x130   : > { %v1445_v55 = vpop.f32.mrf.mxu2  ;;  %v1215_v25 = vpop.f32.mrf.mxu0 }
 0x131   : > { %v1554_v24 = vpop.f32.mrf.mxu3  ;;  %v1446_v45 = vadd.f32 %v1445_v55, %v1353_v34  ;;  %v1355_v5 = vpop.f32.mrf.mxu1  ;;  %v10861_v27 = vadd.f32 %v1215_v25, %v10716_v40  ;;  %v13821_v40 = vld [vmem:[#allocation24_spill] sm:$0xff]  ;;  %v13822_v55 = vld [vmem:[#allocation29_spill] sm:$0xff] }
 0x133   : > { %v10863_v12 = vadd.f32 %v1554_v24, %v1446_v45 }
 0x138   : > { %v1447_v38 = vpop.f32.mrf.mxu2  ;;  %v1218_v13 = vpop.f32.mrf.mxu0 }
 0x139   : > { %v1556_v31 = vpop.f32.mrf.mxu3  ;;  %v1448_v10 = vadd.f32 %v1447_v38, %v1355_v5  ;;  %v1358_v17 = vpop.f32.mrf.mxu1  ;;  %v10866_v49 = vadd.f32 %v1218_v13, %v10722_v47 }
 0x13b   : > { %v10868_v29 = vadd.f32 %v1556_v31, %v1448_v10  ;;  %1686 = vmatmul.bf16.gmra.mxu0 %v13818_v60 }
 0x13c   : > { %1809 = vmatmul.bf16.gmra.mxu1 %v13819_v35 }
 0x13d   : > { %1881 = vmatmul.bf16.gmra.mxu2 %v13820_v33 }
 0x13e   : > { %1925 = vmatmul.bf16.gmra.mxu3 %v13821_v40 }
 0x140   : > { %v1450_v18 = vpop.f32.mrf.mxu2  ;;  %v1220_v22 = vpop.f32.mrf.mxu0 }
 0x141   : > { %v1559_v19 = vpop.f32.mrf.mxu3  ;;  %v1451_v56 = vadd.f32 %v1450_v18, %v1358_v17  ;;  %v1360_v51 = vpop.f32.mrf.mxu1  ;;  %v10875_v50 = vadd.f32 %v1220_v22, %v10739_v41 }
 0x143   : > { %v10877_v47 = vadd.f32 %v1559_v19, %v1451_v56 }
 0x148   : > { %v1452_v3 = vpop.f32.mrf.mxu2  ;;  %v1223_v6 = vpop.f32.mrf.mxu0 }
 0x149   : > { %v1561_v39 = vpop.f32.mrf.mxu3  ;;  %v1453_v23 = vadd.f32 %v1452_v3, %v1360_v51  ;;  %v1363_v37 = vpop.f32.mrf.mxu1  ;;  %v10880_v34 = vadd.f32 %v1223_v6, %v10745_v48 }
 0x14b   : > { %v10882_v61 = vadd.f32 %v1561_v39, %v1453_v23  ;;  %1691 = vmatmul.bf16.gmra.mxu0 %v13822_v55 }
 0x14c   : > { %1814 = vmatmul.bf16.gmra.mxu1 %v10737_v28 }
 0x14d   : > { %1886 = vmatmul.bf16.gmra.mxu2 %v10517_v32 }
 0x14e   : > { %1930 = vmatmul.bf16.gmra.mxu3 %v10511_v44  ;;  %v13823_v44 = vld [vmem:[#allocation31_spill] sm:$0xff] }
 0x150   : > { %v1455_v41 = vpop.f32.mrf.mxu2  ;;  %v1225_v25 = vpop.f32.mrf.mxu0 }
 0x151   : > { %v1564_v24 = vpop.f32.mrf.mxu3  ;;  %v1456_v45 = vadd.f32 %v1455_v41, %v1363_v37  ;;  %v1365_v5 = vpop.f32.mrf.mxu1  ;;  %v10889_v38 = vadd.f32 %v1225_v25, %v10766_v58 }
 0x153   : > { %v10891_v48 = vadd.f32 %v1564_v24, %v1456_v45 }
 0x158   : > { %v1457_v31 = vpop.f32.mrf.mxu2  ;;  %v1228_v17 = vpop.f32.mrf.mxu0 }
 0x159   : > { %v1566_v10 = vpop.f32.mrf.mxu3  ;;  %v1458_v13 = vadd.f32 %v1457_v31, %v1365_v5  ;;  %v1368_v40 = vpop.f32.mrf.mxu1  ;;  %v10894_v18 = vadd.f32 %v1228_v17, %v10776_v42 }
 0x15b   : > { %v10896_v19 = vadd.f32 %v1566_v10, %v1458_v13  ;;  %1696 = vmatmul.bf16.gmra.mxu0 %v13823_v44 }
 0x15c   : > { %1819 = vmatmul.bf16.gmra.mxu1 %v10762_v63 }
 0x15d   : > { %1891 = vmatmul.bf16.gmra.mxu2 %v10561_v26 }
 0x15e   : > { %1935 = vmatmul.bf16.gmra.mxu3 %v10555_v30  ;;  %v13824_v30 = vld [vmem:[#allocation32_spill] sm:$0xff] }
 0x160   : > { %v1460_v58 = vpop.f32.mrf.mxu2  ;;  %v1230_v51 = vpop.f32.mrf.mxu0 }
 0x161   : > { %v1569_v56 = vpop.f32.mrf.mxu3  ;;  %v1461_v22 = vadd.f32 %v1460_v58, %v1368_v40  ;;  %v1370_v3 = vpop.f32.mrf.mxu1  ;;  %v10903_v39 = vadd.f32 %v1230_v51, %v10785_v14 }
 0x163   : > { %v10905_v42 = vadd.f32 %v1569_v56, %v1461_v22 }
 0x168   : > { %v1462_v23 = vpop.f32.mrf.mxu2  ;;  %v1233_v41 = vpop.f32.mrf.mxu0 }
 0x169   : > { %v1571_v6 = vpop.f32.mrf.mxu3  ;;  %v1463_v37 = vadd.f32 %v1462_v23, %v1370_v3  ;;  %v1373_v24 = vpop.f32.mrf.mxu1  ;;  %v10908_v45 = vadd.f32 %v1233_v41, %v10795_v7  ;;  %v10922_v3 = vld [vmem:[%s10260_s13 + $0x48] sm:$0xff] }
 0x16b   : > { %v10910_v25 = vadd.f32 %v1571_v6, %v1463_v37  ;;  %1701 = vmatmul.bf16.gmra.mxu0 %v13824_v30 }
 0x16c   : > { %1824 = vmatmul.bf16.gmra.mxu1 %v10781_v46 }
 0x16d   : > { %1896 = vmatmul.bf16.gmra.mxu2 %v10597_v8 }
 0x16e   : > { %1940 = vmatmul.bf16.gmra.mxu3 %v10591_v4 }
 0x170   : > { %v1465_v14 = vpop.f32.mrf.mxu2  ;;  %v1235_v10 = vpop.f32.mrf.mxu0 }
 0x171   : > { %v1574_v5 = vpop.f32.mrf.mxu3  ;;  %v1466_v31 = vadd.f32 %v1465_v14, %v1373_v24  ;;  %v1375_v13 = vpop.f32.mrf.mxu1  ;;  %v10917_v17 = vadd.f32 %v1235_v10, %v10797_v9 }
 0x173   : > { %v10919_v7 = vadd.f32 %v1574_v5, %v1466_v31 }
 0x178   : > { %v1467_v40 = vpop.f32.mrf.mxu2  ;;  %v1238_v22 = vpop.f32.mrf.mxu0 }
 0x179   : > { %v1576_v58 = vpop.f32.mrf.mxu3  ;;  %v1468_v56 = vadd.f32 %v1467_v40, %v1375_v13  ;;  %v1378_v51 = vpop.f32.mrf.mxu1  ;;  %v10925_v23 = vadd.f32 %v1238_v22, %v10809_v43  ;;  %v10939_v40 = vld [vmem:[%s10260_s13 + $0x50] sm:$0xff] }
 0x17b   : > { %v10927_v4 = vadd.f32 %v1576_v58, %v1468_v56  ;;  %1954 = vmatmul.bf16.vlgmr.msrb.gmra.mxu0 %v13800_v15 }
 0x17c   : > { %2012 = vmatmul.bf16.vlgmr.msrb.gmra.mxu1 %v10623_v16 }
 0x17d   : > { %2126 = vmatmul.bf16.vlgmr.msrb.gmra.mxu2 %v10922_v3 }
 0x17e   : > { %2198 = vmatmul.bf16.vlgmr.msrb.gmra.mxu3 %v10293_v36 }
 0x180   : > { %v1470_v9 = vpop.f32.mrf.mxu2  ;;  %v1240_v41 = vpop.f32.mrf.mxu0 }
 0x181   : > { %v1579_v6 = vpop.f32.mrf.mxu3  ;;  %v1471_v37 = vadd.f32 %v1470_v9, %v1378_v51  ;;  %v1380_v24 = vpop.f32.mrf.mxu1  ;;  %v10934_v14 = vadd.f32 %v1240_v41, %v10822_v57 }
 0x183   : > { %v10936_v43 = vadd.f32 %v1579_v6, %v1471_v37 }
 0x188   : > { %v1472_v5 = vpop.f32.mrf.mxu2  ;;  %v1672_v10 = vpop.f32.mrf.mxu0 }
 0x189   : > { %v1581_v31 = vpop.f32.mrf.mxu3  ;;  %v1473_v15 = vadd.f32 %v1472_v5, %v1380_v24  ;;  %v1795_v13 = vpop.f32.mrf.mxu1  ;;  %v1707_v58 = vadd.f32 %v1672_v10, %v10839_v52 }
 0x18b   : > { %v10942_v36 = vadd.f32 %v1581_v31, %v1473_v15  ;;  %v10944_v56 = vadd.f32 %v1795_v13, %v1707_v58  ;;  %1959 = vmatmul.bf16.gmra.mxu0 %v13809_v20  ;;  %v10962_v15 = vld [vmem:[%s10260_s13 + $0x58] sm:$0xff] }
 0x18c   : > { %2017 = vmatmul.bf16.gmra.mxu1 %v10648_v21 }
 0x18d   : > { %2131 = vmatmul.bf16.gmra.mxu2 %v10939_v40 }
 0x18e   : > { %2203 = vmatmul.bf16.gmra.mxu3 %v10395_v54 }
 0x190   : > { %v1867_v22 = vpop.f32.mrf.mxu2  ;;  %v1674_v52 = vpop.f32.mrf.mxu0 }
 0x191   : > { %v1911_v51 = vpop.f32.mrf.mxu3  ;;  %v1797_v6 = vpop.f32.mrf.mxu1  ;;  %v1708_v37 = vadd.f32 %v1674_v52, %v10852_v1 }
 0x192   : > { %v10952_v9 = vadd.f32 %v1911_v51, %v1867_v22 }
 0x193   : > { %v10955_v41 = vadd.f32 %v1797_v6, %v1708_v37 }
 0x198   : > { %v1869_v20 = vpop.f32.mrf.mxu2  ;;  %v1677_v54 = vpop.f32.mrf.mxu0 }
 0x199   : > { %v1913_v24 = vpop.f32.mrf.mxu3  ;;  %v1800_v31 = vpop.f32.mrf.mxu1  ;;  %v1709_v10 = vadd.f32 %v1677_v54, %v10863_v12 }
 0x19a   : > { %v10959_v5 = vadd.f32 %v1913_v24, %v1869_v20 }
 0x19b   : > { %v10965_v13 = vadd.f32 %v1800_v31, %v1709_v10  ;;  %1964 = vmatmul.bf16.gmra.mxu0 %v13817_v53  ;;  %v10983_v31 = vld [vmem:[%s10260_s13 + $0x60] sm:$0xff] }
 0x19c   : > { %2022 = vmatmul.bf16.gmra.mxu1 %v10683_v59 }
 0x19d   : > { %2136 = vmatmul.bf16.gmra.mxu2 %v10962_v15 }
 0x19e   : > { %2208 = vmatmul.bf16.gmra.mxu3 %v10437_v62 }
 0x1a0   : > { %v1872_v58 = vpop.f32.mrf.mxu2  ;;  %v1679_v52 = vpop.f32.mrf.mxu0 }
 0x1a1   : > { %v1916_v22 = vpop.f32.mrf.mxu3  ;;  %v1802_v12 = vpop.f32.mrf.mxu1  ;;  %v1710_v6 = vadd.f32 %v1679_v52, %v10868_v29  ;;  %v11004_v29 = vld [vmem:[%s10260_s13 + $0x68] sm:$0xff] }
 0x1a2   : > { %v10973_v51 = vadd.f32 %v1916_v22, %v1872_v58 }
 0x1a3   : > { %v10976_v37 = vadd.f32 %v1802_v12, %v1710_v6 }
 0x1a8   : > { %v1874_v53 = vpop.f32.mrf.mxu2  ;;  %v1682_v62 = vpop.f32.mrf.mxu0 }
 0x1a9   : > { %v1918_v20 = vpop.f32.mrf.mxu3  ;;  %v1805_v54 = vpop.f32.mrf.mxu1  ;;  %v1711_v10 = vadd.f32 %v1682_v62, %v10877_v47 }
 0x1aa   : > { %v10980_v24 = vadd.f32 %v1918_v20, %v1874_v53 }
 0x1ab   : > { %v10986_v58 = vadd.f32 %v1805_v54, %v1711_v10  ;;  %1969 = vmatmul.bf16.gmra.mxu0 %v13818_v60 }
 0x1ac   : > { %2027 = vmatmul.bf16.gmra.mxu1 %v13819_v35 }
 0x1ad   : > { %2141 = vmatmul.bf16.gmra.mxu2 %v10983_v31 }
 0x1ae   : > { %2213 = vmatmul.bf16.gmra.mxu3 %v13820_v33 }
 0x1b0   : > { %v1877_v22 = vpop.f32.mrf.mxu2  ;;  %v1684_v6 = vpop.f32.mrf.mxu0 }
 0x1b1   : > { %v1921_v52 = vpop.f32.mrf.mxu3  ;;  %v1807_v47 = vpop.f32.mrf.mxu1  ;;  %v1712_v53 = vadd.f32 %v1684_v6, %v10882_v61  ;;  %v11025_v61 = vld [vmem:[%s10260_s13 + $0x70] sm:$0xff] }
 0x1b2   : > { %v10994_v12 = vadd.f32 %v1921_v52, %v1877_v22 }
 0x1b3   : > { %v10997_v20 = vadd.f32 %v1807_v47, %v1712_v53 }
 0x1b8   : > { %v1879_v35 = vpop.f32.mrf.mxu2  ;;  %v1687_v33 = vpop.f32.mrf.mxu0 }
 0x1b9   : > { %v1923_v62 = vpop.f32.mrf.mxu3  ;;  %v1810_v10 = vpop.f32.mrf.mxu1  ;;  %v1713_v22 = vadd.f32 %v1687_v33, %v10891_v48 }
 0x1ba   : > { %v11001_v54 = vadd.f32 %v1923_v62, %v1879_v35 }
 0x1bb   : > { %v11007_v52 = vadd.f32 %v1810_v10, %v1713_v22  ;;  %1974 = vmatmul.bf16.gmra.mxu0 %v13822_v55 }
 0x1bc   : > { %2032 = vmatmul.bf16.gmra.mxu1 %v10737_v28  ;;  %v11064_v28 = vld [vmem:[%s10260_s13 + $0x78] sm:$0xff] }
 0x1bd   : > { %2146 = vmatmul.bf16.gmra.mxu2 %v11004_v29 }
 0x1be   : > { %2218 = vmatmul.bf16.gmra.mxu3 %v10517_v32 }
 0x1c0   : > { %v1882_v6 = vpop.f32.mrf.mxu2  ;;  %v1689_v35 = vpop.f32.mrf.mxu0 }
 0x1c1   : > { %v1926_v47 = vpop.f32.mrf.mxu3  ;;  %v1812_v48 = vpop.f32.mrf.mxu1  ;;  %v1714_v62 = vadd.f32 %v1689_v35, %v10896_v19  ;;  %v9551_v35 = vld [vmem:[%s13645_s1 + $0x138] sm:$0xff] }
 0x1c2   : > { %v11015_v53 = vadd.f32 %v1926_v47, %v1882_v6  ;;  %2974 = vmatpush.bf16.msrb.mxu2 %v9551_v35 }
 0x1c3   : > { %v11018_v33 = vadd.f32 %v1812_v48, %v1714_v62 }
 0x1c8   : > { %v1884_v55 = vpop.f32.mrf.mxu2  ;;  %v1692_v32 = vpop.f32.mrf.mxu0 }
 0x1c9   : > { %v1928_v10 = vpop.f32.mrf.mxu3  ;;  %v1815_v60 = vpop.f32.mrf.mxu1  ;;  %v1715_v6 = vadd.f32 %v1692_v32, %v10905_v42  ;;  %v11042_v42 = vld [vmem:[%s13645_s1 + $0xb8] sm:$0xff] }
 0x1ca   : > { %v11022_v22 = vadd.f32 %v1928_v10, %v1884_v55  ;;  %2676 = vmatpush.bf16.msrb.mxu0 %v11042_v42  ;;  %v11053_v55 = vld [vmem:[%s13645_s1 + $0x38] sm:$0xff] }
 0x1cb   : > { %v11028_v47 = vadd.f32 %v1815_v60, %v1715_v6  ;;  %1979 = vmatmul.bf16.gmra.mxu0 %v13823_v44  ;;  %2810 = vmatpush.bf16.msrb.mxu1 %v11053_v55 }
 0x1cc   : > { %2037 = vmatmul.bf16.gmra.mxu1 %v10762_v63  ;;  %v9566_v63 = vld [vmem:[%s13645_s1 + $0x1b8] sm:$0xff] }
 0x1cd   : > { %2151 = vmatmul.bf16.gmra.mxu2 %v11025_v61  ;;  %3152 = vmatpush.bf16.msrb.mxu3 %v9566_v63 }
 0x1ce   : > { %2223 = vmatmul.bf16.gmra.mxu3 %v10561_v26 }
 0x1d0   : > { %v1887_v44 = vpop.f32.mrf.mxu2  ;;  %v1694_v48 = vpop.f32.mrf.mxu0 }
 0x1d1   : > { %v1931_v60 = vpop.f32.mrf.mxu3  ;;  %v1817_v62 = vpop.f32.mrf.mxu1  ;;  %v1716_v10 = vadd.f32 %v1694_v48, %v10910_v25  ;;  %v9550_v25 = vld [vmem:[%s13645_s1 + $0x130] sm:$0xff] }
 0x1d2   : > { %v11048_v26 = vadd.f32 %v1931_v60, %v1887_v44  ;;  %v11079_v48 = vld [vmem:[%s13645_s1 + $0xb0] sm:$0xff]  ;;  %2975 = vmatpush.bf16.msrb.mxu2 %v9550_v25 }
 0x1d3   : > { %v11057_v32 = vadd.f32 %v1817_v62, %v1716_v10  ;;  %2677 = vmatpush.bf16.msrb.mxu0 %v11079_v48 }
 0x1d8   : > { %v1889_v35 = vpop.f32.mrf.mxu2  ;;  %v1697_v19 = vpop.f32.mrf.mxu0 }
 0x1d9   : > { %v1933_v44 = vpop.f32.mrf.mxu3  ;;  %v1820_v63 = vpop.f32.mrf.mxu1  ;;  %v1717_v59 = vadd.f32 %v1697_v19, %v10919_v7  ;;  %v9565_v7 = vld [vmem:[%s13645_s1 + $0x1b0] sm:$0xff] }
 0x1da   : > { %v11061_v60 = vadd.f32 %v1933_v44, %v1889_v35  ;;  %3153 = vmatpush.bf16.msrb.mxu3 %v9565_v7 }
 0x1db   : > { %v11067_v1 = vadd.f32 %v1820_v63, %v1717_v59  ;;  %1984 = vmatmul.bf16.gmra.mxu0 %v13824_v30 }
 0x1dc   : > { %2042 = vmatmul.bf16.gmra.mxu1 %v10781_v46  ;;  %v11087_v46 = vld [vmem:[%s13645_s1 + $0x30] sm:$0xff] }
 0x1dd   : > { %2156 = vmatmul.bf16.gmra.mxu2 %v11064_v28  ;;  %2811 = vmatpush.bf16.msrb.mxu1 %v11087_v46 }
 0x1de   : > { %2228 = vmatmul.bf16.gmra.mxu3 %v10597_v8 }
 0x1e0   : > { %v1892_v8 = vpop.f32.mrf.mxu2  ;;  %v1699_v62 = vpop.f32.mrf.mxu0 }
 0x1e1   : > { %v1936_v59 = vpop.f32.mrf.mxu3  ;;  %v1822_v10 = vpop.f32.mrf.mxu1  ;;  %v1718_v35 = vadd.f32 %v1699_v62, %v10927_v4  ;;  %v9925_v4 = vld [vmem:[%s10260_s13 + $0x40] sm:$0xff] }
 0x1e2   : > { %v11093_v19 = vadd.f32 %v1936_v59, %v1892_v8  ;;  %v9549_v8 = vld [vmem:[%s13645_s1 + $0x128] sm:$0xff]  ;;  %v9926_v62 = vld [vmem:[%s10260_s13 + $0xc0] sm:$0xff] }
 0x1e3   : > { %v11096_v44 = vadd.f32 %v1822_v10, %v1718_v35  ;;  %v11113_v10 = vld [vmem:[%s13645_s1 + $0xa8] sm:$0xff]  ;;  %2976 = vmatpush.bf16.msrb.mxu2 %v9549_v8  ;;  %v9548_v8 = vld [vmem:[%s13645_s1 + $0x120] sm:$0xff] }
 0x1e4   : > { %13825 = vst [vmem:[#allocation5_spill] sm:$0xff] %v11113_v10  ;;  %2678 = vmatpush.bf16.msrb.mxu0 %v11113_v10 }
 0x1e7   : > { %2977 = vmatpush.bf16.msrb.mxu2 %v9548_v8  ;;  %v9928_v8 = vld [vmem:[%s10260_s13 + $0xc8] sm:$0xff] }
 0x1e8   : > { %v1894_v25 = vpop.f32.mrf.mxu2  ;;  %v1702_v6 = vpop.f32.mrf.mxu0 }
 0x1e9   : > { %v1938_v30 = vpop.f32.mrf.mxu3  ;;  %v1825_v21 = vpop.f32.mrf.mxu1  ;;  %v1719_v57 = vadd.f32 %v1702_v6, %v10936_v43  ;;  %v11123_v43 = vld [vmem:[%s13645_s1 + $0x28] sm:$0xff] }
 0x1ea   : > { %v11100_v7 = vadd.f32 %v1938_v30, %v1894_v25  ;;  %v9564_v30 = vld [vmem:[%s13645_s1 + $0x1a8] sm:$0xff]  ;;  %13826 = vst [vmem:[#allocation6_spill] sm:$0xff] %v11123_v43  ;;  %2812 = vmatpush.bf16.msrb.mxu1 %v11123_v43  ;;  %v13827_v43 = vmax.f32 %v10818_v11, %v10944_v56 }
 0x1eb   : > { %v11106_v59 = vadd.f32 %v1825_v21, %v1719_v57  ;;  %2242 = vmatmul.bf16.vlgmr.msra.gmra.mxu0 %v9925_v4  ;;  %3154 = vmatpush.bf16.msrb.mxu3 %v9564_v30 }
 0x1ec   : > { %2286 = vmatmul.bf16.vlgmr.msra.gmra.mxu1 %v9926_v62  ;;  %v9927_v62 = vld [vmem:[%s10260_s13 + $0x48] sm:$0xff] }
 0x1ed   : > { %2344 = vmatmul.bf16.vlgmr.msra.gmra.mxu2 %v10623_v16 }
 0x1ee   : > { %2402 = vmatmul.bf16.vlgmr.msra.gmra.mxu3 %v10922_v3 }
 0x1f0   : > { %v1897_v21 = vpop.f32.mrf.mxu2  ;;  %v1704_v16 = vpop.f32.mrf.mxu0 }
 0x1f1   : > { %v1941_v6 = vpop.f32.mrf.mxu3  ;;  %v1827_v3 = vpop.f32.mrf.mxu1  ;;  %v1720_v25 = vadd.f32 %v1704_v16, %v10942_v36  ;;  %v11145_v16 = vld [vmem:[%s13645_s1 + $0xa0] sm:$0xff] }
 0x1f2   : > { %v11129_v35 = vadd.f32 %v1941_v6, %v1897_v21  ;;  %2679 = vmatpush.bf16.msrb.mxu0 %v11145_v16 }
 0x1f3   : > { %v11132_v4 = vadd.f32 %v1827_v3, %v1720_v25  ;;  %v9563_v3 = vld [vmem:[%s13645_s1 + $0x1a0] sm:$0xff] }
 0x1f4   : > { %3155 = vmatpush.bf16.msrb.mxu3 %v9563_v3  ;;  %v11175_v3 = vld [vmem:[%s13645_s1 + $0x98] sm:$0xff] }
 0x1f5   : > { %13828 = vst [vmem:[#allocation7_spill] sm:$0xff] %v11175_v3 }
 0x1f6   : > { %2680 = vmatpush.bf16.msrb.mxu0 %v11175_v3  ;;  %v9931_v3 = vld [vmem:[%s10260_s13 + $0xd0] sm:$0xff] }
 0x1f8   : > { %v1899_v30 = vpop.f32.mrf.mxu2  ;;  %v1955_v57 = vpop.f32.mrf.mxu0 }
 0x1f9   : > { %v1943_v21 = vpop.f32.mrf.mxu3  ;;  %v2013_v63 = vpop.f32.mrf.mxu1  ;;  %v1990_v36 = vadd.f32 %v1955_v57, %v10952_v9  ;;  %v9929_v9 = vld [vmem:[%s10260_s13 + $0x10] sm:$0xff] }
 0x1fa   : > { %v11139_v6 = vadd.f32 %v1943_v21, %v1899_v30  ;;  %v11155_v30 = vld [vmem:[%s13645_s1 + $0x20] sm:$0xff] }
 0x1fb   : > { %v2048_v25 = vadd.f32 %v2013_v63, %v1990_v36  ;;  %2247 = vmatmul.bf16.gmra.mxu0 %v9927_v62  ;;  %2813 = vmatpush.bf16.msrb.mxu1 %v11155_v30 }
 0x1fc   : > { %2291 = vmatmul.bf16.gmra.mxu1 %v9928_v8 }
 0x1fd   : > { %2349 = vmatmul.bf16.gmra.mxu2 %v9929_v9 }
 0x1fe   : > { %2407 = vmatmul.bf16.gmra.mxu3 %v10939_v40  ;;  %v9547_v40 = vld [vmem:[%s13645_s1 + $0x118] sm:$0xff] }
 0x1ff   : > { %2978 = vmatpush.bf16.msrb.mxu2 %v9547_v40 }
 0x200   : > { %v2127_v57 = vpop.f32.mrf.mxu2  ;;  %v1957_v21 = vpop.f32.mrf.mxu0 }
 0x201   : > { %v11161_v63 = vpop.f32.mrf.mxu3  ;;  %v2162_v62 = vadd.f32 %v2127_v57, %v2048_v25  ;;  %v2015_v36 = vpop.f32.mrf.mxu1  ;;  %v1991_v8 = vadd.f32 %v1957_v21, %v10959_v5  ;;  %v9562_v5 = vld [vmem:[%s13645_s1 + $0x198] sm:$0xff]  ;;  %v13829_v21 = vmax.f32 %v10835_v2, %v10955_v41 }
 0x202   : > { %3156 = vmatpush.bf16.msrb.mxu3 %v9562_v5  ;;  %v9930_v5 = vld [vmem:[%s10260_s13 + $0x50] sm:$0xff] }
 0x203   : > { %v11167_v10 = vmax.f32 %v13827_v43, %v2162_v62  ;;  %v2049_v9 = vadd.f32 %v2015_v36, %v1991_v8  ;;  %v11192_v8 = vld [vmem:[%s13645_s1 + $0x18] sm:$0xff] }
 0x204   : > { %2814 = vmatpush.bf16.msrb.mxu1 %v11192_v8 }
 0x208   : > { %v2129_v11 = vpop.f32.mrf.mxu2  ;;  %v1960_v25 = vpop.f32.mrf.mxu0 }
 0x209   : > { %v11181_v56 = vpop.f32.mrf.mxu3  ;;  %v2163_v43 = vadd.f32 %v2129_v11, %v2049_v9  ;;  %v2018_v57 = vpop.f32.mrf.mxu1  ;;  %v1992_v62 = vadd.f32 %v1960_v25, %v10973_v51  ;;  %v9932_v9 = vld [vmem:[%s10260_s13 + $0x18] sm:$0xff] }
 0x20b   : > { %v11187_v36 = vmax.f32 %v13829_v21, %v2163_v43  ;;  %v2050_v40 = vadd.f32 %v2018_v57, %v1992_v62  ;;  %2252 = vmatmul.bf16.gmra.mxu0 %v9930_v5  ;;  %v13830_v57 = vmax.f32 %v10848_v0, %v10965_v13  ;;  %v11213_v21 = vld [vmem:[%s13645_s1 + $0x90] sm:$0xff] }
 0x20c   : > { %2296 = vmatmul.bf16.gmra.mxu1 %v9931_v3  ;;  %13831 = vst [vmem:[#allocation8_spill] sm:$0xff] %v11213_v21  ;;  %v11221_v0 = vld [vmem:[%s13645_s1 + $0x10] sm:$0xff]  ;;  %2681 = vmatpush.bf16.msrb.mxu0 %v11213_v21 }
 0x20d   : > { %2354 = vmatmul.bf16.gmra.mxu2 %v9932_v9  ;;  %13832 = vst [vmem:[#allocation10_spill] sm:$0xff] %v11221_v0  ;;  %2815 = vmatpush.bf16.msrb.mxu1 %v11221_v0 }
 0x20e   : > { %2412 = vmatmul.bf16.gmra.mxu3 %v10962_v15  ;;  %v9546_v15 = vld [vmem:[%s13645_s1 + $0x110] sm:$0xff] }
 0x20f   : > { %2979 = vmatpush.bf16.msrb.mxu2 %v9546_v15  ;;  %v9934_v15 = vld [vmem:[%s10260_s13 + $0xd8] sm:$0xff] }
 0x210   : > { %v2132_v51 = vpop.f32.mrf.mxu2  ;;  %v1962_v11 = vpop.f32.mrf.mxu0 }
 0x211   : > { %v11199_v2 = vpop.f32.mrf.mxu3  ;;  %v2164_v41 = vadd.f32 %v2132_v51, %v2050_v40  ;;  %v2020_v43 = vpop.f32.mrf.mxu1  ;;  %v1993_v25 = vadd.f32 %v1962_v11, %v10980_v24  ;;  %v9561_v24 = vld [vmem:[%s13645_s1 + $0x190] sm:$0xff]  ;;  %v13833_v11 = vmax.f32 %v10861_v27, %v10976_v37  ;;  %v13834_v27 = vmax.f32 %v10866_v49, %v10986_v58  ;;  %v11259_v49 = vld [vmem:[%s13645_s1 + $0x8] sm:$0xff] }
 0x212   : > { %3157 = vmatpush.bf16.msrb.mxu3 %v9561_v24  ;;  %v9935_v24 = vld [vmem:[%s10260_s13 + $0x20] sm:$0xff]  ;;  %2816 = vmatpush.bf16.msrb.mxu1 %v11259_v49 }
 0x213   : > { %v11205_v62 = vmax.f32 %v13830_v57, %v2164_v41  ;;  %v2051_v3 = vadd.f32 %v2020_v43, %v1993_v25  ;;  %v9933_v57 = vld [vmem:[%s10260_s13 + $0x58] sm:$0xff] }
 0x218   : > { %v2134_v13 = vpop.f32.mrf.mxu2  ;;  %v1965_v9 = vpop.f32.mrf.mxu0 }
 0x219   : > { %v11225_v40 = vpop.f32.mrf.mxu3  ;;  %v2165_v5 = vadd.f32 %v2134_v13, %v2051_v3  ;;  %v2023_v51 = vpop.f32.mrf.mxu1  ;;  %v1994_v41 = vadd.f32 %v1965_v9, %v10994_v12 }
 0x21b   : > { %v11231_v43 = vmax.f32 %v13833_v11, %v2165_v5  ;;  %v2052_v25 = vadd.f32 %v2023_v51, %v1994_v41  ;;  %2257 = vmatmul.bf16.gmra.mxu0 %v9933_v57  ;;  %v9545_v5 = vld [vmem:[%s13645_s1 + $0x108] sm:$0xff]  ;;  %v13835_v57 = vmax.f32 %v10875_v50, %v10997_v20 }
 0x21c   : > { %2301 = vmatmul.bf16.gmra.mxu1 %v9934_v15  ;;  %2980 = vmatpush.bf16.msrb.mxu2 %v9545_v5 }
 0x21d   : > { %2359 = vmatmul.bf16.gmra.mxu2 %v9935_v24 }
 0x21e   : > { %2417 = vmatmul.bf16.gmra.mxu3 %v10983_v31  ;;  %v11251_v31 = vld [vmem:[%s13645_s1 + $0x88] sm:$0xff] }
 0x21f   : > { %2682 = vmatpush.bf16.msrb.mxu0 %v11251_v31 }
 0x220   : > { %v2137_v0 = vpop.f32.mrf.mxu2  ;;  %v1967_v21 = vpop.f32.mrf.mxu0 }
 0x221   : > { %v11237_v3 = vpop.f32.mrf.mxu3  ;;  %v2166_v13 = vadd.f32 %v2137_v0, %v2052_v25  ;;  %v2025_v12 = vpop.f32.mrf.mxu1  ;;  %v1995_v9 = vadd.f32 %v1967_v21, %v11001_v54  ;;  %v9560_v54 = vld [vmem:[%s13645_s1 + $0x188] sm:$0xff] }
 0x222   : > { %3158 = vmatpush.bf16.msrb.mxu3 %v9560_v54 }
 0x223   : > { %v11243_v37 = vmax.f32 %v13834_v27, %v2166_v13  ;;  %v2053_v51 = vadd.f32 %v2025_v12, %v1995_v9  ;;  %v9936_v13 = vld [vmem:[%s10260_s13 + $0x60] sm:$0xff]  ;;  %v9938_v9 = vld [vmem:[%s10260_s13 + $0x28] sm:$0xff] }
 0x224   : > { %v9937_v12 = vld [vmem:[%s10260_s13 + $0xe0] sm:$0xff] }
 0x225   : > { %v9544_v27 = vld [vmem:[%s13645_s1 + $0x100] sm:$0xff] }
 0x226   : > { %2981 = vmatpush.bf16.msrb.mxu2 %v9544_v27 }
 0x228   : > { %v2139_v58 = vpop.f32.mrf.mxu2  ;;  %v1970_v41 = vpop.f32.mrf.mxu0 }
 0x229   : > { %v11263_v21 = vpop.f32.mrf.mxu3  ;;  %v2167_v0 = vadd.f32 %v2139_v58, %v2053_v51  ;;  %v2028_v11 = vpop.f32.mrf.mxu1  ;;  %v1996_v25 = vadd.f32 %v1970_v41, %v11015_v53  ;;  %v13836_v58 = vmax.f32 %v10880_v34, %v11007_v52  ;;  %v9559_v41 = vld [vmem:[%s13645_s1 + $0x180] sm:$0xff] }
 0x22a   : > { %3159 = vmatpush.bf16.msrb.mxu3 %v9559_v41 }
 0x22b   : > { %v11269_v15 = vmax.f32 %v13835_v57, %v2167_v0  ;;  %v2054_v24 = vadd.f32 %v2028_v11, %v1996_v25  ;;  %2262 = vmatmul.bf16.gmra.mxu0 %v9936_v13 }
 0x22c   : > { %2306 = vmatmul.bf16.gmra.mxu1 %v9937_v12  ;;  %v13837_v12 = vmax.f32 %v10889_v38, %v11018_v33  ;;  %v9605_v38 = vld [vmem:[%s13645_s1 + $0x178] sm:$0xff] }
 0x22d   : > { %2364 = vmatmul.bf16.gmra.mxu2 %v9938_v9 }
 0x22e   : > { %2422 = vmatmul.bf16.gmra.mxu3 %v11004_v29  ;;  %v11289_v29 = vld [vmem:[%s13645_s1 + $0x80] sm:$0xff] }
 0x22f   : > { %2683 = vmatpush.bf16.msrb.mxu0 %v11289_v29  ;;  %3668 = vmatpush.bf16.msra.mxu3 %v9605_v38  ;;  %v9943_v38 = vld [vmem:[%s10260_s13 + $0xf0] sm:$0xff] }
 0x230   : > { %v2142_v53 = vpop.f32.mrf.mxu2  ;;  %v1972_v20 = vpop.f32.mrf.mxu0 }
 0x231   : > { %v11278_v5 = vpop.f32.mrf.mxu3  ;;  %v2168_v50 = vadd.f32 %v2142_v53, %v2054_v24  ;;  %v2030_v51 = vpop.f32.mrf.mxu1  ;;  %v1997_v54 = vadd.f32 %v1972_v20, %v11022_v22  ;;  %v11297_v22 = vld [vmem:[%s13645_s1] sm:$0xff]  ;;  %v9939_v53 = vld [vmem:[%s10260_s13 + $0x68] sm:$0xff]  ;;  %v9941_v20 = vld [vmem:[%s10260_s13 + $0x30] sm:$0xff] }
 0x232   : > { %2817 = vmatpush.bf16.msrb.mxu1 %v11297_v22 }
 0x233   : > { %v11284_v0 = vmax.f32 %v13836_v58, %v2168_v50  ;;  %v2055_v11 = vadd.f32 %v2030_v51, %v1997_v54  ;;  %v9940_v50 = vld [vmem:[%s10260_s13 + $0xe8] sm:$0xff]  ;;  %v9589_v51 = vld [vmem:[%s13645_s1 + $0x78] sm:$0xff] }
 0x234   : > { %3560 = vmatpush.bf16.msra.mxu2 %v9589_v51  ;;  %v9942_v51 = vld [vmem:[%s10260_s13 + $0x70] sm:$0xff] }
 0x238   : > { %v2144_v34 = vpop.f32.mrf.mxu2  ;;  %v1975_v57 = vpop.f32.mrf.mxu0 }
 0x239   : > { %v11301_v52 = vpop.f32.mrf.mxu3  ;;  %v2169_v25 = vadd.f32 %v2144_v34, %v2055_v11  ;;  %v2033_v24 = vpop.f32.mrf.mxu1  ;;  %v1998_v13 = vadd.f32 %v1975_v57, %v11048_v26  ;;  %v11319_v26 = vld [vmem:[%s13645_s1 + $0x238] sm:$0xff]  ;;  %v13838_v34 = vmax.f32 %v10894_v18, %v11028_v47  ;;  %v13839_v18 = vmax.f32 %v10903_v39, %v11057_v32  ;;  %v9604_v39 = vld [vmem:[%s13645_s1 + $0x170] sm:$0xff] }
 0x23a   : > { %3330 = vmatpush.bf16.msra.mxu0 %v11319_v26  ;;  %v11336_v57 = vld [vmem:[%s13645_s1 + $0xf8] sm:$0xff]  ;;  %v11365_v32 = vld [vmem:[%s13645_s1 + $0xf0] sm:$0xff]  ;;  %3669 = vmatpush.bf16.msra.mxu3 %v9604_v39  ;;  %v11389_v39 = vld [vmem:[%s10260_s13 + $0x48] sm:$0xff] }
 0x23b   : > { %v11307_v9 = vmax.f32 %v13837_v12, %v2169_v25  ;;  %v2056_v27 = vadd.f32 %v2033_v24, %v1998_v13  ;;  %2267 = vmatmul.bf16.gmra.mxu0 %v9939_v53  ;;  %3468 = vmatpush.bf16.msra.mxu1 %v11336_v57  ;;  %13841 = vst [vmem:[#allocation9_spill] sm:$0xff] %v11389_v39 }
 0x23c   : > { %2311 = vmatmul.bf16.gmra.mxu1 %v9940_v50 }
 0x23d   : > { %2369 = vmatmul.bf16.gmra.mxu2 %v9941_v20 }
 0x23e   : > { %2427 = vmatmul.bf16.gmra.mxu3 %v11025_v61 }
 0x23f   : > { %3469 = vmatpush.bf16.msra.mxu1 %v11365_v32 }
 0x240   : > { %v2147_v33 = vpop.f32.mrf.mxu2  ;;  %v1977_v58 = vpop.f32.mrf.mxu0 }
 0x241   : > { %v11325_v54 = vpop.f32.mrf.mxu3  ;;  %v2170_v61 = vadd.f32 %v2147_v33, %v2056_v27  ;;  %v2035_v41 = vpop.f32.mrf.mxu1  ;;  %v1999_v11 = vadd.f32 %v1977_v58, %v11061_v60  ;;  %v9588_v33 = vld [vmem:[%s13645_s1 + $0x70] sm:$0xff] }
 0x242   : > { %3561 = vmatpush.bf16.msra.mxu2 %v9588_v33 }
 0x243   : > { %v11331_v25 = vmax.f32 %v13838_v34, %v2170_v61  ;;  %v2057_v24 = vadd.f32 %v2035_v41, %v1999_v11  ;;  %v9944_v61 = vld [vmem:[%s10260_s13 + $0x38] sm:$0xff] }
 0x248   : > { %v2149_v13 = vpop.f32.mrf.mxu2  ;;  %v1980_v53 = vpop.f32.mrf.mxu0 }
 0x249   : > { %v11339_v12 = vpop.f32.mrf.mxu3  ;;  %v2171_v27 = vadd.f32 %v2149_v13, %v2057_v24  ;;  %v2038_v60 = vpop.f32.mrf.mxu1  ;;  %v2000_v50 = vadd.f32 %v1980_v53, %v11093_v19  ;;  %v11357_v19 = vld [vmem:[%s13645_s1 + $0x230] sm:$0xff]  ;;  %v13840_v13 = vmax.f32 %v10908_v45, %v11067_v1  ;;  %v13842_v45 = vmax.f32 %v10917_v17, %v11096_v44 }
 0x24a   : > { %3331 = vmatpush.bf16.msra.mxu0 %v11357_v19  ;;  %v13843_v44 = vmax.f32 %v10925_v23, %v11106_v59  ;;  %v11427_v23 = vld [vmem:[%s13645_s1 + $0xe8] sm:$0xff] }
 0x24b   : > { %v11345_v47 = vmax.f32 %v13839_v18, %v2171_v27  ;;  %v2058_v20 = vadd.f32 %v2038_v60, %v2000_v50  ;;  %2272 = vmatmul.bf16.gmra.mxu0 %v9942_v51  ;;  %v11380_v18 = vld [vmem:[%s10260_s13 + $0xc0] sm:$0xff]  ;;  %3470 = vmatpush.bf16.msra.mxu1 %v11427_v23 }
 0x24c   : > { %2316 = vmatmul.bf16.gmra.mxu1 %v9943_v38  ;;  %v11383_v51 = vld [vmem:[%s10260_s13 + $0x80] sm:$0xff] }
 0x24d   : > { %2374 = vmatmul.bf16.gmra.mxu2 %v9944_v61  ;;  %v11386_v61 = vld [vmem:[%s10260_s13 + $0x8] sm:$0xff] }
 0x24e   : > { %2432 = vmatmul.bf16.gmra.mxu3 %v11064_v28 }
 0x250   : > { %v2152_v28 = vpop.f32.mrf.mxu2  ;;  %v1982_v11 = vpop.f32.mrf.mxu0 }
 0x251   : > { %v11368_v58 = vpop.f32.mrf.mxu3  ;;  %v2172_v41 = vadd.f32 %v2152_v28, %v2058_v20  ;;  %v2040_v34 = vpop.f32.mrf.mxu1  ;;  %v2001_v24 = vadd.f32 %v1982_v11, %v11100_v7 }
 0x253   : > { %v11375_v27 = vmax.f32 %v13840_v13, %v2172_v41  ;;  %v2059_v53 = vadd.f32 %v2040_v34, %v2001_v24 }
 0x258   : > { %v2154_v60 = vpop.f32.mrf.mxu2  ;;  %v1985_v33 = vpop.f32.mrf.mxu0 }
 0x259   : > { %v11377_v50 = vpop.f32.mrf.mxu3  ;;  %v2173_v38 = vadd.f32 %v2154_v60, %v2059_v53  ;;  %v2043_v20 = vpop.f32.mrf.mxu1  ;;  %v2002_v7 = vadd.f32 %v1985_v33, %v11129_v35  ;;  %v11412_v60 = vld [vmem:[%s13645_s1 + $0x68] sm:$0xff] }
 0x25a   : > { %13844 = vst [vmem:[#allocation11_spill] sm:$0xff] %v11412_v60  ;;  %3562 = vmatpush.bf16.msra.mxu2 %v11412_v60 }
 0x25b   : > { %v11395_v1 = vmax.f32 %v13842_v45, %v2173_v38  ;;  %v2060_v28 = vadd.f32 %v2043_v20, %v2002_v7  ;;  %2684 = vmatmul.bf16.vlgmr.msrb.gmra.mxu0 %v11380_v18  ;;  %v11417_v38 = vld [vmem:[%s13645_s1 + $0x228] sm:$0xff] }
 0x25c   : > { %2818 = vmatmul.bf16.vlgmr.msrb.gmra.mxu1 %v11383_v51  ;;  %3332 = vmatpush.bf16.msra.mxu0 %v11417_v38  ;;  %v11434_v20 = vld [vmem:[%s10260_s13 + $0xc8] sm:$0xff] }
 0x25d   : > { %2982 = vmatmul.bf16.vlgmr.msrb.gmra.mxu2 %v11386_v61  ;;  %v11437_v7 = vld [vmem:[%s10260_s13 + $0x88] sm:$0xff] }
 0x25e   : > { %3160 = vmatmul.bf16.vlgmr.msrb.gmra.mxu3 %v11389_v39  ;;  %13846 = vst [vmem:[#allocation13_spill] sm:$0xff] %v11437_v7 }
 0x260   : > { %v2157_v41 = vpop.f32.mrf.mxu2  ;;  %v1987_v34 = vpop.f32.mrf.mxu0 }
 0x261   : > { %v11401_v11 = vpop.f32.mrf.mxu3  ;;  %v2174_v35 = vadd.f32 %v2157_v41, %v2060_v28  ;;  %v2045_v24 = vpop.f32.mrf.mxu1  ;;  %v2003_v17 = vadd.f32 %v1987_v34, %v11139_v6  ;;  %v11422_v6 = vld [vmem:[%s13645_s1 + $0x168] sm:$0xff]  ;;  %v11445_v34 = vld [vmem:[%s10260_s13 + $0x50] sm:$0xff] }
 0x262   : > { %13845 = vst [vmem:[#allocation12_spill] sm:$0xff] %v11422_v6  ;;  %3670 = vmatpush.bf16.msra.mxu3 %v11422_v6 }
 0x263   : > { %v11407_v13 = vmax.f32 %v13843_v44, %v2174_v35  ;;  %v2061_v53 = vadd.f32 %v2045_v24, %v2003_v17  ;;  %v11442_v35 = vld [vmem:[%s10260_s13 + $0x10] sm:$0xff]  ;;  %13848 = vst [vmem:[#allocation15_spill] sm:$0xff] %v11445_v34  ;;  %v11450_v24 = vld [vmem:[%s13645_s1 + $0x60] sm:$0xff]  ;;  %v13850_v17 = vmax.f32 %v10934_v14, %v11132_v4 }
 0x264   : > { %13847 = vst [vmem:[#allocation14_spill] sm:$0xff] %v11442_v35  ;;  %3563 = vmatpush.bf16.msra.mxu2 %v11450_v24 }
 0x265   : > { %13849 = vst [vmem:[#allocation16_spill] sm:$0xff] %v11450_v24 }
 0x268   : > { %v2159_v59 = vpop.f32.mrf.mxu2  ;;  %v2243_v28 = vpop.f32.mrf.mxu0 }
 0x269   : > { %v11431_v33 = vpop.f32.mrf.mxu3  ;;  %v2175_v45 = vadd.f32 %v2159_v59, %v2061_v53  ;;  %v2287_v41 = vpop.f32.mrf.mxu1  ;;  %v2244_v6 = vadd.f32 %v2243_v28, %v11161_v63 }
 0x26b   : > { %v11455_v44 = vmax.f32 %v13850_v17, %v2175_v45  ;;  %2689 = vmatmul.bf16.gmra.mxu0 %v11434_v20  ;;  %v2322_v53 = vadd.f32 %v2287_v41, %v2244_v6  ;;  %v11467_v17 = vld [vmem:[%s13645_s1 + $0x220] sm:$0xff] }
 0x26c   : > { %2823 = vmatmul.bf16.gmra.mxu1 %v11437_v7  ;;  %v11472_v6 = vld [vmem:[%s13645_s1 + $0x160] sm:$0xff]  ;;  %3333 = vmatpush.bf16.msra.mxu0 %v11467_v17 }
 0x26d   : > { %13851 = vst [vmem:[#allocation17_spill] sm:$0xff] %v11455_v44  ;;  %2987 = vmatmul.bf16.gmra.mxu2 %v11442_v35  ;;  %v11477_v41 = vld [vmem:[%s13645_s1 + $0xe0] sm:$0xff]  ;;  %3671 = vmatpush.bf16.msra.mxu3 %v11472_v6  ;;  %v11513_v44 = vld [vmem:[%s13645_s1 + $0x158] sm:$0xff] }
 0x26e   : > { %3165 = vmatmul.bf16.gmra.mxu3 %v11445_v34  ;;  %13852 = vst [vmem:[#allocation18_spill] sm:$0xff] %v11472_v6  ;;  %v11493_v34 = vld [vmem:[%s10260_s13 + $0x18] sm:$0xff]  ;;  %3471 = vmatpush.bf16.msra.mxu1 %v11477_v41 }
 0x26f   : > { %13855 = vst [vmem:[#allocation22_spill] sm:$0xff] %v11493_v34  ;;  %v11508_v6 = vld [vmem:[%s13645_s1 + $0x218] sm:$0xff] }
 0x270   : > { %v2345_v59 = vpop.f32.mrf.mxu2  ;;  %v2245_v4 = vpop.f32.mrf.mxu0  ;;  %13858 = vst [vmem:[#allocation28_spill] sm:$0xff] %v11508_v6  ;;  %3334 = vmatpush.bf16.msra.mxu0 %v11508_v6 }
 0x271   : > { %v2403_v60 = vpop.f32.mrf.mxu3  ;;  %v2380_v14 = vadd.f32 %v2345_v59, %v2322_v53  ;;  %v2289_v45 = vpop.f32.mrf.mxu1  ;;  %v2246_v63 = vadd.f32 %v2245_v4, %v11181_v56  ;;  %v11482_v56 = vld [vmem:[%s13646_s2] ss:$0 sm:$0xff]  ;;  %v11490_v4 = vld [vmem:[%s10260_s13 + $0x90] sm:$0xff]  ;;  %13859 = vst [vmem:[#allocation30_spill] sm:$0xff] %v11513_v44  ;;  %3672 = vmatpush.bf16.msra.mxu3 %v11513_v44 }
 0x272   : > { %13854 = vst [vmem:[#allocation20_spill] sm:$0xff] %v11490_v4 }
 0x273   : > { %v2438_v28 = vadd.f32 %v2403_v60, %v2380_v14  ;;  %v2323_v60 = vadd.f32 %v2289_v45, %v2246_v63  ;;  %v11487_v14 = vld [vmem:[%s10260_s13 + $0xd0] sm:$0xff]  ;;  %v11498_v45 = vld [vmem:[%s10260_s13 + $0x58] sm:$0xff] }
 0x274   : > { %13853 = vst [vmem:[#allocation19_spill] sm:$0xff] %v11487_v14  ;;  %v11503_v63 = vld [vmem:[%s13645_s1 + $0x58] sm:$0xff] }
 0x275   : > { %v2452_v24 = vmax.f32 %v11167_v10, %v2438_v28  ;;  %13856 = vst [vmem:[#allocation23_spill] sm:$0xff] %v11498_v45  ;;  %3564 = vmatpush.bf16.msra.mxu2 %v11503_v63 }
 0x276   : > { %13857 = vst [vmem:[#allocation27_spill] sm:$0xff] %v11503_v63 }
 0x278   : > { %v2347_v53 = vpop.f32.mrf.mxu2  ;;  %v2248_v35 = vpop.f32.mrf.mxu0 }
 0x279   : > { %v2405_v59 = vpop.f32.mrf.mxu3  ;;  %v2381_v39 = vadd.f32 %v2347_v53, %v2323_v60  ;;  %v2292_v7 = vpop.f32.mrf.mxu1  ;;  %v2249_v28 = vadd.f32 %v2248_v35, %v11199_v2  ;;  %v2470_v60 = vadd.f32 %v11482_v56, %v2452_v24 }
 0x27b   : > { %v2439_v10 = vadd.f32 %v2405_v59, %v2381_v39  ;;  %2694 = vmatmul.bf16.gmra.mxu0 %v11487_v14  ;;  %v2324_v39 = vadd.f32 %v2292_v7, %v2249_v28  ;;  %v2484_v63 = vmax.f32 %v2470_v60, 0.0  ;;  %v11530_v7 = vld [vmem:[%s13645_s1 + $0xd8] sm:$0xff] }
 0x27c   : > { %2828 = vmatmul.bf16.gmra.mxu1 %v11490_v4 }
 0x27d   : > { %v2453_v53 = vmax.f32 %v11187_v36, %v2439_v10  ;;  %2992 = vmatmul.bf16.gmra.mxu2 %v11493_v34  ;;  %3472 = vmatpush.bf16.msra.mxu1 %v11530_v7  ;;  %v11580_v34 = vld [vmem:[%s10260_s13 + $0xe0] sm:$0xff] }
 0x27e   : > { %3170 = vmatmul.bf16.gmra.mxu3 %v11498_v45 }
 0x27f   : > { %v2471_v2 = vadd.f32 %v11482_v56, %v2453_v53 }
 0x280   : > { %v2350_v35 = vpop.f32.mrf.mxu2  ;;  %v2250_v24 = vpop.f32.mrf.mxu0 }
 0x281   : > { %v2408_v59 = vpop.f32.mrf.mxu3  ;;  %v2485_v4 = vmax.f32 %v2471_v2, 0.0  ;;  %v2382_v14 = vadd.f32 %v2350_v35, %v2324_v39  ;;  %v2294_v6 = vpop.f32.mrf.mxu1  ;;  %v2251_v10 = vadd.f32 %v2250_v24, %v11225_v40  ;;  %v11534_v2 = vld [vmem:[%s10260_s13 + $0xd8] sm:$0xff]  ;;  %v11554_v24 = vld [vmem:[%s13645_s1 + $0x210] sm:$0xff] }
 0x282   : > { %13860 = vst [vmem:[#allocation21_spill] sm:$0xff] %v11534_v2  ;;  %v11537_v39 = vld [vmem:[%s10260_s13 + $0x98] sm:$0xff]  ;;  %3335 = vmatpush.bf16.msra.mxu0 %v11554_v24 }
 0x283   : > { %v9803_v36 = vpack.c.bf16 %v2485_v4, %v2484_v63  ;;  %v2440_v45 = vadd.f32 %v2408_v59, %v2382_v14  ;;  %v2325_v28 = vadd.f32 %v2294_v6, %v2251_v10  ;;  %13861 = vst [vmem:[#allocation26_spill] sm:$0xff] %v11537_v39  ;;  %v11540_v4 = vld [vmem:[%s10260_s13 + $0x20] sm:$0xff]  ;;  %v11549_v6 = vld [vmem:[%s13645_s1 + $0x50] sm:$0xff] }
 0x284   : > { %13862 = vst [vmem:[#allocation33_spill] sm:$0xff] %v11540_v4  ;;  %v11544_v59 = vld [vmem:[%s10260_s13 + $0x60] sm:$0xff]  ;;  %3565 = vmatpush.bf16.msra.mxu2 %v11549_v6 }
 0x285   : > { %9804 = vst [vmem:[#allocation2 + $0x30] sm:$0xff] %v9803_v36   ;;  %v2454_v40 = vmax.f32 %v11205_v62, %v2440_v45  ;;  %v11559_v36 = vld [vmem:[%s13645_s1 + $0x150] sm:$0xff] }
 0x286   : > { %13863 = vst [vmem:[#allocation25_spill] sm:$0xff] %v11544_v59  ;;  %v11564_v62 = vld [vmem:[%s13645_s1 + $0xd0] sm:$0xff]  ;;  %3673 = vmatpush.bf16.msra.mxu3 %v11559_v36 }
 0x287   : > { %13864 = vst [vmem:[#allocation24_spill] sm:$0xff] %v11549_v6  ;;  %3473 = vmatpush.bf16.msra.mxu1 %v11564_v62 }
 0x288   : > { %v2352_v60 = vpop.f32.mrf.mxu2  ;;  %v2253_v14 = vpop.f32.mrf.mxu0  ;;  %13865 = vst [vmem:[#allocation29_spill] sm:$0xff] %v11559_v36 }
 0x289   : > { %v2410_v53 = vpop.f32.mrf.mxu3  ;;  %v2383_v63 = vadd.f32 %v2352_v60, %v2325_v28  ;;  %v2297_v35 = vpop.f32.mrf.mxu1  ;;  %13866 = vst [vmem:[#allocation31_spill] sm:$0xff] %v11564_v62  ;;  %v2254_v10 = vadd.f32 %v2253_v14, %v11237_v3  ;;  %v2472_v28 = vadd.f32 %v11482_v56, %v2454_v40  ;;  %v11590_v62 = vld [vmem:[%s10260_s13 + $0x68] sm:$0xff] }
 0x28a   : > { %13867 = vst [vmem:[#allocation32_spill] sm:$0xff] %v11590_v62 }
 0x28b   : > { %v2441_v45 = vadd.f32 %v2410_v53, %v2383_v63  ;;  %2699 = vmatmul.bf16.gmra.mxu0 %v11534_v2  ;;  %v2326_v53 = vadd.f32 %v2297_v35, %v2254_v10  ;;  %v2486_v6 = vmax.f32 %v2472_v28, 0.0  ;;  %v11583_v35 = vld [vmem:[%s10260_s13 + $0xa0] sm:$0xff]  ;;  %v11586_v10 = vld [vmem:[%s10260_s13 + $0x28] sm:$0xff] }
 0x28c   : > { %2833 = vmatmul.bf16.gmra.mxu1 %v11537_v39 }
 0x28d   : > { %v2455_v60 = vmax.f32 %v11231_v43, %v2441_v45  ;;  %2997 = vmatmul.bf16.gmra.mxu2 %v11540_v4 }
 0x28e   : > { %3175 = vmatmul.bf16.gmra.mxu3 %v11544_v59 }
 0x28f   : > { %v2473_v3 = vadd.f32 %v11482_v56, %v2455_v60 }
 0x290   : > { %v2355_v63 = vpop.f32.mrf.mxu2  ;;  %v2255_v43 = vpop.f32.mrf.mxu0 }
 0x291   : > { %v2413_v14 = vpop.f32.mrf.mxu3  ;;  %v2487_v40 = vmax.f32 %v2473_v3, 0.0  ;;  %v2384_v44 = vadd.f32 %v2355_v63, %v2326_v53  ;;  %v2299_v45 = vpop.f32.mrf.mxu1  ;;  %v2256_v59 = vadd.f32 %v2255_v43, %v11263_v21  ;;  %v11595_v21 = vld [vmem:[%s13645_s1 + $0x48] sm:$0xff] }
 0x292   : > { %3566 = vmatpush.bf16.msra.mxu2 %v11595_v21 }
 0x293   : > { %v9808_v4 = vpack.c.bf16 %v2487_v40, %v2486_v6  ;;  %v2442_v36 = vadd.f32 %v2413_v14, %v2384_v44  ;;  %v2327_v39 = vadd.f32 %v2299_v45, %v2256_v59  ;;  %v11600_v44 = vld [vmem:[%s13645_s1 + $0x208] sm:$0xff] }
 0x294   : > { %3336 = vmatpush.bf16.msra.mxu0 %v11600_v44 }
 0x295   : > { %9895 = vst [vmem:[#allocation2] sm:$0xff] %v9808_v4   ;;  %v2456_v28 = vmax.f32 %v11243_v37, %v2442_v36  ;;  %v11605_v4 = vld [vmem:[%s13645_s1 + $0x148] sm:$0xff] }
 0x296   : > { %v11610_v37 = vld [vmem:[%s13645_s1 + $0xc8] sm:$0xff]  ;;  %3674 = vmatpush.bf16.msra.mxu3 %v11605_v4 }
 0x297   : > { %v2474_v59 = vadd.f32 %v11482_v56, %v2456_v28  ;;  %3474 = vmatpush.bf16.msra.mxu1 %v11610_v37 }
 0x298   : > { %v2357_v2 = vpop.f32.mrf.mxu2  ;;  %v2258_v53 = vpop.f32.mrf.mxu0 }
 0x299   : > { %v2415_v60 = vpop.f32.mrf.mxu3  ;;  %v2385_v3 = vadd.f32 %v2357_v2, %v2327_v39  ;;  %v2302_v63 = vpop.f32.mrf.mxu1  ;;  %v2259_v39 = vadd.f32 %v2258_v53, %v11278_v5  ;;  %v2488_v43 = vmax.f32 %v2474_v59, 0.0  ;;  %v11634_v59 = vld [vmem:[%s10260_s13 + $0xa8] sm:$0xff] }
 0x29b   : > { %v2443_v2 = vadd.f32 %v2415_v60, %v2385_v3  ;;  %2704 = vmatmul.bf16.gmra.mxu0 %v11580_v34  ;;  %v2328_v36 = vadd.f32 %v2302_v63, %v2259_v39  ;;  %v11631_v39 = vld [vmem:[%s10260_s13 + $0xe8] sm:$0xff] }
 0x29c   : > { %2838 = vmatmul.bf16.gmra.mxu1 %v11583_v35 }
 0x29d   : > { %v2457_v6 = vmax.f32 %v11269_v15, %v2443_v2  ;;  %3002 = vmatmul.bf16.gmra.mxu2 %v11586_v10 }
 0x29e   : > { %3180 = vmatmul.bf16.gmra.mxu3 %v11590_v62  ;;  %v11628_v62 = vld [vmem:[%s13645_s1 + $0x40] sm:$0xff] }
 0x29f   : > { %v2475_v5 = vadd.f32 %v11482_v56, %v2457_v6  ;;  %3567 = vmatpush.bf16.msra.mxu2 %v11628_v62 }
 0x2a0   : > { %v2360_v14 = vpop.f32.mrf.mxu2  ;;  %v2260_v28 = vpop.f32.mrf.mxu0 }
 0x2a1   : > { %v2418_v40 = vpop.f32.mrf.mxu3  ;;  %v2489_v45 = vmax.f32 %v2475_v5, 0.0  ;;  %v2386_v60 = vadd.f32 %v2360_v14, %v2328_v36  ;;  %v2304_v15 = vpop.f32.mrf.mxu1  ;;  %v2261_v53 = vadd.f32 %v2260_v28, %v11301_v52  ;;  %v11640_v52 = vld [vmem:[%s13645_s1 + $0x200] sm:$0xff]  ;;  %v11655_v28 = vld [vmem:[%s10260_s13 + $0x30] sm:$0xff] }
 0x2a2   : > { %v11645_v36 = vld [vmem:[%s13645_s1 + $0x140] sm:$0xff]  ;;  %3337 = vmatpush.bf16.msra.mxu0 %v11640_v52 }
 0x2a3   : > { %v9813_v3 = vpack.c.bf16 %v2489_v45, %v2488_v43  ;;  %v2444_v2 = vadd.f32 %v2418_v40, %v2386_v60  ;;  %v2329_v63 = vadd.f32 %v2304_v15, %v2261_v53  ;;  %v11650_v14 = vld [vmem:[%s13645_s1 + $0xc0] sm:$0xff]  ;;  %3984 = vmatpush.bf16.msrb.mxu2 %v11042_v42  ;;  %v11658_v15 = vld [vmem:[%s10260_s13 + $0x70] sm:$0xff]  ;;  %3675 = vmatpush.bf16.msra.mxu3 %v11645_v36 }
 0x2a4   : > { %13868 = vst [vmem:[#allocation34_spill] sm:$0xff] %v11658_v15  ;;  %3475 = vmatpush.bf16.msra.mxu1 %v11650_v14 }
 0x2a5   : > { %9896 = vst [vmem:[#allocation2 + $0x18] sm:$0xff] %v9813_v3   ;;  %v2458_v40 = vmax.f32 %v11284_v0, %v2444_v2 }
 0x2a7   : > { %4028 = vmatpush.bf16.msrb.mxu3 %v11053_v55  ;;  %v2476_v42 = vadd.f32 %v11482_v56, %v2458_v40  ;;  %3985 = vmatpush.bf16.msrb.mxu2 %v11079_v48  ;;  %v13870_v48 = vld [vmem:[#allocation6_spill] sm:$0xff] }
 0x2a8   : > { %v2362_v6 = vpop.f32.mrf.mxu2  ;;  %v2263_v45 = vpop.f32.mrf.mxu0 }
 0x2a9   : > { %v2420_v5 = vpop.f32.mrf.mxu3  ;;  %v2387_v43 = vadd.f32 %v2362_v6, %v2329_v63  ;;  %v2307_v60 = vpop.f32.mrf.mxu1  ;;  %v2264_v53 = vadd.f32 %v2263_v45, %v11325_v54  ;;  %v2490_v6 = vmax.f32 %v2476_v42, 0.0  ;;  %v13869_v45 = vld [vmem:[#allocation5_spill] sm:$0xff] }
 0x2ab   : > { %v2445_v3 = vadd.f32 %v2420_v5, %v2387_v43  ;;  %2709 = vmatmul.bf16.gmra.mxu0 %v11631_v39  ;;  %v2330_v2 = vadd.f32 %v2307_v60, %v2264_v53  ;;  %4029 = vmatpush.bf16.msrb.mxu3 %v11087_v46  ;;  %v11680_v60 = vld [vmem:[%s13645_s1 + $0x1f8] sm:$0xff] }
 0x2ac   : > { %2843 = vmatmul.bf16.gmra.mxu1 %v11634_v59  ;;  %3986 = vmatpush.bf16.msrb.mxu2 %v13869_v45  ;;  %v13874_v45 = vld [vmem:[#allocation8_spill] sm:$0xff] }
 0x2ad   : > { %v2459_v0 = vmax.f32 %v11307_v9, %v2445_v3  ;;  %3007 = vmatmul.bf16.gmra.mxu2 %v11655_v28  ;;  %3790 = vmatpush.bf16.msrb.mxu0 %v11680_v60 }
 0x2ae   : > { %3185 = vmatmul.bf16.gmra.mxu3 %v11658_v15 }
 0x2af   : > { %v2477_v54 = vadd.f32 %v11482_v56, %v2459_v0  ;;  %4030 = vmatpush.bf16.msrb.mxu3 %v13870_v48  ;;  %v11686_v0 = vld [vmem:[%s10260_s13 + $0xf0] sm:$0xff]  ;;  %v13875_v48 = vld [vmem:[#allocation10_spill] sm:$0xff] }
 0x2b0   : > { %v2365_v55 = vpop.f32.mrf.mxu2  ;;  %v2265_v40 = vpop.f32.mrf.mxu0  ;;  %3987 = vmatpush.bf16.msrb.mxu2 %v11145_v16  ;;  %13871 = vst [vmem:[#allocation5_spill] sm:$0xff] %v11686_v0  ;;  %v11701_v16 = vld [vmem:[%s13645_s1 + $0x278] sm:$0xff] }
 0x2b1   : > { %v2423_v63 = vpop.f32.mrf.mxu3  ;;  %v2491_v5 = vmax.f32 %v2477_v54, 0.0  ;;  %v2388_v43 = vadd.f32 %v2365_v55, %v2330_v2  ;;  %v2309_v9 = vpop.f32.mrf.mxu1  ;;  %v2266_v15 = vadd.f32 %v2265_v40, %v11339_v12  ;;  %v11689_v54 = vld [vmem:[%s10260_s13 + $0xb0] sm:$0xff]  ;;  %3912 = vmatpush.bf16.msrb.mxu1 %v11701_v16 }
 0x2b3   : > { %v9818_v3 = vpack.c.bf16 %v2491_v5, %v2490_v6  ;;  %v2446_v46 = vadd.f32 %v2423_v63, %v2388_v43  ;;  %v2331_v53 = vadd.f32 %v2309_v9, %v2266_v15  ;;  %4031 = vmatpush.bf16.msrb.mxu3 %v11155_v30  ;;  %v11693_v5 = vld [vmem:[%s10260_s13 + $0x38] sm:$0xff]  ;;  %v13873_v30 = vld [vmem:[#allocation7_spill] sm:$0xff] }
 0x2b4   : > { %13872 = vst [vmem:[#allocation6_spill] sm:$0xff] %v11693_v5  ;;  %v11696_v43 = vld [vmem:[%s10260_s13 + $0x78] sm:$0xff]  ;;  %3988 = vmatpush.bf16.msrb.mxu2 %v13873_v30 }
 0x2b5   : > { %9897 = vst [vmem:[#allocation2 + $0x10] sm:$0xff] %v9818_v3   ;;  %v2460_v2 = vmax.f32 %v11331_v25, %v2446_v46 }
 0x2b7   : > { %4032 = vmatpush.bf16.msrb.mxu3 %v11192_v8  ;;  %v2478_v25 = vadd.f32 %v11482_v56, %v2460_v2 }
 0x2b8   : > { %v2367_v42 = vpop.f32.mrf.mxu2  ;;  %v2268_v63 = vpop.f32.mrf.mxu0  ;;  %3989 = vmatpush.bf16.msrb.mxu2 %v13874_v45 }
 0x2b9   : > { %v2425_v12 = vpop.f32.mrf.mxu3  ;;  %v2389_v55 = vadd.f32 %v2367_v42, %v2331_v53  ;;  %v2312_v6 = vpop.f32.mrf.mxu1  ;;  %v2269_v40 = vadd.f32 %v2268_v63, %v11368_v58  ;;  %v2492_v53 = vmax.f32 %v2478_v25, 0.0 }
 0x2bb   : > { %v2447_v15 = vadd.f32 %v2425_v12, %v2389_v55  ;;  %2714 = vmatmul.bf16.gmra.mxu0 %v11686_v0  ;;  %v2332_v3 = vadd.f32 %v2312_v6, %v2269_v40  ;;  %4033 = vmatpush.bf16.msrb.mxu3 %v13875_v48  ;;  %v11722_v6 = vld [vmem:[%s13645_s1 + $0x1f0] sm:$0xff]  ;;  %v11733_v40 = vld [vmem:[%s10260_s13 + $0x88] sm:$0xff] }
 0x2bc   : > { %2848 = vmatmul.bf16.gmra.mxu1 %v11689_v54  ;;  %3990 = vmatpush.bf16.msrb.mxu2 %v11251_v31 }
 0x2bd   : > { %v2461_v9 = vmax.f32 %v11345_v47, %v2447_v15  ;;  %3012 = vmatmul.bf16.gmra.mxu2 %v11693_v5  ;;  %v11727_v15 = vld [vmem:[%s13645_s1 + $0x270] sm:$0xff]  ;;  %3791 = vmatpush.bf16.msrb.mxu0 %v11722_v6 }
 0x2be   : > { %3190 = vmatmul.bf16.gmra.mxu3 %v11696_v43  ;;  %3913 = vmatpush.bf16.msrb.mxu1 %v11727_v15 }
 0x2bf   : > { %v2479_v58 = vadd.f32 %v11482_v56, %v2461_v9  ;;  %4034 = vmatpush.bf16.msrb.mxu3 %v11259_v49 }
 0x2c0   : > { %v2370_v8 = vpop.f32.mrf.mxu2  ;;  %v2270_v55 = vpop.f32.mrf.mxu0  ;;  %3991 = vmatpush.bf16.msrb.mxu2 %v11289_v29  ;;  %v11741_v29 = vld [vmem:[%s13645_s1 + $0x1e8] sm:$0xff] }
 0x2c1   : > { %v2428_v46 = vpop.f32.mrf.mxu3  ;;  %v2493_v42 = vmax.f32 %v2479_v58, 0.0  ;;  %v2390_v12 = vadd.f32 %v2370_v8, %v2332_v3  ;;  %v2314_v2 = vpop.f32.mrf.mxu1  ;;  %v2271_v63 = vadd.f32 %v2270_v55, %v11377_v50  ;;  %3792 = vmatpush.bf16.msrb.mxu0 %v11741_v29 }
 0x2c3   : > { %v9823_v47 = vpack.c.bf16 %v2493_v42, %v2492_v53  ;;  %v2448_v30 = vadd.f32 %v2428_v46, %v2390_v12  ;;  %v2333_v31 = vadd.f32 %v2314_v2, %v2271_v63  ;;  %4035 = vmatpush.bf16.msrb.mxu3 %v11297_v22 }
 0x2c5   : > { %9898 = vst [vmem:[#allocation2 + $0x8] sm:$0xff] %v9823_v47   ;;  %v2462_v25 = vmax.f32 %v11375_v27, %v2448_v30  ;;  %v11752_v27 = vld [vmem:[%s13645_s1 + $0x268] sm:$0xff] }
 0x2c6   : > { %3914 = vmatpush.bf16.msrb.mxu1 %v11752_v27 }
 0x2c7   : > { %v2480_v8 = vadd.f32 %v11482_v56, %v2462_v25 }
 0x2c8   : > { %v2372_v49 = vpop.f32.mrf.mxu2  ;;  %v2273_v45 = vpop.f32.mrf.mxu0 }
 0x2c9   : > { %v2430_v50 = vpop.f32.mrf.mxu3  ;;  %v2391_v9 = vadd.f32 %v2372_v49, %v2333_v31  ;;  %v2317_v58 = vpop.f32.mrf.mxu1  ;;  %v2274_v48 = vadd.f32 %v2273_v45, %v11401_v11  ;;  %v2494_v53 = vmax.f32 %v2480_v8, 0.0  ;;  %v11765_v49 = vld [vmem:[%s10260_s13 + $0x90] sm:$0xff] }
 0x2ca   : > { %v13879_v8 = vld [vmem:[#allocation28_spill] sm:$0xff] }
 0x2cb   : > { %v2449_v3 = vadd.f32 %v2430_v50, %v2391_v9  ;;  %3338 = vmatmul.bf16.vlgmr.msra.gmra.mxu0 %v11733_v40  ;;  %v2334_v46 = vadd.f32 %v2317_v58, %v2274_v48  ;;  %v13877_v58 = vld [vmem:[#allocation13_spill] sm:$0xff] }
 0x2cc   : > { %3476 = vmatmul.bf16.vlgmr.msra.gmra.mxu1 %v11380_v18 }
 0x2cd   : > { %v2463_v22 = vmax.f32 %v11395_v1, %v2449_v3  ;;  %3568 = vmatmul.bf16.vlgmr.msra.gmra.mxu2 %v11383_v51  ;;  %v13878_v3 = vld [vmem:[#allocation14_spill] sm:$0xff] }
 0x2ce   : > { %3676 = vmatmul.bf16.vlgmr.msra.gmra.mxu3 %v11386_v61  ;;  %4244 = vmatpush.bf16.msra.mxu2 %v11319_v26 }
 0x2cf   : > { %v2481_v11 = vadd.f32 %v11482_v56, %v2463_v22  ;;  %4316 = vmatpush.bf16.msra.mxu3 %v11336_v57 }
 0x2d0   : > { %v2375_v1 = vpop.f32.mrf.mxu2  ;;  %v2275_v55 = vpop.f32.mrf.mxu0 }
 0x2d1   : > { %v2433_v51 = vpop.f32.mrf.mxu3  ;;  %v2495_v42 = vmax.f32 %v2481_v11, 0.0  ;;  %v2392_v12 = vadd.f32 %v2375_v1, %v2334_v46  ;;  %v2319_v2 = vpop.f32.mrf.mxu1  ;;  %v2276_v26 = vadd.f32 %v2275_v55, %v11431_v33  ;;  %v13876_v33 = vld [vmem:[#allocation17_spill] sm:$0xff] }
 0x2d2   : > { %4245 = vmatpush.bf16.msra.mxu2 %v11357_v19 }
 0x2d3   : > { %v9828_v47 = vpack.c.bf16 %v2495_v42, %v2494_v53  ;;  %4317 = vmatpush.bf16.msra.mxu3 %v11365_v32  ;;  %v2450_v63 = vadd.f32 %v2433_v51, %v2392_v12  ;;  %v2335_v57 = vadd.f32 %v2319_v2, %v2276_v26  ;;  %v11804_v26 = vld [vmem:[%s10260_s13 + $0x98] sm:$0xff] }
 0x2d5   : > { %9899 = vst [vmem:[#allocation2 + $0x20] sm:$0xff] %v9828_v47   ;;  %v2464_v50 = vmax.f32 %v11407_v13, %v2450_v63 }
 0x2d6   : > { %4246 = vmatpush.bf16.msra.mxu2 %v11417_v38  ;;  %v11772_v38 = vld [vmem:[%s13645_s1 + $0x1e0] sm:$0xff] }
 0x2d7   : > { %4318 = vmatpush.bf16.msra.mxu3 %v11427_v23  ;;  %v11777_v23 = vld [vmem:[%s13645_s1 + $0x260] sm:$0xff]  ;;  %v2482_v13 = vadd.f32 %v11482_v56, %v2464_v50  ;;  %3793 = vmatpush.bf16.msrb.mxu0 %v11772_v38 }
 0x2d8   : > { %v2377_v30 = vpop.f32.mrf.mxu2  ;;  %v2685_v19 = vpop.f32.mrf.mxu0  ;;  %3915 = vmatpush.bf16.msrb.mxu1 %v11777_v23 }
 0x2d9   : > { %v2435_v31 = vpop.f32.mrf.mxu3  ;;  %v2393_v25 = vadd.f32 %v2377_v30, %v2335_v57  ;;  %v2819_v9 = vpop.f32.mrf.mxu1  ;;  %v2496_v11 = vmax.f32 %v2482_v13, 0.0 }
 0x2da   : > { %v2820_v45 = vadd.f32 %v2819_v9, %v2685_v19  ;;  %4247 = vmatpush.bf16.msra.mxu2 %v11467_v17 }
 0x2db   : > { %v2451_v32 = vadd.f32 %v2435_v31, %v2393_v25  ;;  %4319 = vmatpush.bf16.msra.mxu3 %v11477_v41  ;;  %3343 = vmatmul.bf16.gmra.mxu0 %v11765_v49  ;;  %v13883_v25 = vld [vmem:[#allocation22_spill] sm:$0xff] }
 0x2dc   : > { %3481 = vmatmul.bf16.gmra.mxu1 %v11434_v20 }
 0x2dd   : > { %v2465_v17 = vmax.f32 %v13876_v33, %v2451_v32  ;;  %3573 = vmatmul.bf16.gmra.mxu2 %v13877_v58 }
 0x2de   : > { %3681 = vmatmul.bf16.gmra.mxu3 %v13878_v3  ;;  %4248 = vmatpush.bf16.msra.mxu2 %v13879_v8  ;;  %v11835_v8 = vld [vmem:[%s10260_s13 + $0xa0] sm:$0xff] }
 0x2df   : > { %v2483_v48 = vadd.f32 %v11482_v56, %v2465_v17  ;;  %4320 = vmatpush.bf16.msra.mxu3 %v11530_v7  ;;  %v11796_v56 = vld [vmem:[%s13645_s1 + $0x1d8] sm:$0xff]  ;;  %v13880_v7 = vld [vmem:[#allocation31_spill] sm:$0xff]  ;;  %v11830_v17 = vld [vmem:[%s13645_s1 + $0x250] sm:$0xff] }
 0x2e0   : > { %v2983_v41 = vpop.f32.mrf.mxu2  ;;  %v2687_v51 = vpop.f32.mrf.mxu0  ;;  %3794 = vmatpush.bf16.msrb.mxu0 %v11796_v56 }
 0x2e1   : > { %v3161_v22 = vpop.f32.mrf.mxu3  ;;  %v2497_v46 = vmax.f32 %v2483_v48, 0.0  ;;  %v3018_v1 = vadd.f32 %v2983_v41, %v2820_v45  ;;  %v2821_v53 = vpop.f32.mrf.mxu1 }
 0x2e2   : > { %v2822_v42 = vadd.f32 %v2821_v53, %v2687_v51  ;;  %4249 = vmatpush.bf16.msra.mxu2 %v11554_v24  ;;  %v11811_v24 = vld [vmem:[%s13645_s1 + $0x258] sm:$0xff]  ;;  %v13885_v53 = vld [vmem:[#allocation26_spill] sm:$0xff] }
 0x2e3   : > { %v9833_v12 = vpack.c.bf16 %v2497_v46, %v2496_v11  ;;  %v11791_v55 = vadd.f32 %v3161_v22, %v3018_v1  ;;  %4321 = vmatpush.bf16.msra.mxu3 %v13880_v7  ;;  %3916 = vmatpush.bf16.msrb.mxu1 %v11811_v24  ;;  %v13884_v51 = vld [vmem:[#allocation21_spill] sm:$0xff] }
 0x2e5   : > { %9900 = vst [vmem:[#allocation2 + $0x28] sm:$0xff] %v9833_v12  }
 0x2e6   : > { %4250 = vmatpush.bf16.msra.mxu2 %v11600_v44  ;;  %v13881_v44 = vld [vmem:[#allocation19_spill] sm:$0xff] }
 0x2e7   : > { %4322 = vmatpush.bf16.msra.mxu3 %v11610_v37  ;;  %v13882_v37 = vld [vmem:[#allocation20_spill] sm:$0xff]  ;;  %3917 = vmatpush.bf16.msrb.mxu1 %v11830_v17 }
 0x2e8   : > { %v2985_v2 = vpop.f32.mrf.mxu2  ;;  %v2690_v57 = vpop.f32.mrf.mxu0 }
 0x2e9   : > { %v3163_v47 = vpop.f32.mrf.mxu3  ;;  %v3019_v63 = vadd.f32 %v2985_v2, %v2822_v42  ;;  %v2824_v30 = vpop.f32.mrf.mxu1  ;;  %v13886_v42 = vld [vmem:[#allocation33_spill] sm:$0xff] }
 0x2ea   : > { %v2825_v31 = vadd.f32 %v2824_v30, %v2690_v57  ;;  %4251 = vmatpush.bf16.msra.mxu2 %v11640_v52 }
 0x2eb   : > { %v11806_v50 = vadd.f32 %v3163_v47, %v3019_v63  ;;  %4323 = vmatpush.bf16.msra.mxu3 %v11650_v14  ;;  %3348 = vmatmul.bf16.gmra.mxu0 %v11804_v26  ;;  %v11825_v14 = vld [vmem:[%s13645_s1 + $0x1d0] sm:$0xff] }
 0x2ec   : > { %3486 = vmatmul.bf16.gmra.mxu1 %v13881_v44  ;;  %3795 = vmatpush.bf16.msrb.mxu0 %v11825_v14 }
 0x2ed   : > { %3578 = vmatmul.bf16.gmra.mxu2 %v13882_v37  ;;  %v11853_v37 = vld [vmem:[%s13645_s1 + $0x248] sm:$0xff] }
 0x2ee   : > { %3686 = vmatmul.bf16.gmra.mxu3 %v13883_v25  ;;  %3918 = vmatpush.bf16.msrb.mxu1 %v11853_v37 }
 0x2f0   : > { %v2988_v19 = vpop.f32.mrf.mxu2  ;;  %v2692_v32 = vpop.f32.mrf.mxu0 }
 0x2f1   : > { %v3166_v9 = vpop.f32.mrf.mxu3  ;;  %v3020_v45 = vadd.f32 %v2988_v19, %v2825_v31  ;;  %v2826_v13 = vpop.f32.mrf.mxu1  ;;  %v11848_v31 = vld [vmem:[%s13645_s1 + $0x1c8] sm:$0xff] }
 0x2f2   : > { %v2827_v33 = vadd.f32 %v2826_v13, %v2692_v32  ;;  %3796 = vmatpush.bf16.msrb.mxu0 %v11848_v31 }
 0x2f3   : > { %v11820_v52 = vadd.f32 %v3166_v9, %v3020_v45  ;;  %v11858_v45 = vld [vmem:[%s10260_s13 + $0xa8] sm:$0xff] }
 0x2f8   : > { %v2990_v58 = vpop.f32.mrf.mxu2  ;;  %v2695_v22 = vpop.f32.mrf.mxu0 }
 0x2f9   : > { %v3168_v48 = vpop.f32.mrf.mxu3  ;;  %v3021_v41 = vadd.f32 %v2990_v58, %v2827_v33  ;;  %v2829_v11 = vpop.f32.mrf.mxu1 }
 0x2fa   : > { %v2830_v46 = vadd.f32 %v2829_v11, %v2695_v22 }
 0x2fb   : > { %v11837_v1 = vadd.f32 %v3168_v48, %v3021_v41  ;;  %3353 = vmatmul.bf16.gmra.mxu0 %v11835_v8 }
 0x2fc   : > { %3491 = vmatmul.bf16.gmra.mxu1 %v13884_v51 }
 0x2fd   : > { %3583 = vmatmul.bf16.gmra.mxu2 %v13885_v53 }
 0x2fe   : > { %3691 = vmatmul.bf16.gmra.mxu3 %v13886_v42 }
 0x300   : > { %v2993_v12 = vpop.f32.mrf.mxu2  ;;  %v2697_v47 = vpop.f32.mrf.mxu0 }
 0x301   : > { %v3171_v7 = vpop.f32.mrf.mxu3  ;;  %v3022_v2 = vadd.f32 %v2993_v12, %v2830_v46  ;;  %v2831_v63 = vpop.f32.mrf.mxu1 }
 0x302   : > { %v2832_v57 = vadd.f32 %v2831_v63, %v2697_v47  ;;  %v9945_v47 = vld [vmem:[%s13645_s1 + $0x138] sm:$0xff] }
 0x303   : > { %v11843_v30 = vadd.f32 %v3171_v7, %v3022_v2  ;;  %v11871_v2 = vld [vmem:[%s13645_s1 + $0x1c0] sm:$0xff]  ;;  %v9946_v63 = vld [vmem:[%s13645_s1 + $0x1b8] sm:$0xff] }
 0x304   : > { %3797 = vmatpush.bf16.msrb.mxu0 %v11871_v2 }
 0x308   : > { %v2995_v19 = vpop.f32.mrf.mxu2  ;;  %v2700_v13 = vpop.f32.mrf.mxu0  ;;  %4072 = vmatpush.bf16.msra.mxu0 %v9945_v47 }
 0x309   : > { %v3173_v9 = vpop.f32.mrf.mxu3  ;;  %v3023_v32 = vadd.f32 %v2995_v19, %v2832_v57  ;;  %v2834_v33 = vpop.f32.mrf.mxu1 }
 0x30a   : > { %v2835_v58 = vadd.f32 %v2834_v33, %v2700_v13 }
 0x30b   : > { %v11860_v48 = vadd.f32 %v3173_v9, %v3023_v32  ;;  %3358 = vmatmul.bf16.gmra.mxu0 %v11858_v45  ;;  %v11887_v9 = vld [vmem:[%s10260_s13 + $0xb0] sm:$0xff] }
 0x30c   : > { %3496 = vmatmul.bf16.gmra.mxu1 %v11580_v34  ;;  %13887 = vst [vmem:[#allocation7_spill] sm:$0xff] %v11887_v9 }
 0x30d   : > { %3588 = vmatmul.bf16.gmra.mxu2 %v11583_v35  ;;  %v11876_v35 = vld [vmem:[%s13645_s1 + $0x240] sm:$0xff] }
 0x30e   : > { %3696 = vmatmul.bf16.gmra.mxu3 %v11586_v10  ;;  %3919 = vmatpush.bf16.msrb.mxu1 %v11876_v35 }
 0x310   : > { %v2998_v41 = vpop.f32.mrf.mxu2  ;;  %v2702_v46 = vpop.f32.mrf.mxu0 }
 0x311   : > { %v3176_v22 = vpop.f32.mrf.mxu3  ;;  %v3024_v11 = vadd.f32 %v2998_v41, %v2835_v58  ;;  %v2836_v53 = vpop.f32.mrf.mxu1  ;;  %v9947_v41 = vld [vmem:[%s13645_s1 + $0x130] sm:$0xff] }
 0x312   : > { %v2837_v12 = vadd.f32 %v2836_v53, %v2702_v46  ;;  %4130 = vmatpush.bf16.msra.mxu1 %v9946_v63  ;;  %4073 = vmatpush.bf16.msra.mxu0 %v9947_v41  ;;  %v9949_v46 = vld [vmem:[%s13645_s1 + $0x128] sm:$0xff]  ;;  %v9953_v41 = vld [vmem:[%s13645_s1 + $0x118] sm:$0xff] }
 0x313   : > { %v11866_v7 = vadd.f32 %v3176_v22, %v3024_v11  ;;  %v9948_v22 = vld [vmem:[%s13645_s1 + $0x1b0] sm:$0xff]  ;;  %v9950_v53 = vld [vmem:[%s13645_s1 + $0x1a8] sm:$0xff] }
 0x316   : > { %4131 = vmatpush.bf16.msra.mxu1 %v9948_v22  ;;  %4074 = vmatpush.bf16.msra.mxu0 %v9949_v46 }
 0x318   : > { %v3000_v57 = vpop.f32.mrf.mxu2  ;;  %v2705_v13 = vpop.f32.mrf.mxu0 }
 0x319   : > { %v3178_v19 = vpop.f32.mrf.mxu3  ;;  %v3025_v32 = vadd.f32 %v3000_v57, %v2837_v12  ;;  %v2839_v33 = vpop.f32.mrf.mxu1 }
 0x31a   : > { %v2840_v58 = vadd.f32 %v2839_v33, %v2705_v13  ;;  %4132 = vmatpush.bf16.msra.mxu1 %v9950_v53  ;;  %v9952_v13 = vld [vmem:[%s13645_s1 + $0x1a0] sm:$0xff]  ;;  %v11922_v53 = vld [vmem:[%s10260_s13 + $0xb8] sm:$0xff] }
 0x31b   : > { %v11895_v11 = vadd.f32 %v3178_v19, %v3025_v32  ;;  %3363 = vmatmul.bf16.gmra.mxu0 %v11887_v9  ;;  %13888 = vst [vmem:[#allocation8_spill] sm:$0xff] %v11922_v53 }
 0x31c   : > { %3501 = vmatmul.bf16.gmra.mxu1 %v11631_v39 }
 0x31d   : > { %3593 = vmatmul.bf16.gmra.mxu2 %v11634_v59  ;;  %v9951_v59 = vld [vmem:[%s13645_s1 + $0x120] sm:$0xff] }
 0x31e   : > { %3701 = vmatmul.bf16.gmra.mxu3 %v11655_v28  ;;  %4075 = vmatpush.bf16.msra.mxu0 %v9951_v59 }
 0x31f   : > { %4133 = vmatpush.bf16.msra.mxu1 %v9952_v13 }
 0x320   : > { %v3003_v12 = vpop.f32.mrf.mxu2  ;;  %v2707_v57 = vpop.f32.mrf.mxu0 }
 0x321   : > { %v3181_v47 = vpop.f32.mrf.mxu3  ;;  %v3026_v63 = vadd.f32 %v3003_v12, %v2840_v58  ;;  %v2841_v19 = vpop.f32.mrf.mxu1  ;;  %v9954_v58 = vld [vmem:[%s13645_s1 + $0x198] sm:$0xff] }
 0x322   : > { %v2842_v32 = vadd.f32 %v2841_v19, %v2707_v57  ;;  %4076 = vmatpush.bf16.msra.mxu0 %v9953_v41  ;;  %v9958_v41 = vld [vmem:[%s13645_s1 + $0x188] sm:$0xff] }
 0x323   : > { %v11913_v33 = vadd.f32 %v3181_v47, %v3026_v63  ;;  %4134 = vmatpush.bf16.msra.mxu1 %v9954_v58  ;;  %v9955_v47 = vld [vmem:[%s13645_s1 + $0x110] sm:$0xff] }
 0x324   : > { %v9956_v63 = vld [vmem:[%s13645_s1 + $0x190] sm:$0xff] }
 0x326   : > { %4077 = vmatpush.bf16.msra.mxu0 %v9955_v47  ;;  %v9960_v47 = vld [vmem:[%s13645_s1 + $0x180] sm:$0xff] }
 0x327   : > { %4135 = vmatpush.bf16.msra.mxu1 %v9956_v63 }
 0x328   : > { %v3005_v22 = vpop.f32.mrf.mxu2  ;;  %v2710_v57 = vpop.f32.mrf.mxu0 }
 0x329   : > { %v3183_v46 = vpop.f32.mrf.mxu3  ;;  %v3027_v12 = vadd.f32 %v3005_v22, %v2842_v32  ;;  %v2844_v19 = vpop.f32.mrf.mxu1  ;;  %v9957_v32 = vld [vmem:[%s13645_s1 + $0x108] sm:$0xff] }
 0x32a   : > { %v2845_v59 = vadd.f32 %v2844_v19, %v2710_v57  ;;  %4078 = vmatpush.bf16.msra.mxu0 %v9957_v32 }
 0x32b   : > { %v11930_v13 = vadd.f32 %v3183_v46, %v3027_v12  ;;  %3368 = vmatmul.bf16.gmra.mxu0 %v11922_v53  ;;  %4136 = vmatpush.bf16.msra.mxu1 %v9958_v41 }
 0x32c   : > { %3506 = vmatmul.bf16.gmra.mxu1 %v11686_v0 }
 0x32d   : > { %3598 = vmatmul.bf16.gmra.mxu2 %v11689_v54  ;;  %v9959_v54 = vld [vmem:[%s13645_s1 + $0x100] sm:$0xff] }
 0x32e   : > { %3706 = vmatmul.bf16.gmra.mxu3 %v11693_v5  ;;  %4079 = vmatpush.bf16.msra.mxu0 %v9959_v54 }
 0x32f   : > { %4137 = vmatpush.bf16.msra.mxu1 %v9960_v47  ;;  %v13890_v47 = vld [vmem:[#allocation11_spill] sm:$0xff] }
 0x330   : > { %v3008_v58 = vpop.f32.mrf.mxu2  ;;  %v2712_v12 = vpop.f32.mrf.mxu0 }
 0x331   : > { %v3186_v22 = vpop.f32.mrf.mxu3  ;;  %v3028_v46 = vadd.f32 %v3008_v58, %v2845_v59  ;;  %v2846_v57 = vpop.f32.mrf.mxu1 }
 0x332   : > { %v2847_v19 = vadd.f32 %v2846_v57, %v2712_v12  ;;  %v13889_v12 = vld [vmem:[#allocation9_spill] sm:$0xff] }
 0x333   : > { %v11948_v63 = vadd.f32 %v3186_v22, %v3028_v46  ;;  %v9961_v22 = vld [vmem:[%s13645_s1 + $0x78] sm:$0xff] }
 0x338   : > { %v3010_v32 = vpop.f32.mrf.mxu2  ;;  %v2715_v5 = vpop.f32.mrf.mxu0 }
 0x339   : > { %v3188_v41 = vpop.f32.mrf.mxu3  ;;  %v3029_v0 = vadd.f32 %v3010_v32, %v2847_v19  ;;  %v2849_v59 = vpop.f32.mrf.mxu1 }
 0x33a   : > { %v2850_v58 = vadd.f32 %v2849_v59, %v2715_v5 }
 0x33b   : > { %v11950_v53 = vadd.f32 %v3188_v41, %v3029_v0  ;;  %3798 = vmatmul.bf16.vlgmr.msrb.gmra.mxu0 %v13889_v12  ;;  %v9962_v0 = vld [vmem:[%s13645_s1 + $0x178] sm:$0xff] }
 0x33c   : > { %3920 = vmatmul.bf16.vlgmr.msrb.gmra.mxu1 %v11733_v40  ;;  %4360 = vmatpush.bf16.msrb.mxu0 %v9961_v22  ;;  %v13892_v22 = vld [vmem:[#allocation16_spill] sm:$0xff] }
 0x33d   : > { %3992 = vmatmul.bf16.vlgmr.msrb.gmra.mxu2 %v11386_v61  ;;  %4404 = vmatpush.bf16.msrb.mxu1 %v9962_v0 }
 0x33e   : > { %4036 = vmatmul.bf16.vlgmr.msrb.gmra.mxu3 %v11380_v18  ;;  %4462 = vmatpush.bf16.msrb.mxu2 %v11680_v60  ;;  %v9963_v60 = vld [vmem:[%s13645_s1 + $0x70] sm:$0xff] }
 0x33f   : > { %4520 = vmatpush.bf16.msrb.mxu3 %v11701_v16  ;;  %v9964_v16 = vld [vmem:[%s13645_s1 + $0x170] sm:$0xff] }
 0x340   : > { %v3013_v5 = vpop.f32.mrf.mxu2  ;;  %v2717_v61 = vpop.f32.mrf.mxu0  ;;  %4361 = vmatpush.bf16.msrb.mxu0 %v9963_v60 }
 0x341   : > { %v3191_v46 = vpop.f32.mrf.mxu3  ;;  %v3030_v57 = vadd.f32 %v3013_v5, %v2850_v58  ;;  %v2851_v19 = vpop.f32.mrf.mxu1  ;;  %4405 = vmatpush.bf16.msrb.mxu1 %v9964_v16 }
 0x342   : > { %v2852_v18 = vadd.f32 %v2851_v19, %v2717_v61  ;;  %4463 = vmatpush.bf16.msrb.mxu2 %v11722_v6  ;;  %v13891_v6 = vld [vmem:[#allocation12_spill] sm:$0xff] }
 0x343   : > { %v11968_v54 = vadd.f32 %v3191_v46, %v3030_v57  ;;  %4521 = vmatpush.bf16.msrb.mxu3 %v11727_v15 }
 0x344   : > { %4362 = vmatpush.bf16.msrb.mxu0 %v13890_v47 }
 0x345   : > { %4406 = vmatpush.bf16.msrb.mxu1 %v13891_v6 }
 0x346   : > { %4464 = vmatpush.bf16.msrb.mxu2 %v11741_v29  ;;  %v13893_v29 = vld [vmem:[#allocation18_spill] sm:$0xff] }
 0x347   : > { %4522 = vmatpush.bf16.msrb.mxu3 %v11752_v27  ;;  %v13894_v27 = vld [vmem:[#allocation15_spill] sm:$0xff] }
 0x348   : > { %v3015_v32 = vpop.f32.mrf.mxu2  ;;  %v3339_v58 = vpop.f32.mrf.mxu0  ;;  %4363 = vmatpush.bf16.msrb.mxu0 %v13892_v22 }
 0x349   : > { %v3193_v41 = vpop.f32.mrf.mxu3  ;;  %v3031_v59 = vadd.f32 %v3015_v32, %v2852_v18  ;;  %v3477_v12 = vpop.f32.mrf.mxu1  ;;  %v11979_v15 = vadd.f32 %v3339_v58, %v11791_v55  ;;  %4407 = vmatpush.bf16.msrb.mxu1 %v13893_v29  ;;  %v13895_v55 = vld [vmem:[#allocation27_spill] sm:$0xff] }
 0x34a   : > { %4465 = vmatpush.bf16.msrb.mxu2 %v11772_v38  ;;  %v13896_v38 = vld [vmem:[#allocation30_spill] sm:$0xff] }
 0x34b   : > { %v11983_v0 = vadd.f32 %v3193_v41, %v3031_v59  ;;  %4523 = vmatpush.bf16.msrb.mxu3 %v11777_v23  ;;  %3803 = vmatmul.bf16.gmra.mxu0 %v13894_v27 }
 0x34c   : > { %3925 = vmatmul.bf16.gmra.mxu1 %v11765_v49  ;;  %4364 = vmatpush.bf16.msrb.mxu0 %v13895_v55 }
 0x34d   : > { %3997 = vmatmul.bf16.gmra.mxu2 %v13878_v3  ;;  %4408 = vmatpush.bf16.msrb.mxu1 %v13896_v38  ;;  %v13897_v3 = vld [vmem:[#allocation24_spill] sm:$0xff] }
 0x34e   : > { %4041 = vmatmul.bf16.gmra.mxu3 %v11434_v20  ;;  %4466 = vmatpush.bf16.msrb.mxu2 %v11796_v56  ;;  %v13898_v56 = vld [vmem:[#allocation29_spill] sm:$0xff] }
 0x34f   : > { %4524 = vmatpush.bf16.msrb.mxu3 %v11811_v24 }
 0x350   : > { %v3569_v5 = vpop.f32.mrf.mxu2  ;;  %v3341_v57 = vpop.f32.mrf.mxu0  ;;  %4365 = vmatpush.bf16.msrb.mxu0 %v13897_v3 }
 0x351   : > { %v3677_v23 = vpop.f32.mrf.mxu3  ;;  %v3570_v46 = vadd.f32 %v3569_v5, %v3477_v12  ;;  %v3479_v61 = vpop.f32.mrf.mxu1  ;;  %v11996_v19 = vadd.f32 %v3341_v57, %v11806_v50  ;;  %4409 = vmatpush.bf16.msrb.mxu1 %v13898_v56 }
 0x352   : > { %4467 = vmatpush.bf16.msrb.mxu2 %v11825_v14 }
 0x353   : > { %v12000_v20 = vadd.f32 %v3677_v23, %v3570_v46  ;;  %4525 = vmatpush.bf16.msrb.mxu3 %v11830_v17 }
 0x354   : > { %4366 = vmatpush.bf16.msrb.mxu0 %v11595_v21  ;;  %v13899_v21 = vld [vmem:[#allocation23_spill] sm:$0xff] }
 0x355   : > { %4410 = vmatpush.bf16.msrb.mxu1 %v11605_v4 }
 0x356   : > { %4468 = vmatpush.bf16.msrb.mxu2 %v11848_v31 }
 0x357   : > { %4526 = vmatpush.bf16.msrb.mxu3 %v11853_v37 }
 0x358   : > { %v3571_v50 = vpop.f32.mrf.mxu2  ;;  %v3344_v14 = vpop.f32.mrf.mxu0  ;;  %4367 = vmatpush.bf16.msrb.mxu0 %v11628_v62 }
 0x359   : > { %v3679_v24 = vpop.f32.mrf.mxu3  ;;  %v3572_v18 = vadd.f32 %v3571_v50, %v3479_v61  ;;  %v3482_v60 = vpop.f32.mrf.mxu1  ;;  %v12009_v16 = vadd.f32 %v3344_v14, %v11820_v52  ;;  %4411 = vmatpush.bf16.msrb.mxu1 %v11645_v36 }
 0x35a   : > { %4469 = vmatpush.bf16.msrb.mxu2 %v11871_v2 }
 0x35b   : > { %v12013_v17 = vadd.f32 %v3679_v24, %v3572_v18  ;;  %4527 = vmatpush.bf16.msrb.mxu3 %v11876_v35  ;;  %3808 = vmatmul.bf16.gmra.mxu0 %v13899_v21 }
 0x35c   : > { %3930 = vmatmul.bf16.gmra.mxu1 %v11804_v26 }
 0x35d   : > { %4002 = vmatmul.bf16.gmra.mxu2 %v13883_v25 }
 0x35e   : > { %4046 = vmatmul.bf16.gmra.mxu3 %v13881_v44  ;;  %v13900_v44 = vld [vmem:[#allocation25_spill] sm:$0xff] }
 0x360   : > { %v3574_v4 = vpop.f32.mrf.mxu2  ;;  %v3346_v37 = vpop.f32.mrf.mxu0 }
 0x361   : > { %v3682_v52 = vpop.f32.mrf.mxu3  ;;  %v3575_v31 = vadd.f32 %v3574_v4, %v3482_v60  ;;  %v3484_v2 = vpop.f32.mrf.mxu1  ;;  %v12022_v62 = vadd.f32 %v3346_v37, %v11837_v1 }
 0x363   : > { %v12024_v47 = vadd.f32 %v3682_v52, %v3575_v31 }
 0x368   : > { %v3576_v35 = vpop.f32.mrf.mxu2  ;;  %v3349_v32 = vpop.f32.mrf.mxu0 }
 0x369   : > { %v3684_v36 = vpop.f32.mrf.mxu3  ;;  %v3577_v6 = vadd.f32 %v3576_v35, %v3484_v2  ;;  %v3487_v41 = vpop.f32.mrf.mxu1  ;;  %v12027_v59 = vadd.f32 %v3349_v32, %v11843_v30 }
 0x36b   : > { %v12029_v25 = vadd.f32 %v3684_v36, %v3577_v6  ;;  %3813 = vmatmul.bf16.gmra.mxu0 %v13900_v44 }
 0x36c   : > { %3935 = vmatmul.bf16.gmra.mxu1 %v11835_v8 }
 0x36d   : > { %4007 = vmatmul.bf16.gmra.mxu2 %v13886_v42 }
 0x36e   : > { %4051 = vmatmul.bf16.gmra.mxu3 %v13884_v51  ;;  %v13901_v51 = vld [vmem:[#allocation32_spill] sm:$0xff] }
 0x370   : > { %v3579_v1 = vpop.f32.mrf.mxu2  ;;  %v3351_v22 = vpop.f32.mrf.mxu0 }
 0x371   : > { %v3687_v58 = vpop.f32.mrf.mxu3  ;;  %v3580_v12 = vadd.f32 %v3579_v1, %v3487_v41  ;;  %v3489_v29 = vpop.f32.mrf.mxu1  ;;  %v12036_v27 = vadd.f32 %v3351_v22, %v11860_v48 }
 0x373   : > { %v12038_v30 = vadd.f32 %v3687_v58, %v3580_v12  ;;  %v13906_v12 = vld [vmem:[#allocation6_spill] sm:$0xff] }
 0x378   : > { %v3581_v55 = vpop.f32.mrf.mxu2  ;;  %v3354_v23 = vpop.f32.mrf.mxu0 }
 0x379   : > { %v3689_v38 = vpop.f32.mrf.mxu3  ;;  %v3582_v5 = vadd.f32 %v3581_v55, %v3489_v29  ;;  %v3492_v46 = vpop.f32.mrf.mxu1  ;;  %v12041_v57 = vadd.f32 %v3354_v23, %v11866_v7 }
 0x37b   : > { %v12043_v42 = vadd.f32 %v3689_v38, %v3582_v5  ;;  %3818 = vmatmul.bf16.gmra.mxu0 %v13901_v51 }
 0x37c   : > { %3940 = vmatmul.bf16.gmra.mxu1 %v11858_v45 }
 0x37d   : > { %4012 = vmatmul.bf16.gmra.mxu2 %v11586_v10 }
 0x37e   : > { %4056 = vmatmul.bf16.gmra.mxu3 %v11580_v34  ;;  %v13903_v34 = vld [vmem:[#allocation34_spill] sm:$0xff] }
 0x380   : > { %v3584_v48 = vpop.f32.mrf.mxu2  ;;  %v3356_v56 = vpop.f32.mrf.mxu0 }
 0x381   : > { %v3692_v61 = vpop.f32.mrf.mxu3  ;;  %v3585_v3 = vadd.f32 %v3584_v48, %v3492_v46  ;;  %v3494_v50 = vpop.f32.mrf.mxu1  ;;  %v12050_v24 = vadd.f32 %v3356_v56, %v11895_v11 }
 0x383   : > { %v12052_v7 = vadd.f32 %v3692_v61, %v3585_v3  ;;  %v12083_v3 = vld [vmem:[%s10260_s13 + $0xc8] sm:$0xff] }
 0x388   : > { %v3586_v18 = vpop.f32.mrf.mxu2  ;;  %v3359_v21 = vpop.f32.mrf.mxu0 }
 0x389   : > { %v3694_v14 = vpop.f32.mrf.mxu3  ;;  %v3587_v60 = vadd.f32 %v3586_v18, %v3494_v50  ;;  %v3497_v4 = vpop.f32.mrf.mxu1  ;;  %v12055_v52 = vadd.f32 %v3359_v21, %v11913_v33  ;;  %v12091_v18 = vld [vmem:[%s10260_s13 + $0x48] sm:$0xff] }
 0x38b   : > { %13902 = vst [vmem:[#allocation10_spill] sm:$0xff] %v12055_v52  ;;  %v12057_v10 = vadd.f32 %v3694_v14, %v3587_v60  ;;  %3823 = vmatmul.bf16.gmra.mxu0 %v13903_v34  ;;  %v12225_v52 = vld [vmem:[%s10260_s13 + $0xf8] sm:$0xff] }
 0x38c   : > { %3945 = vmatmul.bf16.gmra.mxu1 %v11887_v9  ;;  %13911 = vst [vmem:[#allocation31_spill] sm:$0xff] %v12225_v52 }
 0x38d   : > { %4017 = vmatmul.bf16.gmra.mxu2 %v11655_v28 }
 0x38e   : > { %4061 = vmatmul.bf16.gmra.mxu3 %v11631_v39  ;;  %v13905_v39 = vld [vmem:[#allocation8_spill] sm:$0xff] }
 0x390   : > { %v3589_v11 = vpop.f32.mrf.mxu2  ;;  %v3361_v2 = vpop.f32.mrf.mxu0 }
 0x391   : > { %v3697_v31 = vpop.f32.mrf.mxu3  ;;  %v3590_v37 = vadd.f32 %v3589_v11, %v3497_v4  ;;  %v3499_v35 = vpop.f32.mrf.mxu1  ;;  %v12064_v36 = vadd.f32 %v3361_v2, %v11930_v13  ;;  %v13907_v13 = vld [vmem:[#allocation5_spill] sm:$0xff] }
 0x393   : > { %v12066_v33 = vadd.f32 %v3697_v31, %v3590_v37 }
 0x398   : > { %v3591_v6 = vpop.f32.mrf.mxu2  ;;  %v3364_v44 = vpop.f32.mrf.mxu0 }
 0x399   : > { %v3699_v32 = vpop.f32.mrf.mxu3  ;;  %v3592_v41 = vadd.f32 %v3591_v6, %v3499_v35  ;;  %v3502_v1 = vpop.f32.mrf.mxu1  ;;  %v12069_v58 = vadd.f32 %v3364_v44, %v11948_v63  ;;  %v12103_v6 = vld [vmem:[%s10260_s13 + $0xd0] sm:$0xff] }
 0x39b   : > { %13904 = vst [vmem:[#allocation17_spill] sm:$0xff] %v12069_v58  ;;  %v12071_v28 = vadd.f32 %v3699_v32, %v3592_v41  ;;  %3828 = vmatmul.bf16.gmra.mxu0 %v11696_v43 }
 0x39c   : > { %3950 = vmatmul.bf16.gmra.mxu1 %v13905_v39 }
 0x39d   : > { %4022 = vmatmul.bf16.gmra.mxu2 %v13906_v12  ;;  %v12201_v12 = vld [vmem:[%s10260_s13 + $0xf0] sm:$0xff] }
 0x39e   : > { %4066 = vmatmul.bf16.gmra.mxu3 %v13907_v13  ;;  %13909 = vst [vmem:[#allocation14_spill] sm:$0xff] %v12201_v12 }
 0x3a0   : > { %v3594_v22 = vpop.f32.mrf.mxu2  ;;  %v3366_v38 = vpop.f32.mrf.mxu0 }
 0x3a1   : > { %v3702_v29 = vpop.f32.mrf.mxu3  ;;  %v3595_v55 = vadd.f32 %v3594_v22, %v3502_v1  ;;  %v3504_v5 = vpop.f32.mrf.mxu1  ;;  %v12078_v63 = vadd.f32 %v3366_v38, %v11950_v53  ;;  %v9966_v53 = vld [vmem:[%s10260_s13 + $0x8] sm:$0xff]  ;;  %v12111_v1 = vld [vmem:[%s10260_s13 + $0x50] sm:$0xff] }
 0x3a3   : > { %v12080_v23 = vadd.f32 %v3702_v29, %v3595_v55 }
 0x3a8   : > { %v3596_v43 = vpop.f32.mrf.mxu2  ;;  %v3369_v48 = vpop.f32.mrf.mxu0 }
 0x3a9   : > { %v3704_v46 = vpop.f32.mrf.mxu3  ;;  %v3597_v51 = vadd.f32 %v3596_v43, %v3504_v5  ;;  %v3507_v61 = vpop.f32.mrf.mxu1  ;;  %v12086_v56 = vadd.f32 %v3369_v48, %v11968_v54 }
 0x3ab   : > { %v12088_v50 = vadd.f32 %v3704_v46, %v3597_v51  ;;  %4080 = vmatmul.bf16.vlgmr.msra.gmra.mxu0 %v12091_v18 }
 0x3ac   : > { %4138 = vmatmul.bf16.vlgmr.msra.gmra.mxu1 %v11733_v40 }
 0x3ad   : > { %4252 = vmatmul.bf16.vlgmr.msra.gmra.mxu2 %v12083_v3 }
 0x3ae   : > { %4324 = vmatmul.bf16.vlgmr.msra.gmra.mxu3 %v9966_v53 }
 0x3b0   : > { %v3599_v14 = vpop.f32.mrf.mxu2  ;;  %v3371_v4 = vpop.f32.mrf.mxu0 }
 0x3b1   : > { %v3707_v60 = vpop.f32.mrf.mxu3  ;;  %v3600_v21 = vadd.f32 %v3599_v14, %v3507_v61  ;;  %v3509_v54 = vpop.f32.mrf.mxu1  ;;  %v12098_v34 = vadd.f32 %v3371_v4, %v11983_v0  ;;  %v9968_v0 = vld [vmem:[%s10260_s13 + $0x10] sm:$0xff]  ;;  %v12129_v14 = vld [vmem:[%s10260_s13 + $0xd8] sm:$0xff] }
 0x3b2   : > { %v12135_v4 = vld [vmem:[%s10260_s13 + $0x58] sm:$0xff] }
 0x3b3   : > { %v12100_v11 = vadd.f32 %v3707_v60, %v3600_v21 }
 0x3b8   : > { %v3601_v31 = vpop.f32.mrf.mxu2  ;;  %v3799_v2 = vpop.f32.mrf.mxu0 }
 0x3b9   : > { %v3709_v37 = vpop.f32.mrf.mxu3  ;;  %v3602_v40 = vadd.f32 %v3601_v31, %v3509_v54  ;;  %v3921_v35 = vpop.f32.mrf.mxu1  ;;  %v3834_v32 = vadd.f32 %v3799_v2, %v12000_v20 }
 0x3bb   : > { %v12106_v41 = vadd.f32 %v3709_v37, %v3602_v40  ;;  %v12108_v44 = vadd.f32 %v3921_v35, %v3834_v32  ;;  %4085 = vmatmul.bf16.gmra.mxu0 %v12111_v1 }
 0x3bc   : > { %4143 = vmatmul.bf16.gmra.mxu1 %v11765_v49 }
 0x3bd   : > { %4257 = vmatmul.bf16.gmra.mxu2 %v12103_v6 }
 0x3be   : > { %4329 = vmatmul.bf16.gmra.mxu3 %v9968_v0  ;;  %v12183_v0 = vld [vmem:[%s10260_s13 + $0x68] sm:$0xff] }
 0x3c0   : > { %v3993_v13 = vpop.f32.mrf.mxu2  ;;  %v3801_v29 = vpop.f32.mrf.mxu0 }
 0x3c1   : > { %v4037_v20 = vpop.f32.mrf.mxu3  ;;  %v3923_v55 = vpop.f32.mrf.mxu1  ;;  %v3835_v38 = vadd.f32 %v3801_v29, %v12013_v17  ;;  %v9970_v17 = vld [vmem:[%s10260_s13 + $0x18] sm:$0xff] }
 0x3c2   : > { %v12119_v22 = vadd.f32 %v4037_v20, %v3993_v13 }
 0x3c3   : > { %v12122_v5 = vadd.f32 %v3923_v55, %v3835_v38 }
 0x3c8   : > { %v3995_v46 = vpop.f32.mrf.mxu2  ;;  %v3804_v61 = vpop.f32.mrf.mxu0 }
 0x3c9   : > { %v4039_v51 = vpop.f32.mrf.mxu3  ;;  %v3926_v53 = vpop.f32.mrf.mxu1  ;;  %v3836_v60 = vadd.f32 %v3804_v61, %v12024_v47 }
 0x3ca   : > { %v12126_v48 = vadd.f32 %v4039_v51, %v3995_v46  ;;  %v12153_v46 = vld [vmem:[%s10260_s13 + $0xe0] sm:$0xff] }
 0x3cb   : > { %v12132_v21 = vadd.f32 %v3926_v53, %v3836_v60  ;;  %4090 = vmatmul.bf16.gmra.mxu0 %v12135_v4  ;;  %v12159_v53 = vld [vmem:[%s10260_s13 + $0x60] sm:$0xff]  ;;  %v12177_v60 = vld [vmem:[%s10260_s13 + $0xe8] sm:$0xff] }
 0x3cc   : > { %4148 = vmatmul.bf16.gmra.mxu1 %v11804_v26 }
 0x3cd   : > { %4262 = vmatmul.bf16.gmra.mxu2 %v12129_v14 }
 0x3ce   : > { %4334 = vmatmul.bf16.gmra.mxu3 %v9970_v17 }
 0x3d0   : > { %v3998_v31 = vpop.f32.mrf.mxu2  ;;  %v3806_v40 = vpop.f32.mrf.mxu0 }
 0x3d1   : > { %v4042_v37 = vpop.f32.mrf.mxu3  ;;  %v3928_v2 = vpop.f32.mrf.mxu1  ;;  %v3837_v35 = vadd.f32 %v3806_v40, %v12029_v25  ;;  %v9972_v25 = vld [vmem:[%s10260_s13 + $0x20] sm:$0xff] }
 0x3d2   : > { %v12143_v47 = vadd.f32 %v4042_v37, %v3998_v31 }
 0x3d3   : > { %v12146_v32 = vadd.f32 %v3928_v2, %v3837_v35 }
 0x3d8   : > { %v4000_v13 = vpop.f32.mrf.mxu2  ;;  %v3809_v55 = vpop.f32.mrf.mxu0 }
 0x3d9   : > { %v4044_v20 = vpop.f32.mrf.mxu3  ;;  %v3931_v38 = vpop.f32.mrf.mxu1  ;;  %v3838_v51 = vadd.f32 %v3809_v55, %v12038_v30 }
 0x3da   : > { %v12150_v29 = vadd.f32 %v4044_v20, %v4000_v13 }
 0x3db   : > { %v12156_v61 = vadd.f32 %v3931_v38, %v3838_v51  ;;  %4095 = vmatmul.bf16.gmra.mxu0 %v12159_v53 }
 0x3dc   : > { %4153 = vmatmul.bf16.gmra.mxu1 %v11835_v8 }
 0x3dd   : > { %4267 = vmatmul.bf16.gmra.mxu2 %v12153_v46 }
 0x3de   : > { %4339 = vmatmul.bf16.gmra.mxu3 %v9972_v25 }
 0x3e0   : > { %v4003_v17 = vpop.f32.mrf.mxu2  ;;  %v3811_v37 = vpop.f32.mrf.mxu0 }
 0x3e1   : > { %v4047_v31 = vpop.f32.mrf.mxu3  ;;  %v3933_v40 = vpop.f32.mrf.mxu1  ;;  %v3839_v2 = vadd.f32 %v3811_v37, %v12043_v42  ;;  %v9974_v42 = vld [vmem:[%s10260_s13 + $0x28] sm:$0xff] }
 0x3e2   : > { %v12167_v30 = vadd.f32 %v4047_v31, %v4003_v17 }
 0x3e3   : > { %v12170_v35 = vadd.f32 %v3933_v40, %v3839_v2 }
 0x3e8   : > { %v4005_v20 = vpop.f32.mrf.mxu2  ;;  %v3814_v51 = vpop.f32.mrf.mxu0 }
 0x3e9   : > { %v4049_v55 = vpop.f32.mrf.mxu3  ;;  %v3936_v25 = vpop.f32.mrf.mxu1  ;;  %v3840_v17 = vadd.f32 %v3814_v51, %v12052_v7 }
 0x3ea   : > { %v12174_v38 = vadd.f32 %v4049_v55, %v4005_v20 }
 0x3eb   : > { %v12180_v31 = vadd.f32 %v3936_v25, %v3840_v17  ;;  %4100 = vmatmul.bf16.gmra.mxu0 %v12183_v0 }
 0x3ec   : > { %4158 = vmatmul.bf16.gmra.mxu1 %v11858_v45 }
 0x3ed   : > { %13908 = vst [vmem:[#allocation13_spill] sm:$0xff] %v12180_v31  ;;  %4272 = vmatmul.bf16.gmra.mxu2 %v12177_v60  ;;  %v12207_v31 = vld [vmem:[%s10260_s13 + $0x70] sm:$0xff] }
 0x3ee   : > { %4344 = vmatmul.bf16.gmra.mxu3 %v9974_v42 }
 0x3f0   : > { %v4008_v40 = vpop.f32.mrf.mxu2  ;;  %v3816_v20 = vpop.f32.mrf.mxu0 }
 0x3f1   : > { %v4052_v2 = vpop.f32.mrf.mxu3  ;;  %v3938_v55 = vpop.f32.mrf.mxu1  ;;  %v3841_v51 = vadd.f32 %v3816_v20, %v12057_v10  ;;  %v9976_v10 = vld [vmem:[%s10260_s13 + $0x30] sm:$0xff] }
 0x3f2   : > { %v12191_v7 = vadd.f32 %v4052_v2, %v4008_v40 }
 0x3f3   : > { %v12194_v25 = vadd.f32 %v3938_v55, %v3841_v51 }
 0x3f8   : > { %v4010_v13 = vpop.f32.mrf.mxu2  ;;  %v3819_v37 = vpop.f32.mrf.mxu0 }
 0x3f9   : > { %v4054_v42 = vpop.f32.mrf.mxu3  ;;  %v3941_v43 = vpop.f32.mrf.mxu1  ;;  %v3842_v40 = vadd.f32 %v3819_v37, %v12066_v33 }
 0x3fa   : > { %v12198_v54 = vadd.f32 %v4054_v42, %v4010_v13 }
 0x3fb   : > { %v12204_v2 = vadd.f32 %v3941_v43, %v3842_v40  ;;  %4105 = vmatmul.bf16.gmra.mxu0 %v12207_v31 }
 0x3fc   : > { %4163 = vmatmul.bf16.gmra.mxu1 %v11887_v9  ;;  %v12231_v9 = vld [vmem:[%s10260_s13 + $0x78] sm:$0xff] }
 0x3fd   : > { %13910 = vst [vmem:[#allocation28_spill] sm:$0xff] %v12204_v2  ;;  %4277 = vmatmul.bf16.gmra.mxu2 %v12201_v12 }
 0x3fe   : > { %4349 = vmatmul.bf16.gmra.mxu3 %v9976_v10 }
 0x400   : > { %v4013_v20 = vpop.f32.mrf.mxu2  ;;  %v3821_v43 = vpop.f32.mrf.mxu0 }
 0x401   : > { %v4057_v55 = vpop.f32.mrf.mxu3  ;;  %v3943_v37 = vpop.f32.mrf.mxu1  ;;  %v3843_v51 = vadd.f32 %v3821_v43, %v12071_v28  ;;  %v9978_v28 = vld [vmem:[%s10260_s13 + $0x38] sm:$0xff] }
 0x402   : > { %v12215_v33 = vadd.f32 %v4057_v55, %v4013_v20 }
 0x403   : > { %v12218_v42 = vadd.f32 %v3943_v37, %v3843_v51 }
 0x408   : > { %v4015_v17 = vpop.f32.mrf.mxu2  ;;  %v3824_v13 = vpop.f32.mrf.mxu0 }
 0x409   : > { %v4059_v10 = vpop.f32.mrf.mxu3  ;;  %v3946_v2 = vpop.f32.mrf.mxu1  ;;  %v3844_v20 = vadd.f32 %v3824_v13, %v12080_v23 }
 0x40a   : > { %v12222_v12 = vadd.f32 %v4059_v10, %v4015_v17 }
 0x40b   : > { %v12228_v55 = vadd.f32 %v3946_v2, %v3844_v20  ;;  %4110 = vmatmul.bf16.gmra.mxu0 %v12231_v9 }
 0x40c   : > { %4168 = vmatmul.bf16.gmra.mxu1 %v13905_v39 }
 0x40d   : > { %13912 = vst [vmem:[#allocation19_spill] sm:$0xff] %v12228_v55  ;;  %4282 = vmatmul.bf16.gmra.mxu2 %v12225_v52 }
 0x40e   : > { %4354 = vmatmul.bf16.gmra.mxu3 %v9978_v28 }
 0x410   : > { %v4018_v43 = vpop.f32.mrf.mxu2  ;;  %v3826_v23 = vpop.f32.mrf.mxu0 }
 0x411   : > { %v4062_v37 = vpop.f32.mrf.mxu3  ;;  %v3948_v2 = vpop.f32.mrf.mxu1  ;;  %v3845_v13 = vadd.f32 %v3826_v23, %v12088_v50  ;;  %v9980_v50 = vld [vmem:[%s10260_s13 + $0x88] sm:$0xff] }
 0x412   : > { %v12239_v51 = vadd.f32 %v4062_v37, %v4018_v43  ;;  %v9979_v37 = vld [vmem:[%s10260_s13 + $0xc0] sm:$0xff] }
 0x413   : > { %v12242_v10 = vadd.f32 %v3948_v2, %v3845_v13 }
 0x418   : > { %v4020_v40 = vpop.f32.mrf.mxu2  ;;  %v3829_v17 = vpop.f32.mrf.mxu0 }
 0x419   : > { %v4064_v28 = vpop.f32.mrf.mxu3  ;;  %v3951_v55 = vpop.f32.mrf.mxu1  ;;  %v3846_v58 = vadd.f32 %v3829_v17, %v12100_v11 }
 0x41a   : > { %v12246_v52 = vadd.f32 %v4064_v28, %v4020_v40 }
 0x41b   : > { %v12249_v43 = vadd.f32 %v3951_v55, %v3846_v58  ;;  %4368 = vmatmul.bf16.vlgmr.msrb.gmra.mxu0 %v9979_v37 }
 0x41c   : > { %4412 = vmatmul.bf16.vlgmr.msrb.gmra.mxu1 %v12091_v18 }
 0x41d   : > { %13913 = vst [vmem:[#allocation20_spill] sm:$0xff] %v12249_v43  ;;  %4470 = vmatmul.bf16.vlgmr.msrb.gmra.mxu2 %v9980_v50 }
 0x41e   : > { %4528 = vmatmul.bf16.vlgmr.msrb.gmra.mxu3 %v12083_v3 }
 0x420   : > { %v4023_v40 = vpop.f32.mrf.mxu2  ;;  %v3831_v28 = vpop.f32.mrf.mxu0 }
 0x421   : > { %v4067_v2 = vpop.f32.mrf.mxu3  ;;  %v3953_v11 = vpop.f32.mrf.mxu1  ;;  %v3847_v58 = vadd.f32 %v3831_v28, %v12106_v41 }
 0x422   : > { %v12257_v13 = vadd.f32 %v4067_v2, %v4023_v40  ;;  %v9981_v40 = vld [vmem:[%s10260_s13 + $0xc8] sm:$0xff] }
 0x423   : > { %v12260_v55 = vadd.f32 %v3953_v11, %v3847_v58 }
 0x428   : > { %v4025_v17 = vpop.f32.mrf.mxu2  ;;  %v4081_v50 = vpop.f32.mrf.mxu0 }
 0x429   : > { %v4069_v37 = vpop.f32.mrf.mxu3  ;;  %v4139_v23 = vpop.f32.mrf.mxu1  ;;  %v4116_v20 = vadd.f32 %v4081_v50, %v12119_v22  ;;  %v13914_v22 = vmax.f32 %v11979_v15, %v12108_v44  ;;  %v9667_v15 = vld [vmem:[%s13647_s3 + $0x138] sm:$0xff] }
 0x42a   : > { %v12264_v3 = vadd.f32 %v4069_v37, %v4025_v17  ;;  %v12297_v44 = vld [vmem:[%s13647_s3 + $0xb8] sm:$0xff]  ;;  %5034 = vmatpush.bf16.msra.mxu2 %v9667_v15 }
 0x42b   : > { %v4174_v43 = vadd.f32 %v4139_v23, %v4116_v20  ;;  %4373 = vmatmul.bf16.gmra.mxu0 %v9981_v40 }
 0x42c   : > { %4417 = vmatmul.bf16.gmra.mxu1 %v12111_v1  ;;  %4783 = vmatpush.bf16.msra.mxu0 %v12297_v44 }
 0x42d   : > { %4475 = vmatmul.bf16.gmra.mxu2 %v11765_v49 }
 0x42e   : > { %4533 = vmatmul.bf16.gmra.mxu3 %v12103_v6 }
 0x430   : > { %v4253_v41 = vpop.f32.mrf.mxu2  ;;  %v4083_v11 = vpop.f32.mrf.mxu0 }
 0x431   : > { %v12271_v2 = vpop.f32.mrf.mxu3  ;;  %v4288_v28 = vadd.f32 %v4253_v41, %v4174_v43  ;;  %v4141_v58 = vpop.f32.mrf.mxu1  ;;  %v4117_v17 = vadd.f32 %v4083_v11, %v12126_v48  ;;  %v13915_v43 = vmax.f32 %v11996_v19, %v12122_v5  ;;  %v9982_v11 = vld [vmem:[%s10260_s13 + $0xd0] sm:$0xff]  ;;  %v12302_v19 = vld [vmem:[%s13647_s3 + $0x1b8] sm:$0xff] }
 0x432   : > { %5183 = vmatpush.bf16.msra.mxu3 %v12302_v19 }
 0x433   : > { %v12277_v20 = vmax.f32 %v13914_v22, %v4288_v28  ;;  %v4175_v23 = vadd.f32 %v4141_v58, %v4117_v17  ;;  %v13916_v58 = vmax.f32 %v12009_v16, %v12132_v21  ;;  %v12317_v22 = vld [vmem:[%s13647_s3 + $0x38] sm:$0xff]  ;;  %v13917_v16 = vmax.f32 %v12022_v62, %v12146_v32  ;;  %v12343_v62 = vld [vmem:[%s13647_s3 + $0x1b0] sm:$0xff] }
 0x434   : > { %4895 = vmatpush.bf16.msra.mxu1 %v12317_v22  ;;  %v12348_v32 = vld [vmem:[%s13647_s3 + $0x30] sm:$0xff] }
 0x436   : > { %5184 = vmatpush.bf16.msra.mxu3 %v12343_v62 }
 0x438   : > { %v4255_v1 = vpop.f32.mrf.mxu2  ;;  %v4086_v6 = vpop.f32.mrf.mxu0  ;;  %4896 = vmatpush.bf16.msra.mxu1 %v12348_v32 }
 0x439   : > { %v12279_v37 = vpop.f32.mrf.mxu3  ;;  %v4289_v49 = vadd.f32 %v4255_v1, %v4175_v23  ;;  %v4144_v50 = vpop.f32.mrf.mxu1  ;;  %v4118_v40 = vadd.f32 %v4086_v6, %v12143_v47 }
 0x43b   : > { %v12285_v41 = vmax.f32 %v13915_v43, %v4289_v49  ;;  %v4176_v48 = vadd.f32 %v4144_v50, %v4118_v40  ;;  %4378 = vmatmul.bf16.gmra.mxu0 %v9982_v11  ;;  %v9666_v11 = vld [vmem:[%s13647_s3 + $0x130] sm:$0xff] }
 0x43c   : > { %4422 = vmatmul.bf16.gmra.mxu1 %v12135_v4  ;;  %5035 = vmatpush.bf16.msra.mxu2 %v9666_v11  ;;  %v9984_v11 = vld [vmem:[%s10260_s13 + $0xe0] sm:$0xff] }
 0x43d   : > { %4480 = vmatmul.bf16.gmra.mxu2 %v11804_v26 }
 0x43e   : > { %4538 = vmatmul.bf16.gmra.mxu3 %v12129_v14 }
 0x440   : > { %v4258_v26 = vpop.f32.mrf.mxu2  ;;  %v4088_v4 = vpop.f32.mrf.mxu0 }
 0x441   : > { %v12305_v5 = vpop.f32.mrf.mxu3  ;;  %v4290_v14 = vadd.f32 %v4258_v26, %v4176_v48  ;;  %v4146_v47 = vpop.f32.mrf.mxu1  ;;  %v4119_v28 = vadd.f32 %v4088_v4, %v12150_v29  ;;  %v9983_v48 = vld [vmem:[%s10260_s13 + $0xd8] sm:$0xff]  ;;  %v13918_v4 = vmax.f32 %v12027_v59, %v12156_v61  ;;  %v12375_v59 = vld [vmem:[%s13647_s3 + $0x20] sm:$0xff] }
 0x442   : > { %v9664_v61 = vld [vmem:[%s13647_s3 + $0x120] sm:$0xff] }
 0x443   : > { %v12312_v17 = vmax.f32 %v13916_v58, %v4290_v14  ;;  %v4177_v23 = vadd.f32 %v4146_v47, %v4119_v28  ;;  %v12364_v58 = vld [vmem:[%s13647_s3 + $0x28] sm:$0xff] }
 0x444   : > { %4897 = vmatpush.bf16.msra.mxu1 %v12364_v58 }
 0x448   : > { %v4260_v1 = vpop.f32.mrf.mxu2  ;;  %v4091_v50 = vpop.f32.mrf.mxu0  ;;  %4898 = vmatpush.bf16.msra.mxu1 %v12375_v59 }
 0x449   : > { %v12320_v49 = vpop.f32.mrf.mxu3  ;;  %v4291_v6 = vadd.f32 %v4260_v1, %v4177_v23  ;;  %v4149_v40 = vpop.f32.mrf.mxu1  ;;  %v4120_v29 = vadd.f32 %v4091_v50, %v12167_v30  ;;  %v12338_v30 = vld [vmem:[%s13647_s3 + $0xb0] sm:$0xff]  ;;  %v9665_v23 = vld [vmem:[%s13647_s3 + $0x128] sm:$0xff] }
 0x44a   : > { %4784 = vmatpush.bf16.msra.mxu0 %v12338_v30  ;;  %5036 = vmatpush.bf16.msra.mxu2 %v9665_v23 }
 0x44b   : > { %v12326_v21 = vmax.f32 %v13917_v16, %v4291_v6  ;;  %v4178_v43 = vadd.f32 %v4149_v40, %v4120_v29  ;;  %4383 = vmatmul.bf16.gmra.mxu0 %v9983_v48  ;;  %v13919_v16 = vmax.f32 %v12036_v27, %v12170_v35  ;;  %v12402_v27 = vld [vmem:[%s13647_s3 + $0x18] sm:$0xff] }
 0x44c   : > { %4427 = vmatmul.bf16.gmra.mxu1 %v12159_v53 }
 0x44d   : > { %4485 = vmatmul.bf16.gmra.mxu2 %v11835_v8  ;;  %4899 = vmatpush.bf16.msra.mxu1 %v12402_v27 }
 0x44e   : > { %4543 = vmatmul.bf16.gmra.mxu3 %v12153_v46  ;;  %5037 = vmatpush.bf16.msra.mxu2 %v9664_v61 }
 0x450   : > { %v4263_v8 = vpop.f32.mrf.mxu2  ;;  %v4093_v15 = vpop.f32.mrf.mxu0 }
 0x451   : > { %v12352_v46 = vpop.f32.mrf.mxu3  ;;  %v4292_v53 = vadd.f32 %v4263_v8, %v4178_v43  ;;  %v4151_v26 = vpop.f32.mrf.mxu1  ;;  %v4121_v14 = vadd.f32 %v4093_v15, %v12174_v38  ;;  %v12392_v8 = vld [vmem:[%s13647_s3 + $0xa8] sm:$0xff] }
 0x452   : > { %4785 = vmatpush.bf16.msra.mxu0 %v12392_v8 }
 0x453   : > { %v12359_v47 = vmax.f32 %v13918_v4, %v4292_v53  ;;  %v4179_v28 = vadd.f32 %v4151_v26, %v4121_v14 }
 0x458   : > { %v4265_v38 = vpop.f32.mrf.mxu2  ;;  %v4096_v50 = vpop.f32.mrf.mxu0 }
 0x459   : > { %v12370_v1 = vpop.f32.mrf.mxu3  ;;  %v4293_v6 = vadd.f32 %v4265_v38, %v4179_v28  ;;  %v4154_v40 = vpop.f32.mrf.mxu1  ;;  %v4122_v29 = vadd.f32 %v4096_v50, %v12191_v7  ;;  %v12397_v7 = vld [vmem:[%s13647_s3 + $0x1a8] sm:$0xff]  ;;  %v13920_v28 = vld [vmem:[#allocation13_spill] sm:$0xff] }
 0x45a   : > { %5185 = vmatpush.bf16.msra.mxu3 %v12397_v7  ;;  %v13921_v23 = vmax.f32 %v12041_v57, %v13920_v28  ;;  %v9661_v50 = vld [vmem:[%s13647_s3 + $0x108] sm:$0xff] }
 0x45b   : > { %v12385_v43 = vmax.f32 %v13919_v16, %v4293_v6  ;;  %v4180_v48 = vadd.f32 %v4154_v40, %v4122_v29  ;;  %4388 = vmatmul.bf16.gmra.mxu0 %v9984_v11  ;;  %v12432_v6 = vld [vmem:[%s13647_s3 + $0x8] sm:$0xff]  ;;  %v12443_v40 = vld [vmem:[%s13647_s3] sm:$0xff] }
 0x45c   : > { %4432 = vmatmul.bf16.gmra.mxu1 %v12183_v0  ;;  %v9663_v0 = vld [vmem:[%s13647_s3 + $0x118] sm:$0xff]  ;;  %v9660_v29 = vld [vmem:[%s13647_s3 + $0x100] sm:$0xff] }
 0x45d   : > { %4490 = vmatmul.bf16.gmra.mxu2 %v11858_v45  ;;  %v12417_v45 = vld [vmem:[%s13647_s3 + $0x10] sm:$0xff] }
 0x45e   : > { %4548 = vmatmul.bf16.gmra.mxu3 %v12177_v60  ;;  %5038 = vmatpush.bf16.msra.mxu2 %v9663_v0  ;;  %v9662_v60 = vld [vmem:[%s13647_s3 + $0x110] sm:$0xff] }
 0x45f   : > { %4900 = vmatpush.bf16.msra.mxu1 %v12417_v45 }
 0x460   : > { %v4268_v35 = vpop.f32.mrf.mxu2  ;;  %v4098_v26 = vpop.f32.mrf.mxu0 }
 0x461   : > { %v12412_v53 = vpop.f32.mrf.mxu3  ;;  %v4294_v15 = vadd.f32 %v4268_v35, %v4180_v48  ;;  %v4156_v14 = vpop.f32.mrf.mxu1  ;;  %v4123_v4 = vadd.f32 %v4098_v26, %v12198_v54  ;;  %v13922_v35 = vmax.f32 %v12050_v24, %v12194_v25  ;;  %v12462_v26 = vld [vmem:[%s13647_s3 + $0x1a0] sm:$0xff]  ;;  %v13923_v24 = vld [vmem:[#allocation7_spill] sm:$0xff] }
 0x462   : > { %5039 = vmatpush.bf16.msra.mxu2 %v9662_v60  ;;  %v13924_v25 = vld [vmem:[#allocation14_spill] sm:$0xff]  ;;  %5186 = vmatpush.bf16.msra.mxu3 %v12462_v26 }
 0x463   : > { %v12426_v38 = vmax.f32 %v13921_v23, %v4294_v15  ;;  %v4181_v61 = vadd.f32 %v4156_v14, %v4123_v4  ;;  %4901 = vmatpush.bf16.msra.mxu1 %v12432_v6  ;;  %v12457_v15 = vld [vmem:[%s13647_s3 + $0xa0] sm:$0xff] }
 0x464   : > { %4786 = vmatpush.bf16.msra.mxu0 %v12457_v15 }
 0x466   : > { %5040 = vmatpush.bf16.msra.mxu2 %v9661_v50 }
 0x467   : > { %4902 = vmatpush.bf16.msra.mxu1 %v12443_v40 }
 0x468   : > { %v4270_v57 = vpop.f32.mrf.mxu2  ;;  %v4101_v48 = vpop.f32.mrf.mxu0 }
 0x469   : > { %v12438_v54 = vpop.f32.mrf.mxu3  ;;  %v4295_v16 = vadd.f32 %v4270_v57, %v4181_v61  ;;  %v4159_v11 = vpop.f32.mrf.mxu1  ;;  %v4124_v0 = vadd.f32 %v4101_v48, %v12215_v33  ;;  %v9985_v33 = vld [vmem:[%s10260_s13 + $0xe8] sm:$0xff] }
 0x46a   : > { %5041 = vmatpush.bf16.msra.mxu2 %v9660_v29  ;;  %v13925_v29 = vld [vmem:[#allocation10_spill] sm:$0xff] }
 0x46b   : > { %v12452_v60 = vmax.f32 %v13922_v35, %v4295_v16  ;;  %v4182_v14 = vadd.f32 %v4159_v11, %v4124_v0  ;;  %4393 = vmatmul.bf16.gmra.mxu0 %v9985_v33  ;;  %v13926_v16 = vld [vmem:[#allocation28_spill] sm:$0xff]  ;;  %v12482_v0 = vld [vmem:[%s13647_s3 + $0x98] sm:$0xff] }
 0x46c   : > { %4437 = vmatmul.bf16.gmra.mxu1 %v12207_v31  ;;  %v13927_v31 = vmax.f32 %v13925_v29, %v13926_v16  ;;  %v12487_v35 = vld [vmem:[%s13647_s3 + $0x198] sm:$0xff]  ;;  %4787 = vmatpush.bf16.msra.mxu0 %v12482_v0  ;;  %v13929_v29 = vld [vmem:[#allocation31_spill] sm:$0xff] }
 0x46d   : > { %4495 = vmatmul.bf16.gmra.mxu2 %v13923_v24  ;;  %5187 = vmatpush.bf16.msra.mxu3 %v12487_v35 }
 0x46e   : > { %4553 = vmatmul.bf16.gmra.mxu3 %v13924_v25 }
 0x470   : > { %v4273_v4 = vpop.f32.mrf.mxu2  ;;  %v4103_v61 = vpop.f32.mrf.mxu0 }
 0x471   : > { %v12471_v28 = vpop.f32.mrf.mxu3  ;;  %v4296_v23 = vadd.f32 %v4273_v4, %v4182_v14  ;;  %v4161_v50 = vpop.f32.mrf.mxu1  ;;  %v4125_v57 = vadd.f32 %v4103_v61, %v12222_v12 }
 0x473   : > { %v12477_v48 = vmax.f32 %v13927_v31, %v4296_v23  ;;  %v4183_v11 = vadd.f32 %v4161_v50, %v4125_v57  ;;  %v13928_v23 = vmax.f32 %v12064_v36, %v12218_v42  ;;  %v9986_v57 = vld [vmem:[%s10260_s13 + $0xf0] sm:$0xff]  ;;  %v13930_v36 = vld [vmem:[#allocation17_spill] sm:$0xff]  ;;  %v13931_v42 = vld [vmem:[#allocation19_spill] sm:$0xff] }
 0x478   : > { %v4275_v12 = vpop.f32.mrf.mxu2  ;;  %v4106_v24 = vpop.f32.mrf.mxu0 }
 0x479   : > { %v12491_v14 = vpop.f32.mrf.mxu3  ;;  %v4297_v33 = vadd.f32 %v4275_v12, %v4183_v11  ;;  %v4164_v25 = vpop.f32.mrf.mxu1  ;;  %v4126_v4 = vadd.f32 %v4106_v24, %v12239_v51 }
 0x47b   : > { %v12497_v61 = vmax.f32 %v13928_v23, %v4297_v33  ;;  %v4184_v50 = vadd.f32 %v4164_v25, %v4126_v4  ;;  %4398 = vmatmul.bf16.gmra.mxu0 %v9986_v57  ;;  %v13932_v33 = vmax.f32 %v13930_v36, %v13931_v42 }
 0x47c   : > { %4442 = vmatmul.bf16.gmra.mxu1 %v12231_v9 }
 0x47d   : > { %4500 = vmatmul.bf16.gmra.mxu2 %v13905_v39 }
 0x47e   : > { %4558 = vmatmul.bf16.gmra.mxu3 %v13929_v29 }
 0x480   : > { %v4278_v16 = vpop.f32.mrf.mxu2  ;;  %v4108_v12 = vpop.f32.mrf.mxu0 }
 0x481   : > { %v12503_v31 = vpop.f32.mrf.mxu3  ;;  %v4298_v11 = vadd.f32 %v4278_v16, %v4184_v50  ;;  %v4166_v51 = vpop.f32.mrf.mxu1  ;;  %v4127_v24 = vadd.f32 %v4108_v12, %v12246_v52  ;;  %v12516_v50 = vld [vmem:[%s13647_s3 + $0x90] sm:$0xff]  ;;  %v13934_v12 = vmax.f32 %v12078_v63, %v12242_v10 }
 0x482   : > { %v12521_v52 = vld [vmem:[%s13647_s3 + $0x190] sm:$0xff]  ;;  %4788 = vmatpush.bf16.msra.mxu0 %v12516_v50 }
 0x483   : > { %v12509_v25 = vmax.f32 %v13932_v33, %v4298_v11  ;;  %v4185_v4 = vadd.f32 %v4166_v51, %v4127_v24  ;;  %13933 = vst [vmem:[#allocation22_spill] sm:$0xff] %v12521_v52  ;;  %v12524_v11 = vld [vmem:[#allocation2 + $0x30] sm:$0xff]  ;;  %v12531_v24 = vld [vmem:[#allocation2] sm:$0xff]  ;;  %5188 = vmatpush.bf16.msra.mxu3 %v12521_v52 }
 0x484   : > { %13935 = vst [vmem:[#allocation21_spill] sm:$0xff] %v12531_v24  ;;  %v13936_v10 = vld [vmem:[#allocation20_spill] sm:$0xff] }
 0x488   : > { %v4280_v23 = vpop.f32.mrf.mxu2  ;;  %v4111_v57 = vpop.f32.mrf.mxu0 }
 0x489   : > { %v12511_v9 = vpop.f32.mrf.mxu3  ;;  %v4299_v39 = vadd.f32 %v4280_v23, %v4185_v4  ;;  %v4169_v29 = vpop.f32.mrf.mxu1  ;;  %v4128_v16 = vadd.f32 %v4111_v57, %v12257_v13 }
 0x48b   : > { %v12529_v51 = vmax.f32 %v13934_v12, %v4299_v39  ;;  %v4186_v36 = vadd.f32 %v4169_v29, %v4128_v16  ;;  %v13937_v39 = vmax.f32 %v12086_v56, %v13936_v10  ;;  %v12548_v29 = vld [vmem:[%s13647_s3 + $0x88] sm:$0xff]  ;;  %v12571_v10 = vld [vmem:[#allocation2 + $0x18] sm:$0xff] }
 0x48c   : > { %4903 = vmatmul.bf16.vlgmr.msra.gmra.mxu1 %v12524_v11  ;;  %4789 = vmatpush.bf16.msra.mxu0 %v12548_v29  ;;  %v12556_v56 = vld [vmem:[%s13647_s3 + $0x188] sm:$0xff]  ;;  %13940 = vst [vmem:[#allocation33_spill] sm:$0xff] %v12571_v10 }
 0x48d   : > { %5042 = vmatmul.bf16.vlgmr.msra.gmra.mxu2 %v12531_v24  ;;  %13938 = vst [vmem:[#allocation26_spill] sm:$0xff] %v12556_v56  ;;  %5189 = vmatpush.bf16.msra.mxu3 %v12556_v56 }
 0x490   : > { %v4283_v42 = vpop.f32.mrf.mxu2  ;;  %v4113_v4 = vpop.f32.mrf.mxu0 }
 0x491   : > { %v12537_v13 = vpop.f32.mrf.mxu3  ;;  %v4300_v33 = vadd.f32 %v4283_v42, %v4186_v36  ;;  %v4171_v23 = vpop.f32.mrf.mxu1  ;;  %v4129_v63 = vadd.f32 %v4113_v4, %v12264_v3  ;;  %v12561_v3 = vld [vmem:[%s13647_s3 + $0x80] sm:$0xff]  ;;  %v13939_v4 = vmax.f32 %v12098_v34, %v12260_v55  ;;  %v12584_v34 = vld [vmem:[%s13647_s3 + $0x78] sm:$0xff] }
 0x492   : > { %4790 = vmatpush.bf16.msra.mxu0 %v12561_v3  ;;  %13942 = vst [vmem:[#allocation11_spill] sm:$0xff] %v12584_v34  ;;  %5540 = vmatpush.bf16.msrb.mxu2 %v12584_v34  ;;  %v12610_v34 = vld [vmem:[%s13647_s3 + $0x68] sm:$0xff] }
 0x493   : > { %v12543_v57 = vmax.f32 %v13937_v39, %v4300_v33  ;;  %v4187_v12 = vadd.f32 %v4171_v23, %v4129_v63  ;;  %v12563_v33 = vld [vmem:[#allocation2] sm:$0xff]  ;;  %v12579_v39 = vld [vmem:[%s13647_s3 + $0xf8] sm:$0xff]  ;;  %13946 = vst [vmem:[#allocation15_spill] sm:$0xff] %v12610_v34 }
 0x494   : > { %13941 = vst [vmem:[#allocation9_spill] sm:$0xff] %v12579_v39  ;;  %5458 = vmatpush.bf16.msrb.mxu1 %v12579_v39  ;;  %v12640_v39 = vld [vmem:[#allocation2 + $0x10] sm:$0xff] }
 0x495   : > { %13950 = vst [vmem:[#allocation29_spill] sm:$0xff] %v12640_v39 }
 0x498   : > { %v4285_v16 = vpop.f32.mrf.mxu2  ;;  %v4369_v42 = vpop.f32.mrf.mxu0 }
 0x499   : > { %v12551_v18 = vpop.f32.mrf.mxu3  ;;  %v4301_v36 = vadd.f32 %v4285_v16, %v4187_v12  ;;  %v4413_v52 = vpop.f32.mrf.mxu1  ;;  %v4370_v63 = vadd.f32 %v4369_v42, %v12271_v2  ;;  %v12592_v16 = vld [vmem:[%s13647_s3 + $0xf0] sm:$0xff] }
 0x49a   : > { %13943 = vst [vmem:[#allocation12_spill] sm:$0xff] %v12592_v16  ;;  %5459 = vmatpush.bf16.msrb.mxu1 %v12592_v16 }
 0x49b   : > { %v12568_v23 = vmax.f32 %v13939_v4, %v4301_v36  ;;  %v4448_v55 = vadd.f32 %v4413_v52, %v4370_v63  ;;  %v12597_v36 = vld [vmem:[%s13647_s3 + $0x70] sm:$0xff]  ;;  %v12605_v63 = vld [vmem:[%s13647_s3 + $0xe8] sm:$0xff] }
 0x49c   : > { %4908 = vmatmul.bf16.gmra.mxu1 %v12563_v33  ;;  %13944 = vst [vmem:[#allocation16_spill] sm:$0xff] %v12597_v36  ;;  %5541 = vmatpush.bf16.msrb.mxu2 %v12597_v36 }
 0x49d   : > { %5047 = vmatmul.bf16.gmra.mxu2 %v12571_v10  ;;  %13945 = vst [vmem:[#allocation18_spill] sm:$0xff] %v12605_v63 }
 0x49e   : > { %5460 = vmatpush.bf16.msrb.mxu1 %v12605_v63  ;;  %v12635_v63 = vld [vmem:[#allocation2 + $0x18] sm:$0xff] }
 0x4a0   : > { %v4471_v2 = vpop.f32.mrf.mxu2  ;;  %v4371_v4 = vpop.f32.mrf.mxu0  ;;  %5542 = vmatpush.bf16.msrb.mxu2 %v12610_v34  ;;  %v12633_v34 = vld [vmem:[%s13647_s3 + $0x180] sm:$0xff] }
 0x4a1   : > { %v4529_v12 = vpop.f32.mrf.mxu3  ;;  %v4506_v42 = vadd.f32 %v4471_v2, %v4448_v55  ;;  %v4415_v10 = vpop.f32.mrf.mxu1  ;;  %v4372_v52 = vadd.f32 %v4371_v4, %v12279_v37  ;;  %v12617_v37 = vld [vmem:[%s13647_s3 + $0xe0] sm:$0xff]  ;;  %13949 = vst [vmem:[#allocation24_spill] sm:$0xff] %v12633_v34  ;;  %5190 = vmatpush.bf16.msra.mxu3 %v12633_v34  ;;  %v12663_v34 = vld [vmem:[%s13647_s3 + $0xd0] sm:$0xff] }
 0x4a2   : > { %13947 = vst [vmem:[#allocation27_spill] sm:$0xff] %v12617_v37  ;;  %v12622_v4 = vld [vmem:[%s13647_s3 + $0x60] sm:$0xff]  ;;  %5461 = vmatpush.bf16.msrb.mxu1 %v12617_v37 }
 0x4a3   : > { %v4564_v56 = vadd.f32 %v4529_v12, %v4506_v42  ;;  %v4449_v55 = vadd.f32 %v4415_v10, %v4372_v52  ;;  %13948 = vst [vmem:[#allocation30_spill] sm:$0xff] %v12622_v4  ;;  %v12628_v12 = vld [vmem:[%s13646_s2] ss:$0 sm:$0xff] }
 0x4a4   : > { %5543 = vmatpush.bf16.msrb.mxu2 %v12622_v4  ;;  %13953 = vst [vmem:[#allocation32_spill] sm:$0xff] %v12663_v34 }
 0x4a5   : > { %v4578_v16 = vmax.f32 %v12277_v20, %v4564_v56 }
 0x4a8   : > { %v4473_v2 = vpop.f32.mrf.mxu2  ;;  %v4374_v42 = vpop.f32.mrf.mxu0 }
 0x4a9   : > { %v4531_v36 = vpop.f32.mrf.mxu3  ;;  %v4507_v10 = vadd.f32 %v4473_v2, %v4449_v55  ;;  %v4418_v52 = vpop.f32.mrf.mxu1  ;;  %v4375_v56 = vadd.f32 %v4374_v42, %v12305_v5  ;;  %v12647_v55 = vld [vmem:[%s13647_s3 + $0xd8] sm:$0xff] }
 0x4aa   : > { %13951 = vst [vmem:[#allocation23_spill] sm:$0xff] %v12647_v55  ;;  %v12652_v2 = vld [vmem:[%s13647_s3 + $0x58] sm:$0xff]  ;;  %5462 = vmatpush.bf16.msrb.mxu1 %v12647_v55 }
 0x4ab   : > { %v4565_v20 = vadd.f32 %v4531_v36, %v4507_v10  ;;  %13952 = vst [vmem:[#allocation25_spill] sm:$0xff] %v12652_v2  ;;  %v4596_v36 = vadd.f32 %v12628_v12, %v4578_v16  ;;  %5544 = vmatpush.bf16.msrb.mxu2 %v12652_v2  ;;  %v4450_v42 = vadd.f32 %v4418_v52, %v4375_v56 }
 0x4ac   : > { %4913 = vmatmul.bf16.gmra.mxu1 %v12635_v63 }
 0x4ad   : > { %v4579_v5 = vmax.f32 %v12285_v41, %v4565_v20  ;;  %5052 = vmatmul.bf16.gmra.mxu2 %v12640_v39  ;;  %v12668_v41 = vld [vmem:[%s13647_s3 + $0x50] sm:$0xff]  ;;  %v4610_v16 = vmax.f32 %v4596_v36, 0.0  ;;  %v12681_v36 = vld [vmem:[%s13647_s3 + $0x48] sm:$0xff] }
 0x4ae   : > { %13954 = vst [vmem:[#allocation34_spill] sm:$0xff] %v12668_v41  ;;  %5463 = vmatpush.bf16.msrb.mxu1 %v12663_v34  ;;  %v12713_v34 = vld [vmem:[#allocation2 + $0x8] sm:$0xff] }
 0x4af   : > { %v4597_v10 = vadd.f32 %v12628_v12, %v4579_v5  ;;  %5545 = vmatpush.bf16.msrb.mxu2 %v12668_v41  ;;  %v12676_v5 = vld [vmem:[%s13647_s3 + $0xc8] sm:$0xff]  ;;  %13956 = vst [vmem:[#allocation6_spill] sm:$0xff] %v12681_v36 }
 0x4b0   : > { %v4476_v4 = vpop.f32.mrf.mxu2  ;;  %v4376_v55 = vpop.f32.mrf.mxu0  ;;  %13955 = vst [vmem:[#allocation8_spill] sm:$0xff] %v12676_v5 }
 0x4b1   : > { %v4534_v37 = vpop.f32.mrf.mxu3  ;;  %v4611_v20 = vmax.f32 %v4597_v10, 0.0  ;;  %v4508_v39 = vadd.f32 %v4476_v4, %v4450_v42  ;;  %v4420_v2 = vpop.f32.mrf.mxu1  ;;  %v4377_v56 = vadd.f32 %v4376_v55, %v12320_v49  ;;  %v12686_v10 = vld [vmem:[%s13647_s3 + $0x238] sm:$0xff]  ;;  %v12700_v42 = vld [vmem:[%s13647_s3 + $0xc0] sm:$0xff] }
 0x4b2   : > { %v12691_v49 = vld [vmem:[%s13647_s3 + $0x178] sm:$0xff]  ;;  %5464 = vmatpush.bf16.msrb.mxu1 %v12676_v5  ;;  %5332 = vmatpush.bf16.msrb.mxu0 %v12686_v10  ;;  %13958 = vst [vmem:[#allocation13_spill] sm:$0xff] %v12700_v42 }
 0x4b3   : > { %v9838_v52 = vpack.c.bf16 %v4611_v20, %v4610_v16  ;;  %v4566_v4 = vadd.f32 %v4534_v37, %v4508_v39  ;;  %13957 = vst [vmem:[#allocation5_spill] sm:$0xff] %v12691_v49  ;;  %5546 = vmatpush.bf16.msrb.mxu2 %v12681_v36  ;;  %v4451_v55 = vadd.f32 %v4420_v2, %v4377_v56  ;;  %v12705_v16 = vld [vmem:[%s13647_s3 + $0x40] sm:$0xff]  ;;  %v12708_v36 = vld [vmem:[#allocation2 + $0x10] sm:$0xff] }
 0x4b4   : > { %5639 = vmatpush.bf16.msrb.mxu3 %v12691_v49  ;;  %13959 = vst [vmem:[#allocation7_spill] sm:$0xff] %v12705_v16 }
 0x4b5   : > { %9839 = vst [vmem:[#allocation3] sm:$0xff] %v9838_v52   ;;  %v4580_v20 = vmax.f32 %v12312_v17, %v4566_v4 }
 0x4b6   : > { %5465 = vmatpush.bf16.msrb.mxu1 %v12700_v42 }
 0x4b7   : > { %5547 = vmatpush.bf16.msrb.mxu2 %v12705_v16  ;;  %v4598_v17 = vadd.f32 %v12628_v12, %v4580_v20 }
 0x4b8   : > { %v4478_v39 = vpop.f32.mrf.mxu2  ;;  %v4379_v2 = vpop.f32.mrf.mxu0 }
 0x4b9   : > { %v4536_v37 = vpop.f32.mrf.mxu3  ;;  %v4509_v52 = vadd.f32 %v4478_v39, %v4451_v55  ;;  %v4423_v56 = vpop.f32.mrf.mxu1  ;;  %v4380_v5 = vadd.f32 %v4379_v2, %v12352_v46 }
 0x4bb   : > { %v4567_v41 = vadd.f32 %v4536_v37, %v4509_v52  ;;  %5911 = vmatpush.bf16.msra.mxu2 %v12297_v44  ;;  %v4452_v39 = vadd.f32 %v4423_v56, %v4380_v5  ;;  %v4612_v44 = vmax.f32 %v4598_v17, 0.0 }
 0x4bc   : > { %4918 = vmatmul.bf16.gmra.mxu1 %v12708_v36  ;;  %v12717_v49 = vld [vmem:[#allocation3] sm:$0xff] }
 0x4bd   : > { %v4581_v4 = vmax.f32 %v12326_v21, %v4567_v41  ;;  %5057 = vmatmul.bf16.gmra.mxu2 %v12713_v34  ;;  %4791 = vmatmul.bf16.vlgmr.msra.gmra.mxu0 %v12717_v49  ;;  %v12730_v41 = vld [vmem:[%s13647_s3 + $0x230] sm:$0xff] }
 0x4be   : > { %5333 = vmatpush.bf16.msrb.mxu0 %v12730_v41 }
 0x4bf   : > { %v4599_v55 = vadd.f32 %v12628_v12, %v4581_v4  ;;  %5912 = vmatpush.bf16.msra.mxu2 %v12338_v30  ;;  %v12735_v30 = vld [vmem:[%s13647_s3 + $0x170] sm:$0xff]  ;;  %v12744_v4 = vld [vmem:[%s13647_s3 + $0x228] sm:$0xff] }
 0x4c0   : > { %v4481_v46 = vpop.f32.mrf.mxu2  ;;  %v4381_v16 = vpop.f32.mrf.mxu0  ;;  %5640 = vmatpush.bf16.msrb.mxu3 %v12735_v30 }
 0x4c1   : > { %v4539_v37 = vpop.f32.mrf.mxu3  ;;  %v4613_v52 = vmax.f32 %v4599_v55, 0.0  ;;  %v4510_v2 = vadd.f32 %v4481_v46, %v4452_v39  ;;  %v4425_v42 = vpop.f32.mrf.mxu1  ;;  %v4382_v20 = vadd.f32 %v4381_v16, %v12370_v1  ;;  %v12751_v55 = vld [vmem:[#allocation2 + $0x8] sm:$0xff]  ;;  %v12754_v46 = vld [vmem:[#allocation2 + $0x20] sm:$0xff] }
 0x4c2   : > { %5334 = vmatpush.bf16.msrb.mxu0 %v12744_v4 }
 0x4c3   : > { %v9843_v24 = vpack.c.bf16 %v4613_v52, %v4612_v44  ;;  %5913 = vmatpush.bf16.msra.mxu2 %v12392_v8  ;;  %v4568_v21 = vadd.f32 %v4539_v37, %v4510_v2  ;;  %v4453_v5 = vadd.f32 %v4425_v42, %v4382_v20  ;;  %v12749_v42 = vld [vmem:[%s13647_s3 + $0x168] sm:$0xff] }
 0x4c4   : > { %5641 = vmatpush.bf16.msrb.mxu3 %v12749_v42 }
 0x4c5   : > { %9901 = vst [vmem:[#allocation3 + $0x8] sm:$0xff] %v9843_v24   ;;  %v4582_v8 = vmax.f32 %v12359_v47, %v4568_v21 }
 0x4c7   : > { %5914 = vmatpush.bf16.msra.mxu2 %v12457_v15  ;;  %v4600_v44 = vadd.f32 %v12628_v12, %v4582_v8 }
 0x4c8   : > { %v4483_v1 = vpop.f32.mrf.mxu2  ;;  %v4384_v56 = vpop.f32.mrf.mxu0 }
 0x4c9   : > { %v4541_v16 = vpop.f32.mrf.mxu3  ;;  %v4511_v24 = vadd.f32 %v4483_v1, %v4453_v5  ;;  %v4428_v17 = vpop.f32.mrf.mxu1  ;;  %v4385_v15 = vadd.f32 %v4384_v56, %v12412_v53  ;;  %v4614_v5 = vmax.f32 %v4600_v44, 0.0 }
 0x4cb   : > { %v4569_v39 = vadd.f32 %v4541_v16, %v4511_v24  ;;  %5915 = vmatpush.bf16.msra.mxu2 %v12482_v0  ;;  %v4454_v2 = vadd.f32 %v4428_v17, %v4385_v15  ;;  %v9690_v17 = vld [vmem:[%s13647_s3 + $0x220] sm:$0xff] }
 0x4cc   : > { %4923 = vmatmul.bf16.gmra.mxu1 %v12751_v55  ;;  %v12759_v47 = vld [vmem:[#allocation3 + $0x8] sm:$0xff]  ;;  %5335 = vmatpush.bf16.msrb.mxu0 %v9690_v17 }
 0x4cd   : > { %v12761_v37 = vld [vmem:[#allocation3 + $0x8] sm:$0xff]  ;;  %v4583_v52 = vmax.f32 %v12385_v43, %v4569_v39  ;;  %5062 = vmatmul.bf16.gmra.mxu2 %v12754_v46  ;;  %4796 = vmatmul.bf16.gmra.mxu0 %v12759_v47 }
 0x4ce   : > { %5191 = vmatmul.bf16.vlgmr.msra.gmra.mxu3 %v12761_v37 }
 0x4cf   : > { %v4601_v53 = vadd.f32 %v12628_v12, %v4583_v52  ;;  %5916 = vmatpush.bf16.msra.mxu2 %v12516_v50  ;;  %v12779_v50 = vld [vmem:[%s13647_s3 + $0x160] sm:$0xff] }
 0x4d0   : > { %v4486_v20 = vpop.f32.mrf.mxu2  ;;  %v4386_v16 = vpop.f32.mrf.mxu0  ;;  %5642 = vmatpush.bf16.msrb.mxu3 %v12779_v50 }
 0x4d1   : > { %v4544_v21 = vpop.f32.mrf.mxu3  ;;  %v4615_v1 = vmax.f32 %v4601_v53, 0.0  ;;  %v4512_v0 = vadd.f32 %v4486_v20, %v4454_v2  ;;  %v4430_v8 = vpop.f32.mrf.mxu1  ;;  %v4387_v43 = vadd.f32 %v4386_v16, %v12438_v54  ;;  %v9689_v2 = vld [vmem:[%s13647_s3 + $0x218] sm:$0xff] }
 0x4d2   : > { %v12790_v20 = vld [vmem:[%s13647_s3 + $0x158] sm:$0xff]  ;;  %5336 = vmatpush.bf16.msrb.mxu0 %v9689_v2 }
 0x4d3   : > { %v9848_v24 = vpack.c.bf16 %v4615_v1, %v4614_v5  ;;  %5917 = vmatpush.bf16.msra.mxu2 %v12548_v29  ;;  %v4570_v56 = vadd.f32 %v4544_v21, %v4512_v0  ;;  %v4455_v39 = vadd.f32 %v4430_v8, %v4387_v43 }
 0x4d4   : > { %5643 = vmatpush.bf16.msrb.mxu3 %v12790_v20 }
 0x4d5   : > { %9902 = vst [vmem:[#allocation3 + $0x20] sm:$0xff] %v9848_v24   ;;  %v4584_v54 = vmax.f32 %v12426_v38, %v4570_v56 }
 0x4d7   : > { %5918 = vmatpush.bf16.msra.mxu2 %v12561_v3  ;;  %v4602_v1 = vadd.f32 %v12628_v12, %v4584_v54 }
 0x4d8   : > { %v4488_v15 = vpop.f32.mrf.mxu2  ;;  %v4389_v52 = vpop.f32.mrf.mxu0 }
 0x4d9   : > { %v4546_v44 = vpop.f32.mrf.mxu3  ;;  %v4513_v29 = vadd.f32 %v4488_v15, %v4455_v39  ;;  %v4433_v53 = vpop.f32.mrf.mxu1  ;;  %v4390_v5 = vadd.f32 %v4389_v52, %v12471_v28  ;;  %v4616_v43 = vmax.f32 %v4602_v1, 0.0  ;;  %v9687_v52 = vld [vmem:[%s13647_s3 + $0x208] sm:$0xff] }
 0x4db   : > { %v4571_v21 = vadd.f32 %v4546_v44, %v4513_v29  ;;  %v4456_v16 = vadd.f32 %v4433_v53, %v4390_v5 }
 0x4dc   : > { %5466 = vmatmul.bf16.vlgmr.msrb.gmra.mxu1 %v12717_v49  ;;  %v12795_v38 = vld [vmem:[#allocation3 + $0x20] sm:$0xff] }
 0x4dd   : > { %v12797_v3 = vld [vmem:[#allocation3 + $0x20] sm:$0xff]  ;;  %v4585_v0 = vmax.f32 %v12452_v60, %v4571_v21  ;;  %5548 = vmatmul.bf16.vlgmr.msrb.gmra.mxu2 %v12524_v11  ;;  %4801 = vmatmul.bf16.gmra.mxu0 %v12795_v38  ;;  %v9688_v60 = vld [vmem:[%s13647_s3 + $0x210] sm:$0xff] }
 0x4de   : > { %5196 = vmatmul.bf16.gmra.mxu3 %v12797_v3  ;;  %6107 = vmatpush.bf16.msrb.mxu2 %v12686_v10  ;;  %v12814_v10 = vld [vmem:[%s13647_s3 + $0x150] sm:$0xff] }
 0x4df   : > { %v4603_v28 = vadd.f32 %v12628_v12, %v4585_v0  ;;  %5337 = vmatpush.bf16.msrb.mxu0 %v9688_v60  ;;  %5644 = vmatpush.bf16.msrb.mxu3 %v12814_v10 }
 0x4e0   : > { %v4491_v8 = vpop.f32.mrf.mxu2  ;;  %v4391_v15 = vpop.f32.mrf.mxu0 }
 0x4e1   : > { %v4549_v24 = vpop.f32.mrf.mxu3  ;;  %v4617_v56 = vmax.f32 %v4603_v28, 0.0  ;;  %v4514_v39 = vadd.f32 %v4491_v8, %v4456_v16  ;;  %v4435_v44 = vpop.f32.mrf.mxu1  ;;  %v4392_v54 = vadd.f32 %v4391_v15, %v12491_v14  ;;  %v12825_v28 = vld [vmem:[%s13647_s3 + $0x200] sm:$0xff] }
 0x4e2   : > { %6108 = vmatpush.bf16.msrb.mxu2 %v12730_v41 }
 0x4e3   : > { %v9853_v11 = vpack.c.bf16 %v4617_v56, %v4616_v43  ;;  %v4572_v29 = vadd.f32 %v4549_v24, %v4514_v39  ;;  %v4457_v53 = vadd.f32 %v4435_v44, %v4392_v54  ;;  %5338 = vmatpush.bf16.msrb.mxu0 %v9687_v52 }
 0x4e5   : > { %9903 = vst [vmem:[#allocation3 + $0x18] sm:$0xff] %v9853_v11   ;;  %v4586_v41 = vmax.f32 %v12477_v48, %v4572_v29  ;;  %v12837_v48 = vld [vmem:[%s13647_s3 + $0x278] sm:$0xff] }
 0x4e6   : > { %6109 = vmatpush.bf16.msrb.mxu2 %v12744_v4  ;;  %5857 = vmatpush.bf16.msra.mxu1 %v12837_v48 }
 0x4e7   : > { %5339 = vmatpush.bf16.msrb.mxu0 %v12825_v28  ;;  %v4604_v43 = vadd.f32 %v12628_v12, %v4586_v41 }
 0x4e8   : > { %v4493_v21 = vpop.f32.mrf.mxu2  ;;  %v4394_v1 = vpop.f32.mrf.mxu0 }
 0x4e9   : > { %v4551_v14 = vpop.f32.mrf.mxu3  ;;  %v4515_v5 = vadd.f32 %v4493_v21, %v4457_v53  ;;  %v4438_v0 = vpop.f32.mrf.mxu1  ;;  %v4395_v8 = vadd.f32 %v4394_v1, %v12503_v31 }
 0x4ea   : > { %6110 = vmatpush.bf16.msrb.mxu2 %v9690_v17  ;;  %v12849_v17 = vld [vmem:[%s13647_s3 + $0x270] sm:$0xff] }
 0x4eb   : > { %v4573_v16 = vadd.f32 %v4551_v14, %v4515_v5  ;;  %v4458_v39 = vadd.f32 %v4438_v0, %v4395_v8  ;;  %5858 = vmatpush.bf16.msra.mxu1 %v12849_v17  ;;  %v12856_v14 = vld [vmem:[%s13647_s3 + $0x268] sm:$0xff] }
 0x4ec   : > { %5471 = vmatmul.bf16.gmra.mxu1 %v12759_v47  ;;  %v12830_v24 = vld [vmem:[#allocation3 + $0x18] sm:$0xff] }
 0x4ed   : > { %v12832_v4 = vld [vmem:[#allocation3 + $0x18] sm:$0xff]  ;;  %v4587_v56 = vmax.f32 %v12497_v61, %v4573_v16  ;;  %5553 = vmatmul.bf16.gmra.mxu2 %v12563_v33  ;;  %4806 = vmatmul.bf16.gmra.mxu0 %v12830_v24  ;;  %v4618_v61 = vmax.f32 %v4604_v43, 0.0 }
 0x4ee   : > { %5201 = vmatmul.bf16.gmra.mxu3 %v12832_v4  ;;  %6111 = vmatpush.bf16.msrb.mxu2 %v9689_v2  ;;  %v12861_v2 = vld [vmem:[%s13647_s3 + $0x148] sm:$0xff] }
 0x4ef   : > { %v4605_v31 = vadd.f32 %v12628_v12, %v4587_v56  ;;  %5645 = vmatpush.bf16.msrb.mxu3 %v12861_v2  ;;  %5859 = vmatpush.bf16.msra.mxu1 %v12856_v14 }
 0x4f0   : > { %v4496_v15 = vpop.f32.mrf.mxu2  ;;  %v4396_v54 = vpop.f32.mrf.mxu0 }
 0x4f1   : > { %v4554_v44 = vpop.f32.mrf.mxu3  ;;  %v4619_v11 = vmax.f32 %v4605_v31, 0.0  ;;  %v4516_v33 = vadd.f32 %v4496_v15, %v4458_v39  ;;  %v4440_v29 = vpop.f32.mrf.mxu1  ;;  %v4397_v21 = vadd.f32 %v4396_v54, %v12511_v9  ;;  %v12867_v9 = vld [vmem:[%s13647_s3 + $0x140] sm:$0xff] }
 0x4f2   : > { %6112 = vmatpush.bf16.msrb.mxu2 %v9688_v60  ;;  %v12873_v60 = vld [vmem:[%s13647_s3 + $0x260] sm:$0xff] }
 0x4f3   : > { %v9858_v53 = vpack.c.bf16 %v4619_v11, %v4618_v61  ;;  %v4574_v41 = vadd.f32 %v4554_v44, %v4516_v33  ;;  %v4459_v5 = vadd.f32 %v4440_v29, %v4397_v21  ;;  %5646 = vmatpush.bf16.msrb.mxu3 %v12867_v9  ;;  %5860 = vmatpush.bf16.msra.mxu1 %v12873_v60  ;;  %v12898_v61 = vld [vmem:[%s13647_s3 + $0x1f8] sm:$0xff] }
 0x4f4   : > { %5748 = vmatpush.bf16.msra.mxu0 %v12898_v61 }
 0x4f5   : > { %9904 = vst [vmem:[#allocation3 + $0x28] sm:$0xff] %v9858_v53   ;;  %v4588_v16 = vmax.f32 %v12509_v25, %v4574_v41  ;;  %v12887_v25 = vld [vmem:[%s13647_s3 + $0x258] sm:$0xff] }
 0x4f6   : > { %6113 = vmatpush.bf16.msrb.mxu2 %v9687_v52 }
 0x4f7   : > { %5945 = vmatpush.bf16.msra.mxu3 %v12317_v22  ;;  %v4606_v52 = vadd.f32 %v12628_v12, %v4588_v16  ;;  %5861 = vmatpush.bf16.msra.mxu1 %v12887_v25 }
 0x4f8   : > { %v4498_v1 = vpop.f32.mrf.mxu2  ;;  %v4399_v43 = vpop.f32.mrf.mxu0 }
 0x4f9   : > { %v4556_v0 = vpop.f32.mrf.mxu3  ;;  %v4517_v8 = vadd.f32 %v4498_v1, %v4459_v5  ;;  %v4443_v56 = vpop.f32.mrf.mxu1  ;;  %v4400_v39 = vadd.f32 %v4399_v43, %v12537_v13  ;;  %v4620_v54 = vmax.f32 %v4606_v52, 0.0  ;;  %v12927_v43 = vld [vmem:[%s13647_s3 + $0x240] sm:$0xff] }
 0x4fa   : > { %6114 = vmatpush.bf16.msrb.mxu2 %v12825_v28  ;;  %v12915_v28 = vld [vmem:[%s13647_s3 + $0x248] sm:$0xff] }
 0x4fb   : > { %v4575_v31 = vadd.f32 %v4556_v0, %v4517_v8  ;;  %v4460_v33 = vadd.f32 %v4443_v56, %v4400_v39  ;;  %5946 = vmatpush.bf16.msra.mxu3 %v12348_v32 }
 0x4fc   : > { %5476 = vmatmul.bf16.gmra.mxu1 %v12795_v38  ;;  %v12880_v15 = vld [vmem:[#allocation3 + $0x28] sm:$0xff] }
 0x4fd   : > { %v12882_v44 = vld [vmem:[#allocation3 + $0x28] sm:$0xff]  ;;  %v4589_v13 = vmax.f32 %v12529_v51, %v4575_v31  ;;  %5558 = vmatmul.bf16.gmra.mxu2 %v12635_v63  ;;  %4811 = vmatmul.bf16.gmra.mxu0 %v12880_v15  ;;  %v12907_v63 = vld [vmem:[%s13647_s3 + $0x250] sm:$0xff] }
 0x4fe   : > { %5206 = vmatmul.bf16.gmra.mxu3 %v12882_v44  ;;  %5862 = vmatpush.bf16.msra.mxu1 %v12907_v63 }
 0x4ff   : > { %v4607_v11 = vadd.f32 %v12628_v12, %v4589_v13  ;;  %5947 = vmatpush.bf16.msra.mxu3 %v12364_v58  ;;  %v12938_v13 = vld [vmem:[#allocation2 + $0x18] sm:$0xff] }
 0x500   : > { %v4501_v22 = vpop.f32.mrf.mxu2  ;;  %v4401_v21 = vpop.f32.mrf.mxu0 }
 0x501   : > { %v4559_v51 = vpop.f32.mrf.mxu3  ;;  %v4621_v29 = vmax.f32 %v4607_v11, 0.0  ;;  %v4518_v53 = vadd.f32 %v4501_v22, %v4460_v33  ;;  %v4445_v41 = vpop.f32.mrf.mxu1  ;;  %v4402_v1 = vadd.f32 %v4401_v21, %v12551_v18  ;;  %v12922_v18 = vld [vmem:[%s13647_s3 + $0x1f0] sm:$0xff] }
 0x502   : > { %5863 = vmatpush.bf16.msra.mxu1 %v12915_v28  ;;  %5749 = vmatpush.bf16.msra.mxu0 %v12922_v18 }
 0x503   : > { %v9863_v5 = vpack.c.bf16 %v4621_v29, %v4620_v54  ;;  %v4576_v0 = vadd.f32 %v4559_v51, %v4518_v53  ;;  %v4461_v32 = vadd.f32 %v4445_v41, %v4402_v1  ;;  %5948 = vmatpush.bf16.msra.mxu3 %v12375_v59  ;;  %v13962_v54 = vld [vmem:[#allocation22_spill] sm:$0xff]  ;;  %v13963_v29 = vld [vmem:[#allocation12_spill] sm:$0xff]  ;;  %v13967_v1 = vld [vmem:[#allocation27_spill] sm:$0xff] }
 0x504   : > { %v13965_v53 = vld [vmem:[#allocation18_spill] sm:$0xff] }
 0x505   : > { %9905 = vst [vmem:[#allocation3 + $0x30] sm:$0xff] %v9863_v5   ;;  %v4590_v58 = vmax.f32 %v12543_v57, %v4576_v0  ;;  %v13966_v5 = vld [vmem:[#allocation24_spill] sm:$0xff]  ;;  %v12994_v0 = vld [vmem:[#allocation2 + $0x8] sm:$0xff] }
 0x506   : > { %5864 = vmatpush.bf16.msra.mxu1 %v12927_v43 }
 0x507   : > { %5949 = vmatpush.bf16.msra.mxu3 %v12402_v27  ;;  %v4608_v59 = vadd.f32 %v12628_v12, %v4590_v58 }
 0x508   : > { %v4503_v16 = vpop.f32.mrf.mxu2 }
 0x509   : > { %v4561_v8 = vpop.f32.mrf.mxu3  ;;  %v4519_v56 = vadd.f32 %v4503_v16, %v4461_v32  ;;  %v12931_v31 = vpop.f32.mrf.mxu1  ;;  %v4622_v22 = vmax.f32 %v4608_v59, 0.0  ;;  %v13968_v32 = vld [vmem:[#allocation5_spill] sm:$0xff]  ;;  %v13971_v59 = vld [vmem:[#allocation32_spill] sm:$0xff] }
 0x50a   : > { %6023 = vmatpush.bf16.msrb.mxu1 %v12302_v19  ;;  %v13969_v16 = vld [vmem:[#allocation33_spill] sm:$0xff] }
 0x50b   : > { %v4577_v39 = vadd.f32 %v4561_v8, %v4519_v56  ;;  %5950 = vmatpush.bf16.msra.mxu3 %v12417_v45  ;;  %v13970_v8 = vld [vmem:[#allocation23_spill] sm:$0xff]  ;;  %v9720_v56 = vld [vmem:[%s13647_s3 + $0x1d0] sm:$0xff] }
 0x50c   : > { %5481 = vmatmul.bf16.gmra.mxu1 %v12830_v24  ;;  %v12936_v52 = vld [vmem:[#allocation3 + $0x30] sm:$0xff] }
 0x50d   : > { %v4591_v57 = vmax.f32 %v12568_v23, %v4577_v39  ;;  %5563 = vmatmul.bf16.gmra.mxu2 %v12708_v36  ;;  %5340 = vmatmul.bf16.vlgmr.msrb.gmra.mxu0 %v12938_v13  ;;  %v9723_v23 = vld [vmem:[%s13647_s3 + $0x1e8] sm:$0xff]  ;;  %v12966_v36 = vld [vmem:[#allocation2 + $0x10] sm:$0xff] }
 0x50e   : > { %5211 = vmatmul.bf16.gmra.mxu3 %v12936_v52  ;;  %6024 = vmatpush.bf16.msrb.mxu1 %v12343_v62  ;;  %v9722_v62 = vld [vmem:[%s13647_s3 + $0x1e0] sm:$0xff] }
 0x50f   : > { %v4609_v11 = vadd.f32 %v12628_v12, %v4591_v57  ;;  %5750 = vmatpush.bf16.msra.mxu0 %v9723_v23  ;;  %5951 = vmatpush.bf16.msra.mxu3 %v12432_v6  ;;  %v13961_v6 = vld [vmem:[#allocation9_spill] sm:$0xff]  ;;  %v9719_v57 = vld [vmem:[%s13647_s3 + $0x1c8] sm:$0xff] }
 0x510   : > { %v12948_v33 = vpop.f32.mrf.mxu2 }
 0x511   : > { %v4623_v27 = vmax.f32 %v4609_v11, 0.0  ;;  %v12951_v51 = vpop.f32.mrf.mxu1 }
 0x512   : > { %6025 = vmatpush.bf16.msrb.mxu1 %v12397_v7  ;;  %v13960_v7 = vld [vmem:[#allocation21_spill] sm:$0xff] }
 0x513   : > { %v9868_v19 = vpack.c.bf16 %v4623_v27, %v4622_v22  ;;  %5952 = vmatpush.bf16.msra.mxu3 %v12443_v40  ;;  %5751 = vmatpush.bf16.msra.mxu0 %v9722_v62  ;;  %v13973_v27 = vld [vmem:[#allocation13_spill] sm:$0xff] }
 0x515   : > { %9906 = vst [vmem:[#allocation3 + $0x10] sm:$0xff] %v9868_v19   ;;  %v13028_v19 = vld [vmem:[#allocation2 + $0x20] sm:$0xff] }
 0x516   : > { %6026 = vmatpush.bf16.msrb.mxu1 %v12462_v26 }
 0x518   : > { %v12959_v12 = vpop.f32.mrf.mxu2 }
 0x519   : > { %v12962_v45 = vpop.f32.mrf.mxu1 }
 0x51a   : > { %6027 = vmatpush.bf16.msrb.mxu1 %v12487_v35  ;;  %v13964_v35 = vld [vmem:[#allocation26_spill] sm:$0xff] }
 0x51c   : > { %5486 = vmatmul.bf16.gmra.mxu1 %v12880_v15 }
 0x51d   : > { %5568 = vmatmul.bf16.gmra.mxu2 %v12751_v55  ;;  %5345 = vmatmul.bf16.gmra.mxu0 %v12966_v36  ;;  %v9721_v55 = vld [vmem:[%s13647_s3 + $0x1d8] sm:$0xff] }
 0x51e   : > { %5647 = vmatmul.bf16.vlgmr.msrb.gmra.mxu3 %v13960_v7  ;;  %6028 = vmatpush.bf16.msrb.mxu1 %v13962_v54 }
 0x51f   : > { %6161 = vmatpush.bf16.msrb.mxu3 %v13961_v6  ;;  %5752 = vmatpush.bf16.msra.mxu0 %v9721_v55  ;;  %v9988_v6 = vld [vmem:[%s13647_s3 + $0x130] sm:$0xff] }
 0x520   : > { %v12976_v40 = vpop.f32.mrf.mxu2 }
 0x521   : > { %v12978_v26 = vpop.f32.mrf.mxu1 }
 0x522   : > { %6029 = vmatpush.bf16.msrb.mxu1 %v13964_v35 }
 0x523   : > { %6162 = vmatpush.bf16.msrb.mxu3 %v13963_v29  ;;  %5753 = vmatpush.bf16.msra.mxu0 %v9720_v56 }
 0x526   : > { %6030 = vmatpush.bf16.msrb.mxu1 %v13966_v5 }
 0x527   : > { %6163 = vmatpush.bf16.msrb.mxu3 %v13965_v53  ;;  %5754 = vmatpush.bf16.msra.mxu0 %v9719_v57 }
 0x528   : > { %v12987_v21 = vpop.f32.mrf.mxu2 }
 0x529   : > { %v12989_v41 = vpop.f32.mrf.mxu1 }
 0x52b   : > { %6164 = vmatpush.bf16.msrb.mxu3 %v13967_v1 }
 0x52c   : > { %5865 = vmatmul.bf16.vlgmr.msra.gmra.mxu1 %v12938_v13 }
 0x52d   : > { %5919 = vmatmul.bf16.vlgmr.msra.gmra.mxu2 %v13960_v7  ;;  %6229 = vmatpush.bf16.msra.mxu1 %v13968_v32 }
 0x52e   : > { %5350 = vmatmul.bf16.gmra.mxu0 %v12994_v0  ;;  %5652 = vmatmul.bf16.gmra.mxu3 %v13969_v16 }
 0x52f   : > { %6165 = vmatpush.bf16.msrb.mxu3 %v13970_v8  ;;  %6273 = vmatpush.bf16.msra.mxu2 %v12898_v61  ;;  %v13972_v61 = vld [vmem:[#allocation8_spill] sm:$0xff] }
 0x530   : > { %v13002_v58 = vpop.f32.mrf.mxu2 }
 0x531   : > { %v13007_v39 = vpop.f32.mrf.mxu1  ;;  %6230 = vmatpush.bf16.msra.mxu1 %v12735_v30  ;;  %v9718_v30 = vld [vmem:[%s13647_s3 + $0x1c0] sm:$0xff] }
 0x532   : > { %5755 = vmatpush.bf16.msra.mxu0 %v9718_v30 }
 0x533   : > { %6166 = vmatpush.bf16.msrb.mxu3 %v13971_v59  ;;  %6274 = vmatpush.bf16.msra.mxu2 %v12922_v18 }
 0x535   : > { %6231 = vmatpush.bf16.msra.mxu1 %v12749_v42 }
 0x537   : > { %6167 = vmatpush.bf16.msrb.mxu3 %v13972_v61  ;;  %6275 = vmatpush.bf16.msra.mxu2 %v9723_v23  ;;  %v9987_v23 = vld [vmem:[%s13647_s3 + $0x138] sm:$0xff]  ;;  %v9994_v61 = vld [vmem:[%s13647_s3 + $0x100] sm:$0xff] }
 0x538   : > { %v13017_v11 = vpop.f32.mrf.mxu2  ;;  %5979 = vmatpush.bf16.msrb.mxu0 %v9987_v23  ;;  %v13975_v23 = vld [vmem:[#allocation11_spill] sm:$0xff] }
 0x539   : > { %v13019_v22 = vpop.f32.mrf.mxu1  ;;  %6232 = vmatpush.bf16.msra.mxu1 %v12779_v50  ;;  %v13974_v50 = vld [vmem:[#allocation29_spill] sm:$0xff] }
 0x53a   : > { %v4792_v18 = vpop.f32.mrf.mxu0 }
 0x53b   : > { %6168 = vmatpush.bf16.msrb.mxu3 %v13973_v27  ;;  %v4905_v42 = vadd.f32 %v12931_v31, %v4792_v18  ;;  %6276 = vmatpush.bf16.msra.mxu2 %v9722_v62 }
 0x53c   : > { %5870 = vmatmul.bf16.gmra.mxu1 %v12966_v36  ;;  %5980 = vmatpush.bf16.msrb.mxu0 %v9988_v6 }
 0x53d   : > { %5924 = vmatmul.bf16.gmra.mxu2 %v13969_v16  ;;  %6233 = vmatpush.bf16.msra.mxu1 %v12790_v20  ;;  %v5068_v7 = vadd.f32 %v12948_v33, %v4905_v42  ;;  %v9989_v33 = vld [vmem:[%s13647_s3 + $0x128] sm:$0xff] }
 0x53e   : > { %5355 = vmatmul.bf16.gmra.mxu0 %v13028_v19  ;;  %5657 = vmatmul.bf16.gmra.mxu3 %v13974_v50 }
 0x53f   : > { %6277 = vmatpush.bf16.msra.mxu2 %v9721_v55 }
 0x540   : > { %v13038_v31 = vpop.f32.mrf.mxu2  ;;  %5981 = vmatpush.bf16.msrb.mxu0 %v9989_v33  ;;  %v13976_v33 = vld [vmem:[#allocation16_spill] sm:$0xff] }
 0x541   : > { %v13043_v54 = vpop.f32.mrf.mxu1  ;;  %6234 = vmatpush.bf16.msra.mxu1 %v12814_v10  ;;  %v9990_v10 = vld [vmem:[%s13647_s3 + $0x120] sm:$0xff] }
 0x542   : > { %v4794_v29 = vpop.f32.mrf.mxu0 }
 0x543   : > { %v4907_v20 = vadd.f32 %v12951_v51, %v4794_v29  ;;  %6278 = vmatpush.bf16.msra.mxu2 %v9720_v56 }
 0x544   : > { %5982 = vmatpush.bf16.msrb.mxu0 %v9990_v10  ;;  %v13977_v10 = vld [vmem:[#allocation15_spill] sm:$0xff] }
 0x545   : > { %6235 = vmatpush.bf16.msra.mxu1 %v12861_v2  ;;  %v5069_v62 = vadd.f32 %v12959_v12, %v4907_v20  ;;  %v13062_v2 = vld [vmem:[#allocation2 + $0x28] sm:$0xff]  ;;  %v9991_v12 = vld [vmem:[%s13647_s3 + $0x118] sm:$0xff] }
 0x547   : > { %6279 = vmatpush.bf16.msra.mxu2 %v9719_v57 }
 0x548   : > { %v13052_v35 = vpop.f32.mrf.mxu2  ;;  %5983 = vmatpush.bf16.msrb.mxu0 %v9991_v12 }
 0x549   : > { %v13057_v55 = vpop.f32.mrf.mxu1  ;;  %6236 = vmatpush.bf16.msra.mxu1 %v12867_v9 }
 0x54a   : > { %v4797_v51 = vpop.f32.mrf.mxu0 }
 0x54b   : > { %v4910_v53 = vadd.f32 %v12962_v45, %v4797_v51  ;;  %6280 = vmatpush.bf16.msra.mxu2 %v9718_v30  ;;  %v9992_v45 = vld [vmem:[%s13647_s3 + $0x110] sm:$0xff] }
 0x54c   : > { %5875 = vmatmul.bf16.gmra.mxu1 %v12994_v0  ;;  %5984 = vmatpush.bf16.msrb.mxu0 %v9992_v45 }
 0x54d   : > { %5929 = vmatmul.bf16.gmra.mxu2 %v13974_v50  ;;  %v5070_v9 = vadd.f32 %v12976_v40, %v4910_v53  ;;  %v9993_v40 = vld [vmem:[%s13647_s3 + $0x108] sm:$0xff] }
 0x54e   : > { %5360 = vmatmul.bf16.gmra.mxu0 %v13062_v2  ;;  %5662 = vmatmul.bf16.gmra.mxu3 %v12713_v34 }
 0x550   : > { %v13071_v5 = vpop.f32.mrf.mxu2  ;;  %5985 = vmatpush.bf16.msrb.mxu0 %v9993_v40 }
 0x551   : > { %v13076_v1 = vpop.f32.mrf.mxu1  ;;  %v5192_v32 = vpop.f32.mrf.mxu3 }
 0x552   : > { %v13078_v16 = vadd.f32 %v5192_v32, %v5068_v7  ;;  %v4799_v8 = vpop.f32.mrf.mxu0 }
 0x553   : > { %v4912_v56 = vadd.f32 %v12978_v26, %v4799_v8  ;;  %v13978_v8 = vld [vmem:[#allocation30_spill] sm:$0xff] }
 0x554   : > { %5986 = vmatpush.bf16.msrb.mxu0 %v9994_v61 }
 0x555   : > { %v5071_v59 = vadd.f32 %v12987_v21, %v4912_v56 }
 0x558   : > { %v13085_v57 = vpop.f32.mrf.mxu2 }
 0x559   : > { %v5194_v30 = vpop.f32.mrf.mxu3  ;;  %v5467_v18 = vpop.f32.mrf.mxu1 }
 0x55a   : > { %v13090_v27 = vadd.f32 %v5194_v30, %v5069_v62  ;;  %v4802_v42 = vpop.f32.mrf.mxu0 }
 0x55b   : > { %v4915_v26 = vadd.f32 %v12989_v41, %v4802_v42 }
 0x55c   : > { %5880 = vmatmul.bf16.gmra.mxu1 %v13028_v19 }
 0x55d   : > { %5934 = vmatmul.bf16.gmra.mxu2 %v12713_v34  ;;  %v5072_v21 = vadd.f32 %v13002_v58, %v4915_v26 }
 0x55e   : > { %5667 = vmatmul.bf16.gmra.mxu3 %v12754_v46  ;;  %5756 = vmatmul.bf16.vlgmr.msra.gmra.mxu0 %v12761_v37 }
 0x55f   : > { %6195 = vmatpush.bf16.msra.mxu0 %v13975_v23 }
 0x560   : > { %v5549_v50 = vpop.f32.mrf.mxu2 }
 0x561   : > { %v13099_v7 = vadd.f32 %v5549_v50, %v5467_v18  ;;  %v5197_v6 = vpop.f32.mrf.mxu3  ;;  %v5469_v29 = vpop.f32.mrf.mxu1  ;;  %v13980_v18 = vld [vmem:[#allocation34_spill] sm:$0xff] }
 0x562   : > { %v13101_v20 = vadd.f32 %v5197_v6, %v5070_v9  ;;  %v4804_v41 = vpop.f32.mrf.mxu0 }
 0x563   : > { %6196 = vmatpush.bf16.msra.mxu0 %v13976_v33  ;;  %v4917_v34 = vadd.f32 %v13007_v39, %v4804_v41 }
 0x565   : > { %v5073_v62 = vadd.f32 %v13017_v11, %v4917_v34  ;;  %v13979_v11 = vld [vmem:[#allocation25_spill] sm:$0xff] }
 0x567   : > { %6197 = vmatpush.bf16.msra.mxu0 %v13977_v10 }
 0x568   : > { %v5551_v51 = vpop.f32.mrf.mxu2 }
 0x569   : > { %v13107_v58 = vadd.f32 %v5551_v51, %v5469_v29  ;;  %v5199_v53 = vpop.f32.mrf.mxu3  ;;  %v5472_v12 = vpop.f32.mrf.mxu1  ;;  %v13134_v29 = vld [vmem:[#allocation3 + $0x20] sm:$0xff] }
 0x56a   : > { %v13109_v45 = vadd.f32 %v5199_v53, %v5071_v59  ;;  %v4807_v32 = vpop.f32.mrf.mxu0 }
 0x56b   : > { %6198 = vmatpush.bf16.msra.mxu0 %v13978_v8  ;;  %v4920_v9 = vadd.f32 %v13019_v22, %v4807_v32  ;;  %v13157_v32 = vld [vmem:[#allocation3 + $0x18] sm:$0xff] }
 0x56c   : > { %5885 = vmatmul.bf16.gmra.mxu1 %v13062_v2 }
 0x56d   : > { %5939 = vmatmul.bf16.gmra.mxu2 %v12754_v46  ;;  %v5074_v39 = vadd.f32 %v13038_v31, %v4920_v9 }
 0x56e   : > { %5761 = vmatmul.bf16.gmra.mxu0 %v12797_v3  ;;  %5953 = vmatmul.bf16.vlgmr.msra.gmra.mxu3 %v12717_v49 }
 0x56f   : > { %6317 = vmatpush.bf16.msra.mxu3 %v12837_v48  ;;  %6199 = vmatpush.bf16.msra.mxu0 %v13979_v11  ;;  %v13981_v48 = vld [vmem:[#allocation6_spill] sm:$0xff] }
 0x570   : > { %v5554_v56 = vpop.f32.mrf.mxu2 }
 0x571   : > { %v13120_v40 = vadd.f32 %v5554_v56, %v5472_v12  ;;  %v5202_v59 = vpop.f32.mrf.mxu3  ;;  %v5474_v61 = vpop.f32.mrf.mxu1 }
 0x572   : > { %v13122_v22 = vadd.f32 %v5202_v59, %v5072_v21  ;;  %v4809_v30 = vpop.f32.mrf.mxu0 }
 0x573   : > { %6318 = vmatpush.bf16.msra.mxu3 %v12849_v17  ;;  %6200 = vmatpush.bf16.msra.mxu0 %v13980_v18  ;;  %v4922_v49 = vadd.f32 %v13043_v54, %v4809_v30  ;;  %v13982_v17 = vld [vmem:[#allocation7_spill] sm:$0xff]  ;;  %v13176_v30 = vld [vmem:[#allocation3 + $0x28] sm:$0xff] }
 0x575   : > { %v5075_v31 = vadd.f32 %v13052_v35, %v4922_v49 }
 0x577   : > { %6319 = vmatpush.bf16.msra.mxu3 %v12856_v14  ;;  %6201 = vmatpush.bf16.msra.mxu0 %v13981_v48 }
 0x578   : > { %v5556_v42 = vpop.f32.mrf.mxu2 }
 0x579   : > { %v13130_v26 = vadd.f32 %v5556_v42, %v5474_v61  ;;  %v5204_v23 = vpop.f32.mrf.mxu3  ;;  %v5477_v50 = vpop.f32.mrf.mxu1 }
 0x57a   : > { %v13132_v21 = vadd.f32 %v5204_v23, %v5073_v62  ;;  %v4812_v6 = vpop.f32.mrf.mxu0 }
 0x57b   : > { %6320 = vmatpush.bf16.msra.mxu3 %v12873_v60  ;;  %6202 = vmatpush.bf16.msra.mxu0 %v13982_v17  ;;  %v4925_v54 = vadd.f32 %v13057_v55, %v4812_v6 }
 0x57c   : > { %6031 = vmatmul.bf16.vlgmr.msrb.gmra.mxu1 %v12938_v13 }
 0x57d   : > { %6115 = vmatmul.bf16.vlgmr.msrb.gmra.mxu2 %v13134_v29  ;;  %v5076_v14 = vadd.f32 %v13071_v5, %v4925_v54 }
 0x57e   : > { %5766 = vmatmul.bf16.gmra.mxu0 %v12832_v4  ;;  %5958 = vmatmul.bf16.gmra.mxu3 %v12759_v47 }
 0x57f   : > { %6321 = vmatpush.bf16.msra.mxu3 %v12887_v25 }
 0x580   : > { %v5559_v35 = vpop.f32.mrf.mxu2 }
 0x581   : > { %v13145_v41 = vadd.f32 %v5559_v35, %v5477_v50  ;;  %v5207_v60 = vpop.f32.mrf.mxu3  ;;  %v5479_v33 = vpop.f32.mrf.mxu1 }
 0x582   : > { %v13147_v34 = vadd.f32 %v5207_v60, %v5074_v39  ;;  %v4814_v55 = vpop.f32.mrf.mxu0  ;;  %v13196_v60 = vld [vmem:[#allocation3 + $0x30] sm:$0xff] }
 0x583   : > { %6322 = vmatpush.bf16.msra.mxu3 %v12907_v63  ;;  %v4927_v62 = vadd.f32 %v13076_v1, %v4814_v55 }
 0x585   : > { %v5077_v10 = vadd.f32 %v13085_v57, %v4927_v62 }
 0x587   : > { %6323 = vmatpush.bf16.msra.mxu3 %v12915_v28 }
 0x588   : > { %v5561_v47 = vpop.f32.mrf.mxu2 }
 0x589   : > { %v13153_v5 = vadd.f32 %v5561_v47, %v5479_v33  ;;  %v5209_v25 = vpop.f32.mrf.mxu3  ;;  %v5482_v51 = vpop.f32.mrf.mxu1 }
 0x58a   : > { %v13155_v53 = vadd.f32 %v5209_v25, %v5075_v31  ;;  %v5341_v12 = vpop.f32.mrf.mxu0 }
 0x58b   : > { %6324 = vmatpush.bf16.msra.mxu3 %v12927_v43  ;;  %v13161_v63 = vadd.f32 %v5341_v12, %v13078_v16  ;;  %v13214_v12 = vld [vmem:[#allocation3 + $0x10] sm:$0xff] }
 0x58c   : > { %6036 = vmatmul.bf16.gmra.mxu1 %v12966_v36 }
 0x58d   : > { %6120 = vmatmul.bf16.gmra.mxu2 %v13157_v32 }
 0x58e   : > { %5771 = vmatmul.bf16.gmra.mxu0 %v12882_v44  ;;  %5963 = vmatmul.bf16.gmra.mxu3 %v12795_v38 }
 0x590   : > { %v5564_v28 = vpop.f32.mrf.mxu2 }
 0x591   : > { %v13167_v1 = vadd.f32 %v5564_v28, %v5482_v51  ;;  %v5212_v57 = vpop.f32.mrf.mxu3  ;;  %v5484_v9 = vpop.f32.mrf.mxu1 }
 0x592   : > { %v5225_v8 = vadd.f32 %v5212_v57, %v5076_v14  ;;  %v5343_v39 = vpop.f32.mrf.mxu0 }
 0x593   : > { %v13170_v43 = vadd.f32 %v5343_v39, %v13090_v27 }
 0x598   : > { %v5566_v16 = vpop.f32.mrf.mxu2 }
 0x599   : > { %v13172_v11 = vadd.f32 %v5566_v16, %v5484_v9  ;;  %v5214_v56 = vpop.f32.mrf.mxu3  ;;  %v5487_v49 = vpop.f32.mrf.mxu1 }
 0x59a   : > { %v13174_v59 = vadd.f32 %v5214_v56, %v5077_v10  ;;  %v5346_v61 = vpop.f32.mrf.mxu0 }
 0x59b   : > { %v13179_v18 = vadd.f32 %v5346_v61, %v13101_v20 }
 0x59c   : > { %6041 = vmatmul.bf16.gmra.mxu1 %v12994_v0 }
 0x59d   : > { %6125 = vmatmul.bf16.gmra.mxu2 %v13176_v30 }
 0x59e   : > { %5776 = vmatmul.bf16.gmra.mxu0 %v12936_v52  ;;  %5968 = vmatmul.bf16.gmra.mxu3 %v12830_v24 }
 0x5a0   : > { %v5569_v27 = vpop.f32.mrf.mxu2 }
 0x5a1   : > { %v13185_v31 = vadd.f32 %v5569_v27, %v5487_v49  ;;  %v5648_v48 = vpop.f32.mrf.mxu3  ;;  %v5489_v20 = vpop.f32.mrf.mxu1 }
 0x5a2   : > { %v5673_v42 = vadd.f32 %v5648_v48, %v13099_v7  ;;  %v5348_v23 = vpop.f32.mrf.mxu0 }
 0x5a3   : > { %v13189_v50 = vadd.f32 %v5348_v23, %v13109_v45 }
 0x5a8   : > { %v5571_v6 = vpop.f32.mrf.mxu2 }
 0x5a9   : > { %v13191_v17 = vadd.f32 %v5571_v6, %v5489_v20  ;;  %v5650_v54 = vpop.f32.mrf.mxu3  ;;  %v5866_v7 = vpop.f32.mrf.mxu1 }
 0x5aa   : > { %v13194_v14 = vadd.f32 %v5650_v54, %v13107_v58 }
 0x5ab   : > { %v5351_v35 = vpop.f32.mrf.mxu0 }
 0x5ac   : > { %v13199_v33 = vadd.f32 %v5351_v35, %v13122_v22  ;;  %6046 = vmatmul.bf16.gmra.mxu1 %v13028_v19 }
 0x5ad   : > { %6130 = vmatmul.bf16.gmra.mxu2 %v13196_v60 }
 0x5ae   : > { %5973 = vmatmul.bf16.gmra.mxu3 %v12880_v15  ;;  %5987 = vmatmul.bf16.vlgmr.msrb.gmra.mxu0 %v12761_v37 }
 0x5b0   : > { %v13206_v62 = vpop.f32.mrf.mxu2 }
 0x5b1   : > { %v5653_v45 = vpop.f32.mrf.mxu3  ;;  %v5868_v25 = vpop.f32.mrf.mxu1 }
 0x5b2   : > { %v5675_v55 = vadd.f32 %v5653_v45, %v13120_v40 }
 0x5b3   : > { %v5353_v58 = vpop.f32.mrf.mxu0 }
 0x5b4   : > { %v13209_v10 = vadd.f32 %v5353_v58, %v13132_v21  ;;  %v9995_v21 = vld [vmem:[#allocation2] sm:$0xff] }
 0x5b8   : > { %v13221_v40 = vpop.f32.mrf.mxu2 }
 0x5b9   : > { %v5655_v22 = vpop.f32.mrf.mxu3 }
 0x5ba   : > { %v13212_v47 = vadd.f32 %v5655_v22, %v13130_v26 }
 0x5bb   : > { %v5356_v51 = vpop.f32.mrf.mxu0 }
 0x5bc   : > { %v13217_v28 = vadd.f32 %v5356_v51, %v13147_v34  ;;  %6051 = vmatmul.bf16.gmra.mxu1 %v13062_v2  ;;  %v5871_v34 = vpop.f32.mrf.mxu1 }
 0x5bd   : > { %6135 = vmatmul.bf16.gmra.mxu2 %v13214_v12 }
 0x5be   : > { %5992 = vmatmul.bf16.gmra.mxu0 %v12797_v3  ;;  %6169 = vmatmul.bf16.vlgmr.msrb.gmra.mxu3 %v9995_v21 }
 0x5c0   : > { %v13230_v16 = vpop.f32.mrf.mxu2 }
 0x5c1   : > { %v5658_v57 = vpop.f32.mrf.mxu3 }
 0x5c2   : > { %v13225_v26 = vadd.f32 %v5658_v57, %v13145_v41  ;;  %v9996_v41 = vld [vmem:[#allocation2 + $0x18] sm:$0xff] }
 0x5c3   : > { %v5358_v9 = vpop.f32.mrf.mxu0 }
 0x5c4   : > { %v13228_v39 = vadd.f32 %v5358_v9, %v13155_v53  ;;  %v5873_v53 = vpop.f32.mrf.mxu1 }
 0x5c8   : > { %v13240_v23 = vpop.f32.mrf.mxu2 }
 0x5c9   : > { %v5660_v56 = vpop.f32.mrf.mxu3 }
 0x5ca   : > { %v13233_v61 = vadd.f32 %v5660_v56, %v13153_v5 }
 0x5cb   : > { %v5361_v49 = vpop.f32.mrf.mxu0 }
 0x5cc   : > { %v13235_v27 = vadd.f32 %v5361_v49, %v5225_v8  ;;  %6237 = vmatmul.bf16.vlgmr.msra.gmra.mxu1 %v12761_v37  ;;  %v5876_v8 = vpop.f32.mrf.mxu1 }
 0x5cd   : > { %6281 = vmatmul.bf16.vlgmr.msra.gmra.mxu2 %v12938_v13 }
 0x5ce   : > { %5997 = vmatmul.bf16.gmra.mxu0 %v12832_v4  ;;  %6174 = vmatmul.bf16.gmra.mxu3 %v9996_v41 }
 0x5d0   : > { %v13251_v35 = vpop.f32.mrf.mxu2 }
 0x5d1   : > { %v5663_v48 = vpop.f32.mrf.mxu3 }
 0x5d2   : > { %v13243_v20 = vadd.f32 %v5663_v48, %v13167_v1  ;;  %v9997_v1 = vld [vmem:[#allocation2 + $0x10] sm:$0xff] }
 0x5d3   : > { %v5363_v5 = vpop.f32.mrf.mxu0 }
 0x5d4   : > { %v13246_v6 = vadd.f32 %v5363_v5, %v13174_v59  ;;  %v5878_v51 = vpop.f32.mrf.mxu1 }
 0x5d9   : > { %v5665_v54 = vpop.f32.mrf.mxu3 }
 0x5da   : > { %v13249_v37 = vadd.f32 %v5665_v54, %v13172_v11 }
 0x5db   : > { %v5757_v13 = vpop.f32.mrf.mxu0 }
 0x5dc   : > { %v5782_v45 = vadd.f32 %v5757_v13, %v5673_v42  ;;  %6242 = vmatmul.bf16.gmra.mxu1 %v12797_v3  ;;  %v13264_v3 = vpop.f32.mrf.mxu2 }
 0x5dd   : > { %6286 = vmatmul.bf16.gmra.mxu2 %v12966_v36 }
 0x5de   : > { %v13255_v58 = vadd.f32 %v5866_v7, %v5782_v45  ;;  %6002 = vmatmul.bf16.gmra.mxu0 %v12882_v44  ;;  %6179 = vmatmul.bf16.gmra.mxu3 %v9997_v1 }
 0x5e0   : > { %v5901_v59 = vmax.f32 %v13161_v63, %v13255_v58 }
 0x5e1   : > { %v5668_v22 = vpop.f32.mrf.mxu3 }
 0x5e2   : > { %v13261_v11 = vadd.f32 %v5668_v22, %v13185_v31  ;;  %v5881_v31 = vpop.f32.mrf.mxu1 }
 0x5e3   : > { %v5759_v21 = vpop.f32.mrf.mxu0 }
 0x5e4   : > { %v5783_v42 = vadd.f32 %v5759_v21, %v13194_v14  ;;  %v9998_v14 = vld [vmem:[#allocation2 + $0x8] sm:$0xff] }
 0x5e6   : > { %v13266_v36 = vadd.f32 %v5868_v25, %v5783_v42  ;;  %v5935_v25 = vpop.f32.mrf.mxu2 }
 0x5e8   : > { %v5902_v7 = vmax.f32 %v13170_v43, %v13266_v36 }
 0x5e9   : > { %v5670_v57 = vpop.f32.mrf.mxu3 }
 0x5ea   : > { %v13271_v9 = vadd.f32 %v5670_v57, %v13191_v17 }
 0x5eb   : > { %v5762_v56 = vpop.f32.mrf.mxu0 }
 0x5ec   : > { %v5784_v49 = vadd.f32 %v5762_v56, %v5675_v55  ;;  %6247 = vmatmul.bf16.gmra.mxu1 %v12832_v4 }
 0x5ed   : > { %6291 = vmatmul.bf16.gmra.mxu2 %v12994_v0  ;;  %v5883_v0 = vpop.f32.mrf.mxu1 }
 0x5ee   : > { %v13275_v41 = vadd.f32 %v5871_v34, %v5784_v49  ;;  %6007 = vmatmul.bf16.gmra.mxu0 %v12936_v52  ;;  %6184 = vmatmul.bf16.gmra.mxu3 %v9998_v14  ;;  %v13288_v45 = vpop.f32.mrf.mxu2 }
 0x5f0   : > { %v5903_v48 = vmax.f32 %v13179_v18, %v13275_v41 }
 0x5f1   : > { %v5954_v5 = vpop.f32.mrf.mxu3 }
 0x5f2   : > { %v13281_v17 = vadd.f32 %v5954_v5, %v13206_v62 }
 0x5f3   : > { %v5764_v55 = vpop.f32.mrf.mxu0 }
 0x5f4   : > { %v5785_v4 = vadd.f32 %v5764_v55, %v13212_v47  ;;  %v9999_v47 = vld [vmem:[#allocation3] sm:$0xff] }
 0x5f5   : > { %v5886_v42 = vpop.f32.mrf.mxu1 }
 0x5f6   : > { %v13284_v54 = vadd.f32 %v5873_v53, %v5785_v4 }
 0x5f8   : > { %v5904_v34 = vmax.f32 %v13189_v50, %v13284_v54 }
 0x5f9   : > { %v5956_v13 = vpop.f32.mrf.mxu3 }
 0x5fa   : > { %v13291_v1 = vadd.f32 %v5956_v13, %v13221_v40 }
 0x5fb   : > { %v5767_v22 = vpop.f32.mrf.mxu0 }
 0x5fc   : > { %v5786_v21 = vadd.f32 %v5767_v22, %v13225_v26  ;;  %6252 = vmatmul.bf16.gmra.mxu1 %v12882_v44  ;;  %v5940_v26 = vpop.f32.mrf.mxu2 }
 0x5fd   : > { %6296 = vmatmul.bf16.gmra.mxu2 %v13028_v19  ;;  %v5888_v14 = vpop.f32.mrf.mxu1 }
 0x5fe   : > { %v13296_v62 = vadd.f32 %v5876_v8, %v5786_v21  ;;  %6189 = vmatmul.bf16.gmra.mxu3 %v12754_v46  ;;  %6203 = vmatmul.bf16.vlgmr.msra.gmra.mxu0 %v9999_v47 }
 0x600   : > { %v5905_v53 = vmax.f32 %v13199_v33, %v13296_v62 }
 0x601   : > { %v5959_v57 = vpop.f32.mrf.mxu3 }
 0x602   : > { %v13302_v40 = vadd.f32 %v5959_v57, %v13230_v16 }
 0x603   : > { %v5769_v56 = vpop.f32.mrf.mxu0 }
 0x604   : > { %v5787_v44 = vadd.f32 %v5769_v56, %v13233_v61  ;;  %v13315_v16 = vpop.f32.mrf.mxu2 }
 0x606   : > { %v13305_v49 = vadd.f32 %v5878_v51, %v5787_v44  ;;  %v10000_v51 = vld [vmem:[#allocation3 + $0x8] sm:$0xff] }
 0x608   : > { %v5906_v19 = vmax.f32 %v13209_v10, %v13305_v49 }
 0x609   : > { %v5961_v46 = vpop.f32.mrf.mxu3 }
 0x60a   : > { %v13310_v8 = vadd.f32 %v5961_v46, %v13240_v23 }
 0x60b   : > { %v5772_v5 = vpop.f32.mrf.mxu0 }
 0x60c   : > { %v5788_v55 = vadd.f32 %v5772_v5, %v13243_v20  ;;  %6257 = vmatmul.bf16.gmra.mxu1 %v12936_v52  ;;  %v6032_v52 = vpop.f32.mrf.mxu1 }
 0x60d   : > { %6301 = vmatmul.bf16.gmra.mxu2 %v13062_v2  ;;  %v6116_v2 = vpop.f32.mrf.mxu2 }
 0x60e   : > { %v13317_v61 = vadd.f32 %v5881_v31, %v5788_v55  ;;  %6208 = vmatmul.bf16.gmra.mxu0 %v10000_v51  ;;  %6325 = vmatmul.bf16.vlgmr.msra.gmra.mxu3 %v13134_v29 }
 0x610   : > { %v5907_v23 = vmax.f32 %v13217_v28, %v13317_v61  ;;  %v9747_v28 = vld [vmem:[%s13649_s5 + $0x38] sm:$0xff] }
 0x611   : > { %v5964_v4 = vpop.f32.mrf.mxu3  ;;  %6488 = vmatpush.bf16.msrb.mxu0 %v9747_v28 }
 0x612   : > { %v5965_v13 = vadd.f32 %v5964_v4, %v13251_v35 }
 0x613   : > { %v5774_v22 = vpop.f32.mrf.mxu0 }
 0x614   : > { %v5789_v20 = vadd.f32 %v5774_v22, %v13249_v37  ;;  %v6034_v37 = vpop.f32.mrf.mxu1 }
 0x615   : > { %v6118_v46 = vpop.f32.mrf.mxu2 }
 0x616   : > { %v13324_v21 = vadd.f32 %v5883_v0, %v5789_v20 }
 0x618   : > { %v5908_v31 = vmax.f32 %v13228_v39, %v13324_v21 }
 0x619   : > { %v5966_v47 = vpop.f32.mrf.mxu3 }
 0x61a   : > { %v13329_v57 = vadd.f32 %v5966_v47, %v13264_v3 }
 0x61b   : > { %v5777_v29 = vpop.f32.mrf.mxu0 }
 0x61c   : > { %v5790_v56 = vadd.f32 %v5777_v29, %v13261_v11 }
 0x61d   : > { %v6121_v22 = vpop.f32.mrf.mxu2 }
 0x61e   : > { %v13332_v44 = vadd.f32 %v5886_v42, %v5790_v56  ;;  %6213 = vmatmul.bf16.gmra.mxu0 %v12795_v38  ;;  %6330 = vmatmul.bf16.gmra.mxu3 %v13157_v32  ;;  %v6037_v42 = vpop.f32.mrf.mxu1 }
 0x620   : > { %v5909_v35 = vmax.f32 %v13235_v27, %v13332_v44  ;;  %v9774_v27 = vld [vmem:[%s13649_s5 + $0xf8] sm:$0xff] }
 0x621   : > { %v5969_v0 = vpop.f32.mrf.mxu3  ;;  %v9756_v44 = vld [vmem:[%s13649_s5 + $0x78] sm:$0xff]  ;;  %6758 = vmatpush.bf16.msrb.mxu3 %v9774_v27 }
 0x622   : > { %v5970_v5 = vadd.f32 %v5969_v0, %v5935_v25  ;;  %6580 = vmatpush.bf16.msrb.mxu1 %v9756_v44  ;;  %v9761_v44 = vld [vmem:[%s13649_s5 + $0x98] sm:$0xff] }
 0x623   : > { %v5779_v55 = vpop.f32.mrf.mxu0 }
 0x624   : > { %v5791_v3 = vadd.f32 %v5779_v55, %v13271_v9 }
 0x625   : > { %v6123_v55 = vpop.f32.mrf.mxu2 }
 0x626   : > { %v13339_v51 = vadd.f32 %v5888_v14, %v5791_v3  ;;  %v6039_v14 = vpop.f32.mrf.mxu1 }
 0x628   : > { %v5910_v11 = vmax.f32 %v13246_v6, %v13339_v51  ;;  %v9742_v6 = vld [vmem:[%s13649_s5 + $0x10] sm:$0xff] }
 0x629   : > { %v5971_v4 = vpop.f32.mrf.mxu3 }
 0x62b   : > { %v5988_v38 = vpop.f32.mrf.mxu0 }
 0x62c   : > { %v6013_v32 = vadd.f32 %v5988_v38, %v13281_v17 }
 0x62d   : > { %v6126_v58 = vpop.f32.mrf.mxu2 }
 0x62e   : > { %v6057_v20 = vadd.f32 %v6032_v52, %v6013_v32  ;;  %6218 = vmatmul.bf16.gmra.mxu0 %v12830_v24  ;;  %6335 = vmatmul.bf16.gmra.mxu3 %v13176_v30 }
 0x630   : > { %v6141_v25 = vadd.f32 %v6116_v2, %v6057_v20  ;;  %v6042_v2 = vpop.f32.mrf.mxu1 }
 0x631   : > { %v5974_v47 = vpop.f32.mrf.mxu3 }
 0x632   : > { %v5975_v29 = vadd.f32 %v5974_v47, %v5940_v26  ;;  %v13349_v9 = vmax.f32 %v5901_v59, %v6141_v25 }
 0x633   : > { %v5990_v56 = vpop.f32.mrf.mxu0 }
 0x634   : > { %v6014_v0 = vadd.f32 %v5990_v56, %v13291_v1 }
 0x636   : > { %v6058_v3 = vadd.f32 %v6034_v37, %v6014_v0 }
 0x638   : > { %v6142_v17 = vadd.f32 %v6118_v46, %v6058_v3 }
 0x639   : > { %v5976_v52 = vpop.f32.mrf.mxu3 }
 0x63a   : > { %v13355_v24 = vmax.f32 %v5902_v7, %v6142_v17  ;;  %v5977_v39 = vadd.f32 %v5976_v52, %v13315_v16  ;;  %v9765_v16 = vld [vmem:[%s13649_s5 + $0xb8] sm:$0xff] }
 0x63b   : > { %v5993_v30 = vpop.f32.mrf.mxu0  ;;  %6669 = vmatpush.bf16.msrb.mxu2 %v9765_v16 }
 0x63c   : > { %v6015_v26 = vadd.f32 %v5993_v30, %v13302_v40  ;;  %v6044_v40 = vpop.f32.mrf.mxu1 }
 0x63e   : > { %v6059_v63 = vadd.f32 %v6037_v42, %v6015_v26  ;;  %6223 = vmatmul.bf16.gmra.mxu0 %v12880_v15  ;;  %6340 = vmatmul.bf16.gmra.mxu3 %v13196_v60  ;;  %v6128_v15 = vpop.f32.mrf.mxu2 }
 0x640   : > { %v6143_v59 = vadd.f32 %v6121_v22, %v6059_v63 }
 0x641   : > { %v13360_v1 = vpop.f32.mrf.mxu3 }
 0x642   : > { %v13365_v37 = vmax.f32 %v5903_v48, %v6143_v59 }
 0x643   : > { %v5995_v43 = vpop.f32.mrf.mxu0 }
 0x644   : > { %v6016_v36 = vadd.f32 %v5995_v43, %v13310_v8  ;;  %v6047_v41 = vpop.f32.mrf.mxu1  ;;  %v9745_v43 = vld [vmem:[%s13649_s5 + $0x28] sm:$0xff] }
 0x646   : > { %v6060_v7 = vadd.f32 %v6039_v14, %v6016_v36  ;;  %v6131_v25 = vpop.f32.mrf.mxu2 }
 0x648   : > { %v6144_v46 = vadd.f32 %v6123_v55, %v6060_v7  ;;  %v5972_v55 = vadd.f32 %v5971_v4, %v13288_v45 }
 0x649   : > { %v13368_v42 = vpop.f32.mrf.mxu3 }
 0x64a   : > { %v13373_v60 = vmax.f32 %v5904_v34, %v6144_v46 }
 0x64b   : > { %v5998_v38 = vpop.f32.mrf.mxu0 }
 0x64c   : > { %v6017_v22 = vadd.f32 %v5998_v38, %v5965_v13  ;;  %v6049_v13 = vpop.f32.mrf.mxu1 }
 0x64e   : > { %v6061_v32 = vadd.f32 %v6042_v2, %v6017_v22  ;;  %6345 = vmatmul.bf16.gmra.mxu3 %v13214_v12  ;;  %v6133_v0 = vpop.f32.mrf.mxu2  ;;  %v9743_v22 = vld [vmem:[%s13649_s5 + $0x18] sm:$0xff] }
 0x650   : > { %v6145_v18 = vadd.f32 %v6126_v58, %v6061_v32  ;;  %v9746_v58 = vld [vmem:[%s13649_s5 + $0x30] sm:$0xff] }
 0x651   : > { %v13376_v48 = vpop.f32.mrf.mxu3  ;;  %6489 = vmatpush.bf16.msrb.mxu0 %v9746_v58  ;;  %v13495_v58 = vld [vmem:[%s13648_s4] ss:$0 sm:$0xff] }
 0x652   : > { %v13381_v8 = vmax.f32 %v5905_v53, %v6145_v18  ;;  %v9755_v18 = vld [vmem:[%s13649_s5 + $0x70] sm:$0xff] }
 0x653   : > { %v6000_v20 = vpop.f32.mrf.mxu0  ;;  %6581 = vmatpush.bf16.msrb.mxu1 %v9755_v18 }
 0x654   : > { %v6018_v50 = vadd.f32 %v6000_v20, %v13329_v57  ;;  %v6052_v10 = vpop.f32.mrf.mxu1  ;;  %v9773_v20 = vld [vmem:[%s13649_s5 + $0xf0] sm:$0xff] }
 0x655   : > { %6490 = vmatpush.bf16.msrb.mxu0 %v9745_v43  ;;  %6759 = vmatpush.bf16.msrb.mxu3 %v9773_v20 }
 0x656   : > { %v6062_v54 = vadd.f32 %v6044_v40, %v6018_v50  ;;  %v9744_v40 = vld [vmem:[%s13649_s5 + $0x20] sm:$0xff]  ;;  %v9754_v50 = vld [vmem:[%s13649_s5 + $0x68] sm:$0xff] }
 0x657   : > { %6582 = vmatpush.bf16.msrb.mxu1 %v9754_v50 }
 0x658   : > { %v6146_v34 = vadd.f32 %v6128_v15, %v6062_v54 }
 0x659   : > { %v13384_v47 = vpop.f32.mrf.mxu3  ;;  %6491 = vmatpush.bf16.msrb.mxu0 %v9744_v40 }
 0x65a   : > { %v13389_v12 = vmax.f32 %v5906_v19, %v6146_v34  ;;  %v6136_v19 = vpop.f32.mrf.mxu2 }
 0x65b   : > { %v6003_v14 = vpop.f32.mrf.mxu0 }
 0x65c   : > { %v6019_v56 = vadd.f32 %v6003_v14, %v5970_v5 }
 0x65d   : > { %6492 = vmatpush.bf16.msrb.mxu0 %v9743_v22 }
 0x65e   : > { %v6063_v33 = vadd.f32 %v6047_v41, %v6019_v56  ;;  %v9764_v41 = vld [vmem:[%s13649_s5 + $0xb0] sm:$0xff]  ;;  %v9740_v56 = vld [vmem:[%s13649_s5] sm:$0xff] }
 0x65f   : > { %6670 = vmatpush.bf16.msrb.mxu2 %v9764_v41 }
 0x660   : > { %v6147_v62 = vadd.f32 %v6131_v25, %v6063_v33  ;;  %v9741_v25 = vld [vmem:[%s13649_s5 + $0x8] sm:$0xff] }
 0x661   : > { %v13391_v53 = vpop.f32.mrf.mxu3  ;;  %6493 = vmatpush.bf16.msrb.mxu0 %v9742_v6 }
 0x662   : > { %v13397_v57 = vmax.f32 %v5907_v23, %v6147_v62  ;;  %v6054_v23 = vpop.f32.mrf.mxu1  ;;  %v6138_v21 = vpop.f32.mrf.mxu2 }
 0x663   : > { %v6005_v3 = vpop.f32.mrf.mxu0 }
 0x664   : > { %v6020_v17 = vadd.f32 %v6005_v3, %v5972_v55  ;;  %v9752_v55 = vld [vmem:[%s13649_s5 + $0x58] sm:$0xff] }
 0x665   : > { %6494 = vmatpush.bf16.msrb.mxu0 %v9741_v25 }
 0x666   : > { %v6064_v49 = vadd.f32 %v6049_v13, %v6020_v17  ;;  %v9763_v13 = vld [vmem:[%s13649_s5 + $0xa8] sm:$0xff] }
 0x667   : > { %6671 = vmatpush.bf16.msrb.mxu2 %v9763_v13 }
 0x668   : > { %v6148_v30 = vadd.f32 %v6133_v0, %v6064_v49  ;;  %v9753_v0 = vld [vmem:[%s13649_s5 + $0x60] sm:$0xff] }
 0x669   : > { %v13399_v26 = vpop.f32.mrf.mxu3  ;;  %6495 = vmatpush.bf16.msrb.mxu0 %v9740_v56  ;;  %6583 = vmatpush.bf16.msrb.mxu1 %v9753_v0  ;;  %v9769_v56 = vld [vmem:[%s13649_s5 + $0xd0] sm:$0xff] }
 0x66a   : > { %v13404_v5 = vmax.f32 %v5908_v31, %v6148_v30  ;;  %v6282_v38 = vpop.f32.mrf.mxu2 }
 0x66b   : > { %v6008_v2 = vpop.f32.mrf.mxu0 }
 0x66c   : > { %v6021_v45 = vadd.f32 %v6008_v2, %v5975_v29 }
 0x66d   : > { %6584 = vmatpush.bf16.msrb.mxu1 %v9752_v55 }
 0x66e   : > { %v6065_v61 = vadd.f32 %v6052_v10, %v6021_v45 }
 0x670   : > { %v6149_v4 = vadd.f32 %v6136_v19, %v6065_v61  ;;  %v9751_v19 = vld [vmem:[%s13649_s5 + $0x50] sm:$0xff]  ;;  %v9772_v61 = vld [vmem:[%s13649_s5 + $0xe8] sm:$0xff] }
 0x671   : > { %v13409_v63 = vpop.f32.mrf.mxu3  ;;  %6585 = vmatpush.bf16.msrb.mxu1 %v9751_v19  ;;  %6760 = vmatpush.bf16.msrb.mxu3 %v9772_v61 }
 0x672   : > { %v13418_v31 = vmax.f32 %v5909_v35, %v6149_v4  ;;  %v6238_v35 = vpop.f32.mrf.mxu1  ;;  %v6284_v54 = vpop.f32.mrf.mxu2 }
 0x673   : > { %v6010_v29 = vpop.f32.mrf.mxu0 }
 0x674   : > { %v6022_v59 = vadd.f32 %v6010_v29, %v5977_v39 }
 0x676   : > { %v6066_v36 = vadd.f32 %v6054_v23, %v6022_v59  ;;  %v9749_v59 = vld [vmem:[%s13649_s5 + $0x40] sm:$0xff] }
 0x678   : > { %v6150_v7 = vadd.f32 %v6138_v21, %v6066_v36  ;;  %v9771_v21 = vld [vmem:[%s13649_s5 + $0xe0] sm:$0xff] }
 0x679   : > { %v13432_v52 = vpop.f32.mrf.mxu3  ;;  %6761 = vmatpush.bf16.msrb.mxu3 %v9771_v21  ;;  %v9768_v21 = vld [vmem:[%s13649_s5 + $0xc8] sm:$0xff] }
 0x67a   : > { %v13440_v46 = vmax.f32 %v5910_v11, %v6150_v7  ;;  %v6240_v51 = vpop.f32.mrf.mxu1  ;;  %v6287_v3 = vpop.f32.mrf.mxu2 }
 0x67b   : > { %v6204_v15 = vpop.f32.mrf.mxu0 }
 0x67c   : > { %v6205_v34 = vadd.f32 %v6204_v15, %v13360_v1 }
 0x67e   : > { %v6263_v62 = vadd.f32 %v6238_v35, %v6205_v34 }
 0x680   : > { %v6307_v10 = vadd.f32 %v6282_v38, %v6263_v62 }
 0x681   : > { %v13445_v32 = vpop.f32.mrf.mxu3 }
 0x682   : > { %v6243_v1 = vpop.f32.mrf.mxu1 }
 0x683   : > { %v6206_v11 = vpop.f32.mrf.mxu0 }
 0x684   : > { %v6207_v17 = vadd.f32 %v6206_v11, %v13368_v42  ;;  %v9750_v42 = vld [vmem:[%s13649_s5 + $0x48] sm:$0xff] }
 0x685   : > { %6586 = vmatpush.bf16.msrb.mxu1 %v9750_v42 }
 0x686   : > { %v6264_v45 = vadd.f32 %v6240_v51, %v6207_v17  ;;  %v9760_v51 = vld [vmem:[%s13649_s5 + $0x90] sm:$0xff]  ;;  %v9783_v17 = vld [vmem:[%s13649_s5 + $0x138] sm:$0xff] }
 0x687   : > { %6847 = vmatpush.bf16.msra.mxu0 %v9783_v17 }
 0x688   : > { %v6308_v39 = vadd.f32 %v6284_v54, %v6264_v45  ;;  %v9759_v54 = vld [vmem:[%s13649_s5 + $0x88] sm:$0xff] }
 0x689   : > { %v13469_v14 = vpop.f32.mrf.mxu3  ;;  %6587 = vmatpush.bf16.msrb.mxu1 %v9749_v59 }
 0x68a   : > { %v6245_v23 = vpop.f32.mrf.mxu1 }
 0x68b   : > { %v6209_v33 = vpop.f32.mrf.mxu0 }
 0x68c   : > { %v6210_v4 = vadd.f32 %v6209_v33, %v13376_v48  ;;  %v6289_v48 = vpop.f32.mrf.mxu2 }
 0x68e   : > { %v6265_v7 = vadd.f32 %v6243_v1, %v6210_v4 }
 0x690   : > { %v6309_v22 = vadd.f32 %v6287_v3, %v6265_v7  ;;  %v9780_v7 = vld [vmem:[%s13649_s5 + $0x120] sm:$0xff] }
 0x691   : > { %v6326_v49 = vpop.f32.mrf.mxu3 }
 0x692   : > { %v6351_v30 = vadd.f32 %v6326_v49, %v6307_v10  ;;  %v6248_v18 = vpop.f32.mrf.mxu1 }
 0x693   : > { %v6211_v2 = vpop.f32.mrf.mxu0 }
 0x694   : > { %v6361_v28 = vmax.f32 %v13349_v9, %v6351_v30  ;;  %v9762_v9 = vld [vmem:[%s13649_s5 + $0xa0] sm:$0xff]  ;;  %v6212_v15 = vadd.f32 %v6211_v2, %v13384_v47  ;;  %v6292_v41 = vpop.f32.mrf.mxu2  ;;  %v9770_v47 = vld [vmem:[%s13649_s5 + $0xd8] sm:$0xff] }
 0x695   : > { %6672 = vmatpush.bf16.msrb.mxu2 %v9762_v9  ;;  %6762 = vmatpush.bf16.msrb.mxu3 %v9770_v47 }
 0x696   : > { %v6375_v16 = vadd.f32 %v13495_v58, %v6361_v28  ;;  %v6266_v20 = vadd.f32 %v6245_v23, %v6212_v15 }
 0x698   : > { %v6385_v40 = vmax.f32 %v6375_v16, 0.0  ;;  %v6310_v13 = vadd.f32 %v6289_v48, %v6266_v20 }
 0x699   : > { %v6328_v29 = vpop.f32.mrf.mxu3  ;;  %6673 = vmatpush.bf16.msrb.mxu2 %v9761_v44  ;;  %6763 = vmatpush.bf16.msrb.mxu3 %v9769_v56 }
 0x69a   : > { %v6352_v43 = vadd.f32 %v6328_v29, %v6308_v39  ;;  %v6250_v62 = vpop.f32.mrf.mxu1 }
 0x69b   : > { %v6214_v36 = vpop.f32.mrf.mxu0 }
 0x69c   : > { %v6362_v27 = vmax.f32 %v13355_v24, %v6352_v43  ;;  %v6215_v34 = vadd.f32 %v6214_v36, %v13391_v53  ;;  %v6294_v10 = vpop.f32.mrf.mxu2 }
 0x69d   : > { %6674 = vmatpush.bf16.msrb.mxu2 %v9760_v51  ;;  %6764 = vmatpush.bf16.msrb.mxu3 %v9768_v21 }
 0x69e   : > { %v6376_v35 = vadd.f32 %v13495_v58, %v6362_v27  ;;  %v6267_v55 = vadd.f32 %v6248_v18, %v6215_v34 }
 0x6a0   : > { %v6386_v38 = vmax.f32 %v6376_v35, 0.0  ;;  %v6311_v28 = vadd.f32 %v6292_v41, %v6267_v55 }
 0x6a1   : > { %v6331_v6 = vpop.f32.mrf.mxu3  ;;  %6675 = vmatpush.bf16.msrb.mxu2 %v9759_v54  ;;  %v9776_v54 = vld [vmem:[%s13649_s5 + $0x100] sm:$0xff] }
 0x6a2   : > { %v9873_v11 = vpack.c.bf16 %v6386_v38, %v6385_v40  ;;  %v6353_v24 = vadd.f32 %v6331_v6, %v6309_v22  ;;  %v6253_v9 = vpop.f32.mrf.mxu1  ;;  %v9779_v40 = vld [vmem:[%s13649_s5 + $0x118] sm:$0xff] }
 0x6a3   : > { %v6216_v50 = vpop.f32.mrf.mxu0 }
 0x6a4   : > { %9874 = vst [vmem:[#allocation4] sm:$0xff] %v9873_v11   ;;  %v6363_v25 = vmax.f32 %v13365_v37, %v6353_v24  ;;  %v9758_v37 = vld [vmem:[%s13649_s5 + $0x80] sm:$0xff]  ;;  %v6217_v2 = vadd.f32 %v6216_v50, %v13399_v26  ;;  %v9781_v26 = vld [vmem:[%s13649_s5 + $0x128] sm:$0xff]  ;;  %v6297_v29 = vpop.f32.mrf.mxu2  ;;  %v9778_v24 = vld [vmem:[%s13649_s5 + $0x110] sm:$0xff] }
 0x6a5   : > { %6676 = vmatpush.bf16.msrb.mxu2 %v9758_v37 }
 0x6a6   : > { %v6377_v3 = vadd.f32 %v13495_v58, %v6363_v25  ;;  %v6268_v4 = vadd.f32 %v6250_v62, %v6217_v2 }
 0x6a8   : > { %v6387_v30 = vmax.f32 %v6377_v3, 0.0  ;;  %v6312_v48 = vadd.f32 %v6294_v10, %v6268_v4 }
 0x6a9   : > { %v6333_v0 = vpop.f32.mrf.mxu3 }
 0x6aa   : > { %v6354_v33 = vadd.f32 %v6333_v0, %v6310_v13  ;;  %v6255_v38 = vpop.f32.mrf.mxu1 }
 0x6ab   : > { %v9739_v1 = vld [vmem:[#allocation4] sm:$0xff]  ;;  %v6219_v19 = vpop.f32.mrf.mxu0 }
 0x6ac   : > { %v6364_v53 = vmax.f32 %v13373_v60, %v6354_v33  ;;  %6496 = vmatmul.bf16.vlgmr.msrb.gmra.mxu0 %v9739_v1  ;;  %v9782_v60 = vld [vmem:[%s13649_s5 + $0x130] sm:$0xff]  ;;  %v6220_v59 = vadd.f32 %v6219_v19, %v13409_v63  ;;  %v6299_v20 = vpop.f32.mrf.mxu2 }
 0x6ad   : > { %6848 = vmatpush.bf16.msra.mxu0 %v9782_v60 }
 0x6ae   : > { %v6378_v49 = vadd.f32 %v13495_v58, %v6364_v53  ;;  %v6269_v44 = vadd.f32 %v6253_v9, %v6220_v59 }
 0x6b0   : > { %v6388_v45 = vmax.f32 %v6378_v49, 0.0  ;;  %v6313_v51 = vadd.f32 %v6297_v29, %v6269_v44  ;;  %v9798_v44 = vld [vmem:[%s13653_s9 + $0x30] sm:$0xff] }
 0x6b1   : > { %v6336_v61 = vpop.f32.mrf.mxu3  ;;  %6849 = vmatpush.bf16.msra.mxu0 %v9781_v26 }
 0x6b2   : > { %v9878_v42 = vpack.c.bf16 %v6388_v45, %v6387_v30  ;;  %v6355_v23 = vadd.f32 %v6336_v61, %v6311_v28  ;;  %v6258_v56 = vpop.f32.mrf.mxu1 }
 0x6b3   : > { %v6221_v43 = vpop.f32.mrf.mxu0 }
 0x6b4   : > { %9907 = vst [vmem:[#allocation4 + $0x8] sm:$0xff] %v9878_v42   ;;  %v6365_v39 = vmax.f32 %v13381_v8, %v6355_v23  ;;  %v9767_v8 = vld [vmem:[%s13649_s5 + $0xc0] sm:$0xff]  ;;  %v6222_v18 = vadd.f32 %v6221_v43, %v13432_v52  ;;  %v9777_v52 = vld [vmem:[%s13649_s5 + $0x108] sm:$0xff]  ;;  %v6302_v55 = vpop.f32.mrf.mxu2  ;;  %v9787_v43 = vld [vmem:[%s13651_s7 + $0x18] sm:$0xff] }
 0x6b5   : > { %6765 = vmatpush.bf16.msrb.mxu3 %v9767_v8  ;;  %6850 = vmatpush.bf16.msra.mxu0 %v9780_v7  ;;  %v9785_v8 = vld [vmem:[%s13651_s7 + $0x8] sm:$0xff]  ;;  %v9784_v7 = vld [vmem:[%s13651_s7] sm:$0xff] }
 0x6b6   : > { %v6379_v35 = vadd.f32 %v13495_v58, %v6365_v39  ;;  %v6270_v47 = vadd.f32 %v6255_v38, %v6222_v18  ;;  %v9796_v38 = vld [vmem:[%s13653_s9 + $0x20] sm:$0xff] }
 0x6b7   : > { %v9922_v18 = vld [vmem:[%s13650_s6] ss:$0 sm:$0xff] }
 0x6b8   : > { %v6389_v22 = vmax.f32 %v6379_v35, 0.0  ;;  %v6314_v13 = vadd.f32 %v6299_v20, %v6270_v47  ;;  %v9797_v35 = vld [vmem:[%s13653_s9 + $0x28] sm:$0xff] }
 0x6b9   : > { %v6338_v36 = vpop.f32.mrf.mxu3  ;;  %6851 = vmatpush.bf16.msra.mxu0 %v9779_v40 }
 0x6ba   : > { %v6356_v16 = vadd.f32 %v6338_v36, %v6312_v48  ;;  %v6260_v45 = vpop.f32.mrf.mxu1  ;;  %v9790_v48 = vld [vmem:[%s13651_s7 + $0x30] sm:$0xff] }
 0x6bb   : > { %v9748_v27 = vld [vmem:[#allocation4 + $0x8] sm:$0xff]  ;;  %v6224_v25 = vpop.f32.mrf.mxu0  ;;  %v9786_v36 = vld [vmem:[%s13651_s7 + $0x10] sm:$0xff] }
 0x6bc   : > { %v6366_v63 = vmax.f32 %v13389_v12, %v6356_v16  ;;  %6588 = vmatmul.bf16.vlgmr.msrb.gmra.mxu1 %v9748_v27  ;;  %v6225_v34 = vadd.f32 %v6224_v25, %v13445_v32  ;;  %v6304_v60 = vpop.f32.mrf.mxu2  ;;  %v9799_v27 = vld [vmem:[%s13653_s9 + $0x38] sm:$0xff] }
 0x6bd   : > { %6852 = vmatpush.bf16.msra.mxu0 %v9778_v24  ;;  %7019 = vmatpush.bf16.msra.mxu2 %v9799_v27 }
 0x6be   : > { %v6380_v15 = vadd.f32 %v13495_v58, %v6366_v63  ;;  %v6271_v62 = vadd.f32 %v6258_v56, %v6225_v34 }
 0x6c0   : > { %v6390_v6 = vmax.f32 %v6380_v15, 0.0  ;;  %v6315_v49 = vadd.f32 %v6302_v55, %v6271_v62  ;;  %v9795_v62 = vld [vmem:[%s13653_s9 + $0x18] sm:$0xff]  ;;  %v9792_v55 = vld [vmem:[%s13653_s9] sm:$0xff] }
 0x6c1   : > { %v6341_v11 = vpop.f32.mrf.mxu3  ;;  %6853 = vmatpush.bf16.msra.mxu0 %v9777_v52  ;;  %7020 = vmatpush.bf16.msra.mxu2 %v9798_v44 }
 0x6c2   : > { %v9883_v12 = vpack.c.bf16 %v6390_v6, %v6389_v22  ;;  %v6357_v41 = vadd.f32 %v6341_v11, %v6313_v51 }
 0x6c3   : > { %v6226_v3 = vpop.f32.mrf.mxu0 }
 0x6c4   : > { %9908 = vst [vmem:[#allocation4 + $0x18] sm:$0xff] %v9883_v12   ;;  %v6367_v50 = vmax.f32 %v13397_v57, %v6357_v41  ;;  %v6227_v10 = vadd.f32 %v6226_v3, %v13469_v14 }
 0x6c5   : > { %6854 = vmatpush.bf16.msra.mxu0 %v9776_v54  ;;  %7021 = vmatpush.bf16.msra.mxu2 %v9797_v35 }
 0x6c6   : > { %v6381_v57 = vadd.f32 %v13495_v58, %v6367_v50  ;;  %v6272_v28 = vadd.f32 %v6260_v45, %v6227_v10 }
 0x6c8   : > { %v6391_v17 = vmax.f32 %v6381_v57, 0.0  ;;  %v6316_v42 = vadd.f32 %v6304_v60, %v6272_v28  ;;  %v9794_v57 = vld [vmem:[%s13653_s9 + $0x10] sm:$0xff] }
 0x6c9   : > { %v6343_v0 = vpop.f32.mrf.mxu3  ;;  %7022 = vmatpush.bf16.msra.mxu2 %v9796_v38 }
 0x6ca   : > { %v6358_v37 = vadd.f32 %v6343_v0, %v6314_v13 }
 0x6cb   : > { %v9757_v33 = vld [vmem:[#allocation4 + $0x18] sm:$0xff] }
 0x6cc   : > { %v6368_v1 = vmax.f32 %v13404_v5, %v6358_v37  ;;  %6677 = vmatmul.bf16.vlgmr.msrb.gmra.mxu2 %v9757_v33 }
 0x6cd   : > { %7023 = vmatpush.bf16.msra.mxu2 %v9795_v62 }
 0x6ce   : > { %v6382_v53 = vadd.f32 %v13495_v58, %v6368_v1  ;;  %v9793_v1 = vld [vmem:[%s13653_s9 + $0x8] sm:$0xff] }
 0x6d0   : > { %v6392_v32 = vmax.f32 %v6382_v53, 0.0  ;;  %v9923_v53 = vld [vmem:[%s13652_s8] ss:$0 sm:$0xff] }
 0x6d1   : > { %v6346_v19 = vpop.f32.mrf.mxu3  ;;  %7024 = vmatpush.bf16.msra.mxu2 %v9794_v57 }
 0x6d2   : > { %v9888_v30 = vpack.c.bf16 %v6392_v32, %v6391_v17  ;;  %v6359_v2 = vadd.f32 %v6346_v19, %v6315_v49 }
 0x6d4   : > { %9909 = vst [vmem:[#allocation4 + $0x20] sm:$0xff] %v9888_v30   ;;  %v6369_v61 = vmax.f32 %v13418_v31, %v6359_v2  ;;  %v9791_v31 = vld [vmem:[%s13651_s7 + $0x38] sm:$0xff]  ;;  %v9924_v2 = vld [vmem:[%s13654_s10] ss:$0 sm:$0xff] }
 0x6d5   : > { %6934 = vmatpush.bf16.msra.mxu1 %v9791_v31  ;;  %7025 = vmatpush.bf16.msra.mxu2 %v9793_v1 }
 0x6d6   : > { %v6383_v5 = vadd.f32 %v13495_v58, %v6369_v61 }
 0x6d8   : > { %v6393_v21 = vmax.f32 %v6383_v5, 0.0 }
 0x6d9   : > { %v6348_v23 = vpop.f32.mrf.mxu3  ;;  %6935 = vmatpush.bf16.msra.mxu1 %v9790_v48  ;;  %7026 = vmatpush.bf16.msra.mxu2 %v9792_v55 }
 0x6da   : > { %v6360_v4 = vadd.f32 %v6348_v23, %v6316_v42 }
 0x6db   : > { %v9766_v39 = vld [vmem:[#allocation4 + $0x20] sm:$0xff] }
 0x6dc   : > { %v6370_v9 = vmax.f32 %v13440_v46, %v6360_v4  ;;  %6766 = vmatmul.bf16.vlgmr.msrb.gmra.mxu3 %v9766_v39  ;;  %v9789_v46 = vld [vmem:[%s13651_s7 + $0x28] sm:$0xff] }
 0x6dd   : > { %6936 = vmatpush.bf16.msra.mxu1 %v9789_v46 }
 0x6de   : > { %v6384_v14 = vadd.f32 %v13495_v58, %v6370_v9  ;;  %v9788_v58 = vld [vmem:[%s13651_s7 + $0x20] sm:$0xff] }
 0x6e0   : > { %v6394_v26 = vmax.f32 %v6384_v14, 0.0 }
 0x6e1   : > { %6937 = vmatpush.bf16.msra.mxu1 %v9788_v58 }
 0x6e2   : > { %v9893_v29 = vpack.c.bf16 %v6394_v26, %v6393_v21 }
 0x6e4   : > { %9910 = vst [vmem:[#allocation4 + $0x10] sm:$0xff] %v9893_v29  }
 0x6e5   : > { %6938 = vmatpush.bf16.msra.mxu1 %v9787_v43 }
 0x6e9   : > { %6939 = vmatpush.bf16.msra.mxu1 %v9786_v36 }
 0x6eb   : > { %v9775_v59 = vld [vmem:[#allocation4 + $0x10] sm:$0xff] }
 0x6ec   : > { %6855 = vmatmul.bf16.vlgmr.msra.gmra.mxu0 %v9775_v59 }
 0x6ed   : > { %6940 = vmatpush.bf16.msra.mxu1 %v9785_v8 }
 0x6f1   : > { %6941 = vmatpush.bf16.msra.mxu1 %v9784_v7 }
 0x729   : > { %v6497_v16 = vpop.f32.mrf.mxu0 }
 0x72a   : > { %v6505_v6 = vadd.f32 %v9922_v18, %v6497_v16 }
 0x731   : > { %v6499_v40 = vpop.f32.mrf.mxu0 }
 0x732   : > { %v6506_v24 = vadd.f32 %v9922_v18, %v6499_v40 }
 0x739   : > { %v6589_v63 = vpop.f32.mrf.mxu1 }
 0x73a   : > { %v6594_v12 = vadd.f32 %v6589_v63, %v6505_v6 }
 0x741   : > { %v6591_v51 = vpop.f32.mrf.mxu1 }
 0x742   : > { %v6595_v20 = vadd.f32 %v6591_v51, %v6506_v24 }
 0x74f   : > { %v6678_v15 = vpop.f32.mrf.mxu2 }
 0x750   : > { %v6683_v25 = vadd.f32 %v6678_v15, %v6594_v12 }
 0x757   : > { %v6680_v41 = vpop.f32.mrf.mxu2 }
 0x758   : > { %v6684_v50 = vadd.f32 %v6680_v41, %v6595_v20 }
 0x75f   : > { %v6767_v22 = vpop.f32.mrf.mxu3 }
 0x760   : > { %v6772_v52 = vadd.f32 %v6767_v22, %v6683_v25 }
 0x767   : > { %v6769_v47 = vpop.f32.mrf.mxu3 }
 0x768   : > { %v6773_v54 = vadd.f32 %v6769_v47, %v6684_v50 }
 0x769   : > { %v6856_v11 = vpop.f32.mrf.mxu0 }
 0x76a   : > { %v6861_v34 = vadd.f32 %v6856_v11, %v6772_v52 }
 0x76c   : > { %v6863_v0 = vmax.f32 %v6861_v34, 0.0 }
 0x771   : > { %v6858_v13 = vpop.f32.mrf.mxu0 }
 0x772   : > { %v6862_v56 = vadd.f32 %v6858_v13, %v6773_v54 }
 0x774   : > { %v6864_v37 = vmax.f32 %v6862_v56, 0.0 }
 0x776   : > { %v6865_v33 = vpack.c.bf16 %v6864_v37, %v6863_v0 }
 0x778   : > { %6942 = vmatmul.bf16.vlgmr.msra.gmra.mxu1 %v6865_v33 }
 0x7f5   : > { %v6943_v3 = vpop.f32.mrf.mxu1 }
 0x7f6   : > { %v6944_v17 = vadd.f32 %v9923_v53, %v6943_v3 }
 0x7f8   : > { %v6948_v49 = vmax.f32 %v6944_v17, 0.0 }
 0x7fd   : > { %v6945_v10 = vpop.f32.mrf.mxu1 }
 0x7fe   : > { %v6946_v32 = vadd.f32 %v9923_v53, %v6945_v10 }
 0x800   : > { %v6949_v19 = vmax.f32 %v6946_v32, 0.0 }
 0x802   : > { %v6950_v30 = vpack.c.bf16 %v6949_v19, %v6948_v49 }
 0x804   : > { %7027 = vmatmul.bf16.vlgmr.msra.gmra.mxu2 %v6950_v30 }
 0x887   : > { %v7028_v45 = vpop.f32.mrf.mxu2 }
 0x888   : > { %v7029_v28 = vadd.f32 %v9924_v2, %v7028_v45 }
 0x88a   : > { %7033 = vst [vmem:[%s386_s29] sm:$0xff] %v7029_v28 }
 0x88f   : > { %v7030_v61 = vpop.f32.mrf.mxu2 }
 0x890   : > { %v7031_v5 = vadd.f32 %v9924_v2, %v7030_v61 }
 0x892   : > { %7034 = vst [vmem:[%s386_s29 + $0x8] sm:$0xff] %v7031_v5 }
 0x893 PF: > { %s21_s17 = sadd.s32 1, %s10007_s17  }
 0x894   : > { %p18_p5 = scmp.ge.s32.totalorder %s21_s17, 4  }
 0x896   :  { %20 = sbr.rel (!%p18_p5) target bundleno = 1 (0x1), region = 119 }

</bundles_post_ra>
